<compile_context>
chip_gen: v5e
topology: v5e:2x2
jax: 0.10.0
libtpu: 0.0.40
codegen_flags: <defaults>
</compile_context>

<pallas_src>
import jax
import jax.numpy as jnp
from jax import lax
from jax.experimental import pallas as pl
from jax.experimental.pallas import tpu as pltpu


# ----------------------------- hardware budgets -----------------------------

def _vmem_budgets():
    """Generation-aware VMEM budgets (v5e/v6e: 128 MiB phys, v7x: 64 MiB)."""
    cap = 64 * 1024 * 1024                   # conservative (v7x-safe) fallback
    try:
        cap = int(pltpu.get_tpu_info().vmem_capacity_bytes)
    except Exception:
        pass
    vmem_limit = (cap * 3) // 4              # scoped-VMEM limit handed to Mosaic
    tile_budget = (vmem_limit * 3) // 5      # per-step working set target
    return int(vmem_limit), int(tile_budget)


def _pick_tile(m_pad, per_tm_bytes, fixed_bytes, budget):
    """Largest multiple-of-128 divisor of m_pad whose working set fits budget.

    m_pad is always a multiple of 128, so 128 is a legal clamped fallback
    (no full-extent VMEM-blowing fallback any more).
    """
    best = 128
    t = 128
    while t <= m_pad:
        if m_pad % t == 0 and fixed_bytes + per_tm_bytes * t <= budget:
            best = t
        t += 128
    return int(best)


# ------------------------------ host helpers -------------------------------

def _fold_conv_weight(w):
    """(Cout, Cin, 3, 3, 3) -> (Cout, 27*Cin); K order = (kd, kh, kw, cin)."""
    cout, cin = w.shape[:2]
    return jnp.transpose(w, (0, 2, 3, 4, 1)).reshape(cout, 27 * cin)


def _halo_windows(x_flat, m_pad, tm, off):
    """(N, C, M) -> (N, m_pad//tm, C, tm + 2*off) overlapping flat halo windows.

    Only a ~(1 + 2*off/tm)x slab (vs. the old 27x im2col); the 27 conv taps are
    rebuilt in-kernel as shifted slices of each window.
    """
    n, c, m = x_flat.shape
    xp = jnp.pad(x_flat, ((0, 0), (0, 0), (off, off + (m_pad - m))))
    mt = m_pad // tm
    idx = (jnp.arange(mt, dtype=jnp.int32)[:, None] * tm
           + jnp.arange(tm + 2 * off, dtype=jnp.int32)[None, :])
    win = jnp.take(xp, idx, axis=2)              # (N, C, MT, WIN)
    return jnp.transpose(win, (0, 2, 1, 3))      # (N, MT, C, WIN)


def _spatial_index_table(dsz, hsz, wsz, m_pad):
    """(3, m_pad) int32 table of (d, h, w) per flat output position."""
    pos = jnp.arange(m_pad, dtype=jnp.int32)
    d = pos // (hsz * wsz)
    h = (pos // wsz) % hsz
    w = pos % wsz
    return jnp.stack([d, h, w], axis=0)


def _bn_affine(psum, psq, gamma, beta, count, eps):
    """Combine per-(sample, tile) partial sums into BN scale/shift."""
    tot = jnp.sum(psum, axis=(0, 1))[:, 0]
    tot_sq = jnp.sum(psq, axis=(0, 1))[:, 0]
    mean = tot / count
    # NOTE: single-pass E[y^2]-E[y]^2 in f32 (fine at these magnitudes; a
    # two-pass / Welford accumulation would be more robust for huge values).
    var = tot_sq / count - mean * mean            # biased, as BN uses for norm
    scale = gamma * lax.rsqrt(var + eps)
    shift = beta - mean * scale
    c = gamma.shape[0]
    return scale.reshape(c, 1), shift.reshape(c, 1)


# ----------------------------- Pallas kernels -------------------------------

def _make_conv_kernel(*, cin, tm, off, dsz, hsz, wsz, fuse_in_act, mask_tail):
    """Conv3x3x3 (as one folded-K MXU matmul) + bias + per-tile BN partials.

    If fuse_in_act: applies the previous subunit's BN(scale/shift)+PReLU(alpha)
    to the halo window before building the taps (subunit-1 epilogue fused into
    subunit-2's conv input path).
    """
    hw = hsz * wsz

    def kernel(*refs):
        if fuse_in_act:
            (win_ref, idx_ref, wf_ref, b_ref, sc_ref, sh_ref, al_ref,
             y_ref, sum_ref, sq_ref, col_ref, act_ref) = refs
        else:
            (win_ref, idx_ref, wf_ref, b_ref,
             y_ref, sum_ref, sq_ref, col_ref) = refs

        if fuse_in_act:
            v = win_ref[0, 0] * sc_ref[...] + sh_ref[...]
            act_ref[...] = jnp.where(v >= 0.0, v, al_ref[0] * v)

        d_idx = idx_ref[0:1, :]          # (1, tm) int32
        h_idx = idx_ref[1:2, :]
        w_idx = idx_ref[2:3, :]

        # Build the folded (27*Cin, tm) im2col operand in VMEM from 27 shifted
        # static slices of the halo window; out-of-bounds taps are zero-masked.
        for kd in range(3):
            for kh in range(3):
                for kw in range(3):
                    t = (kd * 3 + kh) * 3 + kw
                    s = off + (kd - 1) * hw + (kh - 1) * wsz + (kw - 1)
                    if fuse_in_act:
                        tap = act_ref[:, s:s + tm]
                    else:
                        tap = win_ref[0, 0, :, s:s + tm]
                    conds = []
                    if kd == 0:
                        conds.append(d_idx >= 1)
                    if kd == 2:
                        conds.append(d_idx < dsz - 1)
                    if kh == 0:
                        conds.append(h_idx >= 1)
                    if kh == 2:
                        conds.append(h_idx < hsz - 1)
                    if kw == 0:
                        conds.append(w_idx >= 1)
                    if kw == 2:
                        conds.append(w_idx < wsz - 1)
                    if conds:
                        msk = conds[0]
                        for c in conds[1:]:
                            msk = jnp.logical_and(msk, c)
                        tap = tap * msk.astype(jnp.float32)
                    col_ref[t * cin:(t + 1) * cin, :] = tap

        y = jnp.dot(wf_ref[...], col_ref[...],
                    preferred_element_type=jnp.float32) + b_ref[...]
        y_ref[0] = y

        if mask_tail:                         # exclude padded tail from stats
            valid = (d_idx < dsz).astype(jnp.float32)
            y = y * valid
        sum_ref[0, 0] = jnp.sum(y, axis=-1, keepdims=True)
        sq_ref[0, 0] = jnp.sum(y * y, axis=-1, keepdims=True)

    return kernel


def _bn_prelu_res_kernel(y_ref, sc_ref, sh_ref, al_ref, x_ref, wr_ref, br_ref,
                         o_ref):
    """BN normalize + PReLU + fused 1x1x1 residual conv + add (lane-dense)."""
    v = y_ref[0] * sc_ref[...] + sh_ref[...]
    act = jnp.where(v >= 0.0, v, al_ref[0] * v)
    res = jnp.dot(wr_ref[...], x_ref[0], preferred_element_type=jnp.float32)
    o_ref[0] = act + res + br_ref[...]


# ------------------------------ pallas_call wrappers ------------------------

def _conv_bn_stats(win, idx, w_fold, bias, in_act=None, *,
                   tm, dsz, hsz, wsz, off, m_pad, vmem_limit):
    n, mt, cin, wlen = win.shape
    cout = w_fold.shape[0]
    fuse = in_act is not None
    kernel = _make_conv_kernel(cin=cin, tm=tm, off=off, dsz=dsz, hsz=hsz,
                               wsz=wsz, fuse_in_act=fuse,
                               mask_tail=(m_pad != dsz * hsz * wsz))

    in_specs = [
        pl.BlockSpec((1, 1, cin, wlen), lambda i, j: (i, j, 0, 0)),
        pl.BlockSpec((3, tm), lambda i, j: (0, j)),
        pl.BlockSpec((cout, 27 * cin), lambda i, j: (0, 0)),
        pl.BlockSpec((cout, 1), lambda i, j: (0, 0)),
    ]
    args = [win, idx, w_fold, bias]
    scratch = [pltpu.VMEM((27 * cin, tm), jnp.float32)]
    if fuse:
        scale, shift, alpha = in_act
        in_specs += [
            pl.BlockSpec((cin, 1), lambda i, j: (0, 0)),
            pl.BlockSpec((cin, 1), lambda i, j: (0, 0)),
            pl.BlockSpec(memory_space=pltpu.MemorySpace.SMEM),
        ]
        args += [scale, shift, alpha]
        scratch.append(pltpu.VMEM((cin, wlen), jnp.float32))

    return pl.pallas_call(
        kernel,
        out_shape=(
            jax.ShapeDtypeStruct((n, cout, m_pad), jnp.float32),
            jax.ShapeDtypeStruct((n, mt, cout, 1), jnp.float32),
            jax.ShapeDtypeStruct((n, mt, cout, 1), jnp.float32),
        ),
        grid_spec=pltpu.PrefetchScalarGridSpec(
            num_scalar_prefetch=0,
            grid=(n, mt),
            in_specs=in_specs,
            out_specs=[
                pl.BlockSpec((1, cout, tm), lambda i, j: (i, 0, j)),
                pl.BlockSpec((1, 1, cout, 1), lambda i, j: (i, j, 0, 0)),
                pl.BlockSpec((1, 1, cout, 1), lambda i, j: (i, j, 0, 0)),
            ],
            scratch_shapes=scratch,
        ),
        compiler_params=pltpu.CompilerParams(
            dimension_semantics=("parallel", "parallel"),
            vmem_limit_bytes=vmem_limit),
    )(*args)


def _bn_prelu_residual(y, scale, shift, alpha, x_flat, wr, br, *, tm,
                       vmem_limit):
    n, cout, m_pad = y.shape
    cin = x_flat.shape[1]
    return pl.pallas_call(
        _bn_prelu_res_kernel,
        out_shape=jax.ShapeDtypeStruct((n, cout, m_pad), jnp.float32),
        grid_spec=pltpu.PrefetchScalarGridSpec(
            num_scalar_prefetch=0,
            grid=(n, m_pad // tm),
            in_specs=[
                pl.BlockSpec((1, cout, tm), lambda i, j: (i, 0, j)),
                pl.BlockSpec((cout, 1), lambda i, j: (0, 0)),
                pl.BlockSpec((cout, 1), lambda i, j: (0, 0)),
                pl.BlockSpec(memory_space=pltpu.MemorySpace.SMEM),
                pl.BlockSpec((1, cin, tm), lambda i, j: (i, 0, j)),
                pl.BlockSpec((cout, cin), lambda i, j: (0, 0)),
                pl.BlockSpec((cout, 1), lambda i, j: (0, 0)),
            ],
            out_specs=pl.BlockSpec((1, cout, tm), lambda i, j: (i, 0, j)),
        ),
        input_output_aliases={0: 0},
        compiler_params=pltpu.CompilerParams(
            dimension_semantics=("parallel", "parallel"),
            vmem_limit_bytes=vmem_limit),
    )(y, scale, shift, alpha, x_flat, wr, br)


# ------------------------------ forward pass -------------------------------

def res_block_pallas(x, p, *, eps=1e-5):
    """ResBlock forward.  x: (N, Cin, D, H, W) f32 -> (N, Cout, D, H, W)."""
    n, cin, dsz, hsz, wsz = x.shape
    cout = p["w1"].shape[0]
    m = dsz * hsz * wsz
    m_pad = ((m + 127) // 128) * 128
    off = hsz * wsz + wsz + 1           # flat halo: one plane + one row + one
    count = jnp.float32(n * m)

    vmem_limit, budget = _vmem_budgets()

    def conv_tile(ci, co, fuse):
        per_tm = 4 * (2 * ci + 6 + 27 * ci + 2 * co + (ci if fuse else 0))
        fixed = 4 * (2 * ci * 2 * off + 2 * co * 27 * ci
                     + (ci * 2 * off if fuse else 0)) + 64 * 1024
        return _pick_tile(m_pad, per_tm, fixed, budget)

    tm1 = conv_tile(cin, cout, False)                 # subunit-1 conv tile
    tm2 = conv_tile(cout, cout, True)                 # subunit-2 conv tile
    tm3 = _pick_tile(m_pad, 4 * (4 * cout + 2 * cin), 64 * 1024, budget)

    idx = _spatial_index_table(dsz, hsz, wsz, m_pad)
    x_flat = x.reshape(n, cin, m)
    x_flat_p = (jnp.pad(x_flat, ((0, 0), (0, 0), (0, m_pad - m)))
                if m_pad != m else x_flat)

    # ---- subunit 1: conv3x3 + BN batch-stat partials ----
    win1 = _halo_windows(x_flat, m_pad, tm1, off)
    y1, s1, q1 = _conv_bn_stats(
        win1, idx, _fold_conv_weight(p["w1"]), p["b1"].reshape(cout, 1),
        tm=tm1, dsz=dsz, hsz=hsz, wsz=wsz, off=off, m_pad=m_pad,
        vmem_limit=vmem_limit)
    scale1, shift1 = _bn_affine(s1, q1, p["g1"], p["beta1"], count, eps)

    # ---- subunit 2: (fused BN1 + PReLU1) -> conv3x3 + BN stat partials ----
    win2 = _halo_windows(y1, m_pad, tm2, off)
    y2, s2, q2 = _conv_bn_stats(
        win2, idx, _fold_conv_weight(p["w2"]), p["b2"].reshape(cout, 1),
        in_act=(scale1, shift1, p["alpha1"].reshape(1,)),
        tm=tm2, dsz=dsz, hsz=hsz, wsz=wsz, off=off, m_pad=m_pad,
        vmem_limit=vmem_limit)
    scale2, shift2 = _bn_affine(s2, q2, p["g2"], p["beta2"], count, eps)

    # ---- BN2 + PReLU2 + fused 1x1x1 residual conv + add ----
    out_flat = _bn_prelu_residual(
        y2, scale2, shift2, p["alpha2"].reshape(1,), x_flat_p,
        p["wr"].reshape(cout, cin), p["br"].reshape(cout, 1),
        tm=tm3, vmem_limit=vmem_limit)

    if m_pad != m:
        out_flat = out_flat[:, :, :m]
    return out_flat.reshape(n, cout, dsz, hsz, wsz)   # already NCDHW


# ------------------------------- reference ---------------------------------

def res_block_ref(x, p, eps=1e-5):
    def conv(h_, w_, b_, pad):
        y = lax.conv_general_dilated(
            h_, w_, (1, 1, 1), ((pad, pad),) * 3,
            dimension_numbers=("NCDHW", "OIDHW", "NCDHW"),
            precision=lax.Precision.HIGHEST)
        return y + b_[None, :, None, None, None]

    def bn(y, g, b):
        mu = y.mean(axis=(0, 2, 3, 4), keepdims=True)
        var = y.var(axis=(0, 2, 3, 4), keepdims=True)   # biased
        return (y - mu) * lax.rsqrt(var + eps) * g[None, :, None, None, None] \
            + b[None, :, None, None, None]

    def prelu(y, a):
        return jnp.where(y >= 0, y, a * y)

    h = prelu(bn(conv(x, p["w1"], p["b1"], 1), p["g1"], p["beta1"]),
              p["alpha1"][0])
    h = prelu(bn(conv(h, p["w2"], p["b2"], 1), p["g2"], p["beta2"]),
              p["alpha2"][0])
    res = conv(x, p["wr"], p["br"], 0)
    return h + res


# --------------------------------- main -------------------------------------

if __name__ == "__main__":
    N, CIN, COUT, D, H, W = 2, 4, 8, 8, 8, 8

    key = jax.random.PRNGKey(0)
    keys = jax.random.split(key, 4)
    x = jax.random.normal(keys[0], (N, CIN, D, H, W), dtype=jnp.float32)

    def conv_init(k, co, ci, ks):
        fan_in = ci * ks ** 3
        bound = 1.0 / jnp.sqrt(jnp.float32(fan_in))
        kw_, kb_ = jax.random.split(k)
        w_ = jax.random.uniform(kw_, (co, ci, ks, ks, ks), jnp.float32,
                                -bound, bound)
        b_ = jax.random.uniform(kb_, (co,), jnp.float32, -bound, bound)
        return w_, b_

    w1, b1 = conv_init(keys[1], COUT, CIN, 3)      # subunit 1 conv
    w2, b2 = conv_init(keys[2], COUT, COUT, 3)     # subunit 2 conv
    wr, br = conv_init(keys[3], COUT, CIN, 1)      # residual 1x1x1 conv

    params = dict(
        w1=w1, b1=b1, g1=jnp.ones((COUT,), jnp.float32),
        beta1=jnp.zeros((COUT,), jnp.float32),
        alpha1=jnp.full((1,), 0.2, jnp.float32),   # PReLU init=0.2
        w2=w2, b2=b2, g2=jnp.ones((COUT,), jnp.float32),
        beta2=jnp.zeros((COUT,), jnp.float32),
        alpha2=jnp.full((1,), 0.2, jnp.float32),
        wr=wr, br=br,
    )

    fwd = jax.jit(res_block_pallas)
    out = jax.block_until_ready(fwd(x, params))

    ref = res_block_ref(x, params)
    assert out.shape == (N, COUT, D, H, W)
    max_err = float(jnp.max(jnp.abs(out - ref)))
    assert jnp.allclose(out, ref, atol=1e-3, rtol=1e-3), max_err

    print("KERNEL_OK")
</pallas_src>

<mosaic_0001>
module attributes {stable_mosaic.version = 11 : i64} {
  func.func @kernel(%arg0: i32, %arg1: i32, %arg2: memref<1x1x4x658xf32, #tpu.memory_space<vmem>>, %arg3: memref<3x512xi32, #tpu.memory_space<vmem>>, %arg4: memref<8x108xf32, #tpu.memory_space<vmem>>, %arg5: memref<8x1xf32, #tpu.memory_space<vmem>>, %arg6: memref<1x8x512xf32, #tpu.memory_space<vmem>>, %arg7: memref<1x1x8x1xf32, #tpu.memory_space<vmem>>, %arg8: memref<1x1x8x1xf32, #tpu.memory_space<vmem>>, %arg9: memref<108x512xf32, #tpu.memory_space<vmem>>) attributes {dimension_semantics = [#tpu.dimension_semantics<parallel>, #tpu.dimension_semantics<parallel>], iteration_bounds = array<i64: 2, 1>, scalar_prefetch = 0 : i64, scratch_operands = 1 : i64, tpu.core_type = #tpu.core_type<tc>, window_params = [{transform_indices = @transform_0, window_bounds = array<i64: 1, 1, 4, 658>}, {transform_indices = @transform_1, window_bounds = array<i64: 3, 512>}, {pipeline_mode = #tpu.pipeline_mode<synchronous>, transform_indices = @transform_2, window_bounds = array<i64: 8, 108>}, {pipeline_mode = #tpu.pipeline_mode<synchronous>, transform_indices = @transform_3, window_bounds = array<i64: 8, 1>}, {transform_indices = @transform_4, window_bounds = array<i64: 1, 8, 512>}, {transform_indices = @transform_5, window_bounds = array<i64: 1, 1, 8, 1>}, {transform_indices = @transform_6, window_bounds = array<i64: 1, 1, 8, 1>}]} {
    %c0 = arith.constant 0 : index
    %c0_0 = arith.constant 0 : index
    %0 = vector.load %arg3[%c0, %c0_0] : memref<3x512xi32, #tpu.memory_space<vmem>>, vector<1x512xi32>
    %c1 = arith.constant 1 : index
    %c0_1 = arith.constant 0 : index
    %1 = vector.load %arg3[%c1, %c0_1] : memref<3x512xi32, #tpu.memory_space<vmem>>, vector<1x512xi32>
    %c2 = arith.constant 2 : index
    %c0_2 = arith.constant 0 : index
    %2 = vector.load %arg3[%c2, %c0_2] : memref<3x512xi32, #tpu.memory_space<vmem>>, vector<1x512xi32>
    %c0_3 = arith.constant 0 : index
    %c0_4 = arith.constant 0 : index
    %c0_5 = arith.constant 0 : index
    %c0_6 = arith.constant 0 : index
    %3 = vector.load %arg2[%c0_3, %c0_4, %c0_5, %c0_6] : memref<1x1x4x658xf32, #tpu.memory_space<vmem>>, vector<1x1x4x512xf32>
    %4 = vector.shape_cast %3 : vector<1x1x4x512xf32> to vector<4x512xf32>
    %c1_i32 = arith.constant 1 : i32
    %5 = vector.broadcast %c1_i32 : i32 to vector<1x512xi32>
    %6 = arith.cmpi sge, %0, %5 : vector<1x512xi32>
    %c1_i32_7 = arith.constant 1 : i32
    %7 = vector.broadcast %c1_i32_7 : i32 to vector<1x512xi32>
    %8 = arith.cmpi sge, %1, %7 : vector<1x512xi32>
    %c1_i32_8 = arith.constant 1 : i32
    %9 = vector.broadcast %c1_i32_8 : i32 to vector<1x512xi32>
    %10 = arith.cmpi sge, %2, %9 : vector<1x512xi32>
    %11 = arith.andi %6, %8 : vector<1x512xi1>
    %12 = arith.andi %11, %10 : vector<1x512xi1>
    %13 = arith.extui %12 : vector<1x512xi1> to vector<1x512xi32>
    %14 = arith.sitofp %13 : vector<1x512xi32> to vector<1x512xf32>
    %15 = vector.broadcast %14 : vector<1x512xf32> to vector<4x512xf32>
    %16 = arith.mulf %4, %15 : vector<4x512xf32>
    %c0_9 = arith.constant 0 : index
    %c0_10 = arith.constant 0 : index
    %17 = vector.load %arg9[%c0_9, %c0_10] : memref<108x512xf32, #tpu.memory_space<vmem>>, vector<4x512xf32>
    tpu.vector_store %arg9[%c0_9, %c0_10], %16 {strides = array<i32>} : memref<108x512xf32, #tpu.memory_space<vmem>>, vector<4x512xf32>,
    %c0_11 = arith.constant 0 : index
    %c0_12 = arith.constant 0 : index
    %c0_13 = arith.constant 0 : index
    %c1_14 = arith.constant 1 : index
    %18 = vector.load %arg2[%c0_11, %c0_12, %c0_13, %c1_14] : memref<1x1x4x658xf32, #tpu.memory_space<vmem>>, vector<1x1x4x512xf32>
    %19 = vector.shape_cast %18 : vector<1x1x4x512xf32> to vector<4x512xf32>
    %c1_i32_15 = arith.constant 1 : i32
    %20 = vector.broadcast %c1_i32_15 : i32 to vector<1x512xi32>
    %21 = arith.cmpi sge, %0, %20 : vector<1x512xi32>
    %c1_i32_16 = arith.constant 1 : i32
    %22 = vector.broadcast %c1_i32_16 : i32 to vector<1x512xi32>
    %23 = arith.cmpi sge, %1, %22 : vector<1x512xi32>
    %24 = arith.andi %21, %23 : vector<1x512xi1>
    %25 = arith.extui %24 : vector<1x512xi1> to vector<1x512xi32>
    %26 = arith.sitofp %25 : vector<1x512xi32> to vector<1x512xf32>
    %27 = vector.broadcast %26 : vector<1x512xf32> to vector<4x512xf32>
    %28 = arith.mulf %19, %27 : vector<4x512xf32>
    %c4 = arith.constant 4 : index
    %c0_17 = arith.constant 0 : index
    %29 = vector.load %arg9[%c4, %c0_17] : memref<108x512xf32, #tpu.memory_space<vmem>>, vector<4x512xf32>
    tpu.vector_store %arg9[%c4, %c0_17], %28 {strides = array<i32>} : memref<108x512xf32, #tpu.memory_space<vmem>>, vector<4x512xf32>,
    %c0_18 = arith.constant 0 : index
    %c0_19 = arith.constant 0 : index
    %c0_20 = arith.constant 0 : index
    %c2_21 = arith.constant 2 : index
    %30 = vector.load %arg2[%c0_18, %c0_19, %c0_20, %c2_21] : memref<1x1x4x658xf32, #tpu.memory_space<vmem>>, vector<1x1x4x512xf32>
    %31 = vector.shape_cast %30 : vector<1x1x4x512xf32> to vector<4x512xf32>
    %c1_i32_22 = arith.constant 1 : i32
    %32 = vector.broadcast %c1_i32_22 : i32 to vector<1x512xi32>
    %33 = arith.cmpi sge, %0, %32 : vector<1x512xi32>
    %c1_i32_23 = arith.constant 1 : i32
    %34 = vector.broadcast %c1_i32_23 : i32 to vector<1x512xi32>
    %35 = arith.cmpi sge, %1, %34 : vector<1x512xi32>
    %c7_i32 = arith.constant 7 : i32
    %36 = vector.broadcast %c7_i32 : i32 to vector<1x512xi32>
    %37 = arith.cmpi slt, %2, %36 : vector<1x512xi32>
    %38 = arith.andi %33, %35 : vector<1x512xi1>
    %39 = arith.andi %38, %37 : vector<1x512xi1>
    %40 = arith.extui %39 : vector<1x512xi1> to vector<1x512xi32>
    %41 = arith.sitofp %40 : vector<1x512xi32> to vector<1x512xf32>
    %42 = vector.broadcast %41 : vector<1x512xf32> to vector<4x512xf32>
    %43 = arith.mulf %31, %42 : vector<4x512xf32>
    %c8 = arith.constant 8 : index
    %c0_24 = arith.constant 0 : index
    %44 = vector.load %arg9[%c8, %c0_24] : memref<108x512xf32, #tpu.memory_space<vmem>>, vector<4x512xf32>
    tpu.vector_store %arg9[%c8, %c0_24], %43 {strides = array<i32>} : memref<108x512xf32, #tpu.memory_space<vmem>>, vector<4x512xf32>,
    %c0_25 = arith.constant 0 : index
    %c0_26 = arith.constant 0 : index
    %c0_27 = arith.constant 0 : index
    %c8_28 = arith.constant 8 : index
    %45 = vector.load %arg2[%c0_25, %c0_26, %c0_27, %c8_28] : memref<1x1x4x658xf32, #tpu.memory_space<vmem>>, vector<1x1x4x512xf32>
    %46 = vector.shape_cast %45 : vector<1x1x4x512xf32> to vector<4x512xf32>
    %c1_i32_29 = arith.constant 1 : i32
    %47 = vector.broadcast %c1_i32_29 : i32 to vector<1x512xi32>
    %48 = arith.cmpi sge, %0, %47 : vector<1x512xi32>
    %c1_i32_30 = arith.constant 1 : i32
    %49 = vector.broadcast %c1_i32_30 : i32 to vector<1x512xi32>
    %50 = arith.cmpi sge, %2, %49 : vector<1x512xi32>
    %51 = arith.andi %48, %50 : vector<1x512xi1>
    %52 = arith.extui %51 : vector<1x512xi1> to vector<1x512xi32>
    %53 = arith.sitofp %52 : vector<1x512xi32> to vector<1x512xf32>
    %54 = vector.broadcast %53 : vector<1x512xf32> to vector<4x512xf32>
    %55 = arith.mulf %46, %54 : vector<4x512xf32>
    %c12 = arith.constant 12 : index
    %c0_31 = arith.constant 0 : index
    %56 = vector.load %arg9[%c12, %c0_31] : memref<108x512xf32, #tpu.memory_space<vmem>>, vector<4x512xf32>
    tpu.vector_store %arg9[%c12, %c0_31], %55 {strides = array<i32>} : memref<108x512xf32, #tpu.memory_space<vmem>>, vector<4x512xf32>,
    %c0_32 = arith.constant 0 : index
    %c0_33 = arith.constant 0 : index
    %c0_34 = arith.constant 0 : index
    %c9 = arith.constant 9 : index
    %57 = vector.load %arg2[%c0_32, %c0_33, %c0_34, %c9] : memref<1x1x4x658xf32, #tpu.memory_space<vmem>>, vector<1x1x4x512xf32>
    %58 = vector.shape_cast %57 : vector<1x1x4x512xf32> to vector<4x512xf32>
    %c1_i32_35 = arith.constant 1 : i32
    %59 = vector.broadcast %c1_i32_35 : i32 to vector<1x512xi32>
    %60 = arith.cmpi sge, %0, %59 : vector<1x512xi32>
    %61 = arith.extui %60 : vector<1x512xi1> to vector<1x512xi32>
    %62 = arith.sitofp %61 : vector<1x512xi32> to vector<1x512xf32>
    %63 = vector.broadcast %62 : vector<1x512xf32> to vector<4x512xf32>
    %64 = arith.mulf %58, %63 : vector<4x512xf32>
    %c16 = arith.constant 16 : index
    %c0_36 = arith.constant 0 : index
    %65 = vector.load %arg9[%c16, %c0_36] : memref<108x512xf32, #tpu.memory_space<vmem>>, vector<4x512xf32>
    tpu.vector_store %arg9[%c16, %c0_36], %64 {strides = array<i32>} : memref<108x512xf32, #tpu.memory_space<vmem>>, vector<4x512xf32>,
    %c0_37 = arith.constant 0 : index
    %c0_38 = arith.constant 0 : index
    %c0_39 = arith.constant 0 : index
    %c10 = arith.constant 10 : index
    %66 = vector.load %arg2[%c0_37, %c0_38, %c0_39, %c10] : memref<1x1x4x658xf32, #tpu.memory_space<vmem>>, vector<1x1x4x512xf32>
    %67 = vector.shape_cast %66 : vector<1x1x4x512xf32> to vector<4x512xf32>
    %c1_i32_40 = arith.constant 1 : i32
    %68 = vector.broadcast %c1_i32_40 : i32 to vector<1x512xi32>
    %69 = arith.cmpi sge, %0, %68 : vector<1x512xi32>
    %c7_i32_41 = arith.constant 7 : i32
    %70 = vector.broadcast %c7_i32_41 : i32 to vector<1x512xi32>
    %71 = arith.cmpi slt, %2, %70 : vector<1x512xi32>
    %72 = arith.andi %69, %71 : vector<1x512xi1>
    %73 = arith.extui %72 : vector<1x512xi1> to vector<1x512xi32>
    %74 = arith.sitofp %73 : vector<1x512xi32> to vector<1x512xf32>
    %75 = vector.broadcast %74 : vector<1x512xf32> to vector<4x512xf32>
    %76 = arith.mulf %67, %75 : vector<4x512xf32>
    %c20 = arith.constant 20 : index
    %c0_42 = arith.constant 0 : index
    %77 = vector.load %arg9[%c20, %c0_42] : memref<108x512xf32, #tpu.memory_space<vmem>>, vector<4x512xf32>
    tpu.vector_store %arg9[%c20, %c0_42], %76 {strides = array<i32>} : memref<108x512xf32, #tpu.memory_space<vmem>>, vector<4x512xf32>,
    %c0_43 = arith.constant 0 : index
    %c0_44 = arith.constant 0 : index
    %c0_45 = arith.constant 0 : index
    %c16_46 = arith.constant 16 : index
    %78 = vector.load %arg2[%c0_43, %c0_44, %c0_45, %c16_46] : memref<1x1x4x658xf32, #tpu.memory_space<vmem>>, vector<1x1x4x512xf32>
    %79 = vector.shape_cast %78 : vector<1x1x4x512xf32> to vector<4x512xf32>
    %c1_i32_47 = arith.constant 1 : i32
    %80 = vector.broadcast %c1_i32_47 : i32 to vector<1x512xi32>
    %81 = arith.cmpi sge, %0, %80 : vector<1x512xi32>
    %c7_i32_48 = arith.constant 7 : i32
    %82 = vector.broadcast %c7_i32_48 : i32 to vector<1x512xi32>
    %83 = arith.cmpi slt, %1, %82 : vector<1x512xi32>
    %c1_i32_49 = arith.constant 1 : i32
    %84 = vector.broadcast %c1_i32_49 : i32 to vector<1x512xi32>
    %85 = arith.cmpi sge, %2, %84 : vector<1x512xi32>
    %86 = arith.andi %81, %83 : vector<1x512xi1>
    %87 = arith.andi %86, %85 : vector<1x512xi1>
    %88 = arith.extui %87 : vector<1x512xi1> to vector<1x512xi32>
    %89 = arith.sitofp %88 : vector<1x512xi32> to vector<1x512xf32>
    %90 = vector.broadcast %89 : vector<1x512xf32> to vector<4x512xf32>
    %91 = arith.mulf %79, %90 : vector<4x512xf32>
    %c24 = arith.constant 24 : index
    %c0_50 = arith.constant 0 : index
    %92 = vector.load %arg9[%c24, %c0_50] : memref<108x512xf32, #tpu.memory_space<vmem>>, vector<4x512xf32>
    tpu.vector_store %arg9[%c24, %c0_50], %91 {strides = array<i32>} : memref<108x512xf32, #tpu.memory_space<vmem>>, vector<4x512xf32>,
    %c0_51 = arith.constant 0 : index
    %c0_52 = arith.constant 0 : index
    %c0_53 = arith.constant 0 : index
    %c17 = arith.constant 17 : index
    %93 = vector.load %arg2[%c0_51, %c0_52, %c0_53, %c17] : memref<1x1x4x658xf32, #tpu.memory_space<vmem>>, vector<1x1x4x512xf32>
    %94 = vector.shape_cast %93 : vector<1x1x4x512xf32> to vector<4x512xf32>
    %c1_i32_54 = arith.constant 1 : i32
    %95 = vector.broadcast %c1_i32_54 : i32 to vector<1x512xi32>
    %96 = arith.cmpi sge, %0, %95 : vector<1x512xi32>
    %c7_i32_55 = arith.constant 7 : i32
    %97 = vector.broadcast %c7_i32_55 : i32 to vector<1x512xi32>
    %98 = arith.cmpi slt, %1, %97 : vector<1x512xi32>
    %99 = arith.andi %96, %98 : vector<1x512xi1>
    %100 = arith.extui %99 : vector<1x512xi1> to vector<1x512xi32>
    %101 = arith.sitofp %100 : vector<1x512xi32> to vector<1x512xf32>
    %102 = vector.broadcast %101 : vector<1x512xf32> to vector<4x512xf32>
    %103 = arith.mulf %94, %102 : vector<4x512xf32>
    %c28 = arith.constant 28 : index
    %c0_56 = arith.constant 0 : index
    %104 = vector.load %arg9[%c28, %c0_56] : memref<108x512xf32, #tpu.memory_space<vmem>>, vector<4x512xf32>
    tpu.vector_store %arg9[%c28, %c0_56], %103 {strides = array<i32>} : memref<108x512xf32, #tpu.memory_space<vmem>>, vector<4x512xf32>,
    %c0_57 = arith.constant 0 : index
    %c0_58 = arith.constant 0 : index
    %c0_59 = arith.constant 0 : index
    %c18 = arith.constant 18 : index
    %105 = vector.load %arg2[%c0_57, %c0_58, %c0_59, %c18] : memref<1x1x4x658xf32, #tpu.memory_space<vmem>>, vector<1x1x4x512xf32>
    %106 = vector.shape_cast %105 : vector<1x1x4x512xf32> to vector<4x512xf32>
    %c1_i32_60 = arith.constant 1 : i32
    %107 = vector.broadcast %c1_i32_60 : i32 to vector<1x512xi32>
    %108 = arith.cmpi sge, %0, %107 : vector<1x512xi32>
    %c7_i32_61 = arith.constant 7 : i32
    %109 = vector.broadcast %c7_i32_61 : i32 to vector<1x512xi32>
    %110 = arith.cmpi slt, %1, %109 : vector<1x512xi32>
    %c7_i32_62 = arith.constant 7 : i32
    %111 = vector.broadcast %c7_i32_62 : i32 to vector<1x512xi32>
    %112 = arith.cmpi slt, %2, %111 : vector<1x512xi32>
    %113 = arith.andi %108, %110 : vector<1x512xi1>
    %114 = arith.andi %113, %112 : vector<1x512xi1>
    %115 = arith.extui %114 : vector<1x512xi1> to vector<1x512xi32>
    %116 = arith.sitofp %115 : vector<1x512xi32> to vector<1x512xf32>
    %117 = vector.broadcast %116 : vector<1x512xf32> to vector<4x512xf32>
    %118 = arith.mulf %106, %117 : vector<4x512xf32>
    %c32 = arith.constant 32 : index
    %c0_63 = arith.constant 0 : index
    %119 = vector.load %arg9[%c32, %c0_63] : memref<108x512xf32, #tpu.memory_space<vmem>>, vector<4x512xf32>
    tpu.vector_store %arg9[%c32, %c0_63], %118 {strides = array<i32>} : memref<108x512xf32, #tpu.memory_space<vmem>>, vector<4x512xf32>,
    %c0_64 = arith.constant 0 : index
    %c0_65 = arith.constant 0 : index
    %c0_66 = arith.constant 0 : index
    %c64 = arith.constant 64 : index
    %120 = vector.load %arg2[%c0_64, %c0_65, %c0_66, %c64] : memref<1x1x4x658xf32, #tpu.memory_space<vmem>>, vector<1x1x4x512xf32>
    %121 = vector.shape_cast %120 : vector<1x1x4x512xf32> to vector<4x512xf32>
    %c1_i32_67 = arith.constant 1 : i32
    %122 = vector.broadcast %c1_i32_67 : i32 to vector<1x512xi32>
    %123 = arith.cmpi sge, %1, %122 : vector<1x512xi32>
    %c1_i32_68 = arith.constant 1 : i32
    %124 = vector.broadcast %c1_i32_68 : i32 to vector<1x512xi32>
    %125 = arith.cmpi sge, %2, %124 : vector<1x512xi32>
    %126 = arith.andi %123, %125 : vector<1x512xi1>
    %127 = arith.extui %126 : vector<1x512xi1> to vector<1x512xi32>
    %128 = arith.sitofp %127 : vector<1x512xi32> to vector<1x512xf32>
    %129 = vector.broadcast %128 : vector<1x512xf32> to vector<4x512xf32>
    %130 = arith.mulf %121, %129 : vector<4x512xf32>
    %c36 = arith.constant 36 : index
    %c0_69 = arith.constant 0 : index
    %131 = vector.load %arg9[%c36, %c0_69] : memref<108x512xf32, #tpu.memory_space<vmem>>, vector<4x512xf32>
    tpu.vector_store %arg9[%c36, %c0_69], %130 {strides = array<i32>} : memref<108x512xf32, #tpu.memory_space<vmem>>, vector<4x512xf32>,
    %c0_70 = arith.constant 0 : index
    %c0_71 = arith.constant 0 : index
    %c0_72 = arith.constant 0 : index
    %c65 = arith.constant 65 : index
    %132 = vector.load %arg2[%c0_70, %c0_71, %c0_72, %c65] : memref<1x1x4x658xf32, #tpu.memory_space<vmem>>, vector<1x1x4x512xf32>
    %133 = vector.shape_cast %132 : vector<1x1x4x512xf32> to vector<4x512xf32>
    %c1_i32_73 = arith.constant 1 : i32
    %134 = vector.broadcast %c1_i32_73 : i32 to vector<1x512xi32>
    %135 = arith.cmpi sge, %1, %134 : vector<1x512xi32>
    %136 = arith.extui %135 : vector<1x512xi1> to vector<1x512xi32>
    %137 = arith.sitofp %136 : vector<1x512xi32> to vector<1x512xf32>
    %138 = vector.broadcast %137 : vector<1x512xf32> to vector<4x512xf32>
    %139 = arith.mulf %133, %138 : vector<4x512xf32>
    %c40 = arith.constant 40 : index
    %c0_74 = arith.constant 0 : index
    %140 = vector.load %arg9[%c40, %c0_74] : memref<108x512xf32, #tpu.memory_space<vmem>>, vector<4x512xf32>
    tpu.vector_store %arg9[%c40, %c0_74], %139 {strides = array<i32>} : memref<108x512xf32, #tpu.memory_space<vmem>>, vector<4x512xf32>,
    %c0_75 = arith.constant 0 : index
    %c0_76 = arith.constant 0 : index
    %c0_77 = arith.constant 0 : index
    %c66 = arith.constant 66 : index
    %141 = vector.load %arg2[%c0_75, %c0_76, %c0_77, %c66] : memref<1x1x4x658xf32, #tpu.memory_space<vmem>>, vector<1x1x4x512xf32>
    %142 = vector.shape_cast %141 : vector<1x1x4x512xf32> to vector<4x512xf32>
    %c1_i32_78 = arith.constant 1 : i32
    %143 = vector.broadcast %c1_i32_78 : i32 to vector<1x512xi32>
    %144 = arith.cmpi sge, %1, %143 : vector<1x512xi32>
    %c7_i32_79 = arith.constant 7 : i32
    %145 = vector.broadcast %c7_i32_79 : i32 to vector<1x512xi32>
    %146 = arith.cmpi slt, %2, %145 : vector<1x512xi32>
    %147 = arith.andi %144, %146 : vector<1x512xi1>
    %148 = arith.extui %147 : vector<1x512xi1> to vector<1x512xi32>
    %149 = arith.sitofp %148 : vector<1x512xi32> to vector<1x512xf32>
    %150 = vector.broadcast %149 : vector<1x512xf32> to vector<4x512xf32>
    %151 = arith.mulf %142, %150 : vector<4x512xf32>
    %c44 = arith.constant 44 : index
    %c0_80 = arith.constant 0 : index
    %152 = vector.load %arg9[%c44, %c0_80] : memref<108x512xf32, #tpu.memory_space<vmem>>, vector<4x512xf32>
    tpu.vector_store %arg9[%c44, %c0_80], %151 {strides = array<i32>} : memref<108x512xf32, #tpu.memory_space<vmem>>, vector<4x512xf32>,
    %c0_81 = arith.constant 0 : index
    %c0_82 = arith.constant 0 : index
    %c0_83 = arith.constant 0 : index
    %c72 = arith.constant 72 : index
    %153 = vector.load %arg2[%c0_81, %c0_82, %c0_83, %c72] : memref<1x1x4x658xf32, #tpu.memory_space<vmem>>, vector<1x1x4x512xf32>
    %154 = vector.shape_cast %153 : vector<1x1x4x512xf32> to vector<4x512xf32>
    %c1_i32_84 = arith.constant 1 : i32
    %155 = vector.broadcast %c1_i32_84 : i32 to vector<1x512xi32>
    %156 = arith.cmpi sge, %2, %155 : vector<1x512xi32>
    %157 = arith.extui %156 : vector<1x512xi1> to vector<1x512xi32>
    %158 = arith.sitofp %157 : vector<1x512xi32> to vector<1x512xf32>
    %159 = vector.broadcast %158 : vector<1x512xf32> to vector<4x512xf32>
    %160 = arith.mulf %154, %159 : vector<4x512xf32>
    %c48 = arith.constant 48 : index
    %c0_85 = arith.constant 0 : index
    %161 = vector.load %arg9[%c48, %c0_85] : memref<108x512xf32, #tpu.memory_space<vmem>>, vector<4x512xf32>
    tpu.vector_store %arg9[%c48, %c0_85], %160 {strides = array<i32>} : memref<108x512xf32, #tpu.memory_space<vmem>>, vector<4x512xf32>,
    %c0_86 = arith.constant 0 : index
    %c0_87 = arith.constant 0 : index
    %c0_88 = arith.constant 0 : index
    %c73 = arith.constant 73 : index
    %162 = vector.load %arg2[%c0_86, %c0_87, %c0_88, %c73] : memref<1x1x4x658xf32, #tpu.memory_space<vmem>>, vector<1x1x4x512xf32>
    %163 = vector.shape_cast %162 : vector<1x1x4x512xf32> to vector<4x512xf32>
    %c52 = arith.constant 52 : index
    %c0_89 = arith.constant 0 : index
    %164 = vector.load %arg9[%c52, %c0_89] : memref<108x512xf32, #tpu.memory_space<vmem>>, vector<4x512xf32>
    tpu.vector_store %arg9[%c52, %c0_89], %163 {strides = array<i32>} : memref<108x512xf32, #tpu.memory_space<vmem>>, vector<4x512xf32>,
    %c0_90 = arith.constant 0 : index
    %c0_91 = arith.constant 0 : index
    %c0_92 = arith.constant 0 : index
    %c74 = arith.constant 74 : index
    %165 = vector.load %arg2[%c0_90, %c0_91, %c0_92, %c74] : memref<1x1x4x658xf32, #tpu.memory_space<vmem>>, vector<1x1x4x512xf32>
    %166 = vector.shape_cast %165 : vector<1x1x4x512xf32> to vector<4x512xf32>
    %c7_i32_93 = arith.constant 7 : i32
    %167 = vector.broadcast %c7_i32_93 : i32 to vector<1x512xi32>
    %168 = arith.cmpi slt, %2, %167 : vector<1x512xi32>
    %169 = arith.extui %168 : vector<1x512xi1> to vector<1x512xi32>
    %170 = arith.sitofp %169 : vector<1x512xi32> to vector<1x512xf32>
    %171 = vector.broadcast %170 : vector<1x512xf32> to vector<4x512xf32>
    %172 = arith.mulf %166, %171 : vector<4x512xf32>
    %c56 = arith.constant 56 : index
    %c0_94 = arith.constant 0 : index
    %173 = vector.load %arg9[%c56, %c0_94] : memref<108x512xf32, #tpu.memory_space<vmem>>, vector<4x512xf32>
    tpu.vector_store %arg9[%c56, %c0_94], %172 {strides = array<i32>} : memref<108x512xf32, #tpu.memory_space<vmem>>, vector<4x512xf32>,
    %c0_95 = arith.constant 0 : index
    %c0_96 = arith.constant 0 : index
    %c0_97 = arith.constant 0 : index
    %c80 = arith.constant 80 : index
    %174 = vector.load %arg2[%c0_95, %c0_96, %c0_97, %c80] : memref<1x1x4x658xf32, #tpu.memory_space<vmem>>, vector<1x1x4x512xf32>
    %175 = vector.shape_cast %174 : vector<1x1x4x512xf32> to vector<4x512xf32>
    %c7_i32_98 = arith.constant 7 : i32
    %176 = vector.broadcast %c7_i32_98 : i32 to vector<1x512xi32>
    %177 = arith.cmpi slt, %1, %176 : vector<1x512xi32>
    %c1_i32_99 = arith.constant 1 : i32
    %178 = vector.broadcast %c1_i32_99 : i32 to vector<1x512xi32>
    %179 = arith.cmpi sge, %2, %178 : vector<1x512xi32>
    %180 = arith.andi %177, %179 : vector<1x512xi1>
    %181 = arith.extui %180 : vector<1x512xi1> to vector<1x512xi32>
    %182 = arith.sitofp %181 : vector<1x512xi32> to vector<1x512xf32>
    %183 = vector.broadcast %182 : vector<1x512xf32> to vector<4x512xf32>
    %184 = arith.mulf %175, %183 : vector<4x512xf32>
    %c60 = arith.constant 60 : index
    %c0_100 = arith.constant 0 : index
    %185 = vector.load %arg9[%c60, %c0_100] : memref<108x512xf32, #tpu.memory_space<vmem>>, vector<4x512xf32>
    tpu.vector_store %arg9[%c60, %c0_100], %184 {strides = array<i32>} : memref<108x512xf32, #tpu.memory_space<vmem>>, vector<4x512xf32>,
    %c0_101 = arith.constant 0 : index
    %c0_102 = arith.constant 0 : index
    %c0_103 = arith.constant 0 : index
    %c81 = arith.constant 81 : index
    %186 = vector.load %arg2[%c0_101, %c0_102, %c0_103, %c81] : memref<1x1x4x658xf32, #tpu.memory_space<vmem>>, vector<1x1x4x512xf32>
    %187 = vector.shape_cast %186 : vector<1x1x4x512xf32> to vector<4x512xf32>
    %c7_i32_104 = arith.constant 7 : i32
    %188 = vector.broadcast %c7_i32_104 : i32 to vector<1x512xi32>
    %189 = arith.cmpi slt, %1, %188 : vector<1x512xi32>
    %190 = arith.extui %189 : vector<1x512xi1> to vector<1x512xi32>
    %191 = arith.sitofp %190 : vector<1x512xi32> to vector<1x512xf32>
    %192 = vector.broadcast %191 : vector<1x512xf32> to vector<4x512xf32>
    %193 = arith.mulf %187, %192 : vector<4x512xf32>
    %c64_105 = arith.constant 64 : index
    %c0_106 = arith.constant 0 : index
    %194 = vector.load %arg9[%c64_105, %c0_106] : memref<108x512xf32, #tpu.memory_space<vmem>>, vector<4x512xf32>
    tpu.vector_store %arg9[%c64_105, %c0_106], %193 {strides = array<i32>} : memref<108x512xf32, #tpu.memory_space<vmem>>, vector<4x512xf32>,
    %c0_107 = arith.constant 0 : index
    %c0_108 = arith.constant 0 : index
    %c0_109 = arith.constant 0 : index
    %c82 = arith.constant 82 : index
    %195 = vector.load %arg2[%c0_107, %c0_108, %c0_109, %c82] : memref<1x1x4x658xf32, #tpu.memory_space<vmem>>, vector<1x1x4x512xf32>
    %196 = vector.shape_cast %195 : vector<1x1x4x512xf32> to vector<4x512xf32>
    %c7_i32_110 = arith.constant 7 : i32
    %197 = vector.broadcast %c7_i32_110 : i32 to vector<1x512xi32>
    %198 = arith.cmpi slt, %1, %197 : vector<1x512xi32>
    %c7_i32_111 = arith.constant 7 : i32
    %199 = vector.broadcast %c7_i32_111 : i32 to vector<1x512xi32>
    %200 = arith.cmpi slt, %2, %199 : vector<1x512xi32>
    %201 = arith.andi %198, %200 : vector<1x512xi1>
    %202 = arith.extui %201 : vector<1x512xi1> to vector<1x512xi32>
    %203 = arith.sitofp %202 : vector<1x512xi32> to vector<1x512xf32>
    %204 = vector.broadcast %203 : vector<1x512xf32> to vector<4x512xf32>
    %205 = arith.mulf %196, %204 : vector<4x512xf32>
    %c68 = arith.constant 68 : index
    %c0_112 = arith.constant 0 : index
    %206 = vector.load %arg9[%c68, %c0_112] : memref<108x512xf32, #tpu.memory_space<vmem>>, vector<4x512xf32>
    tpu.vector_store %arg9[%c68, %c0_112], %205 {strides = array<i32>} : memref<108x512xf32, #tpu.memory_space<vmem>>, vector<4x512xf32>,
    %c0_113 = arith.constant 0 : index
    %c0_114 = arith.constant 0 : index
    %c0_115 = arith.constant 0 : index
    %c128 = arith.constant 128 : index
    %207 = vector.load %arg2[%c0_113, %c0_114, %c0_115, %c128] : memref<1x1x4x658xf32, #tpu.memory_space<vmem>>, vector<1x1x4x512xf32>
    %208 = vector.shape_cast %207 : vector<1x1x4x512xf32> to vector<4x512xf32>
    %c7_i32_116 = arith.constant 7 : i32
    %209 = vector.broadcast %c7_i32_116 : i32 to vector<1x512xi32>
    %210 = arith.cmpi slt, %0, %209 : vector<1x512xi32>
    %c1_i32_117 = arith.constant 1 : i32
    %211 = vector.broadcast %c1_i32_117 : i32 to vector<1x512xi32>
    %212 = arith.cmpi sge, %1, %211 : vector<1x512xi32>
    %c1_i32_118 = arith.constant 1 : i32
    %213 = vector.broadcast %c1_i32_118 : i32 to vector<1x512xi32>
    %214 = arith.cmpi sge, %2, %213 : vector<1x512xi32>
    %215 = arith.andi %210, %212 : vector<1x512xi1>
    %216 = arith.andi %215, %214 : vector<1x512xi1>
    %217 = arith.extui %216 : vector<1x512xi1> to vector<1x512xi32>
    %218 = arith.sitofp %217 : vector<1x512xi32> to vector<1x512xf32>
    %219 = vector.broadcast %218 : vector<1x512xf32> to vector<4x512xf32>
    %220 = arith.mulf %208, %219 : vector<4x512xf32>
    %c72_119 = arith.constant 72 : index
    %c0_120 = arith.constant 0 : index
    %221 = vector.load %arg9[%c72_119, %c0_120] : memref<108x512xf32, #tpu.memory_space<vmem>>, vector<4x512xf32>
    tpu.vector_store %arg9[%c72_119, %c0_120], %220 {strides = array<i32>} : memref<108x512xf32, #tpu.memory_space<vmem>>, vector<4x512xf32>,
    %c0_121 = arith.constant 0 : index
    %c0_122 = arith.constant 0 : index
    %c0_123 = arith.constant 0 : index
    %c129 = arith.constant 129 : index
    %222 = vector.load %arg2[%c0_121, %c0_122, %c0_123, %c129] : memref<1x1x4x658xf32, #tpu.memory_space<vmem>>, vector<1x1x4x512xf32>
    %223 = vector.shape_cast %222 : vector<1x1x4x512xf32> to vector<4x512xf32>
    %c7_i32_124 = arith.constant 7 : i32
    %224 = vector.broadcast %c7_i32_124 : i32 to vector<1x512xi32>
    %225 = arith.cmpi slt, %0, %224 : vector<1x512xi32>
    %c1_i32_125 = arith.constant 1 : i32
    %226 = vector.broadcast %c1_i32_125 : i32 to vector<1x512xi32>
    %227 = arith.cmpi sge, %1, %226 : vector<1x512xi32>
    %228 = arith.andi %225, %227 : vector<1x512xi1>
    %229 = arith.extui %228 : vector<1x512xi1> to vector<1x512xi32>
    %230 = arith.sitofp %229 : vector<1x512xi32> to vector<1x512xf32>
    %231 = vector.broadcast %230 : vector<1x512xf32> to vector<4x512xf32>
    %232 = arith.mulf %223, %231 : vector<4x512xf32>
    %c76 = arith.constant 76 : index
    %c0_126 = arith.constant 0 : index
    %233 = vector.load %arg9[%c76, %c0_126] : memref<108x512xf32, #tpu.memory_space<vmem>>, vector<4x512xf32>
    tpu.vector_store %arg9[%c76, %c0_126], %232 {strides = array<i32>} : memref<108x512xf32, #tpu.memory_space<vmem>>, vector<4x512xf32>,
    %c0_127 = arith.constant 0 : index
    %c0_128 = arith.constant 0 : index
    %c0_129 = arith.constant 0 : index
    %c130 = arith.constant 130 : index
    %234 = vector.load %arg2[%c0_127, %c0_128, %c0_129, %c130] : memref<1x1x4x658xf32, #tpu.memory_space<vmem>>, vector<1x1x4x512xf32>
    %235 = vector.shape_cast %234 : vector<1x1x4x512xf32> to vector<4x512xf32>
    %c7_i32_130 = arith.constant 7 : i32
    %236 = vector.broadcast %c7_i32_130 : i32 to vector<1x512xi32>
    %237 = arith.cmpi slt, %0, %236 : vector<1x512xi32>
    %c1_i32_131 = arith.constant 1 : i32
    %238 = vector.broadcast %c1_i32_131 : i32 to vector<1x512xi32>
    %239 = arith.cmpi sge, %1, %238 : vector<1x512xi32>
    %c7_i32_132 = arith.constant 7 : i32
    %240 = vector.broadcast %c7_i32_132 : i32 to vector<1x512xi32>
    %241 = arith.cmpi slt, %2, %240 : vector<1x512xi32>
    %242 = arith.andi %237, %239 : vector<1x512xi1>
    %243 = arith.andi %242, %241 : vector<1x512xi1>
    %244 = arith.extui %243 : vector<1x512xi1> to vector<1x512xi32>
    %245 = arith.sitofp %244 : vector<1x512xi32> to vector<1x512xf32>
    %246 = vector.broadcast %245 : vector<1x512xf32> to vector<4x512xf32>
    %247 = arith.mulf %235, %246 : vector<4x512xf32>
    %c80_133 = arith.constant 80 : index
    %c0_134 = arith.constant 0 : index
    %248 = vector.load %arg9[%c80_133, %c0_134] : memref<108x512xf32, #tpu.memory_space<vmem>>, vector<4x512xf32>
    tpu.vector_store %arg9[%c80_133, %c0_134], %247 {strides = array<i32>} : memref<108x512xf32, #tpu.memory_space<vmem>>, vector<4x512xf32>,
    %c0_135 = arith.constant 0 : index
    %c0_136 = arith.constant 0 : index
    %c0_137 = arith.constant 0 : index
    %c136 = arith.constant 136 : index
    %249 = vector.load %arg2[%c0_135, %c0_136, %c0_137, %c136] : memref<1x1x4x658xf32, #tpu.memory_space<vmem>>, vector<1x1x4x512xf32>
    %250 = vector.shape_cast %249 : vector<1x1x4x512xf32> to vector<4x512xf32>
    %c7_i32_138 = arith.constant 7 : i32
    %251 = vector.broadcast %c7_i32_138 : i32 to vector<1x512xi32>
    %252 = arith.cmpi slt, %0, %251 : vector<1x512xi32>
    %c1_i32_139 = arith.constant 1 : i32
    %253 = vector.broadcast %c1_i32_139 : i32 to vector<1x512xi32>
    %254 = arith.cmpi sge, %2, %253 : vector<1x512xi32>
    %255 = arith.andi %252, %254 : vector<1x512xi1>
    %256 = arith.extui %255 : vector<1x512xi1> to vector<1x512xi32>
    %257 = arith.sitofp %256 : vector<1x512xi32> to vector<1x512xf32>
    %258 = vector.broadcast %257 : vector<1x512xf32> to vector<4x512xf32>
    %259 = arith.mulf %250, %258 : vector<4x512xf32>
    %c84 = arith.constant 84 : index
    %c0_140 = arith.constant 0 : index
    %260 = vector.load %arg9[%c84, %c0_140] : memref<108x512xf32, #tpu.memory_space<vmem>>, vector<4x512xf32>
    tpu.vector_store %arg9[%c84, %c0_140], %259 {strides = array<i32>} : memref<108x512xf32, #tpu.memory_space<vmem>>, vector<4x512xf32>,
    %c0_141 = arith.constant 0 : index
    %c0_142 = arith.constant 0 : index
    %c0_143 = arith.constant 0 : index
    %c137 = arith.constant 137 : index
    %261 = vector.load %arg2[%c0_141, %c0_142, %c0_143, %c137] : memref<1x1x4x658xf32, #tpu.memory_space<vmem>>, vector<1x1x4x512xf32>
    %262 = vector.shape_cast %261 : vector<1x1x4x512xf32> to vector<4x512xf32>
    %c7_i32_144 = arith.constant 7 : i32
    %263 = vector.broadcast %c7_i32_144 : i32 to vector<1x512xi32>
    %264 = arith.cmpi slt, %0, %263 : vector<1x512xi32>
    %265 = arith.extui %264 : vector<1x512xi1> to vector<1x512xi32>
    %266 = arith.sitofp %265 : vector<1x512xi32> to vector<1x512xf32>
    %267 = vector.broadcast %266 : vector<1x512xf32> to vector<4x512xf32>
    %268 = arith.mulf %262, %267 : vector<4x512xf32>
    %c88 = arith.constant 88 : index
    %c0_145 = arith.constant 0 : index
    %269 = vector.load %arg9[%c88, %c0_145] : memref<108x512xf32, #tpu.memory_space<vmem>>, vector<4x512xf32>
    tpu.vector_store %arg9[%c88, %c0_145], %268 {strides = array<i32>} : memref<108x512xf32, #tpu.memory_space<vmem>>, vector<4x512xf32>,
    %c0_146 = arith.constant 0 : index
    %c0_147 = arith.constant 0 : index
    %c0_148 = arith.constant 0 : index
    %c138 = arith.constant 138 : index
    %270 = vector.load %arg2[%c0_146, %c0_147, %c0_148, %c138] : memref<1x1x4x658xf32, #tpu.memory_space<vmem>>, vector<1x1x4x512xf32>
    %271 = vector.shape_cast %270 : vector<1x1x4x512xf32> to vector<4x512xf32>
    %c7_i32_149 = arith.constant 7 : i32
    %272 = vector.broadcast %c7_i32_149 : i32 to vector<1x512xi32>
    %273 = arith.cmpi slt, %0, %272 : vector<1x512xi32>
    %c7_i32_150 = arith.constant 7 : i32
    %274 = vector.broadcast %c7_i32_150 : i32 to vector<1x512xi32>
    %275 = arith.cmpi slt, %2, %274 : vector<1x512xi32>
    %276 = arith.andi %273, %275 : vector<1x512xi1>
    %277 = arith.extui %276 : vector<1x512xi1> to vector<1x512xi32>
    %278 = arith.sitofp %277 : vector<1x512xi32> to vector<1x512xf32>
    %279 = vector.broadcast %278 : vector<1x512xf32> to vector<4x512xf32>
    %280 = arith.mulf %271, %279 : vector<4x512xf32>
    %c92 = arith.constant 92 : index
    %c0_151 = arith.constant 0 : index
    %281 = vector.load %arg9[%c92, %c0_151] : memref<108x512xf32, #tpu.memory_space<vmem>>, vector<4x512xf32>
    tpu.vector_store %arg9[%c92, %c0_151], %280 {strides = array<i32>} : memref<108x512xf32, #tpu.memory_space<vmem>>, vector<4x512xf32>,
    %c0_152 = arith.constant 0 : index
    %c0_153 = arith.constant 0 : index
    %c0_154 = arith.constant 0 : index
    %c144 = arith.constant 144 : index
    %282 = vector.load %arg2[%c0_152, %c0_153, %c0_154, %c144] : memref<1x1x4x658xf32, #tpu.memory_space<vmem>>, vector<1x1x4x512xf32>
    %283 = vector.shape_cast %282 : vector<1x1x4x512xf32> to vector<4x512xf32>
    %c7_i32_155 = arith.constant 7 : i32
    %284 = vector.broadcast %c7_i32_155 : i32 to vector<1x512xi32>
    %285 = arith.cmpi slt, %0, %284 : vector<1x512xi32>
    %c7_i32_156 = arith.constant 7 : i32
    %286 = vector.broadcast %c7_i32_156 : i32 to vector<1x512xi32>
    %287 = arith.cmpi slt, %1, %286 : vector<1x512xi32>
    %c1_i32_157 = arith.constant 1 : i32
    %288 = vector.broadcast %c1_i32_157 : i32 to vector<1x512xi32>
    %289 = arith.cmpi sge, %2, %288 : vector<1x512xi32>
    %290 = arith.andi %285, %287 : vector<1x512xi1>
    %291 = arith.andi %290, %289 : vector<1x512xi1>
    %292 = arith.extui %291 : vector<1x512xi1> to vector<1x512xi32>
    %293 = arith.sitofp %292 : vector<1x512xi32> to vector<1x512xf32>
    %294 = vector.broadcast %293 : vector<1x512xf32> to vector<4x512xf32>
    %295 = arith.mulf %283, %294 : vector<4x512xf32>
    %c96 = arith.constant 96 : index
    %c0_158 = arith.constant 0 : index
    %296 = vector.load %arg9[%c96, %c0_158] : memref<108x512xf32, #tpu.memory_space<vmem>>, vector<4x512xf32>
    tpu.vector_store %arg9[%c96, %c0_158], %295 {strides = array<i32>} : memref<108x512xf32, #tpu.memory_space<vmem>>, vector<4x512xf32>,
    %c0_159 = arith.constant 0 : index
    %c0_160 = arith.constant 0 : index
    %c0_161 = arith.constant 0 : index
    %c145 = arith.constant 145 : index
    %297 = vector.load %arg2[%c0_159, %c0_160, %c0_161, %c145] : memref<1x1x4x658xf32, #tpu.memory_space<vmem>>, vector<1x1x4x512xf32>
    %298 = vector.shape_cast %297 : vector<1x1x4x512xf32> to vector<4x512xf32>
    %c7_i32_162 = arith.constant 7 : i32
    %299 = vector.broadcast %c7_i32_162 : i32 to vector<1x512xi32>
    %300 = arith.cmpi slt, %0, %299 : vector<1x512xi32>
    %c7_i32_163 = arith.constant 7 : i32
    %301 = vector.broadcast %c7_i32_163 : i32 to vector<1x512xi32>
    %302 = arith.cmpi slt, %1, %301 : vector<1x512xi32>
    %303 = arith.andi %300, %302 : vector<1x512xi1>
    %304 = arith.extui %303 : vector<1x512xi1> to vector<1x512xi32>
    %305 = arith.sitofp %304 : vector<1x512xi32> to vector<1x512xf32>
    %306 = vector.broadcast %305 : vector<1x512xf32> to vector<4x512xf32>
    %307 = arith.mulf %298, %306 : vector<4x512xf32>
    %c100 = arith.constant 100 : index
    %c0_164 = arith.constant 0 : index
    %308 = vector.load %arg9[%c100, %c0_164] : memref<108x512xf32, #tpu.memory_space<vmem>>, vector<4x512xf32>
    tpu.vector_store %arg9[%c100, %c0_164], %307 {strides = array<i32>} : memref<108x512xf32, #tpu.memory_space<vmem>>, vector<4x512xf32>,
    %c0_165 = arith.constant 0 : index
    %c0_166 = arith.constant 0 : index
    %c0_167 = arith.constant 0 : index
    %c146 = arith.constant 146 : index
    %309 = vector.load %arg2[%c0_165, %c0_166, %c0_167, %c146] : memref<1x1x4x658xf32, #tpu.memory_space<vmem>>, vector<1x1x4x512xf32>
    %310 = vector.shape_cast %309 : vector<1x1x4x512xf32> to vector<4x512xf32>
    %c7_i32_168 = arith.constant 7 : i32
    %311 = vector.broadcast %c7_i32_168 : i32 to vector<1x512xi32>
    %312 = arith.cmpi slt, %0, %311 : vector<1x512xi32>
    %c7_i32_169 = arith.constant 7 : i32
    %313 = vector.broadcast %c7_i32_169 : i32 to vector<1x512xi32>
    %314 = arith.cmpi slt, %1, %313 : vector<1x512xi32>
    %c7_i32_170 = arith.constant 7 : i32
    %315 = vector.broadcast %c7_i32_170 : i32 to vector<1x512xi32>
    %316 = arith.cmpi slt, %2, %315 : vector<1x512xi32>
    %317 = arith.andi %312, %314 : vector<1x512xi1>
    %318 = arith.andi %317, %316 : vector<1x512xi1>
    %319 = arith.extui %318 : vector<1x512xi1> to vector<1x512xi32>
    %320 = arith.sitofp %319 : vector<1x512xi32> to vector<1x512xf32>
    %321 = vector.broadcast %320 : vector<1x512xf32> to vector<4x512xf32>
    %322 = arith.mulf %310, %321 : vector<4x512xf32>
    %c104 = arith.constant 104 : index
    %c0_171 = arith.constant 0 : index
    %323 = vector.load %arg9[%c104, %c0_171] : memref<108x512xf32, #tpu.memory_space<vmem>>, vector<4x512xf32>
    tpu.vector_store %arg9[%c104, %c0_171], %322 {strides = array<i32>} : memref<108x512xf32, #tpu.memory_space<vmem>>, vector<4x512xf32>,
    %c0_172 = arith.constant 0 : index
    %c0_173 = arith.constant 0 : index
    %324 = vector.load %arg4[%c0_172, %c0_173] : memref<8x108xf32, #tpu.memory_space<vmem>>, vector<8x108xf32>
    %c0_174 = arith.constant 0 : index
    %c0_175 = arith.constant 0 : index
    %325 = vector.load %arg9[%c0_174, %c0_175] : memref<108x512xf32, #tpu.memory_space<vmem>>, vector<108x512xf32>
    %cst = arith.constant dense<0.000000e+00> : vector<8x512xf32>
    %326 = tpu.matmul %324, %325, %cst {dimension_numbers = #tpu.dot_dimension_numbers<[1], [0], [0], [1], [0, 0, 1, 1], [], []>} : vector<8x108xf32>, vector<108x512xf32>, vector<8x512xf32> -> vector<8x512xf32>
    %c0_176 = arith.constant 0 : index
    %c0_177 = arith.constant 0 : index
    %327 = vector.load %arg5[%c0_176, %c0_177] : memref<8x1xf32, #tpu.memory_space<vmem>>, vector<8x1xf32>
    %328 = vector.broadcast %327 : vector<8x1xf32> to vector<8x512xf32>
    %329 = arith.addf %326, %328 : vector<8x512xf32>
    %c0_178 = arith.constant 0 : index
    %c0_179 = arith.constant 0 : index
    %c0_180 = arith.constant 0 : index
    %330 = vector.load %arg6[%c0_178, %c0_179, %c0_180] : memref<1x8x512xf32, #tpu.memory_space<vmem>>, vector<1x8x512xf32>
    %331 = vector.shape_cast %330 : vector<1x8x512xf32> to vector<8x512xf32>
    %332 = vector.shape_cast %329 : vector<8x512xf32> to vector<1x8x512xf32>
    tpu.vector_store %arg6[%c0_178, %c0_179, %c0_180], %332 {strides = array<i32>} : memref<1x8x512xf32, #tpu.memory_space<vmem>>, vector<1x8x512xf32>,
    %cst_181 = arith.constant dense<0.000000e+00> : vector<8xf32>
    %333 = vector.multi_reduction <add>, %329, %cst_181 [1] : vector<8x512xf32> to vector<8xf32>
    %334 = vector.shape_cast %333 : vector<8xf32> to vector<8x1xf32>
    %c0_182 = arith.constant 0 : index
    %c0_183 = arith.constant 0 : index
    %c0_184 = arith.constant 0 : index
    %c0_185 = arith.constant 0 : index
    %335 = vector.load %arg7[%c0_182, %c0_183, %c0_184, %c0_185] : memref<1x1x8x1xf32, #tpu.memory_space<vmem>>, vector<1x1x8x1xf32>
    %336 = vector.shape_cast %335 : vector<1x1x8x1xf32> to vector<8x1xf32>
    %337 = vector.shape_cast %334 : vector<8x1xf32> to vector<1x1x8x1xf32>
    tpu.vector_store %arg7[%c0_182, %c0_183, %c0_184, %c0_185], %337 {strides = array<i32>} : memref<1x1x8x1xf32, #tpu.memory_space<vmem>>, vector<1x1x8x1xf32>,
    %338 = arith.mulf %329, %329 : vector<8x512xf32>
    %cst_186 = arith.constant dense<0.000000e+00> : vector<8xf32>
    %339 = vector.multi_reduction <add>, %338, %cst_186 [1] : vector<8x512xf32> to vector<8xf32>
    %340 = vector.shape_cast %339 : vector<8xf32> to vector<8x1xf32>
    %c0_187 = arith.constant 0 : index
    %c0_188 = arith.constant 0 : index
    %c0_189 = arith.constant 0 : index
    %c0_190 = arith.constant 0 : index
    %341 = vector.load %arg8[%c0_187, %c0_188, %c0_189, %c0_190] : memref<1x1x8x1xf32, #tpu.memory_space<vmem>>, vector<1x1x8x1xf32>
    %342 = vector.shape_cast %341 : vector<1x1x8x1xf32> to vector<8x1xf32>
    %343 = vector.shape_cast %340 : vector<8x1xf32> to vector<1x1x8x1xf32>
    tpu.vector_store %arg8[%c0_187, %c0_188, %c0_189, %c0_190], %343 {strides = array<i32>} : memref<1x1x8x1xf32, #tpu.memory_space<vmem>>, vector<1x1x8x1xf32>,
    return
  }
  func.func @transform_0(%arg0: i32, %arg1: i32) -> (i32, i32, i32, i32) {
    %c0_i32 = arith.constant 0 : i32
    %c0_i32_0 = arith.constant 0 : i32
    %c0_i32_1 = arith.constant 0 : i32
    return %arg0, %arg1, %c0_i32, %c0_i32_0 : i32, i32, i32, i32
  }
  func.func @transform_1(%arg0: i32, %arg1: i32) -> (i32, i32) {
    %c0_i32 = arith.constant 0 : i32
    %c0_i32_0 = arith.constant 0 : i32
    return %c0_i32, %arg1 : i32, i32
  }
  func.func @transform_2(%arg0: i32, %arg1: i32) -> (i32, i32) {
    %c0_i32 = arith.constant 0 : i32
    %c0_i32_0 = arith.constant 0 : i32
    %c0_i32_1 = arith.constant 0 : i32
    return %c0_i32, %c0_i32_0 : i32, i32
  }
  func.func @transform_3(%arg0: i32, %arg1: i32) -> (i32, i32) {
    %c0_i32 = arith.constant 0 : i32
    %c0_i32_0 = arith.constant 0 : i32
    %c0_i32_1 = arith.constant 0 : i32
    return %c0_i32, %c0_i32_0 : i32, i32
  }
  func.func @transform_4(%arg0: i32, %arg1: i32) -> (i32, i32, i32) {
    %c0_i32 = arith.constant 0 : i32
    %c0_i32_0 = arith.constant 0 : i32
    return %arg0, %c0_i32, %arg1 : i32, i32, i32
  }
  func.func @transform_5(%arg0: i32, %arg1: i32) -> (i32, i32, i32, i32) {
    %c0_i32 = arith.constant 0 : i32
    %c0_i32_0 = arith.constant 0 : i32
    %c0_i32_1 = arith.constant 0 : i32
    return %arg0, %arg1, %c0_i32, %c0_i32_0 : i32, i32, i32, i32
  }
  func.func @transform_6(%arg0: i32, %arg1: i32) -> (i32, i32, i32, i32) {
    %c0_i32 = arith.constant 0 : i32
    %c0_i32_0 = arith.constant 0 : i32
    %c0_i32_1 = arith.constant 0 : i32
    return %arg0, %arg1, %c0_i32, %c0_i32_0 : i32, i32, i32, i32
  }
}

module attributes {stable_mosaic.version = 11 : i64} {
  func.func @kernel(%arg0: i32, %arg1: i32, %arg2: memref<1x1x8x658xf32, #tpu.memory_space<vmem>>, %arg3: memref<3x512xi32, #tpu.memory_space<vmem>>, %arg4: memref<8x216xf32, #tpu.memory_space<vmem>>, %arg5: memref<8x1xf32, #tpu.memory_space<vmem>>, %arg6: memref<8x1xf32, #tpu.memory_space<vmem>>, %arg7: memref<8x1xf32, #tpu.memory_space<vmem>>, %arg8: memref<1xf32, #tpu.memory_space<smem>>, %arg9: memref<1x8x512xf32, #tpu.memory_space<vmem>>, %arg10: memref<1x1x8x1xf32, #tpu.memory_space<vmem>>, %arg11: memref<1x1x8x1xf32, #tpu.memory_space<vmem>>, %arg12: memref<216x512xf32, #tpu.memory_space<vmem>>, %arg13: memref<8x658xf32, #tpu.memory_space<vmem>>) attributes {dimension_semantics = [#tpu.dimension_semantics<parallel>, #tpu.dimension_semantics<parallel>], iteration_bounds = array<i64: 2, 1>, scalar_prefetch = 0 : i64, scratch_operands = 2 : i64, tpu.core_type = #tpu.core_type<tc>, window_params = [{transform_indices = @transform_0, window_bounds = array<i64: 1, 1, 8, 658>}, {transform_indices = @transform_1, window_bounds = array<i64: 3, 512>}, {pipeline_mode = #tpu.pipeline_mode<synchronous>, transform_indices = @transform_2, window_bounds = array<i64: 8, 216>}, {pipeline_mode = #tpu.pipeline_mode<synchronous>, transform_indices = @transform_3, window_bounds = array<i64: 8, 1>}, {pipeline_mode = #tpu.pipeline_mode<synchronous>, transform_indices = @transform_4, window_bounds = array<i64: 8, 1>}, {pipeline_mode = #tpu.pipeline_mode<synchronous>, transform_indices = @transform_5, window_bounds = array<i64: 8, 1>}, {transform_indices = @transform_6, window_bounds = array<i64: 1>}, {transform_indices = @transform_7, window_bounds = array<i64: 1, 8, 512>}, {transform_indices = @transform_8, window_bounds = array<i64: 1, 1, 8, 1>}, {transform_indices = @transform_9, window_bounds = array<i64: 1, 1, 8, 1>}]} {
    %c0 = arith.constant 0 : index
    %c0_0 = arith.constant 0 : index
    %c0_1 = arith.constant 0 : index
    %c0_2 = arith.constant 0 : index
    %0 = vector.load %arg2[%c0, %c0_0, %c0_1, %c0_2] : memref<1x1x8x658xf32, #tpu.memory_space<vmem>>, vector<1x1x8x658xf32>
    %1 = vector.shape_cast %0 : vector<1x1x8x658xf32> to vector<8x658xf32>
    %c0_3 = arith.constant 0 : index
    %c0_4 = arith.constant 0 : index
    %2 = vector.load %arg6[%c0_3, %c0_4] : memref<8x1xf32, #tpu.memory_space<vmem>>, vector<8x1xf32>
    %3 = vector.broadcast %2 : vector<8x1xf32> to vector<8x658xf32>
    %4 = arith.mulf %1, %3 : vector<8x658xf32>
    %c0_5 = arith.constant 0 : index
    %c0_6 = arith.constant 0 : index
    %5 = vector.load %arg7[%c0_5, %c0_6] : memref<8x1xf32, #tpu.memory_space<vmem>>, vector<8x1xf32>
    %6 = vector.broadcast %5 : vector<8x1xf32> to vector<8x658xf32>
    %7 = arith.addf %4, %6 : vector<8x658xf32>
    %cst = arith.constant 0.000000e+00 : f32
    %8 = vector.broadcast %cst : f32 to vector<8x658xf32>
    %9 = arith.cmpf oge, %7, %8 : vector<8x658xf32>
    %c0_7 = arith.constant 0 : index
    %10 = memref.load %arg8[%c0_7] : memref<1xf32, #tpu.memory_space<smem>>
    %11 = vector.broadcast %10 : f32 to vector<8x658xf32>
    %12 = arith.mulf %11, %7 : vector<8x658xf32>
    %13 = arith.select %9, %7, %12 : vector<8x658xi1>, vector<8x658xf32>
    %c0_8 = arith.constant 0 : index
    %c0_9 = arith.constant 0 : index
    %14 = vector.load %arg13[%c0_8, %c0_9] : memref<8x658xf32, #tpu.memory_space<vmem>>, vector<8x658xf32>
    tpu.vector_store %arg13[%c0_8, %c0_9], %13 {strides = array<i32>} : memref<8x658xf32, #tpu.memory_space<vmem>>, vector<8x658xf32>,
    %c0_10 = arith.constant 0 : index
    %c0_11 = arith.constant 0 : index
    %15 = vector.load %arg3[%c0_10, %c0_11] : memref<3x512xi32, #tpu.memory_space<vmem>>, vector<1x512xi32>
    %c1 = arith.constant 1 : index
    %c0_12 = arith.constant 0 : index
    %16 = vector.load %arg3[%c1, %c0_12] : memref<3x512xi32, #tpu.memory_space<vmem>>, vector<1x512xi32>
    %c2 = arith.constant 2 : index
    %c0_13 = arith.constant 0 : index
    %17 = vector.load %arg3[%c2, %c0_13] : memref<3x512xi32, #tpu.memory_space<vmem>>, vector<1x512xi32>
    %c0_14 = arith.constant 0 : index
    %c0_15 = arith.constant 0 : index
    %18 = vector.load %arg13[%c0_14, %c0_15] : memref<8x658xf32, #tpu.memory_space<vmem>>, vector<8x512xf32>
    %c1_i32 = arith.constant 1 : i32
    %19 = vector.broadcast %c1_i32 : i32 to vector<1x512xi32>
    %20 = arith.cmpi sge, %15, %19 : vector<1x512xi32>
    %c1_i32_16 = arith.constant 1 : i32
    %21 = vector.broadcast %c1_i32_16 : i32 to vector<1x512xi32>
    %22 = arith.cmpi sge, %16, %21 : vector<1x512xi32>
    %c1_i32_17 = arith.constant 1 : i32
    %23 = vector.broadcast %c1_i32_17 : i32 to vector<1x512xi32>
    %24 = arith.cmpi sge, %17, %23 : vector<1x512xi32>
    %25 = arith.andi %20, %22 : vector<1x512xi1>
    %26 = arith.andi %25, %24 : vector<1x512xi1>
    %27 = arith.extui %26 : vector<1x512xi1> to vector<1x512xi32>
    %28 = arith.sitofp %27 : vector<1x512xi32> to vector<1x512xf32>
    %29 = vector.broadcast %28 : vector<1x512xf32> to vector<8x512xf32>
    %30 = arith.mulf %18, %29 : vector<8x512xf32>
    %c0_18 = arith.constant 0 : index
    %c0_19 = arith.constant 0 : index
    %31 = vector.load %arg12[%c0_18, %c0_19] : memref<216x512xf32, #tpu.memory_space<vmem>>, vector<8x512xf32>
    tpu.vector_store %arg12[%c0_18, %c0_19], %30 {strides = array<i32>} : memref<216x512xf32, #tpu.memory_space<vmem>>, vector<8x512xf32>,
    %c0_20 = arith.constant 0 : index
    %c1_21 = arith.constant 1 : index
    %32 = vector.load %arg13[%c0_20, %c1_21] : memref<8x658xf32, #tpu.memory_space<vmem>>, vector<8x512xf32>
    %c1_i32_22 = arith.constant 1 : i32
    %33 = vector.broadcast %c1_i32_22 : i32 to vector<1x512xi32>
    %34 = arith.cmpi sge, %15, %33 : vector<1x512xi32>
    %c1_i32_23 = arith.constant 1 : i32
    %35 = vector.broadcast %c1_i32_23 : i32 to vector<1x512xi32>
    %36 = arith.cmpi sge, %16, %35 : vector<1x512xi32>
    %37 = arith.andi %34, %36 : vector<1x512xi1>
    %38 = arith.extui %37 : vector<1x512xi1> to vector<1x512xi32>
    %39 = arith.sitofp %38 : vector<1x512xi32> to vector<1x512xf32>
    %40 = vector.broadcast %39 : vector<1x512xf32> to vector<8x512xf32>
    %41 = arith.mulf %32, %40 : vector<8x512xf32>
    %c8 = arith.constant 8 : index
    %c0_24 = arith.constant 0 : index
    %42 = vector.load %arg12[%c8, %c0_24] : memref<216x512xf32, #tpu.memory_space<vmem>>, vector<8x512xf32>
    tpu.vector_store %arg12[%c8, %c0_24], %41 {strides = array<i32>} : memref<216x512xf32, #tpu.memory_space<vmem>>, vector<8x512xf32>,
    %c0_25 = arith.constant 0 : index
    %c2_26 = arith.constant 2 : index
    %43 = vector.load %arg13[%c0_25, %c2_26] : memref<8x658xf32, #tpu.memory_space<vmem>>, vector<8x512xf32>
    %c1_i32_27 = arith.constant 1 : i32
    %44 = vector.broadcast %c1_i32_27 : i32 to vector<1x512xi32>
    %45 = arith.cmpi sge, %15, %44 : vector<1x512xi32>
    %c1_i32_28 = arith.constant 1 : i32
    %46 = vector.broadcast %c1_i32_28 : i32 to vector<1x512xi32>
    %47 = arith.cmpi sge, %16, %46 : vector<1x512xi32>
    %c7_i32 = arith.constant 7 : i32
    %48 = vector.broadcast %c7_i32 : i32 to vector<1x512xi32>
    %49 = arith.cmpi slt, %17, %48 : vector<1x512xi32>
    %50 = arith.andi %45, %47 : vector<1x512xi1>
    %51 = arith.andi %50, %49 : vector<1x512xi1>
    %52 = arith.extui %51 : vector<1x512xi1> to vector<1x512xi32>
    %53 = arith.sitofp %52 : vector<1x512xi32> to vector<1x512xf32>
    %54 = vector.broadcast %53 : vector<1x512xf32> to vector<8x512xf32>
    %55 = arith.mulf %43, %54 : vector<8x512xf32>
    %c16 = arith.constant 16 : index
    %c0_29 = arith.constant 0 : index
    %56 = vector.load %arg12[%c16, %c0_29] : memref<216x512xf32, #tpu.memory_space<vmem>>, vector<8x512xf32>
    tpu.vector_store %arg12[%c16, %c0_29], %55 {strides = array<i32>} : memref<216x512xf32, #tpu.memory_space<vmem>>, vector<8x512xf32>,
    %c0_30 = arith.constant 0 : index
    %c8_31 = arith.constant 8 : index
    %57 = vector.load %arg13[%c0_30, %c8_31] : memref<8x658xf32, #tpu.memory_space<vmem>>, vector<8x512xf32>
    %c1_i32_32 = arith.constant 1 : i32
    %58 = vector.broadcast %c1_i32_32 : i32 to vector<1x512xi32>
    %59 = arith.cmpi sge, %15, %58 : vector<1x512xi32>
    %c1_i32_33 = arith.constant 1 : i32
    %60 = vector.broadcast %c1_i32_33 : i32 to vector<1x512xi32>
    %61 = arith.cmpi sge, %17, %60 : vector<1x512xi32>
    %62 = arith.andi %59, %61 : vector<1x512xi1>
    %63 = arith.extui %62 : vector<1x512xi1> to vector<1x512xi32>
    %64 = arith.sitofp %63 : vector<1x512xi32> to vector<1x512xf32>
    %65 = vector.broadcast %64 : vector<1x512xf32> to vector<8x512xf32>
    %66 = arith.mulf %57, %65 : vector<8x512xf32>
    %c24 = arith.constant 24 : index
    %c0_34 = arith.constant 0 : index
    %67 = vector.load %arg12[%c24, %c0_34] : memref<216x512xf32, #tpu.memory_space<vmem>>, vector<8x512xf32>
    tpu.vector_store %arg12[%c24, %c0_34], %66 {strides = array<i32>} : memref<216x512xf32, #tpu.memory_space<vmem>>, vector<8x512xf32>,
    %c0_35 = arith.constant 0 : index
    %c9 = arith.constant 9 : index
    %68 = vector.load %arg13[%c0_35, %c9] : memref<8x658xf32, #tpu.memory_space<vmem>>, vector<8x512xf32>
    %c1_i32_36 = arith.constant 1 : i32
    %69 = vector.broadcast %c1_i32_36 : i32 to vector<1x512xi32>
    %70 = arith.cmpi sge, %15, %69 : vector<1x512xi32>
    %71 = arith.extui %70 : vector<1x512xi1> to vector<1x512xi32>
    %72 = arith.sitofp %71 : vector<1x512xi32> to vector<1x512xf32>
    %73 = vector.broadcast %72 : vector<1x512xf32> to vector<8x512xf32>
    %74 = arith.mulf %68, %73 : vector<8x512xf32>
    %c32 = arith.constant 32 : index
    %c0_37 = arith.constant 0 : index
    %75 = vector.load %arg12[%c32, %c0_37] : memref<216x512xf32, #tpu.memory_space<vmem>>, vector<8x512xf32>
    tpu.vector_store %arg12[%c32, %c0_37], %74 {strides = array<i32>} : memref<216x512xf32, #tpu.memory_space<vmem>>, vector<8x512xf32>,
    %c0_38 = arith.constant 0 : index
    %c10 = arith.constant 10 : index
    %76 = vector.load %arg13[%c0_38, %c10] : memref<8x658xf32, #tpu.memory_space<vmem>>, vector<8x512xf32>
    %c1_i32_39 = arith.constant 1 : i32
    %77 = vector.broadcast %c1_i32_39 : i32 to vector<1x512xi32>
    %78 = arith.cmpi sge, %15, %77 : vector<1x512xi32>
    %c7_i32_40 = arith.constant 7 : i32
    %79 = vector.broadcast %c7_i32_40 : i32 to vector<1x512xi32>
    %80 = arith.cmpi slt, %17, %79 : vector<1x512xi32>
    %81 = arith.andi %78, %80 : vector<1x512xi1>
    %82 = arith.extui %81 : vector<1x512xi1> to vector<1x512xi32>
    %83 = arith.sitofp %82 : vector<1x512xi32> to vector<1x512xf32>
    %84 = vector.broadcast %83 : vector<1x512xf32> to vector<8x512xf32>
    %85 = arith.mulf %76, %84 : vector<8x512xf32>
    %c40 = arith.constant 40 : index
    %c0_41 = arith.constant 0 : index
    %86 = vector.load %arg12[%c40, %c0_41] : memref<216x512xf32, #tpu.memory_space<vmem>>, vector<8x512xf32>
    tpu.vector_store %arg12[%c40, %c0_41], %85 {strides = array<i32>} : memref<216x512xf32, #tpu.memory_space<vmem>>, vector<8x512xf32>,
    %c0_42 = arith.constant 0 : index
    %c16_43 = arith.constant 16 : index
    %87 = vector.load %arg13[%c0_42, %c16_43] : memref<8x658xf32, #tpu.memory_space<vmem>>, vector<8x512xf32>
    %c1_i32_44 = arith.constant 1 : i32
    %88 = vector.broadcast %c1_i32_44 : i32 to vector<1x512xi32>
    %89 = arith.cmpi sge, %15, %88 : vector<1x512xi32>
    %c7_i32_45 = arith.constant 7 : i32
    %90 = vector.broadcast %c7_i32_45 : i32 to vector<1x512xi32>
    %91 = arith.cmpi slt, %16, %90 : vector<1x512xi32>
    %c1_i32_46 = arith.constant 1 : i32
    %92 = vector.broadcast %c1_i32_46 : i32 to vector<1x512xi32>
    %93 = arith.cmpi sge, %17, %92 : vector<1x512xi32>
    %94 = arith.andi %89, %91 : vector<1x512xi1>
    %95 = arith.andi %94, %93 : vector<1x512xi1>
    %96 = arith.extui %95 : vector<1x512xi1> to vector<1x512xi32>
    %97 = arith.sitofp %96 : vector<1x512xi32> to vector<1x512xf32>
    %98 = vector.broadcast %97 : vector<1x512xf32> to vector<8x512xf32>
    %99 = arith.mulf %87, %98 : vector<8x512xf32>
    %c48 = arith.constant 48 : index
    %c0_47 = arith.constant 0 : index
    %100 = vector.load %arg12[%c48, %c0_47] : memref<216x512xf32, #tpu.memory_space<vmem>>, vector<8x512xf32>
    tpu.vector_store %arg12[%c48, %c0_47], %99 {strides = array<i32>} : memref<216x512xf32, #tpu.memory_space<vmem>>, vector<8x512xf32>,
    %c0_48 = arith.constant 0 : index
    %c17 = arith.constant 17 : index
    %101 = vector.load %arg13[%c0_48, %c17] : memref<8x658xf32, #tpu.memory_space<vmem>>, vector<8x512xf32>
    %c1_i32_49 = arith.constant 1 : i32
    %102 = vector.broadcast %c1_i32_49 : i32 to vector<1x512xi32>
    %103 = arith.cmpi sge, %15, %102 : vector<1x512xi32>
    %c7_i32_50 = arith.constant 7 : i32
    %104 = vector.broadcast %c7_i32_50 : i32 to vector<1x512xi32>
    %105 = arith.cmpi slt, %16, %104 : vector<1x512xi32>
    %106 = arith.andi %103, %105 : vector<1x512xi1>
    %107 = arith.extui %106 : vector<1x512xi1> to vector<1x512xi32>
    %108 = arith.sitofp %107 : vector<1x512xi32> to vector<1x512xf32>
    %109 = vector.broadcast %108 : vector<1x512xf32> to vector<8x512xf32>
    %110 = arith.mulf %101, %109 : vector<8x512xf32>
    %c56 = arith.constant 56 : index
    %c0_51 = arith.constant 0 : index
    %111 = vector.load %arg12[%c56, %c0_51] : memref<216x512xf32, #tpu.memory_space<vmem>>, vector<8x512xf32>
    tpu.vector_store %arg12[%c56, %c0_51], %110 {strides = array<i32>} : memref<216x512xf32, #tpu.memory_space<vmem>>, vector<8x512xf32>,
    %c0_52 = arith.constant 0 : index
    %c18 = arith.constant 18 : index
    %112 = vector.load %arg13[%c0_52, %c18] : memref<8x658xf32, #tpu.memory_space<vmem>>, vector<8x512xf32>
    %c1_i32_53 = arith.constant 1 : i32
    %113 = vector.broadcast %c1_i32_53 : i32 to vector<1x512xi32>
    %114 = arith.cmpi sge, %15, %113 : vector<1x512xi32>
    %c7_i32_54 = arith.constant 7 : i32
    %115 = vector.broadcast %c7_i32_54 : i32 to vector<1x512xi32>
    %116 = arith.cmpi slt, %16, %115 : vector<1x512xi32>
    %c7_i32_55 = arith.constant 7 : i32
    %117 = vector.broadcast %c7_i32_55 : i32 to vector<1x512xi32>
    %118 = arith.cmpi slt, %17, %117 : vector<1x512xi32>
    %119 = arith.andi %114, %116 : vector<1x512xi1>
    %120 = arith.andi %119, %118 : vector<1x512xi1>
    %121 = arith.extui %120 : vector<1x512xi1> to vector<1x512xi32>
    %122 = arith.sitofp %121 : vector<1x512xi32> to vector<1x512xf32>
    %123 = vector.broadcast %122 : vector<1x512xf32> to vector<8x512xf32>
    %124 = arith.mulf %112, %123 : vector<8x512xf32>
    %c64 = arith.constant 64 : index
    %c0_56 = arith.constant 0 : index
    %125 = vector.load %arg12[%c64, %c0_56] : memref<216x512xf32, #tpu.memory_space<vmem>>, vector<8x512xf32>
    tpu.vector_store %arg12[%c64, %c0_56], %124 {strides = array<i32>} : memref<216x512xf32, #tpu.memory_space<vmem>>, vector<8x512xf32>,
    %c0_57 = arith.constant 0 : index
    %c64_58 = arith.constant 64 : index
    %126 = vector.load %arg13[%c0_57, %c64_58] : memref<8x658xf32, #tpu.memory_space<vmem>>, vector<8x512xf32>
    %c1_i32_59 = arith.constant 1 : i32
    %127 = vector.broadcast %c1_i32_59 : i32 to vector<1x512xi32>
    %128 = arith.cmpi sge, %16, %127 : vector<1x512xi32>
    %c1_i32_60 = arith.constant 1 : i32
    %129 = vector.broadcast %c1_i32_60 : i32 to vector<1x512xi32>
    %130 = arith.cmpi sge, %17, %129 : vector<1x512xi32>
    %131 = arith.andi %128, %130 : vector<1x512xi1>
    %132 = arith.extui %131 : vector<1x512xi1> to vector<1x512xi32>
    %133 = arith.sitofp %132 : vector<1x512xi32> to vector<1x512xf32>
    %134 = vector.broadcast %133 : vector<1x512xf32> to vector<8x512xf32>
    %135 = arith.mulf %126, %134 : vector<8x512xf32>
    %c72 = arith.constant 72 : index
    %c0_61 = arith.constant 0 : index
    %136 = vector.load %arg12[%c72, %c0_61] : memref<216x512xf32, #tpu.memory_space<vmem>>, vector<8x512xf32>
    tpu.vector_store %arg12[%c72, %c0_61], %135 {strides = array<i32>} : memref<216x512xf32, #tpu.memory_space<vmem>>, vector<8x512xf32>,
    %c0_62 = arith.constant 0 : index
    %c65 = arith.constant 65 : index
    %137 = vector.load %arg13[%c0_62, %c65] : memref<8x658xf32, #tpu.memory_space<vmem>>, vector<8x512xf32>
    %c1_i32_63 = arith.constant 1 : i32
    %138 = vector.broadcast %c1_i32_63 : i32 to vector<1x512xi32>
    %139 = arith.cmpi sge, %16, %138 : vector<1x512xi32>
    %140 = arith.extui %139 : vector<1x512xi1> to vector<1x512xi32>
    %141 = arith.sitofp %140 : vector<1x512xi32> to vector<1x512xf32>
    %142 = vector.broadcast %141 : vector<1x512xf32> to vector<8x512xf32>
    %143 = arith.mulf %137, %142 : vector<8x512xf32>
    %c80 = arith.constant 80 : index
    %c0_64 = arith.constant 0 : index
    %144 = vector.load %arg12[%c80, %c0_64] : memref<216x512xf32, #tpu.memory_space<vmem>>, vector<8x512xf32>
    tpu.vector_store %arg12[%c80, %c0_64], %143 {strides = array<i32>} : memref<216x512xf32, #tpu.memory_space<vmem>>, vector<8x512xf32>,
    %c0_65 = arith.constant 0 : index
    %c66 = arith.constant 66 : index
    %145 = vector.load %arg13[%c0_65, %c66] : memref<8x658xf32, #tpu.memory_space<vmem>>, vector<8x512xf32>
    %c1_i32_66 = arith.constant 1 : i32
    %146 = vector.broadcast %c1_i32_66 : i32 to vector<1x512xi32>
    %147 = arith.cmpi sge, %16, %146 : vector<1x512xi32>
    %c7_i32_67 = arith.constant 7 : i32
    %148 = vector.broadcast %c7_i32_67 : i32 to vector<1x512xi32>
    %149 = arith.cmpi slt, %17, %148 : vector<1x512xi32>
    %150 = arith.andi %147, %149 : vector<1x512xi1>
    %151 = arith.extui %150 : vector<1x512xi1> to vector<1x512xi32>
    %152 = arith.sitofp %151 : vector<1x512xi32> to vector<1x512xf32>
    %153 = vector.broadcast %152 : vector<1x512xf32> to vector<8x512xf32>
    %154 = arith.mulf %145, %153 : vector<8x512xf32>
    %c88 = arith.constant 88 : index
    %c0_68 = arith.constant 0 : index
    %155 = vector.load %arg12[%c88, %c0_68] : memref<216x512xf32, #tpu.memory_space<vmem>>, vector<8x512xf32>
    tpu.vector_store %arg12[%c88, %c0_68], %154 {strides = array<i32>} : memref<216x512xf32, #tpu.memory_space<vmem>>, vector<8x512xf32>,
    %c0_69 = arith.constant 0 : index
    %c72_70 = arith.constant 72 : index
    %156 = vector.load %arg13[%c0_69, %c72_70] : memref<8x658xf32, #tpu.memory_space<vmem>>, vector<8x512xf32>
    %c1_i32_71 = arith.constant 1 : i32
    %157 = vector.broadcast %c1_i32_71 : i32 to vector<1x512xi32>
    %158 = arith.cmpi sge, %17, %157 : vector<1x512xi32>
    %159 = arith.extui %158 : vector<1x512xi1> to vector<1x512xi32>
    %160 = arith.sitofp %159 : vector<1x512xi32> to vector<1x512xf32>
    %161 = vector.broadcast %160 : vector<1x512xf32> to vector<8x512xf32>
    %162 = arith.mulf %156, %161 : vector<8x512xf32>
    %c96 = arith.constant 96 : index
    %c0_72 = arith.constant 0 : index
    %163 = vector.load %arg12[%c96, %c0_72] : memref<216x512xf32, #tpu.memory_space<vmem>>, vector<8x512xf32>
    tpu.vector_store %arg12[%c96, %c0_72], %162 {strides = array<i32>} : memref<216x512xf32, #tpu.memory_space<vmem>>, vector<8x512xf32>,
    %c0_73 = arith.constant 0 : index
    %c73 = arith.constant 73 : index
    %164 = vector.load %arg13[%c0_73, %c73] : memref<8x658xf32, #tpu.memory_space<vmem>>, vector<8x512xf32>
    %c104 = arith.constant 104 : index
    %c0_74 = arith.constant 0 : index
    %165 = vector.load %arg12[%c104, %c0_74] : memref<216x512xf32, #tpu.memory_space<vmem>>, vector<8x512xf32>
    tpu.vector_store %arg12[%c104, %c0_74], %164 {strides = array<i32>} : memref<216x512xf32, #tpu.memory_space<vmem>>, vector<8x512xf32>,
    %c0_75 = arith.constant 0 : index
    %c74 = arith.constant 74 : index
    %166 = vector.load %arg13[%c0_75, %c74] : memref<8x658xf32, #tpu.memory_space<vmem>>, vector<8x512xf32>
    %c7_i32_76 = arith.constant 7 : i32
    %167 = vector.broadcast %c7_i32_76 : i32 to vector<1x512xi32>
    %168 = arith.cmpi slt, %17, %167 : vector<1x512xi32>
    %169 = arith.extui %168 : vector<1x512xi1> to vector<1x512xi32>
    %170 = arith.sitofp %169 : vector<1x512xi32> to vector<1x512xf32>
    %171 = vector.broadcast %170 : vector<1x512xf32> to vector<8x512xf32>
    %172 = arith.mulf %166, %171 : vector<8x512xf32>
    %c112 = arith.constant 112 : index
    %c0_77 = arith.constant 0 : index
    %173 = vector.load %arg12[%c112, %c0_77] : memref<216x512xf32, #tpu.memory_space<vmem>>, vector<8x512xf32>
    tpu.vector_store %arg12[%c112, %c0_77], %172 {strides = array<i32>} : memref<216x512xf32, #tpu.memory_space<vmem>>, vector<8x512xf32>,
    %c0_78 = arith.constant 0 : index
    %c80_79 = arith.constant 80 : index
    %174 = vector.load %arg13[%c0_78, %c80_79] : memref<8x658xf32, #tpu.memory_space<vmem>>, vector<8x512xf32>
    %c7_i32_80 = arith.constant 7 : i32
    %175 = vector.broadcast %c7_i32_80 : i32 to vector<1x512xi32>
    %176 = arith.cmpi slt, %16, %175 : vector<1x512xi32>
    %c1_i32_81 = arith.constant 1 : i32
    %177 = vector.broadcast %c1_i32_81 : i32 to vector<1x512xi32>
    %178 = arith.cmpi sge, %17, %177 : vector<1x512xi32>
    %179 = arith.andi %176, %178 : vector<1x512xi1>
    %180 = arith.extui %179 : vector<1x512xi1> to vector<1x512xi32>
    %181 = arith.sitofp %180 : vector<1x512xi32> to vector<1x512xf32>
    %182 = vector.broadcast %181 : vector<1x512xf32> to vector<8x512xf32>
    %183 = arith.mulf %174, %182 : vector<8x512xf32>
    %c120 = arith.constant 120 : index
    %c0_82 = arith.constant 0 : index
    %184 = vector.load %arg12[%c120, %c0_82] : memref<216x512xf32, #tpu.memory_space<vmem>>, vector<8x512xf32>
    tpu.vector_store %arg12[%c120, %c0_82], %183 {strides = array<i32>} : memref<216x512xf32, #tpu.memory_space<vmem>>, vector<8x512xf32>,
    %c0_83 = arith.constant 0 : index
    %c81 = arith.constant 81 : index
    %185 = vector.load %arg13[%c0_83, %c81] : memref<8x658xf32, #tpu.memory_space<vmem>>, vector<8x512xf32>
    %c7_i32_84 = arith.constant 7 : i32
    %186 = vector.broadcast %c7_i32_84 : i32 to vector<1x512xi32>
    %187 = arith.cmpi slt, %16, %186 : vector<1x512xi32>
    %188 = arith.extui %187 : vector<1x512xi1> to vector<1x512xi32>
    %189 = arith.sitofp %188 : vector<1x512xi32> to vector<1x512xf32>
    %190 = vector.broadcast %189 : vector<1x512xf32> to vector<8x512xf32>
    %191 = arith.mulf %185, %190 : vector<8x512xf32>
    %c128 = arith.constant 128 : index
    %c0_85 = arith.constant 0 : index
    %192 = vector.load %arg12[%c128, %c0_85] : memref<216x512xf32, #tpu.memory_space<vmem>>, vector<8x512xf32>
    tpu.vector_store %arg12[%c128, %c0_85], %191 {strides = array<i32>} : memref<216x512xf32, #tpu.memory_space<vmem>>, vector<8x512xf32>,
    %c0_86 = arith.constant 0 : index
    %c82 = arith.constant 82 : index
    %193 = vector.load %arg13[%c0_86, %c82] : memref<8x658xf32, #tpu.memory_space<vmem>>, vector<8x512xf32>
    %c7_i32_87 = arith.constant 7 : i32
    %194 = vector.broadcast %c7_i32_87 : i32 to vector<1x512xi32>
    %195 = arith.cmpi slt, %16, %194 : vector<1x512xi32>
    %c7_i32_88 = arith.constant 7 : i32
    %196 = vector.broadcast %c7_i32_88 : i32 to vector<1x512xi32>
    %197 = arith.cmpi slt, %17, %196 : vector<1x512xi32>
    %198 = arith.andi %195, %197 : vector<1x512xi1>
    %199 = arith.extui %198 : vector<1x512xi1> to vector<1x512xi32>
    %200 = arith.sitofp %199 : vector<1x512xi32> to vector<1x512xf32>
    %201 = vector.broadcast %200 : vector<1x512xf32> to vector<8x512xf32>
    %202 = arith.mulf %193, %201 : vector<8x512xf32>
    %c136 = arith.constant 136 : index
    %c0_89 = arith.constant 0 : index
    %203 = vector.load %arg12[%c136, %c0_89] : memref<216x512xf32, #tpu.memory_space<vmem>>, vector<8x512xf32>
    tpu.vector_store %arg12[%c136, %c0_89], %202 {strides = array<i32>} : memref<216x512xf32, #tpu.memory_space<vmem>>, vector<8x512xf32>,
    %c0_90 = arith.constant 0 : index
    %c128_91 = arith.constant 128 : index
    %204 = vector.load %arg13[%c0_90, %c128_91] : memref<8x658xf32, #tpu.memory_space<vmem>>, vector<8x512xf32>
    %c7_i32_92 = arith.constant 7 : i32
    %205 = vector.broadcast %c7_i32_92 : i32 to vector<1x512xi32>
    %206 = arith.cmpi slt, %15, %205 : vector<1x512xi32>
    %c1_i32_93 = arith.constant 1 : i32
    %207 = vector.broadcast %c1_i32_93 : i32 to vector<1x512xi32>
    %208 = arith.cmpi sge, %16, %207 : vector<1x512xi32>
    %c1_i32_94 = arith.constant 1 : i32
    %209 = vector.broadcast %c1_i32_94 : i32 to vector<1x512xi32>
    %210 = arith.cmpi sge, %17, %209 : vector<1x512xi32>
    %211 = arith.andi %206, %208 : vector<1x512xi1>
    %212 = arith.andi %211, %210 : vector<1x512xi1>
    %213 = arith.extui %212 : vector<1x512xi1> to vector<1x512xi32>
    %214 = arith.sitofp %213 : vector<1x512xi32> to vector<1x512xf32>
    %215 = vector.broadcast %214 : vector<1x512xf32> to vector<8x512xf32>
    %216 = arith.mulf %204, %215 : vector<8x512xf32>
    %c144 = arith.constant 144 : index
    %c0_95 = arith.constant 0 : index
    %217 = vector.load %arg12[%c144, %c0_95] : memref<216x512xf32, #tpu.memory_space<vmem>>, vector<8x512xf32>
    tpu.vector_store %arg12[%c144, %c0_95], %216 {strides = array<i32>} : memref<216x512xf32, #tpu.memory_space<vmem>>, vector<8x512xf32>,
    %c0_96 = arith.constant 0 : index
    %c129 = arith.constant 129 : index
    %218 = vector.load %arg13[%c0_96, %c129] : memref<8x658xf32, #tpu.memory_space<vmem>>, vector<8x512xf32>
    %c7_i32_97 = arith.constant 7 : i32
    %219 = vector.broadcast %c7_i32_97 : i32 to vector<1x512xi32>
    %220 = arith.cmpi slt, %15, %219 : vector<1x512xi32>
    %c1_i32_98 = arith.constant 1 : i32
    %221 = vector.broadcast %c1_i32_98 : i32 to vector<1x512xi32>
    %222 = arith.cmpi sge, %16, %221 : vector<1x512xi32>
    %223 = arith.andi %220, %222 : vector<1x512xi1>
    %224 = arith.extui %223 : vector<1x512xi1> to vector<1x512xi32>
    %225 = arith.sitofp %224 : vector<1x512xi32> to vector<1x512xf32>
    %226 = vector.broadcast %225 : vector<1x512xf32> to vector<8x512xf32>
    %227 = arith.mulf %218, %226 : vector<8x512xf32>
    %c152 = arith.constant 152 : index
    %c0_99 = arith.constant 0 : index
    %228 = vector.load %arg12[%c152, %c0_99] : memref<216x512xf32, #tpu.memory_space<vmem>>, vector<8x512xf32>
    tpu.vector_store %arg12[%c152, %c0_99], %227 {strides = array<i32>} : memref<216x512xf32, #tpu.memory_space<vmem>>, vector<8x512xf32>,
    %c0_100 = arith.constant 0 : index
    %c130 = arith.constant 130 : index
    %229 = vector.load %arg13[%c0_100, %c130] : memref<8x658xf32, #tpu.memory_space<vmem>>, vector<8x512xf32>
    %c7_i32_101 = arith.constant 7 : i32
    %230 = vector.broadcast %c7_i32_101 : i32 to vector<1x512xi32>
    %231 = arith.cmpi slt, %15, %230 : vector<1x512xi32>
    %c1_i32_102 = arith.constant 1 : i32
    %232 = vector.broadcast %c1_i32_102 : i32 to vector<1x512xi32>
    %233 = arith.cmpi sge, %16, %232 : vector<1x512xi32>
    %c7_i32_103 = arith.constant 7 : i32
    %234 = vector.broadcast %c7_i32_103 : i32 to vector<1x512xi32>
    %235 = arith.cmpi slt, %17, %234 : vector<1x512xi32>
    %236 = arith.andi %231, %233 : vector<1x512xi1>
    %237 = arith.andi %236, %235 : vector<1x512xi1>
    %238 = arith.extui %237 : vector<1x512xi1> to vector<1x512xi32>
    %239 = arith.sitofp %238 : vector<1x512xi32> to vector<1x512xf32>
    %240 = vector.broadcast %239 : vector<1x512xf32> to vector<8x512xf32>
    %241 = arith.mulf %229, %240 : vector<8x512xf32>
    %c160 = arith.constant 160 : index
    %c0_104 = arith.constant 0 : index
    %242 = vector.load %arg12[%c160, %c0_104] : memref<216x512xf32, #tpu.memory_space<vmem>>, vector<8x512xf32>
    tpu.vector_store %arg12[%c160, %c0_104], %241 {strides = array<i32>} : memref<216x512xf32, #tpu.memory_space<vmem>>, vector<8x512xf32>,
    %c0_105 = arith.constant 0 : index
    %c136_106 = arith.constant 136 : index
    %243 = vector.load %arg13[%c0_105, %c136_106] : memref<8x658xf32, #tpu.memory_space<vmem>>, vector<8x512xf32>
    %c7_i32_107 = arith.constant 7 : i32
    %244 = vector.broadcast %c7_i32_107 : i32 to vector<1x512xi32>
    %245 = arith.cmpi slt, %15, %244 : vector<1x512xi32>
    %c1_i32_108 = arith.constant 1 : i32
    %246 = vector.broadcast %c1_i32_108 : i32 to vector<1x512xi32>
    %247 = arith.cmpi sge, %17, %246 : vector<1x512xi32>
    %248 = arith.andi %245, %247 : vector<1x512xi1>
    %249 = arith.extui %248 : vector<1x512xi1> to vector<1x512xi32>
    %250 = arith.sitofp %249 : vector<1x512xi32> to vector<1x512xf32>
    %251 = vector.broadcast %250 : vector<1x512xf32> to vector<8x512xf32>
    %252 = arith.mulf %243, %251 : vector<8x512xf32>
    %c168 = arith.constant 168 : index
    %c0_109 = arith.constant 0 : index
    %253 = vector.load %arg12[%c168, %c0_109] : memref<216x512xf32, #tpu.memory_space<vmem>>, vector<8x512xf32>
    tpu.vector_store %arg12[%c168, %c0_109], %252 {strides = array<i32>} : memref<216x512xf32, #tpu.memory_space<vmem>>, vector<8x512xf32>,
    %c0_110 = arith.constant 0 : index
    %c137 = arith.constant 137 : index
    %254 = vector.load %arg13[%c0_110, %c137] : memref<8x658xf32, #tpu.memory_space<vmem>>, vector<8x512xf32>
    %c7_i32_111 = arith.constant 7 : i32
    %255 = vector.broadcast %c7_i32_111 : i32 to vector<1x512xi32>
    %256 = arith.cmpi slt, %15, %255 : vector<1x512xi32>
    %257 = arith.extui %256 : vector<1x512xi1> to vector<1x512xi32>
    %258 = arith.sitofp %257 : vector<1x512xi32> to vector<1x512xf32>
    %259 = vector.broadcast %258 : vector<1x512xf32> to vector<8x512xf32>
    %260 = arith.mulf %254, %259 : vector<8x512xf32>
    %c176 = arith.constant 176 : index
    %c0_112 = arith.constant 0 : index
    %261 = vector.load %arg12[%c176, %c0_112] : memref<216x512xf32, #tpu.memory_space<vmem>>, vector<8x512xf32>
    tpu.vector_store %arg12[%c176, %c0_112], %260 {strides = array<i32>} : memref<216x512xf32, #tpu.memory_space<vmem>>, vector<8x512xf32>,
    %c0_113 = arith.constant 0 : index
    %c138 = arith.constant 138 : index
    %262 = vector.load %arg13[%c0_113, %c138] : memref<8x658xf32, #tpu.memory_space<vmem>>, vector<8x512xf32>
    %c7_i32_114 = arith.constant 7 : i32
    %263 = vector.broadcast %c7_i32_114 : i32 to vector<1x512xi32>
    %264 = arith.cmpi slt, %15, %263 : vector<1x512xi32>
    %c7_i32_115 = arith.constant 7 : i32
    %265 = vector.broadcast %c7_i32_115 : i32 to vector<1x512xi32>
    %266 = arith.cmpi slt, %17, %265 : vector<1x512xi32>
    %267 = arith.andi %264, %266 : vector<1x512xi1>
    %268 = arith.extui %267 : vector<1x512xi1> to vector<1x512xi32>
    %269 = arith.sitofp %268 : vector<1x512xi32> to vector<1x512xf32>
    %270 = vector.broadcast %269 : vector<1x512xf32> to vector<8x512xf32>
    %271 = arith.mulf %262, %270 : vector<8x512xf32>
    %c184 = arith.constant 184 : index
    %c0_116 = arith.constant 0 : index
    %272 = vector.load %arg12[%c184, %c0_116] : memref<216x512xf32, #tpu.memory_space<vmem>>, vector<8x512xf32>
    tpu.vector_store %arg12[%c184, %c0_116], %271 {strides = array<i32>} : memref<216x512xf32, #tpu.memory_space<vmem>>, vector<8x512xf32>,
    %c0_117 = arith.constant 0 : index
    %c144_118 = arith.constant 144 : index
    %273 = vector.load %arg13[%c0_117, %c144_118] : memref<8x658xf32, #tpu.memory_space<vmem>>, vector<8x512xf32>
    %c7_i32_119 = arith.constant 7 : i32
    %274 = vector.broadcast %c7_i32_119 : i32 to vector<1x512xi32>
    %275 = arith.cmpi slt, %15, %274 : vector<1x512xi32>
    %c7_i32_120 = arith.constant 7 : i32
    %276 = vector.broadcast %c7_i32_120 : i32 to vector<1x512xi32>
    %277 = arith.cmpi slt, %16, %276 : vector<1x512xi32>
    %c1_i32_121 = arith.constant 1 : i32
    %278 = vector.broadcast %c1_i32_121 : i32 to vector<1x512xi32>
    %279 = arith.cmpi sge, %17, %278 : vector<1x512xi32>
    %280 = arith.andi %275, %277 : vector<1x512xi1>
    %281 = arith.andi %280, %279 : vector<1x512xi1>
    %282 = arith.extui %281 : vector<1x512xi1> to vector<1x512xi32>
    %283 = arith.sitofp %282 : vector<1x512xi32> to vector<1x512xf32>
    %284 = vector.broadcast %283 : vector<1x512xf32> to vector<8x512xf32>
    %285 = arith.mulf %273, %284 : vector<8x512xf32>
    %c192 = arith.constant 192 : index
    %c0_122 = arith.constant 0 : index
    %286 = vector.load %arg12[%c192, %c0_122] : memref<216x512xf32, #tpu.memory_space<vmem>>, vector<8x512xf32>
    tpu.vector_store %arg12[%c192, %c0_122], %285 {strides = array<i32>} : memref<216x512xf32, #tpu.memory_space<vmem>>, vector<8x512xf32>,
    %c0_123 = arith.constant 0 : index
    %c145 = arith.constant 145 : index
    %287 = vector.load %arg13[%c0_123, %c145] : memref<8x658xf32, #tpu.memory_space<vmem>>, vector<8x512xf32>
    %c7_i32_124 = arith.constant 7 : i32
    %288 = vector.broadcast %c7_i32_124 : i32 to vector<1x512xi32>
    %289 = arith.cmpi slt, %15, %288 : vector<1x512xi32>
    %c7_i32_125 = arith.constant 7 : i32
    %290 = vector.broadcast %c7_i32_125 : i32 to vector<1x512xi32>
    %291 = arith.cmpi slt, %16, %290 : vector<1x512xi32>
    %292 = arith.andi %289, %291 : vector<1x512xi1>
    %293 = arith.extui %292 : vector<1x512xi1> to vector<1x512xi32>
    %294 = arith.sitofp %293 : vector<1x512xi32> to vector<1x512xf32>
    %295 = vector.broadcast %294 : vector<1x512xf32> to vector<8x512xf32>
    %296 = arith.mulf %287, %295 : vector<8x512xf32>
    %c200 = arith.constant 200 : index
    %c0_126 = arith.constant 0 : index
    %297 = vector.load %arg12[%c200, %c0_126] : memref<216x512xf32, #tpu.memory_space<vmem>>, vector<8x512xf32>
    tpu.vector_store %arg12[%c200, %c0_126], %296 {strides = array<i32>} : memref<216x512xf32, #tpu.memory_space<vmem>>, vector<8x512xf32>,
    %c0_127 = arith.constant 0 : index
    %c146 = arith.constant 146 : index
    %298 = vector.load %arg13[%c0_127, %c146] : memref<8x658xf32, #tpu.memory_space<vmem>>, vector<8x512xf32>
    %c7_i32_128 = arith.constant 7 : i32
    %299 = vector.broadcast %c7_i32_128 : i32 to vector<1x512xi32>
    %300 = arith.cmpi slt, %15, %299 : vector<1x512xi32>
    %c7_i32_129 = arith.constant 7 : i32
    %301 = vector.broadcast %c7_i32_129 : i32 to vector<1x512xi32>
    %302 = arith.cmpi slt, %16, %301 : vector<1x512xi32>
    %c7_i32_130 = arith.constant 7 : i32
    %303 = vector.broadcast %c7_i32_130 : i32 to vector<1x512xi32>
    %304 = arith.cmpi slt, %17, %303 : vector<1x512xi32>
    %305 = arith.andi %300, %302 : vector<1x512xi1>
    %306 = arith.andi %305, %304 : vector<1x512xi1>
    %307 = arith.extui %306 : vector<1x512xi1> to vector<1x512xi32>
    %308 = arith.sitofp %307 : vector<1x512xi32> to vector<1x512xf32>
    %309 = vector.broadcast %308 : vector<1x512xf32> to vector<8x512xf32>
    %310 = arith.mulf %298, %309 : vector<8x512xf32>
    %c208 = arith.constant 208 : index
    %c0_131 = arith.constant 0 : index
    %311 = vector.load %arg12[%c208, %c0_131] : memref<216x512xf32, #tpu.memory_space<vmem>>, vector<8x512xf32>
    tpu.vector_store %arg12[%c208, %c0_131], %310 {strides = array<i32>} : memref<216x512xf32, #tpu.memory_space<vmem>>, vector<8x512xf32>,
    %c0_132 = arith.constant 0 : index
    %c0_133 = arith.constant 0 : index
    %312 = vector.load %arg4[%c0_132, %c0_133] : memref<8x216xf32, #tpu.memory_space<vmem>>, vector<8x216xf32>
    %c0_134 = arith.constant 0 : index
    %c0_135 = arith.constant 0 : index
    %313 = vector.load %arg12[%c0_134, %c0_135] : memref<216x512xf32, #tpu.memory_space<vmem>>, vector<216x512xf32>
    %cst_136 = arith.constant dense<0.000000e+00> : vector<8x512xf32>
    %314 = tpu.matmul %312, %313, %cst_136 {dimension_numbers = #tpu.dot_dimension_numbers<[1], [0], [0], [1], [0, 0, 1, 1], [], []>} : vector<8x216xf32>, vector<216x512xf32>, vector<8x512xf32> -> vector<8x512xf32>
    %c0_137 = arith.constant 0 : index
    %c0_138 = arith.constant 0 : index
    %315 = vector.load %arg5[%c0_137, %c0_138] : memref<8x1xf32, #tpu.memory_space<vmem>>, vector<8x1xf32>
    %316 = vector.broadcast %315 : vector<8x1xf32> to vector<8x512xf32>
    %317 = arith.addf %314, %316 : vector<8x512xf32>
    %c0_139 = arith.constant 0 : index
    %c0_140 = arith.constant 0 : index
    %c0_141 = arith.constant 0 : index
    %318 = vector.load %arg9[%c0_139, %c0_140, %c0_141] : memref<1x8x512xf32, #tpu.memory_space<vmem>>, vector<1x8x512xf32>
    %319 = vector.shape_cast %318 : vector<1x8x512xf32> to vector<8x512xf32>
    %320 = vector.shape_cast %317 : vector<8x512xf32> to vector<1x8x512xf32>
    tpu.vector_store %arg9[%c0_139, %c0_140, %c0_141], %320 {strides = array<i32>} : memref<1x8x512xf32, #tpu.memory_space<vmem>>, vector<1x8x512xf32>,
    %cst_142 = arith.constant dense<0.000000e+00> : vector<8xf32>
    %321 = vector.multi_reduction <add>, %317, %cst_142 [1] : vector<8x512xf32> to vector<8xf32>
    %322 = vector.shape_cast %321 : vector<8xf32> to vector<8x1xf32>
    %c0_143 = arith.constant 0 : index
    %c0_144 = arith.constant 0 : index
    %c0_145 = arith.constant 0 : index
    %c0_146 = arith.constant 0 : index
    %323 = vector.load %arg10[%c0_143, %c0_144, %c0_145, %c0_146] : memref<1x1x8x1xf32, #tpu.memory_space<vmem>>, vector<1x1x8x1xf32>
    %324 = vector.shape_cast %323 : vector<1x1x8x1xf32> to vector<8x1xf32>
    %325 = vector.shape_cast %322 : vector<8x1xf32> to vector<1x1x8x1xf32>
    tpu.vector_store %arg10[%c0_143, %c0_144, %c0_145, %c0_146], %325 {strides = array<i32>} : memref<1x1x8x1xf32, #tpu.memory_space<vmem>>, vector<1x1x8x1xf32>,
    %326 = arith.mulf %317, %317 : vector<8x512xf32>
    %cst_147 = arith.constant dense<0.000000e+00> : vector<8xf32>
    %327 = vector.multi_reduction <add>, %326, %cst_147 [1] : vector<8x512xf32> to vector<8xf32>
    %328 = vector.shape_cast %327 : vector<8xf32> to vector<8x1xf32>
    %c0_148 = arith.constant 0 : index
    %c0_149 = arith.constant 0 : index
    %c0_150 = arith.constant 0 : index
    %c0_151 = arith.constant 0 : index
    %329 = vector.load %arg11[%c0_148, %c0_149, %c0_150, %c0_151] : memref<1x1x8x1xf32, #tpu.memory_space<vmem>>, vector<1x1x8x1xf32>
    %330 = vector.shape_cast %329 : vector<1x1x8x1xf32> to vector<8x1xf32>
    %331 = vector.shape_cast %328 : vector<8x1xf32> to vector<1x1x8x1xf32>
    tpu.vector_store %arg11[%c0_148, %c0_149, %c0_150, %c0_151], %331 {strides = array<i32>} : memref<1x1x8x1xf32, #tpu.memory_space<vmem>>, vector<1x1x8x1xf32>,
    return
  }
  func.func @transform_0(%arg0: i32, %arg1: i32) -> (i32, i32, i32, i32) {
    %c0_i32 = arith.constant 0 : i32
    %c0_i32_0 = arith.constant 0 : i32
    %c0_i32_1 = arith.constant 0 : i32
    return %arg0, %arg1, %c0_i32, %c0_i32_0 : i32, i32, i32, i32
  }
  func.func @transform_1(%arg0: i32, %arg1: i32) -> (i32, i32) {
    %c0_i32 = arith.constant 0 : i32
    %c0_i32_0 = arith.constant 0 : i32
    return %c0_i32, %arg1 : i32, i32
  }
  func.func @transform_2(%arg0: i32, %arg1: i32) -> (i32, i32) {
    %c0_i32 = arith.constant 0 : i32
    %c0_i32_0 = arith.constant 0 : i32
    %c0_i32_1 = arith.constant 0 : i32
    return %c0_i32, %c0_i32_0 : i32, i32
  }
  func.func @transform_3(%arg0: i32, %arg1: i32) -> (i32, i32) {
    %c0_i32 = arith.constant 0 : i32
    %c0_i32_0 = arith.constant 0 : i32
    %c0_i32_1 = arith.constant 0 : i32
    return %c0_i32, %c0_i32_0 : i32, i32
  }
  func.func @transform_4(%arg0: i32, %arg1: i32) -> (i32, i32) {
    %c0_i32 = arith.constant 0 : i32
    %c0_i32_0 = arith.constant 0 : i32
    %c0_i32_1 = arith.constant 0 : i32
    return %c0_i32, %c0_i32_0 : i32, i32
  }
  func.func @transform_5(%arg0: i32, %arg1: i32) -> (i32, i32) {
    %c0_i32 = arith.constant 0 : i32
    %c0_i32_0 = arith.constant 0 : i32
    %c0_i32_1 = arith.constant 0 : i32
    return %c0_i32, %c0_i32_0 : i32, i32
  }
  func.func @transform_6(%arg0: i32, %arg1: i32) -> i32 {
    %c0_i32 = arith.constant 0 : i32
    %c0_i32_0 = arith.constant 0 : i32
    return %c0_i32 : i32
  }
  func.func @transform_7(%arg0: i32, %arg1: i32) -> (i32, i32, i32) {
    %c0_i32 = arith.constant 0 : i32
    %c0_i32_0 = arith.constant 0 : i32
    return %arg0, %c0_i32, %arg1 : i32, i32, i32
  }
  func.func @transform_8(%arg0: i32, %arg1: i32) -> (i32, i32, i32, i32) {
    %c0_i32 = arith.constant 0 : i32
    %c0_i32_0 = arith.constant 0 : i32
    %c0_i32_1 = arith.constant 0 : i32
    return %arg0, %arg1, %c0_i32, %c0_i32_0 : i32, i32, i32, i32
  }
  func.func @transform_9(%arg0: i32, %arg1: i32) -> (i32, i32, i32, i32) {
    %c0_i32 = arith.constant 0 : i32
    %c0_i32_0 = arith.constant 0 : i32
    %c0_i32_1 = arith.constant 0 : i32
    return %arg0, %arg1, %c0_i32, %c0_i32_0 : i32, i32, i32, i32
  }
}

module attributes {stable_mosaic.version = 11 : i64} {
  func.func @_bn_prelu_res_kernel(%arg0: i32, %arg1: i32, %arg2: memref<1x8x512xf32, #tpu.memory_space<vmem>>, %arg3: memref<8x1xf32, #tpu.memory_space<vmem>>, %arg4: memref<8x1xf32, #tpu.memory_space<vmem>>, %arg5: memref<1xf32, #tpu.memory_space<smem>>, %arg6: memref<1x4x512xf32, #tpu.memory_space<vmem>>, %arg7: memref<8x4xf32, #tpu.memory_space<vmem>>, %arg8: memref<8x1xf32, #tpu.memory_space<vmem>>, %arg9: memref<1x8x512xf32, #tpu.memory_space<vmem>>) attributes {dimension_semantics = [#tpu.dimension_semantics<parallel>, #tpu.dimension_semantics<parallel>], iteration_bounds = array<i64: 2, 1>, scalar_prefetch = 0 : i64, scratch_operands = 0 : i64, tpu.core_type = #tpu.core_type<tc>, window_params = [{transform_indices = @transform_0, window_bounds = array<i64: 1, 8, 512>}, {pipeline_mode = #tpu.pipeline_mode<synchronous>, transform_indices = @transform_1, window_bounds = array<i64: 8, 1>}, {pipeline_mode = #tpu.pipeline_mode<synchronous>, transform_indices = @transform_2, window_bounds = array<i64: 8, 1>}, {transform_indices = @transform_3, window_bounds = array<i64: 1>}, {transform_indices = @transform_4, window_bounds = array<i64: 1, 4, 512>}, {pipeline_mode = #tpu.pipeline_mode<synchronous>, transform_indices = @transform_5, window_bounds = array<i64: 8, 4>}, {pipeline_mode = #tpu.pipeline_mode<synchronous>, transform_indices = @transform_6, window_bounds = array<i64: 8, 1>}, {transform_indices = @transform_7, window_bounds = array<i64: 1, 8, 512>}]} {
    %c0 = arith.constant 0 : index
    %c0_0 = arith.constant 0 : index
    %c0_1 = arith.constant 0 : index
    %0 = vector.load %arg2[%c0, %c0_0, %c0_1] : memref<1x8x512xf32, #tpu.memory_space<vmem>>, vector<1x8x512xf32>
    %1 = vector.shape_cast %0 : vector<1x8x512xf32> to vector<8x512xf32>
    %c0_2 = arith.constant 0 : index
    %c0_3 = arith.constant 0 : index
    %2 = vector.load %arg3[%c0_2, %c0_3] : memref<8x1xf32, #tpu.memory_space<vmem>>, vector<8x1xf32>
    %3 = vector.broadcast %2 : vector<8x1xf32> to vector<8x512xf32>
    %4 = arith.mulf %1, %3 : vector<8x512xf32>
    %c0_4 = arith.constant 0 : index
    %c0_5 = arith.constant 0 : index
    %5 = vector.load %arg4[%c0_4, %c0_5] : memref<8x1xf32, #tpu.memory_space<vmem>>, vector<8x1xf32>
    %6 = vector.broadcast %5 : vector<8x1xf32> to vector<8x512xf32>
    %7 = arith.addf %4, %6 : vector<8x512xf32>
    %cst = arith.constant 0.000000e+00 : f32
    %8 = vector.broadcast %cst : f32 to vector<8x512xf32>
    %9 = arith.cmpf oge, %7, %8 : vector<8x512xf32>
    %c0_6 = arith.constant 0 : index
    %10 = memref.load %arg5[%c0_6] : memref<1xf32, #tpu.memory_space<smem>>
    %11 = vector.broadcast %10 : f32 to vector<8x512xf32>
    %12 = arith.mulf %11, %7 : vector<8x512xf32>
    %13 = arith.select %9, %7, %12 : vector<8x512xi1>, vector<8x512xf32>
    %c0_7 = arith.constant 0 : index
    %c0_8 = arith.constant 0 : index
    %14 = vector.load %arg7[%c0_7, %c0_8] : memref<8x4xf32, #tpu.memory_space<vmem>>, vector<8x4xf32>
    %c0_9 = arith.constant 0 : index
    %c0_10 = arith.constant 0 : index
    %c0_11 = arith.constant 0 : index
    %15 = vector.load %arg6[%c0_9, %c0_10, %c0_11] : memref<1x4x512xf32, #tpu.memory_space<vmem>>, vector<1x4x512xf32>
    %16 = vector.shape_cast %15 : vector<1x4x512xf32> to vector<4x512xf32>
    %cst_12 = arith.constant dense<0.000000e+00> : vector<8x512xf32>
    %17 = tpu.matmul %14, %16, %cst_12 {dimension_numbers = #tpu.dot_dimension_numbers<[1], [0], [0], [1], [0, 0, 1, 1], [], []>} : vector<8x4xf32>, vector<4x512xf32>, vector<8x512xf32> -> vector<8x512xf32>
    %18 = arith.addf %13, %17 : vector<8x512xf32>
    %c0_13 = arith.constant 0 : index
    %c0_14 = arith.constant 0 : index
    %19 = vector.load %arg8[%c0_13, %c0_14] : memref<8x1xf32, #tpu.memory_space<vmem>>, vector<8x1xf32>
    %20 = vector.broadcast %19 : vector<8x1xf32> to vector<8x512xf32>
    %21 = arith.addf %18, %20 : vector<8x512xf32>
    %c0_15 = arith.constant 0 : index
    %c0_16 = arith.constant 0 : index
    %c0_17 = arith.constant 0 : index
    %22 = vector.load %arg9[%c0_15, %c0_16, %c0_17] : memref<1x8x512xf32, #tpu.memory_space<vmem>>, vector<1x8x512xf32>
    %23 = vector.shape_cast %22 : vector<1x8x512xf32> to vector<8x512xf32>
    %24 = vector.shape_cast %21 : vector<8x512xf32> to vector<1x8x512xf32>
    tpu.vector_store %arg9[%c0_15, %c0_16, %c0_17], %24 {strides = array<i32>} : memref<1x8x512xf32, #tpu.memory_space<vmem>>, vector<1x8x512xf32>,
    return
  }
  func.func @transform_0(%arg0: i32, %arg1: i32) -> (i32, i32, i32) {
    %c0_i32 = arith.constant 0 : i32
    %c0_i32_0 = arith.constant 0 : i32
    return %arg0, %c0_i32, %arg1 : i32, i32, i32
  }
  func.func @transform_1(%arg0: i32, %arg1: i32) -> (i32, i32) {
    %c0_i32 = arith.constant 0 : i32
    %c0_i32_0 = arith.constant 0 : i32
    %c0_i32_1 = arith.constant 0 : i32
    return %c0_i32, %c0_i32_0 : i32, i32
  }
  func.func @transform_2(%arg0: i32, %arg1: i32) -> (i32, i32) {
    %c0_i32 = arith.constant 0 : i32
    %c0_i32_0 = arith.constant 0 : i32
    %c0_i32_1 = arith.constant 0 : i32
    return %c0_i32, %c0_i32_0 : i32, i32
  }
  func.func @transform_3(%arg0: i32, %arg1: i32) -> i32 {
    %c0_i32 = arith.constant 0 : i32
    %c0_i32_0 = arith.constant 0 : i32
    return %c0_i32 : i32
  }
  func.func @transform_4(%arg0: i32, %arg1: i32) -> (i32, i32, i32) {
    %c0_i32 = arith.constant 0 : i32
    %c0_i32_0 = arith.constant 0 : i32
    return %arg0, %c0_i32, %arg1 : i32, i32, i32
  }
  func.func @transform_5(%arg0: i32, %arg1: i32) -> (i32, i32) {
    %c0_i32 = arith.constant 0 : i32
    %c0_i32_0 = arith.constant 0 : i32
    %c0_i32_1 = arith.constant 0 : i32
    return %c0_i32, %c0_i32_0 : i32, i32
  }
  func.func @transform_6(%arg0: i32, %arg1: i32) -> (i32, i32) {
    %c0_i32 = arith.constant 0 : i32
    %c0_i32_0 = arith.constant 0 : i32
    %c0_i32_1 = arith.constant 0 : i32
    return %c0_i32, %c0_i32_0 : i32, i32
  }
  func.func @transform_7(%arg0: i32, %arg1: i32) -> (i32, i32, i32) {
    %c0_i32 = arith.constant 0 : i32
    %c0_i32_0 = arith.constant 0 : i32
    return %arg0, %c0_i32, %arg1 : i32, i32, i32
  }
}

</mosaic_0001>

<bundles_post_ra>
// kernel: res_block_pallas.3
= control target key start
LH: loop header
LB: loop body
LE: loop exit
PB: predicated region body
PF: predicated region fallthrough
CT: control target
= control target key end

     0   :  { %s2757_s21 = smov 0   ;;  %s2759_s22 = smov 0   ;;  %s3936_s0 = inlined_call_operand.vmem [shape: f32[2,1,4,658], index: 0, kind: input, shape index: {}]   ;;  %s3937_s1 = inlined_call_operand.vmem [shape: s32[3,512], index: 1, kind: input, shape index: {}]   ;;  %s3938_s2 = inlined_call_operand.vmem [shape: f32[8,108], index: 2, kind: input, shape index: {}]   ;;  %s3939_s3 = inlined_call_operand.vmem [shape: f32[8,1], index: 3, kind: input, shape index: {}]   ;;  %s3940_s4 = inlined_call_operand.vmem [shape: f32[2,8,512], index: 4, kind: output, shape index: {0}]   ;;  %s3941_s5 = inlined_call_operand.vmem [shape: f32[2,1,8,1], index: 5, kind: output, shape index: {1}]   ;;  %s3942_s6 = inlined_call_operand.vmem [shape: f32[2,1,8,1], index: 6, kind: output, shape index: {2}]  }
   0x1   :  { %s2761_s23 = smov 0  }
   0x2 LB: > { %s29_s24 = sadd.s32 1, %s2682_s22  ;;  %p2438_p0 = scmp.ge.s32.totalorder %s2686_s23, 1  ;;  %s2686_s23 = sphi %s2761_s23, %s17_s23   ;;  %s2682_s22 = sphi %s2759_s22, %s3981_s22   ;;  %s2678_s21 = sphi %s2757_s21, %s3980_s21  }
   0x3   : > { %p31_p1 = scmp.ge.s32.totalorder %s29_s24, 2  ;;  %p252_p2 = scmp.lt.s32.totalorder %s2686_s23, 3 }
   0x5   : > { %s3983_s24 = smov (%p31_p1, %s29_s24), 0  ;;  %p253_p3 = pnand %p2438_p0, %p252_p2 }
   0x7   : > { %256 = sbr.rel (%p253_p3) target bundleno = 878 (0x36e), region = 36 }
   0xc   : > { %v2778_v0 = vld [vmem:[%s3937_s1] ss:$4 sm:$0xf]  ;;  %v2783_v1 = vld [vmem:[%s3937_s1 + $0x1] ss:$4 sm:$0xf] }
   0xd   : > { %v2788_v2 = vld [vmem:[%s3937_s1 + $0x2] ss:$4 sm:$0xf]  ;;  %vm355_vm0 = vcmp.ge.s32.totalorder %v2778_v0, 1  ;;  %vm356_vm1 = vcmp.ge.s32.totalorder %v2783_v1, 1  ;;  %p309_p4 = scmp.lt.s32.totalorder %s2678_s21, 1 }
   0xe   : > { %vm357_vm2 = vcmp.ge.s32.totalorder %v2788_v2, 1  ;;  %vm358_vm3 = vmand %vm355_vm0, %vm356_vm1  ;;  %vm463_vm4 = vcmp.lt.s32.totalorder %v2788_v2, 7  ;;  %v3944_v3 = vmov 0.0   ;;  %vm369_vm7 = vcmask 1043456   ;;  %s2689_s11 = smov 1   ;;  %s2690_s12 = smov 2  }
   0xf   : > { %v2447_v4 = vsel %vm358_vm3, 1.0, %v3944_v3  ;;  %vm359_vm5 = vmand %vm358_vm3, %vm357_vm2  ;;  %s3985_s21 = smov (!%p309_p4, %s2678_s21), 1  ;;  %vm733_vm8 = vcmp.lt.s32.totalorder %v2783_v1, 7  ;;  %v2850_v34 = vsel %vm355_vm0, 1.0, %v3944_v3  ;;  %s2691_s13 = smov 17  }
  0x10   : > { %v399_v5 = vperm.slane %v2447_v4, 0  ;;  %v400_v6 = vperm.slane %v2447_v4, 1  ;;  %v401_v7 = vperm.slane %v2447_v4, 2  ;;  %v402_v8 = vperm.slane %v2447_v4, 3  ;;  %vm464_vm6 = vmand %vm358_vm3, %vm463_vm4  ;;  %s2483_s7 = smul.u32 24, %s3985_s21  ;;  %s2692_s14 = smov 8  }
  0x11   : > { %v2446_v9 = vsel %vm359_vm5, 1.0, %v3944_v3  ;;  %v2448_v10 = vsel %vm464_vm6, 1.0, %v3944_v3  ;;  %vm2813_vm9 = vmand %vm355_vm0, %vm357_vm2  ;;  %v603_v45 = vperm.slane %v2850_v34, 1  ;;  %v602_v61 = vperm.slane %v2850_v34, 0  ;;  %s2693_s15 = smov 9   ;;  %s2694_s16 = smov 64  }
  0x12   : > { %v403_v11 = vrot.slane %v400_v6, 4  ;;  %v404_v12 = vrot.slane %v402_v8, 4  ;;  %v363_v13 = vperm.slane %v2446_v9, 0  ;;  %v364_v14 = vperm.slane %v2446_v9, 1  ;;  %vm665_vm10 = vmand %vm355_vm0, %vm463_vm4  ;;  %s2826_s10 = scalar_lea.vmem %s3936_s0, %s2483_s7  ;;  %s2695_s17 = smov 10  }
  0x13   : > { %v365_v16 = vperm.slane %v2446_v9, 2  ;;  %v366_v17 = vperm.slane %v2446_v9, 3  ;;  %v468_v18 = vperm.slane %v2448_v10, 0  ;;  %v469_v19 = vperm.slane %v2448_v10, 1  ;;  %v2829_v25 = vld [vmem:[%s2826_s10] sm:$0xff]  ;;  %v2832_v26 = vld [vmem:[%s2826_s10 + $0x8] sm:$0xff]  ;;  %vm2838_vm11 = vmand %vm355_vm0, %vm733_vm8 }
  0x14   : > { %v405_v20 = vsel %vm369_vm7, %v399_v5, %v403_v11  ;;  %v406_v21 = vsel %vm369_vm7, %v401_v7, %v404_v12  ;;  %v367_v22 = vrot.slane %v364_v14, 4  ;;  %v470_v23 = vperm.slane %v2448_v10, 2  ;;  %vm936_vm12 = vmand %vm356_vm1, %vm357_vm2  ;;  %s2696_s18 = smov 16   ;;  %s2697_s19 = smov 66  }
  0x15   : > { %v2542_v24 = vpack.i.bf16 %v406_v21, %v405_v20  ;;  %v368_v27 = vrot.slane %v366_v17, 4  ;;  %v471_v28 = vperm.slane %v2448_v10, 3  ;;  %v472_v29 = vrot.slane %v469_v19, 4  ;;  %vm2882_vm13 = vmand %vm2838_vm11, %vm357_vm2  ;;  %s2698_s20 = smov 65   ;;  %s2699_s25 = smov 18  }
  0x16   : > { %v370_v31 = vsel %vm369_vm7, %v363_v13, %v367_v22  ;;  %v2449_v32 = vsel %vm2813_vm9, 1.0, %v3944_v3  ;;  %v2451_v33 = vsel %vm665_vm10, 1.0, %v3944_v3  ;;  %v2453_v41 = vsel %vm2838_vm11, 1.0, %v3944_v3  ;;  %vm2902_vm14 = vmand %vm356_vm1, %vm463_vm4  ;;  %s2700_s26 = smov 74   ;;  %s2701_s27 = smov 72  }
  0x17   : > { %2543 = vrot.lane.b32.xlu0 %v2542_v24, %s2689_s11  ;;  %v371_v35 = vsel %vm369_vm7, %v365_v16, %v368_v27  ;;  %v374_v36 = vmul.f32 %v370_v31, %v2829_v25  ;;  %v473_v37 = vrot.slane %v471_v28, 4  ;;  %v474_v39 = vsel %vm369_vm7, %v468_v18, %v472_v29  ;;  %vm869_vm15 = vmand %vm2838_vm11, %vm463_vm4  ;;  %s2702_s28 = smov 81   ;;  %s2703_s29 = smov 80  }
  0x18   : > { %v375_v38 = vmul.f32 %v371_v35, %v2832_v26  ;;  %v536_v40 = vperm.slane %v2449_v32, 1  ;;  %v538_v43 = vperm.slane %v2449_v32, 3  ;;  %v670_v44 = vperm.slane %v2451_v33, 1  ;;  %vm1309_vm0 = vmand %vm733_vm8, %vm357_vm2  ;;  %s2704_s30 = smov 82   ;;  %s2705_s7 = smov 127  }
  0x19   : > { %378 = vst [vmem:[#allocation1] ss:$2 sm:$0xff] %v374_v36  ;;  %v475_v42 = vsel %vm369_vm7, %v470_v23, %v473_v37  ;;  %v535_v46 = vperm.slane %v2449_v32, 0  ;;  %v537_v47 = vperm.slane %v2449_v32, 2  ;;  %v672_v49 = vperm.slane %v2451_v33, 3  ;;  %s2706_s8 = smov 126  }
  0x1a   : > { %380 = vst [vmem:[#allocation1 + $0x10] ss:$2 sm:$0xff] %v375_v38  ;;  %v539_v48 = vrot.slane %v536_v40, 4  ;;  %v2547_v50 = vpack.i.bf16 %v475_v42, %v474_v39  ;;  %v540_v51 = vrot.slane %v538_v43, 4  ;;  %v805_v52 = vperm.slane %v2453_v41, 0  ;;  %s2707_s9 = smov 120  }
  0x1b   : > { %v806_v53 = vperm.slane %v2453_v41, 1  ;;  %v669_v54 = vperm.slane %v2451_v33, 0  ;;  %v673_v55 = vrot.slane %v670_v44, 4  ;;  %v807_v56 = vperm.slane %v2453_v41, 2 }
  0x1c   : > { %v808_v57 = vperm.slane %v2453_v41, 3  ;;  %v671_v58 = vperm.slane %v2451_v33, 2  ;;  %v674_v59 = vrot.slane %v672_v49, 4  ;;  %v541_v62 = vsel %vm369_vm7, %v535_v46, %v539_v48 }
  0x1d   : > { %v809_v60 = vrot.slane %v806_v53, 4  ;;  %v542_v63 = vsel %vm369_vm7, %v537_v47, %v540_v51  ;;  %v605_v5 = vperm.slane %v2850_v34, 3  ;;  %v606_v7 = vrot.slane %v603_v45, 4 }
  0x1e   : > { %v810_v4 = vrot.slane %v808_v57, 4  ;;  %v2455_v8 = vsel %vm936_vm12, 1.0, %v3944_v3  ;;  %v2874_v10 = vsel %vm369_vm7, %v669_v54, %v673_v55  ;;  %v604_v12 = vperm.slane %v2850_v34, 2 }
  0x1f   : > { %2548 = vrot.lane.b32.xlu0 %v2547_v50, %s2690_s12  ;;  %v811_v6 = vsel %vm369_vm7, %v805_v52, %v809_v60  ;;  %v2456_v14 = vsel %vm356_vm1, 1.0, %v3944_v3  ;;  %v2552_v17 = vpack.i.bf16 %v542_v63, %v541_v62  ;;  %v2890_v18 = vsel %vm369_vm7, %v671_v58, %v674_v59 }
  0x20   : > { %v381_v9 = vld.sshfl [vmem:[#allocation1] sm:$0xff pattern:$0x75316420]  ;;  %v812_v11 = vsel %vm369_vm7, %v807_v56, %v810_v4  ;;  %v382_v15 = vld.sshfl [vmem:[#allocation1 + $0x8] sm:$0xff pattern:$0x75316420]  ;;  %v608_v20 = vsel %vm369_vm7, %v602_v61, %v606_v7  ;;  %v2562_v50 = vpack.i.bf16 %v2890_v18, %v2874_v10 }
  0x21   : > { %v383_v16 = vld.sshfl [vmem:[#allocation1 + $0x10] sm:$0xff pattern:$0x75316420]  ;;  %v2572_v19 = vpack.i.bf16 %v812_v11, %v811_v6  ;;  %v384_v21 = vld.sshfl [vmem:[#allocation1 + $0x18] sm:$0xff pattern:$0x75316420] }
  0x22   : > { %389 = vst [vmem:[#allocation2 + $0xb0] sm:$0xf] %v381_v9  ;;  %v607_v22 = vrot.slane %v605_v5, 4  ;;  %v940_v23 = vperm.slane %v2455_v8, 0  ;;  %v941_v24 = vperm.slane %v2455_v8, 1  ;;  %v942_v27 = vperm.slane %v2455_v8, 2 }
  0x23   : > { %390 = vst [vmem:[#allocation2 + $0x1b0] sm:$0xf] %v382_v15  ;;  %2573 = vrot.lane.b32.xlu1 %v2572_v19, %s2691_s13  ;;  %v943_v28 = vperm.slane %v2455_v8, 3  ;;  %v2452_v29 = vsel %vm2882_vm13, 1.0, %v3944_v3  ;;  %v1006_v31 = vperm.slane %v2456_v14, 0  ;;  %v1007_v32 = vperm.slane %v2456_v14, 1 }
  0x24   : > { %391 = vst [vmem:[#allocation2 + $0xd8] sm:$0xf] %v383_v16  ;;  %v609_v33 = vsel %vm369_vm7, %v604_v12, %v607_v22  ;;  %v944_v34 = vrot.slane %v941_v24, 4  ;;  %v739_v35 = vperm.slane %v2452_v29, 0  ;;  %v740_v36 = vperm.slane %v2452_v29, 1 }
  0x25   : > { %392 = vst [vmem:[#allocation2 + $0x18] sm:$0xf] %v384_v21  ;;  %v2557_v38 = vpack.i.bf16 %v609_v33, %v608_v20  ;;  %v945_v39 = vrot.slane %v943_v28, 4  ;;  %v741_v40 = vperm.slane %v2452_v29, 2  ;;  %v742_v41 = vperm.slane %v2452_v29, 3 }
  0x26   : > { %v946_v42 = vsel %vm369_vm7, %v940_v23, %v944_v34  ;;  %v743_v43 = vrot.slane %v740_v36, 4  ;;  %v1008_v44 = vperm.slane %v2456_v14, 2  ;;  %v1009_v45 = vperm.slane %v2456_v14, 3 }
  0x27   : > { %2553 = vrot.lane.b32.xlu0 %v2552_v17, %s2692_s14  ;;  %2558 = vrot.lane.b32.xlu2 %v2557_v38, %s2693_s15  ;;  %v947_v46 = vsel %vm369_vm7, %v942_v27, %v945_v39  ;;  %v744_v47 = vrot.slane %v742_v41, 4  ;;  %v1010_v48 = vrot.slane %v1007_v32, 4  ;;  %v2457_v49 = vsel %vm2902_vm14, 1.0, %v3944_v3 }
  0x28   : > { %v2582_v51 = vpack.i.bf16 %v947_v46, %v946_v42  ;;  %v745_v52 = vsel %vm369_vm7, %v739_v35, %v743_v43  ;;  %v1011_v53 = vrot.slane %v1009_v45, 4  ;;  %v1073_v56 = vperm.slane %v2457_v49, 0 }
  0x29   : > { %v746_v54 = vsel %vm369_vm7, %v741_v40, %v744_v47  ;;  %v1012_v55 = vsel %vm369_vm7, %v1006_v31, %v1010_v48  ;;  %v1074_v57 = vperm.slane %v2457_v49, 1  ;;  %v1075_v59 = vperm.slane %v2457_v49, 2 }
  0x2a   : > { %v2567_v58 = vpack.i.bf16 %v746_v54, %v745_v52  ;;  %v1076_v60 = vperm.slane %v2457_v49, 3  ;;  %v2454_v61 = vsel %vm869_vm15, 1.0, %v3944_v3  ;;  %v1013_v30 = vsel %vm369_vm7, %v1008_v44, %v1011_v53 }
  0x2b   : > { %2583 = vrot.lane.b32.xlu1 %v2582_v51, %s2694_s16  ;;  %v1077_v62 = vrot.slane %v1074_v57, 4  ;;  %v873_v63 = vperm.slane %v2454_v61, 0  ;;  %v874_v4 = vperm.slane %v2454_v61, 1  ;;  %v875_v6 = vperm.slane %v2454_v61, 2 }
  0x2c   : > { %v1078_v5 = vrot.slane %v1076_v60, 4  ;;  %v876_v7 = vperm.slane %v2454_v61, 3  ;;  %v2458_v8 = vsel %vm357_vm2, 1.0, %v3944_v3  ;;  %v2459_v20 = vsel %vm463_vm4, 1.0, %v3944_v3 }
  0x2d   : > { %v1079_v9 = vsel %vm369_vm7, %v1073_v56, %v1077_v62  ;;  %v877_v10 = vrot.slane %v874_v4, 4  ;;  %v1140_v11 = vperm.slane %v2458_v8, 0  ;;  %v1141_v12 = vperm.slane %v2458_v8, 1 }
  0x2e   : > { %v1080_v13 = vsel %vm369_vm7, %v1075_v59, %v1078_v5  ;;  %v878_v14 = vrot.slane %v876_v7, 4  ;;  %v1142_v15 = vperm.slane %v2458_v8, 2  ;;  %v1143_v16 = vperm.slane %v2458_v8, 3 }
  0x2f   : > { %2563 = vrot.lane.b32.xlu0 %v2562_v50, %s2695_s17  ;;  %2568 = vrot.lane.b32.xlu2 %v2567_v58, %s2696_s18  ;;  %v2592_v17 = vpack.i.bf16 %v1080_v13, %v1079_v9  ;;  %v879_v18 = vsel %vm369_vm7, %v873_v63, %v877_v10  ;;  %v1144_v19 = vrot.slane %v1141_v12, 4  ;;  %v1246_v23 = vperm.slane %v2459_v20, 0 }
  0x30   : > { %v880_v21 = vsel %vm369_vm7, %v875_v6, %v878_v14  ;;  %v1145_v22 = vrot.slane %v1143_v16, 4  ;;  %v1247_v24 = vperm.slane %v2459_v20, 1  ;;  %v2587_v27 = vpack.i.bf16 %v1013_v30, %v1012_v55 }
  0x31   : > { %v1248_v28 = vperm.slane %v2459_v20, 2  ;;  %v1249_v29 = vperm.slane %v2459_v20, 3  ;;  %v2577_v31 = vpack.i.bf16 %v880_v21, %v879_v18  ;;  %v1146_v32 = vsel %vm369_vm7, %v1140_v11, %v1144_v19 }
  0x32   : > { %v1250_v33 = vrot.slane %v1247_v24, 4  ;;  %v2461_v34 = vsel %vm733_vm8, 1.0, %v3944_v3  ;;  %v1147_v35 = vsel %vm369_vm7, %v1142_v15, %v1145_v22  ;;  %v2460_v38 = vsel %vm1309_vm0, 1.0, %v3944_v3 }
  0x33   : > { %2593 = vrot.lane.b32.xlu1 %v2592_v17, %s2697_s19  ;;  %v1251_v36 = vrot.slane %v1249_v29, 4  ;;  %v1381_v37 = vperm.slane %v2461_v34, 1  ;;  %v1380_v40 = vperm.slane %v2461_v34, 0  ;;  %v1382_v41 = vperm.slane %v2461_v34, 2  ;;  %s2715_s19 = smov 54  }
  0x34   : > { %v1252_v39 = vsel %vm369_vm7, %v1246_v23, %v1250_v33  ;;  %v1383_v42 = vperm.slane %v2461_v34, 3  ;;  %v1314_v46 = vperm.slane %v2460_v38, 1  ;;  %v1316_v47 = vperm.slane %v2460_v38, 3 }
  0x35   : > { %v1253_v43 = vsel %vm369_vm7, %v1248_v28, %v1251_v36  ;;  %v1384_v44 = vrot.slane %v1381_v37, 4  ;;  %vm1510_vm3 = vcmp.lt.s32.totalorder %v2778_v0, 7  ;;  %v2597_v48 = vpack.i.bf16 %v1147_v35, %v1146_v32 }
  0x36   : > { %v1385_v45 = vrot.slane %v1383_v42, 4  ;;  %v2602_v49 = vpack.i.bf16 %v1253_v43, %v1252_v39  ;;  %v2467_v50 = vsel %vm1510_vm3, 1.0, %v3944_v3  ;;  %vm2958_vm5 = vmand %vm1510_vm3, %vm356_vm1  ;;  %v1313_v57 = vperm.slane %v2460_v38, 0 }
  0x37   : > { %2588 = vrot.lane.b32.xlu0 %v2587_v27, %s2698_s20  ;;  %2578 = vrot.lane.b32.xlu2 %v2577_v31, %s2699_s25  ;;  %v1386_v52 = vsel %vm369_vm7, %v1380_v40, %v1384_v44  ;;  %v1747_v54 = vperm.slane %v2467_v50, 0  ;;  %v1748_v55 = vperm.slane %v2467_v50, 1  ;;  %vm2968_vm6 = vmand %vm2958_vm5, %vm357_vm2  ;;  %v1315_v58 = vperm.slane %v2460_v38, 2  ;;  %s2717_s20 = smov 48  }
  0x38   : > { %v1387_v53 = vsel %vm369_vm7, %v1382_v41, %v1385_v45  ;;  %v1749_v59 = vperm.slane %v2467_v50, 2  ;;  %v1750_v60 = vperm.slane %v2467_v50, 3  ;;  %vm1443_vm1 = vmand %vm733_vm8, %vm463_vm4  ;;  %v1317_v61 = vrot.slane %v1314_v46, 4 }
  0x39   : > { %v1318_v30 = vrot.slane %v1316_v47, 4  ;;  %v1751_v62 = vrot.slane %v1748_v55, 4  ;;  %v2464_v63 = vsel %vm2958_vm5, 1.0, %v3944_v3  ;;  %vm2983_vm9 = vmand %vm1510_vm3, %vm733_vm8  ;;  %v2612_v5 = vpack.i.bf16 %v1387_v53, %v1386_v52 }
  0x3a   : > { %v1752_v6 = vrot.slane %v1750_v60, 4  ;;  %v1551_v7 = vperm.slane %v2464_v63, 0  ;;  %v1552_v8 = vperm.slane %v2464_v63, 1  ;;  %v1553_v10 = vperm.slane %v2464_v63, 2  ;;  %vm1875_vm8 = vmand %vm2983_vm9, %vm357_vm2 }
  0x3b   : > { %2603 = vrot.lane.b32.xlu1 %v2602_v49, %s2700_s26  ;;  %v1753_v9 = vsel %vm369_vm7, %v1747_v54, %v1751_v62  ;;  %v1554_v11 = vperm.slane %v2464_v63, 3  ;;  %v2462_v12 = vsel %vm1443_vm1, 1.0, %v3944_v3  ;;  %v1319_v14 = vsel %vm369_vm7, %v1313_v57, %v1317_v61  ;;  %vm1678_vm10 = vmand %vm1510_vm3, %vm357_vm2  ;;  %s2719_s26 = smov 46  }
  0x3c   : > { %v1754_v1 = vsel %vm369_vm7, %v1749_v59, %v1752_v6  ;;  %v1555_v13 = vrot.slane %v1552_v8, 4  ;;  %v1320_v15 = vsel %vm369_vm7, %v1315_v58, %v1318_v30  ;;  %v1448_v19 = vperm.slane %v2462_v12, 1  ;;  %vm1613_vm11 = vmand %vm2958_vm5, %vm463_vm4 }
  0x3d   : > { %v1556_v16 = vrot.slane %v1554_v11, 4  ;;  %v2637_v17 = vpack.i.bf16 %v1754_v1, %v1753_v9  ;;  %v1450_v21 = vperm.slane %v2462_v12, 3  ;;  %v2469_v22 = vsel %vm1875_vm8, 1.0, %v3944_v3  ;;  %vm2005_vm2 = vmand %vm2983_vm9, %vm463_vm4 }
  0x3e   : > { %v1557_v18 = vsel %vm369_vm7, %v1551_v7, %v1555_v13  ;;  %v2607_v23 = vpack.i.bf16 %v1320_v15, %v1319_v14  ;;  %v1447_v24 = vperm.slane %v2462_v12, 0  ;;  %v1449_v28 = vperm.slane %v2462_v12, 2  ;;  %vm1808_vm12 = vmand %vm1510_vm3, %vm463_vm4 }
  0x3f   : > { %2598 = vrot.lane.b32.xlu0 %v2597_v48, %s2701_s27  ;;  %2613 = vrot.lane.b32.xlu2 %v2612_v5, %s2702_s28  ;;  %v1558_v20 = vsel %vm369_vm7, %v1553_v10, %v1556_v16  ;;  %v1879_v29 = vperm.slane %v2469_v22, 0  ;;  %v1880_v31 = vperm.slane %v2469_v22, 1  ;;  %v1451_v32 = vrot.slane %v1448_v19, 4 }
  0x40   : > { %v2622_v27 = vpack.i.bf16 %v1558_v20, %v1557_v18  ;;  %v1452_v33 = vrot.slane %v1450_v21, 4  ;;  %v1881_v34 = vperm.slane %v2469_v22, 2  ;;  %v1882_v35 = vperm.slane %v2469_v22, 3 }
  0x41   : > { %v1883_v36 = vrot.slane %v1880_v31, 4  ;;  %v2466_v37 = vsel %vm1678_vm10, 1.0, %v3944_v3  ;;  %v2465_v41 = vsel %vm1613_vm11, 1.0, %v3944_v3  ;;  %v1453_v45 = vsel %vm369_vm7, %v1447_v24, %v1451_v32 }
  0x42   : > { %v1884_v38 = vrot.slane %v1882_v35, 4  ;;  %v1682_v39 = vperm.slane %v2466_v37, 0  ;;  %v1683_v40 = vperm.slane %v2466_v37, 1  ;;  %v1684_v43 = vperm.slane %v2466_v37, 2 }
  0x43   : > { %2638 = vrot.lane.b32.xlu1 %v2637_v17, %s2693_s15  ;;  %v1885_v42 = vsel %vm369_vm7, %v1879_v29, %v1883_v36  ;;  %v1685_v44 = vperm.slane %v2466_v37, 3  ;;  %v1454_v46 = vsel %vm369_vm7, %v1449_v28, %v1452_v33  ;;  %v1618_v51 = vperm.slane %v2465_v41, 1  ;;  %v395_v37 = vld [vmem:[%s2826_s10 + $0x10] sm:$0xf]  ;;  %s2712_s15 = smov 110  }
  0x44   : > { %v1886_v47 = vsel %vm369_vm7, %v1881_v34, %v1884_v38  ;;  %v1686_v48 = vrot.slane %v1683_v40, 4  ;;  %v1620_v52 = vperm.slane %v2465_v41, 3  ;;  %v2617_v55 = vpack.i.bf16 %v1454_v46, %v1453_v45 }
  0x45   : > { %v2647_v49 = vpack.i.bf16 %v1886_v47, %v1885_v42  ;;  %v1687_v50 = vrot.slane %v1685_v44, 4  ;;  %v1617_v58 = vperm.slane %v2465_v41, 0  ;;  %v1619_v59 = vperm.slane %v2465_v41, 2 }
  0x46   : > { %v1688_v53 = vsel %vm369_vm7, %v1682_v39, %v1686_v48  ;;  %v1621_v60 = vrot.slane %v1618_v51, 4  ;;  %v1622_v61 = vrot.slane %v1620_v52, 4  ;;  %v2471_v5 = vsel %vm2005_vm2, 1.0, %v3944_v3  ;;  %v462_v51 = vld [vmem:[%s2826_s10 + $0x10] sm:$0xf] }
  0x47   : > { %2608 = vrot.lane.b32.xlu0 %v2607_v23, %s2703_s29  ;;  %2623 = vrot.lane.b32.xlu2 %v2622_v27, %s2689_s11  ;;  %v1689_v54 = vsel %vm369_vm7, %v1684_v43, %v1687_v50  ;;  %v2010_v6 = vperm.slane %v2471_v5, 1  ;;  %v2012_v7 = vperm.slane %v2471_v5, 3  ;;  %v2468_v8 = vsel %vm1808_vm12, 1.0, %v3944_v3  ;;  %s2708_s11 = smov 119  }
  0x48   : > { %v2632_v57 = vpack.i.bf16 %v1689_v54, %v1688_v53  ;;  %v1623_v30 = vsel %vm369_vm7, %v1617_v58, %v1621_v60  ;;  %v1624_v62 = vsel %vm369_vm7, %v1619_v59, %v1622_v61  ;;  %v2009_v9 = vperm.slane %v2471_v5, 0 }
  0x49   : > { %v2627_v63 = vpack.i.bf16 %v1624_v62, %v1623_v30  ;;  %v2011_v10 = vperm.slane %v2471_v5, 2  ;;  %v2013_v11 = vrot.slane %v2010_v6, 4  ;;  %v2014_v12 = vrot.slane %v2012_v7, 4 }
  0x4a   : > { %v1813_v1 = vperm.slane %v2468_v8, 1  ;;  %v1815_v13 = vperm.slane %v2468_v8, 3  ;;  %v2470_v14 = vsel %vm2983_vm9, 1.0, %v3944_v3  ;;  %v1812_v2 = vperm.slane %v2468_v8, 0 }
  0x4b   : > { %2648 = vrot.lane.b32.xlu1 %v2647_v49, %s2696_s18  ;;  %v2015_v15 = vsel %vm369_vm7, %v2009_v9, %v2013_v11  ;;  %v2016_v16 = vsel %vm369_vm7, %v2011_v10, %v2014_v12  ;;  %v1814_v17 = vperm.slane %v2468_v8, 2  ;;  %v1943_v20 = vperm.slane %v2470_v14, 0  ;;  %v530_v12 = vld [vmem:[%s2826_s10 + $0x10] sm:$0xf]  ;;  %s2714_s18 = smov 56  }
  0x4c   : > { %v2657_v0 = vpack.i.bf16 %v2016_v16, %v2015_v15  ;;  %v1816_v18 = vrot.slane %v1813_v1, 4  ;;  %v1817_v19 = vrot.slane %v1815_v13, 4  ;;  %v1944_v21 = vperm.slane %v2470_v14, 1 }
  0x4d   : > { %v1945_v22 = vperm.slane %v2470_v14, 2  ;;  %v1946_v23 = vperm.slane %v2470_v14, 3  ;;  %vm3947_vm4 = vcmask 7168   ;;  %vm482_vm13 = vcmask 15360  }
  0x4e   : > { %v1818_v24 = vsel %vm369_vm7, %v1812_v2, %v1816_v18  ;;  %v1819_v4 = vsel %vm369_vm7, %v1814_v17, %v1817_v19  ;;  %v1947_v28 = vrot.slane %v1944_v21, 4  ;;  %vm549_vm14 = vcmask 64512  }
  0x4f   : > { %2618 = vrot.lane.b32.xlu0 %v2617_v55, %s2704_s30  ;;  %2633 = vrot.lane.b32.xlu2 %v2632_v57, %s2692_s14  ;;  %v2642_v27 = vpack.i.bf16 %v1819_v4, %v1818_v24  ;;  %v1948_v29 = vrot.slane %v1946_v23, 4  ;;  %vm616_vm15 = vcmask 72704   ;;  %vm683_vm0 = vcmask 80896   ;;  %s2711_s14 = smov 111  }
  0x50   : > { %v1949_v31 = vsel %vm369_vm7, %v1943_v20, %v1947_v28  ;;  %vm753_vm3 = vcmask 130048   ;;  %vm819_vm5 = vcmask 138240   ;;  %vm887_vm1 = vcmask 146432  }
  0x51   : > { %v1950_v32 = vsel %vm369_vm7, %v1945_v22, %v1948_v29  ;;  %vm954_vm9 = vcmask 523264   ;;  %vm1020_vm8 = vcmask 531456   ;;  %vm1087_vm10 = vcmask 539648  }
  0x52   : > { %v2652_v33 = vpack.i.bf16 %v1950_v32, %v1949_v31  ;;  %v598_v31 = vld [vmem:[%s2826_s10 + $0x10] sm:$0xf]  ;;  %vm1154_vm11 = vcmask 588800   ;;  %vm447_vm2 = vcmask 1039360   ;;  %vm1260_vm12 = vcmask 605184  }
  0x53   : > { %2658 = vrot.lane.b32.xlu1 %v2657_v0, %s2699_s25  ;;  %s2718_s25 = smov 47  }
  0x57   : > { %2628 = vrot.lane.b32.xlu0 %v2627_v63, %s2690_s12  ;;  %2643 = vrot.lane.b32.xlu2 %v2642_v27, %s2695_s17  ;;  %s2709_s12 = smov 118   ;;  %s2713_s17 = smov 63  }
  0x5f   : > { %2653 = vrot.lane.b32.xlu0 %v2652_v33, %s2691_s13  ;;  %s2710_s13 = smov 112  }
  0x81   : > { %v2559_v30 = vpop.permute.xlu2 %2558 }
  0x82   : > { %v2561_v8 = vunpack.i.h.bf16 %v2559_v30  ;;  %v2560_v9 = vunpack.i.l.bf16 %v2559_v30 }
  0x84   : > { %v615_v16 = vrot.slane %v2561_v8, 4  ;;  %v614_v2 = vrot.slane %v2560_v9, 4 }
  0x86   : > { %v618_v24 = vsel %vm369_vm7, %v614_v2, %v615_v16  ;;  %v617_v28 = vsel %vm616_vm15, %v614_v2, %v2560_v9 }
  0x87   : > { %v619_v29 = vsel %vm616_vm15, %v618_v24, %v2561_v8  ;;  %v623_v32 = vmul.f32 %v617_v28, %v2829_v25 }
  0x89   : > { %v2544_v34 = vpop.permute.xlu0 %2543 }
  0x8a   : > { %v2546_v35 = vunpack.i.h.bf16 %v2544_v34  ;;  %v2545_v36 = vunpack.i.l.bf16 %v2544_v34 }
  0x8c   : > { %v412_v38 = vrot.slane %v2546_v35, 4  ;;  %v411_v39 = vrot.slane %v2545_v36, 4 }
  0x8e   : > { %v414_v40 = vsel %vm3947_vm4, %v411_v39, %v2545_v36  ;;  %v415_v41 = vsel %vm369_vm7, %v411_v39, %v412_v38  ;;  %v422_v42 = vmul.f32 %v412_v38, %v395_v37  ;;  %v625_v38 = vmul.f32 %v615_v16, %v598_v31  ;;  %v2569_v39 = vpop.permute.xlu2 %2568 }
  0x8f   : > { %v416_v43 = vsel %vm3947_vm4, %v415_v41, %v2546_v35  ;;  %v420_v44 = vmul.f32 %v414_v40, %v2829_v25  ;;  %v624_v35 = vmul.f32 %v619_v29, %v2832_v26 }
  0x90   : > { %v421_v45 = vmul.f32 %v416_v43, %v2832_v26  ;;  %431 = vst [vmem:[#allocation1 + $0x21] ss:$2 sm:$0xff] %v422_v42 }
  0x91   : > { %427 = vst [vmem:[#allocation1 + $0x1] ss:$2 sm:$0xff] %v420_v44  ;;  %v2549_v46 = vpop.permute.xlu0 %2548  ;;  %v2571_v44 = vunpack.i.h.bf16 %v2569_v39 }
  0x92   : > { %429 = vst [vmem:[#allocation1 + $0x11] ss:$2 sm:$0xff] %v421_v45  ;;  %v2551_v47 = vunpack.i.h.bf16 %v2549_v46  ;;  %v2550_v48 = vunpack.i.l.bf16 %v2549_v46  ;;  %v2570_v45 = vunpack.i.l.bf16 %v2569_v39 }
  0x94   : > { %v481_v49 = vrot.slane %v2551_v47, 4  ;;  %v480_v50 = vrot.slane %v2550_v48, 4 }
  0x96   : > { %v483_v52 = vsel %vm482_vm13, %v480_v50, %v2550_v48  ;;  %v484_v53 = vsel %vm369_vm7, %v480_v50, %v481_v49  ;;  %v491_v61 = vmul.f32 %v481_v49, %v462_v51  ;;  %v664_v48 = vld [vmem:[%s2826_s10 + $0x10] sm:$0xf]  ;;  %v752_v50 = vrot.slane %v2571_v44, 4 }
  0x97   : > { %v436_v54 = vld.sshfl [vmem:[#allocation1 + $0x20] sm:$0xff pattern:$0x75316420]  ;;  %v485_v55 = vsel %vm482_vm13, %v484_v53, %v2551_v47  ;;  %v489_v57 = vmul.f32 %v483_v52, %v2829_v25  ;;  %v751_v51 = vrot.slane %v2570_v45, 4  ;;  %v2574_v53 = vpop.permute.xlu1 %2573 }
  0x98   : > { %v432_v58 = vld.sshfl [vmem:[#allocation1] sm:$0xff pattern:$0x75316420]  ;;  %v433_v59 = vld.sshfl [vmem:[#allocation1 + $0x8] sm:$0xff pattern:$0x75316420]  ;;  %v490_v60 = vmul.f32 %v485_v55, %v2832_v26  ;;  %445 = vrot.lane.b32.xlu2 %v436_v54, %s2705_s7  ;;  %v3089_v54 = vpop.permute.xlu2 %2578 }
  0x99   : > { %v434_v62 = vld.sshfl [vmem:[#allocation1 + $0x10] sm:$0xff pattern:$0x75316420]  ;;  %v435_v63 = vld.sshfl [vmem:[#allocation1 + $0x18] sm:$0xff pattern:$0x75316420]  ;;  %v2554_v5 = vpop.permute.xlu0 %2553  ;;  %439 = vrot.lane.b32.xlu1 %v433_v59, %s2705_s7  ;;  %437 = vrot.lane.b32.xlu0 %v432_v58, %s2705_s7  ;;  %v755_v30 = vsel %vm369_vm7, %v751_v51, %v752_v50  ;;  %v2581_v24 = vunpack.i.h.bf16 %v3089_v54 }
  0x9a   : > { %495 = vst [vmem:[#allocation1] ss:$2 sm:$0xff] %v489_v57  ;;  %v2556_v6 = vunpack.i.h.bf16 %v2554_v5  ;;  %v2555_v7 = vunpack.i.l.bf16 %v2554_v5  ;;  %v754_v5 = vsel %vm753_vm3, %v751_v51, %v2570_v45  ;;  %v935_v51 = vld [vmem:[%s2826_s10 + $0x10] sm:$0xf] }
  0x9b   : > { %497 = vst [vmem:[#allocation1 + $0x10] ss:$2 sm:$0xff] %v490_v60 }
  0x9c   : > { %499 = vst [vmem:[#allocation1 + $0x20] ss:$2 sm:$0xff] %v491_v61  ;;  %v548_v10 = vrot.slane %v2556_v6, 4  ;;  %v547_v11 = vrot.slane %v2555_v7, 4 }
  0x9e   : > { %v550_v1 = vsel %vm549_vm14, %v547_v11, %v2555_v7  ;;  %v551_v13 = vsel %vm369_vm7, %v547_v11, %v548_v10  ;;  %v558_v19 = vmul.f32 %v548_v10, %v530_v12  ;;  %v732_v7 = vld [vmem:[%s2826_s10 + $0x10] sm:$0xf]  ;;  %v760_v10 = vmul.f32 %v754_v5, %v2829_v25 }
  0x9f   : > { %v552_v14 = vsel %vm549_vm14, %v551_v13, %v2556_v6  ;;  %v556_v15 = vmul.f32 %v550_v1, %v2829_v25  ;;  %v756_v6 = vsel %vm753_vm3, %v755_v30, %v2571_v44 }
  0xa0   : > { %v557_v17 = vmul.f32 %v552_v14, %v2832_v26  ;;  %443 = vrot.lane.b32.xlu2 %v435_v63, %s2705_s7  ;;  %v2575_v63 = vunpack.i.l.bf16 %v2574_v53  ;;  %v3101_v11 = vpop.permute.xlu2 %2613  ;;  %v761_v12 = vmul.f32 %v756_v6, %v2832_v26  ;;  %v762_v14 = vmul.f32 %v752_v50, %v732_v7 }
  0xa1   : > { %v500_v0 = vld.sshfl [vmem:[#allocation1] sm:$0xff pattern:$0x75316420]  ;;  %v501_v18 = vld.sshfl [vmem:[#allocation1 + $0x8] sm:$0xff pattern:$0x75316420]  ;;  %441 = vrot.lane.b32.xlu1 %v434_v62, %s2705_s7  ;;  %v2564_v20 = vpop.permute.xlu0 %2563  ;;  %v2576_v62 = vunpack.i.h.bf16 %v2574_v53 }
  0xa2   : > { %v502_v21 = vld.sshfl [vmem:[#allocation1 + $0x10] sm:$0xff pattern:$0x75316420]  ;;  %v503_v22 = vld.sshfl [vmem:[#allocation1 + $0x18] sm:$0xff pattern:$0x75316420]  ;;  %v2566_v4 = vunpack.i.h.bf16 %v2564_v20  ;;  %v2565_v27 = vunpack.i.l.bf16 %v2564_v20 }
  0xa3   : > { %v504_v23 = vld.sshfl [vmem:[#allocation1 + $0x20] sm:$0xff pattern:$0x75316420]  ;;  %563 = vst [vmem:[#allocation1 + $0x1] ss:$2 sm:$0xff] %v556_v15  ;;  %509 = vrot.lane.b32.xlu0 %v502_v21, %s2706_s8  ;;  %v818_v8 = vrot.slane %v2576_v62, 4 }
  0xa4   : > { %565 = vst [vmem:[#allocation1 + $0x11] ss:$2 sm:$0xff] %v557_v17  ;;  %v682_v33 = vrot.slane %v2566_v4, 4  ;;  %v681_v34 = vrot.slane %v2565_v27, 4  ;;  %v817_v9 = vrot.slane %v2575_v63, 4 }
  0xa5   : > { %567 = vst [vmem:[#allocation1 + $0x21] ss:$2 sm:$0xff] %v558_v19  ;;  %v801_v19 = vld [vmem:[%s2826_s10 + $0x10] sm:$0xf] }
  0xa6   : > { %v685_v43 = vsel %vm369_vm7, %v681_v34, %v682_v33  ;;  %v684_v46 = vsel %vm683_vm0, %v681_v34, %v2565_v27  ;;  %v692_v58 = vmul.f32 %v682_v33, %v664_v48  ;;  %v821_v2 = vsel %vm369_vm7, %v817_v9, %v818_v8 }
  0xa7   : > { %v686_v47 = vsel %vm683_vm0, %v685_v43, %v2566_v4  ;;  %v690_v49 = vmul.f32 %v684_v46, %v2829_v25  ;;  %v820_v20 = vsel %vm819_vm5, %v817_v9, %v2575_v63  ;;  %v2580_v4 = vunpack.i.l.bf16 %v3089_v54  ;;  %v3178_v9 = vld [vmem:[%s2826_s10] sm:$0xff] }
  0xa8   : > { %513 = vrot.lane.b32.xlu2 %v504_v23, %s2706_s8  ;;  %v691_v52 = vmul.f32 %v686_v47, %v2832_v26  ;;  %v3120_v21 = vpop.permute.xlu2 %2623  ;;  %v828_v23 = vmul.f32 %v818_v8, %v801_v19  ;;  %v826_v28 = vmul.f32 %v820_v20, %v2829_v25  ;;  %v886_v34 = vrot.slane %v2581_v24, 4  ;;  %v1002_v20 = vld [vmem:[%s2826_s10 + $0x10] sm:$0xf] }
  0xa9   : > { %505 = vrot.lane.b32.xlu1 %v500_v0, %s2706_s8  ;;  %v822_v0 = vsel %vm819_vm5, %v821_v2, %v2576_v62  ;;  %v3152_v53 = vpop.permute.xlu0 %2588 }
  0xaa   : > { %v3076_v36 = vld.sshfl [vmem:[#allocation1] sm:$0xff pattern:$0x75316420]  ;;  %v569_v37 = vld.sshfl [vmem:[#allocation1 + $0x8] sm:$0xff pattern:$0x75316420]  ;;  %v2590_v7 = vunpack.i.l.bf16 %v3152_v53 }
  0xab   : > { %v570_v40 = vld.sshfl [vmem:[#allocation1 + $0x10] sm:$0xff pattern:$0x75316420]  ;;  %v3078_v41 = vld.sshfl [vmem:[#allocation1 + $0x18] sm:$0xff pattern:$0x75316420] }
  0xac   : > { %v572_v42 = vld.sshfl [vmem:[#allocation1 + $0x20] sm:$0xff pattern:$0x75316420]  ;;  %629 = vst [vmem:[#allocation1] ss:$2 sm:$0xff] %v623_v32  ;;  %577 = vrot.lane.b32.xlu0 %v570_v40, %s2707_s9 }
  0xad   : > { %631 = vst [vmem:[#allocation1 + $0x10] ss:$2 sm:$0xff] %v624_v35  ;;  %v885_v35 = vrot.slane %v2580_v4, 4 }
  0xae   : > { %633 = vst [vmem:[#allocation1 + $0x20] ss:$2 sm:$0xff] %v625_v38 }
  0xaf   : > { %v889_v39 = vsel %vm369_vm7, %v885_v35, %v886_v34  ;;  %v888_v44 = vsel %vm887_vm1, %v885_v35, %v2580_v4 }
  0xb0   : > { %507 = vrot.lane.b32.xlu2 %v501_v18, %s2706_s8  ;;  %v3114_v18 = vpop.permute.xlu1 %2583  ;;  %v2634_v38 = vpop.permute.xlu2 %2633  ;;  %v894_v50 = vmul.f32 %v888_v44, %v2829_v25 }
  0xb1   : > { %511 = vrot.lane.b32.xlu1 %v503_v22, %s2706_s8  ;;  %v827_v22 = vmul.f32 %v822_v0, %v2832_v26  ;;  %v2585_v43 = vunpack.i.l.bf16 %v3114_v18  ;;  %v2636_v47 = vunpack.i.h.bf16 %v2634_v38  ;;  %v2635_v48 = vunpack.i.l.bf16 %v2634_v38  ;;  %v3198_v4 = vpop.permute.xlu0 %2598 }
  0xb3   : > { %v634_v55 = vld.sshfl [vmem:[#allocation1] sm:$0xff pattern:$0x75316420]  ;;  %v635_v57 = vld.sshfl [vmem:[#allocation1 + $0x8] sm:$0xff pattern:$0x75316420] }
  0xb4   : > { %v636_v59 = vld.sshfl [vmem:[#allocation1 + $0x10] sm:$0xff pattern:$0x75316420]  ;;  %v637_v60 = vld.sshfl [vmem:[#allocation1 + $0x18] sm:$0xff pattern:$0x75316420]  ;;  %639 = vrot.lane.b32.xlu0 %v634_v55, %s2708_s11 }
  0xb5   : > { %v3092_v61 = vld.sshfl [vmem:[#allocation1 + $0x20] sm:$0xff pattern:$0x75316420]  ;;  %697 = vst [vmem:[#allocation1 + $0x1] ss:$2 sm:$0xff] %v690_v49 }
  0xb6   : > { %699 = vst [vmem:[#allocation1 + $0x11] ss:$2 sm:$0xff] %v691_v52  ;;  %v952_v52 = vrot.slane %v2585_v43, 4 }
  0xb7   : > { %701 = vst [vmem:[#allocation1 + $0x21] ss:$2 sm:$0xff] %v692_v58  ;;  %v3159_v58 = vrot.slane %v2636_v47, 4 }
  0xb8   : > { %575 = vrot.lane.b32.xlu2 %v569_v37, %s2707_s9  ;;  %v868_v37 = vld [vmem:[%s2826_s10 + $0x10] sm:$0xf] }
  0xb9   : > { %581 = vrot.lane.b32.xlu1 %v572_v42, %s2707_s9  ;;  %v896_v40 = vmul.f32 %v886_v34, %v868_v37  ;;  %v2586_v42 = vunpack.i.h.bf16 %v3114_v18 }
  0xbb   : > { %v953_v46 = vrot.slane %v2586_v42, 4 }
  0xbc   : > { %v702_v1 = vld.sshfl [vmem:[#allocation1] sm:$0xff pattern:$0x75316420]  ;;  %v703_v13 = vld.sshfl [vmem:[#allocation1 + $0x8] sm:$0xff pattern:$0x75316420]  ;;  %641 = vrot.lane.b32.xlu0 %v635_v57, %s2708_s11 }
  0xbd   : > { %v3105_v15 = vld.sshfl [vmem:[#allocation1 + $0x10] sm:$0xff pattern:$0x75316420]  ;;  %v3107_v16 = vld.sshfl [vmem:[#allocation1 + $0x18] sm:$0xff pattern:$0x75316420]  ;;  %v963_v63 = vmul.f32 %v953_v46, %v935_v51  ;;  %v956_v6 = vsel %vm369_vm7, %v952_v52, %v953_v46 }
  0xbe   : > { %v3110_v17 = vld.sshfl [vmem:[#allocation1 + $0x20] sm:$0xff pattern:$0x75316420]  ;;  %766 = vst [vmem:[#allocation1] ss:$2 sm:$0xff] %v760_v10  ;;  %v955_v10 = vsel %vm954_vm9, %v952_v52, %v2585_v43  ;;  %v957_v2 = vsel %vm954_vm9, %v956_v6, %v2586_v42  ;;  %v3234_v52 = vpop.permute.xlu0 %2608  ;;  %v3260_v6 = vld [vmem:[%s2826_s10 + $0xc] sm:$0xff] }
  0xbf   : > { %768 = vst [vmem:[#allocation1 + $0x10] ss:$2 sm:$0xff] %v761_v12  ;;  %v961_v19 = vmul.f32 %v955_v10, %v3178_v9  ;;  %v1068_v46 = vld [vmem:[%s2826_s10 + $0x10] sm:$0xf] }
  0xc0   : > { %770 = vst [vmem:[#allocation1 + $0x20] ss:$2 sm:$0xff] %v762_v14  ;;  %643 = vrot.lane.b32.xlu2 %v636_v59, %s2708_s11  ;;  %v1694_v59 = vrot.slane %v2635_v48, 4  ;;  %v3186_v14 = vld [vmem:[%s2826_s10 + $0x8] sm:$0xff] }
  0xc1   : > { %573 = vrot.lane.b32.xlu1 %v3076_v36, %s2707_s9  ;;  %v3134_v36 = vpop.permute.xlu1 %2593 }
  0xc2   : > { %v1697_v5 = vsel %vm369_vm7, %v1694_v59, %v3159_v58  ;;  %v2595_v38 = vunpack.i.l.bf16 %v3134_v36 }
  0xc3   : > { %v3175_v8 = vsel %vm549_vm14, %v1697_v5, %v2636_v47 }
  0xc4   : > { %709 = vrot.lane.b32.xlu0 %v703_v13, %s2709_s12  ;;  %v1085_v47 = vrot.slane %v2595_v38, 4 }
  0xc5   : > { %v3126_v27 = vld.sshfl [vmem:[#allocation1] sm:$0xff pattern:$0x75316420]  ;;  %v772_v29 = vld.sshfl [vmem:[#allocation1 + $0x8] sm:$0xff pattern:$0x75316420] }
  0xc6   : > { %v3129_v31 = vld.sshfl [vmem:[#allocation1 + $0x10] sm:$0xff pattern:$0x75316420]  ;;  %v3131_v32 = vld.sshfl [vmem:[#allocation1 + $0x18] sm:$0xff pattern:$0x75316420] }
  0xc7   : > { %v775_v33 = vld.sshfl [vmem:[#allocation1 + $0x20] sm:$0xff pattern:$0x75316420]  ;;  %835 = vst [vmem:[#allocation1 + $0x11] ss:$2 sm:$0xff] %v827_v22  ;;  %v1018_v22 = vrot.slane %v2590_v7, 4 }
  0xc8   : > { %837 = vst [vmem:[#allocation1 + $0x21] ss:$2 sm:$0xff] %v828_v23  ;;  %645 = vrot.lane.b32.xlu2 %v637_v60, %s2708_s11  ;;  %v2644_v60 = vpop.permute.xlu2 %2643 }
  0xc9   : > { %579 = vrot.lane.b32.xlu1 %v3078_v41, %s2707_s9  ;;  %833 = vst [vmem:[#allocation1 + $0x1] ss:$2 sm:$0xff] %v826_v28  ;;  %v890_v41 = vsel %vm887_vm1, %v889_v39, %v2581_v24  ;;  %v3148_v49 = vpop.permute.xlu1 %2603  ;;  %v2646_v25 = vunpack.i.h.bf16 %v2644_v60  ;;  %v2645_v13 = vunpack.i.l.bf16 %v2644_v60  ;;  %v962_v24 = vmul.f32 %v957_v2, %v3186_v14 }
  0xca   : > { %v895_v55 = vmul.f32 %v890_v41, %v2832_v26  ;;  %v3168_v26 = vsel %vm549_vm14, %v1694_v59, %v2635_v48  ;;  %v2600_v60 = vunpack.i.l.bf16 %v3198_v4  ;;  %vm1327_vm14 = vcmask 654336  }
  0xcb   : > { %v1824_v23 = vrot.slane %v2645_v13, 4 }
  0xcc   : > { %784 = vrot.lane.b32.xlu0 %v775_v33, %s2710_s13  ;;  %v2596_v33 = vunpack.i.h.bf16 %v3134_v36  ;;  %v1021_v36 = vsel %vm1020_vm8, %v1018_v22, %v2590_v7 }
  0xcd   : > { %v3201_v28 = vsel %vm683_vm0, %v1824_v23, %v2645_v13 }
  0xce   : > { %v3156_v54 = vld.sshfl [vmem:[#allocation1 + $0x18] sm:$0xff pattern:$0x75316420]  ;;  %v3163_v62 = vld.sshfl [vmem:[#allocation1 + $0x10] sm:$0xff pattern:$0x75316420] }
  0xcf   : > { %v3144_v45 = vld.sshfl [vmem:[#allocation1 + $0x20] sm:$0xff pattern:$0x75316420]  ;;  %902 = vst [vmem:[#allocation1 + $0x10] ss:$2 sm:$0xff] %v895_v55  ;;  %v1086_v44 = vrot.slane %v2596_v33, 4 }
  0xd0   : > { %904 = vst [vmem:[#allocation1 + $0x20] ss:$2 sm:$0xff] %v896_v40  ;;  %707 = vrot.lane.b32.xlu2 %v702_v1, %s2709_s12  ;;  %v838_v57 = vld.sshfl [vmem:[#allocation1] sm:$0xff pattern:$0x75316420]  ;;  %v3183_v1 = vrot.slane %v2646_v25, 4 }
  0xd1   : > { %647 = vrot.lane.b32.xlu1 %v3092_v61, %s2708_s11  ;;  %v3161_v30 = vld.sshfl [vmem:[#allocation1 + $0x8] sm:$0xff pattern:$0x75316420]  ;;  %v2591_v61 = vunpack.i.h.bf16 %v3152_v53  ;;  %v3191_v18 = vpop.permute.xlu1 %2638  ;;  %v2601_v53 = vunpack.i.h.bf16 %v3198_v4  ;;  %v1089_v59 = vsel %vm369_vm7, %v1085_v47, %v1086_v44  ;;  %v1088_v4 = vsel %vm1087_vm10, %v1085_v47, %v2595_v38 }
  0xd2   : > { %900 = vst [vmem:[#allocation1] ss:$2 sm:$0xff] %v894_v50  ;;  %v1090_v13 = vsel %vm1087_vm10, %v1089_v59, %v2596_v33  ;;  %vm649_vm10 = vcmask 973824  }
  0xd3   : > { %v1019_v0 = vrot.slane %v2591_v61, 4  ;;  %v1153_v2 = vrot.slane %v2601_v53, 4 }
  0xd4   : > { %778 = vrot.lane.b32.xlu0 %v772_v29, %s2710_s13 }
  0xd5   : > { %v1029_v29 = vmul.f32 %v1019_v0, %v1002_v20  ;;  %v1022_v37 = vsel %vm369_vm7, %v1018_v22, %v1019_v0  ;;  %v1136_v20 = vld [vmem:[%s2826_s10 + $0x10] sm:$0xf]  ;;  %v1152_v22 = vrot.slane %v2600_v60, 4 }
  0xd6   : > { %v3216_v39 = vld.sshfl [vmem:[#allocation1 + $0x10] sm:$0xff pattern:$0x75316420]  ;;  %v3218_v40 = vld.sshfl [vmem:[#allocation1 + $0x18] sm:$0xff pattern:$0x75316420]  ;;  %v1023_v43 = vsel %vm1020_vm8, %v1022_v37, %v2591_v61 }
  0xd7   : > { %v3181_v12 = vld.sshfl [vmem:[#allocation1 + $0x20] sm:$0xff pattern:$0x75316420]  ;;  %970 = vst [vmem:[#allocation1 + $0x11] ss:$2 sm:$0xff] %v962_v24  ;;  %v1028_v51 = vmul.f32 %v1023_v43, %v3186_v14  ;;  %v1156_v37 = vsel %vm369_vm7, %v1152_v22, %v1153_v2  ;;  %v3281_v43 = vpop.permute.xlu0 %2618  ;;  %v1155_v59 = vsel %vm1154_vm11, %v1152_v22, %v2600_v60  ;;  %vm1461_vm8 = vcmask 670720  }
  0xd8   : > { %972 = vst [vmem:[#allocation1 + $0x21] ss:$2 sm:$0xff] %v963_v63  ;;  %711 = vrot.lane.b32.xlu2 %v3105_v15, %s2709_s12  ;;  %v1827_v15 = vsel %vm369_vm7, %v1824_v23, %v3183_v1 }
  0xd9   : > { %715 = vrot.lane.b32.xlu1 %v3110_v17, %s2709_s12  ;;  %v3208_v34 = vsel %vm683_vm0, %v1827_v15, %v2646_v25  ;;  %v3210_v17 = vld.sshfl [vmem:[#allocation1 + $0x8] sm:$0xff pattern:$0x75316420]  ;;  %v3212_v35 = vld.sshfl [vmem:[#allocation1] sm:$0xff pattern:$0x75316420]  ;;  %v3225_v41 = vpop.permute.xlu1 %2648  ;;  %v1095_v15 = vmul.f32 %v1090_v13, %v3186_v14 }
  0xda   : > { %968 = vst [vmem:[#allocation1 + $0x1] ss:$2 sm:$0xff] %v961_v19  ;;  %v2651_v48 = vunpack.i.h.bf16 %v3225_v41  ;;  %v3943_v50 = vunpack.i.l.bf16 %v3225_v41  ;;  %vm1394_vm0 = vcmask 662528  }
  0xdc   : > { %843 = vrot.lane.b32.xlu0 %v838_v57, %s2711_s14  ;;  %v3239_v55 = vrot.slane %v2651_v48, 4  ;;  %v1027_v57 = vmul.f32 %v1021_v36, %v3178_v9 }
  0xde   : > { %v3255_v61 = vld.sshfl [vmem:[#allocation1 + $0x10] sm:$0xff pattern:$0x75316420]  ;;  %v3257_v5 = vld.sshfl [vmem:[#allocation1 + $0x18] sm:$0xff pattern:$0x75316420] }
  0xdf   : > { %v3220_v42 = vld.sshfl [vmem:[#allocation1 + $0x20] sm:$0xff pattern:$0x75316420]  ;;  %1035 = vst [vmem:[#allocation1 + $0x10] ss:$2 sm:$0xff] %v1028_v51 }
  0xe0   : > { %1037 = vst [vmem:[#allocation1 + $0x20] ss:$2 sm:$0xff] %v1029_v29  ;;  %776 = vrot.lane.b32.xlu2 %v3126_v27, %s2710_s13  ;;  %v1096_v27 = vmul.f32 %v1086_v44, %v1068_v46  ;;  %v1094_v44 = vmul.f32 %v1088_v4, %v3178_v9 }
  0xe1   : > { %713 = vrot.lane.b32.xlu1 %v3107_v16, %s2709_s12  ;;  %v3243_v16 = vrot.slane %v3943_v50, 4  ;;  %v3248_v25 = vld.sshfl [vmem:[#allocation1] sm:$0xff pattern:$0x75316420]  ;;  %v2659_v19 = vpop.permute.xlu1 %2658 }
  0xe2   : > { %v3250_v63 = vld.sshfl [vmem:[#allocation1 + $0x8] sm:$0xff pattern:$0x75316420]  ;;  %v2661_v23 = vunpack.i.h.bf16 %v2659_v19  ;;  %v2660_v24 = vunpack.i.l.bf16 %v2659_v19  ;;  %v3317_v19 = vpop.permute.xlu0 %2628 }
  0xe3   : > { %1033 = vst [vmem:[#allocation1] ss:$2 sm:$0xff] %v1027_v57 }
  0xe4   : > { %849 = vrot.lane.b32.xlu0 %v3156_v54, %s2711_s14  ;;  %v1894_v54 = vsel %vm369_vm7, %v3243_v16, %v3239_v55  ;;  %v3276_v29 = vrot.slane %v2661_v23, 4  ;;  %v2021_v33 = vrot.slane %v2660_v24, 4 }
  0xe5   : > { %v1895_v10 = vsel %vm753_vm3, %v1894_v54, %v2651_v48  ;;  %v1157_v48 = vsel %vm1154_vm11, %v1156_v37, %v2601_v53  ;;  %v1202_v53 = vld [vmem:[%s2826_s10 + $0x10] sm:$0xf]  ;;  %vm717_vm11 = vcmask 965632  }
  0xe6   : > { %v3269_v0 = vmul.f32 %v1895_v10, %v3260_v6  ;;  %v2024_v38 = vsel %vm369_vm7, %v2021_v33, %v3276_v29  ;;  %v3289_v46 = vld.sshfl [vmem:[#allocation1 + $0x10] sm:$0xff pattern:$0x75316420]  ;;  %v3291_v47 = vld.sshfl [vmem:[#allocation1 + $0x18] sm:$0xff pattern:$0x75316420]  ;;  %v1162_v54 = vmul.f32 %v1157_v48, %v3186_v14  ;;  %v1161_v10 = vmul.f32 %v1155_v59, %v3178_v9 }
  0xe7   : > { %v3262_v7 = vld.sshfl [vmem:[#allocation1 + $0x20] sm:$0xff pattern:$0x75316420]  ;;  %1103 = vst [vmem:[#allocation1 + $0x11] ss:$2 sm:$0xff] %v1095_v15  ;;  %v2610_v15 = vunpack.i.l.bf16 %v3234_v52 }
  0xe8   : > { %1105 = vst [vmem:[#allocation1 + $0x21] ss:$2 sm:$0xff] %v1096_v27  ;;  %845 = vrot.lane.b32.xlu2 %v3161_v30, %s2711_s14  ;;  %v1163_v30 = vmul.f32 %v1153_v2, %v1136_v20  ;;  %v2605_v2 = vunpack.i.l.bf16 %v3148_v49  ;;  %v1308_v48 = vld [vmem:[%s2826_s10 + $0x10] sm:$0xf] }
  0xe9   : > { %780 = vrot.lane.b32.xlu1 %v3129_v31, %s2710_s13  ;;  %v3284_v31 = vsel %vm887_vm1, %v2021_v33, %v2660_v24 }
  0xea   : > { %v1038_v51 = vld.sshfl [vmem:[#allocation1] sm:$0xff pattern:$0x75316420]  ;;  %v3303_v27 = vld.sshfl [vmem:[#allocation1 + $0x8] sm:$0xff pattern:$0x75316420] }
  0xeb   : > { %1101 = vst [vmem:[#allocation1 + $0x1] ss:$2 sm:$0xff] %v1094_v44  ;;  %v1258_v24 = vrot.slane %v2605_v2, 4 }
  0xec   : > { %918 = vrot.lane.b32.xlu0 %v3181_v12, %s2712_s15  ;;  %v3294_v12 = vsel %vm887_vm1, %v2024_v38, %v2661_v23  ;;  %v1242_v23 = vld [vmem:[%s2826_s10 + $0x10] sm:$0xf]  ;;  %vm515_vm1 = vcmask 1031168  }
  0xee   : > { %v3311_v13 = vld.sshfl [vmem:[#allocation1 + $0x10] sm:$0xff pattern:$0x75316420] }
  0xef   : > { %v3296_v36 = vld.sshfl [vmem:[#allocation1 + $0x20] sm:$0xff pattern:$0x75316420] }
  0xf0   : > { %3962 = vst [vmem:[#allocation3_spill] sm:$0xff] %v3296_v36  ;;  %847 = vrot.lane.b32.xlu2 %v3163_v62, %s2711_s14  ;;  %v3313_v62 = vld.sshfl [vmem:[#allocation1 + $0x18] sm:$0xff pattern:$0x75316420] }
  0xf1   : > { %1171 = vst [vmem:[#allocation1 + $0x20] ss:$2 sm:$0xff] %v1163_v30  ;;  %782 = vrot.lane.b32.xlu1 %v3131_v32, %s2710_s13  ;;  %v2606_v32 = vunpack.i.h.bf16 %v3148_v49 }
  0xf2   : > { %v446_v57 = vpop.permute.xlu2 %445  ;;  %1169 = vst [vmem:[#allocation1 + $0x10] ss:$2 sm:$0xff] %v1162_v54  ;;  %v3327_v20 = vld.sshfl [vmem:[#allocation1 + $0x8] sm:$0xff pattern:$0x75316420] }
  0xf3   : > { %3964 = vst [vmem:[#allocation5_spill] sm:$0xff] %v3327_v20  ;;  %v1259_v49 = vrot.slane %v2606_v32, 4 }
  0xf4   : > { %912 = vrot.lane.b32.xlu0 %v3210_v17, %s2712_s15  ;;  %v3325_v17 = vld.sshfl [vmem:[#allocation1] sm:$0xff pattern:$0x75316420] }
  0xf5   : > { %3963 = vst [vmem:[#allocation4_spill] sm:$0xff] %v3325_v17  ;;  %v1262_v37 = vsel %vm369_vm7, %v1258_v24, %v1259_v49 }
  0xf6   : > { %1167 = vst [vmem:[#allocation1] ss:$2 sm:$0xff] %v1161_v10  ;;  %v1263_v54 = vsel %vm1260_vm12, %v1262_v37, %v2606_v32  ;;  %v2615_v37 = vunpack.i.l.bf16 %v3101_v11 }
  0xf8   : > { %v3319_v60 = vld.sshfl [vmem:[#allocation1 + $0x20] sm:$0xff pattern:$0x75316420]  ;;  %910 = vrot.lane.b32.xlu2 %v3212_v35, %s2712_s15  ;;  %v2611_v35 = vunpack.i.h.bf16 %v3234_v52  ;;  %v3349_v52 = vpop.permute.xlu0 %2653 }
  0xf9   : > { %1211 = vst [vmem:[#allocation1 + $0x21] ss:$2 sm:$0xff] %v1202_v53  ;;  %851 = vrot.lane.b32.xlu1 %v3144_v45, %s2711_s14  ;;  %v1269_v45 = vmul.f32 %v1259_v49, %v1242_v23  ;;  %v3338_v33 = vld.sshfl [vmem:[#allocation1 + $0x10] sm:$0xff pattern:$0x75316420] }
  0xfa   : > { %v3329_v22 = vpop.permute.xlu2 %443  ;;  %v1175_v30 = vld.sshfl [vmem:[#allocation1 + $0x18] sm:$0xff pattern:$0x75316420]  ;;  %v1326_v44 = vrot.slane %v2611_v35, 4 }
  0xfb   : > { %v451_v4 = vsel %vm447_vm2, %v3329_v22, %v446_v57  ;;  %1209 = vst [vmem:[#allocation1 + $0x11] ss:$2 sm:$0xff] %v3186_v14  ;;  %v1325_v57 = vrot.slane %v2610_v15, 4 }
  0xfc   : > { %459 = vst [vmem:[#allocation2 + $0x18] sm:$0xf0] %v451_v4  ;;  %982 = vrot.lane.b32.xlu0 %v3255_v61, %s2694_s16  ;;  %v1336_v10 = vmul.f32 %v1326_v44, %v1308_v48 }
  0xfd   : > { %v3351_v61 = vld.sshfl [vmem:[#allocation1] sm:$0xff pattern:$0x75316420]  ;;  %v3353_v59 = vld.sshfl [vmem:[#allocation1 + $0x8] sm:$0xff pattern:$0x75316420]  ;;  %v1329_v49 = vsel %vm369_vm7, %v1325_v57, %v1326_v44 }
  0xfe   : > { %3965 = vst [vmem:[#allocation6_spill] sm:$0xff] %v3351_v61 }
  0xff   : > { %1207 = vst [vmem:[#allocation1 + $0x1] ss:$2 sm:$0xff] %v3178_v9 }
 0x100   : > { %v3342_v38 = vld.sshfl [vmem:[#allocation1 + $0x20] sm:$0xff pattern:$0x75316420]  ;;  %916 = vrot.lane.b32.xlu2 %v3218_v40, %s2712_s15  ;;  %v1261_v40 = vsel %vm1260_vm12, %v1258_v24, %v2605_v2  ;;  %v1330_v2 = vsel %vm1327_vm14, %v1329_v49, %v2611_v35  ;;  %vm853_vm12 = vcmask 908288  }
 0x101   : > { %1277 = vst [vmem:[#allocation1 + $0x20] ss:$2 sm:$0xff] %v1269_v45  ;;  %914 = vrot.lane.b32.xlu1 %v3216_v39, %s2712_s15  ;;  %v1268_v39 = vmul.f32 %v1263_v54, %v3186_v14  ;;  %v2616_v45 = vunpack.i.h.bf16 %v3101_v11  ;;  %v1376_v54 = vld [vmem:[%s2826_s10 + $0x10] sm:$0xf]  ;;  %v1328_v11 = vsel %vm1327_vm14, %v1325_v57, %v2610_v15  ;;  %v2621_v15 = vunpack.i.h.bf16 %v3281_v43 }
 0x102   : > { %v3356_v53 = vpop.permute.xlu2 %513  ;;  %v3363_v23 = vld.sshfl [vmem:[#allocation1 + $0x10] sm:$0xff pattern:$0x75316420]  ;;  %v3365_v4 = vld.sshfl [vmem:[#allocation1 + $0x18] sm:$0xff pattern:$0x75316420]  ;;  %v1334_v50 = vmul.f32 %v1328_v11, %v3178_v9  ;;  %v2620_v57 = vunpack.i.l.bf16 %v3281_v43 }
 0x103   : > { %1275 = vst [vmem:[#allocation1 + $0x10] ss:$2 sm:$0xff] %v1268_v39  ;;  %v1393_v49 = vrot.slane %v2616_v45, 4  ;;  %vm1361_vm14 = vcmask 392192  }
 0x104   : > { %1043 = vrot.lane.b32.xlu0 %v1038_v51, %s2713_s17  ;;  %v1267_v51 = vmul.f32 %v1261_v40, %v3178_v9  ;;  %v1335_v40 = vmul.f32 %v1330_v2, %v3186_v14 }
 0x106   : > { %v3375_v24 = vld.sshfl [vmem:[#allocation1] sm:$0xff pattern:$0x75316420]  ;;  %v3377_v44 = vld.sshfl [vmem:[#allocation1 + $0x8] sm:$0xff pattern:$0x75316420] }
 0x107   : > { %3966 = vst [vmem:[#allocation7_spill] sm:$0xff] %v3375_v24 }
 0x108   : > { %v1282_v32 = vld.sshfl [vmem:[#allocation1 + $0x20] sm:$0xff pattern:$0x75316420]  ;;  %986 = vrot.lane.b32.xlu2 %v3220_v42, %s2694_s16  ;;  %3967 = vst [vmem:[#allocation8_spill] sm:$0xff] %v3377_v44  ;;  %v1392_v42 = vrot.slane %v2615_v37, 4 }
 0x109   : > { %1345 = vst [vmem:[#allocation1 + $0x21] ss:$2 sm:$0xff] %v1336_v10  ;;  %978 = vrot.lane.b32.xlu1 %v3248_v25, %s2694_s16  ;;  %v1403_v10 = vmul.f32 %v1393_v49, %v1376_v54 }
 0x10a   : > { %v3379_v48 = vpop.permute.xlu2 %507  ;;  %1273 = vst [vmem:[#allocation1] ss:$2 sm:$0xff] %v1267_v51  ;;  %v1280_v3 = vld.sshfl [vmem:[#allocation1 + $0x10] sm:$0xff pattern:$0x75316420] }
 0x10b   : > { %v440_v35 = vpop.permute.xlu1 %439  ;;  %v438_v39 = vpop.permute.xlu0 %437  ;;  %v3387_v51 = vld.sshfl [vmem:[#allocation1 + $0x18] sm:$0xff pattern:$0x75316420] }
 0x10c   : > { %1183 = vrot.lane.b32.xlu0 %v1175_v30, %s2714_s18  ;;  %v448_v25 = vsel %vm447_vm2, %v438_v39, %v440_v35  ;;  %1343 = vst [vmem:[#allocation1 + $0x11] ss:$2 sm:$0xff] %v1335_v40  ;;  %v1396_v30 = vsel %vm369_vm7, %v1392_v42, %v1393_v49  ;;  %v1460_v40 = vrot.slane %v2621_v15, 4  ;;  %v1442_v49 = vld [vmem:[%s2826_s10 + $0x10] sm:$0xf] }
 0x10d   : > { %456 = vst [vmem:[#allocation2 + $0xb0] sm:$0xf0] %v448_v25  ;;  %v1397_v43 = vsel %vm1394_vm0, %v1396_v30, %v2616_v45  ;;  %v1459_v25 = vrot.slane %v2620_v57, 4 }
 0x10e   : > { %v1402_v30 = vmul.f32 %v1397_v43, %v3186_v14  ;;  %v1470_v36 = vmul.f32 %v1460_v40, %v1442_v49 }
 0x110   : > { %v3391_v2 = vld.sshfl [vmem:[#allocation1 + $0x20] sm:$0xff pattern:$0x75316420]  ;;  %980 = vrot.lane.b32.xlu2 %v3250_v63, %s2694_s16 }
 0x111   : > { %1411 = vst [vmem:[#allocation1 + $0x20] ss:$2 sm:$0xff] %v1403_v10  ;;  %984 = vrot.lane.b32.xlu1 %v3257_v5, %s2694_s16  ;;  %v3398_v54 = vld.sshfl [vmem:[#allocation1] sm:$0xff pattern:$0x75316420]  ;;  %v1395_v10 = vsel %vm1394_vm0, %v1392_v42, %v2615_v37  ;;  %s2716_s16 = smov 55  }
 0x112   : > { %v3400_v11 = vld.sshfl [vmem:[#allocation1 + $0x8] sm:$0xff pattern:$0x75316420]  ;;  %v3402_v39 = vpop.permute.xlu2 %575  ;;  %vm1293_vm0 = vcmask 441344  }
 0x113   : > { %1341 = vst [vmem:[#allocation1 + $0x1] ss:$2 sm:$0xff] %v1334_v50  ;;  %v442_v20 = vpop.permute.xlu1 %441  ;;  %v3968_v50 = vmov 0.0  }
 0x114   : > { %1291 = vrot.lane.b32.xlu0 %v1282_v32, %s2715_s19  ;;  %v449_v63 = vsel %vm447_vm2, %v440_v35, %v442_v20  ;;  %v450_v5 = vsel %vm447_vm2, %v442_v20, %v3329_v22  ;;  %v2463_v45 = vsel %vm2968_vm6, 1.0, %v3968_v50  ;;  %v1349_v32 = vld.sshfl [vmem:[#allocation1 + $0x18] sm:$0xff pattern:$0x75316420]  ;;  %v1463_v35 = vsel %vm369_vm7, %v1459_v25, %v1460_v40 }
 0x115   : > { %457 = vst [vmem:[#allocation2 + $0x1b0] sm:$0xf0] %v449_v63  ;;  %v510_v24 = vpop.permute.xlu0 %509  ;;  %v3418_v20 = vld.sshfl [vmem:[#allocation1 + $0x10] sm:$0xff pattern:$0x75316420]  ;;  %v1401_v22 = vmul.f32 %v1395_v10, %v3178_v9  ;;  %v1519_v43 = vperm.slane %v2463_v45, 3 }
 0x116   : > { %458 = vst [vmem:[#allocation2 + $0xd8] sm:$0xf0] %v450_v5  ;;  %v517_v44 = vsel %vm515_vm1, %v3379_v48, %v510_v24  ;;  %v1517_v63 = vperm.slane %v2463_v45, 1  ;;  %vm583_vm6 = vcmask 982016   ;;  %v1518_v10 = vperm.slane %v2463_v45, 2 }
 0x117   : > { %525 = vst [vmem:[#allocation2 + $0x168] sm:$0xf] %v517_v44  ;;  %v1464_v44 = vsel %vm1461_vm8, %v1463_v35, %v2621_v15  ;;  %v1521_v50 = vrot.slane %v1519_v43, 4 }
 0x118   : > { %1047 = vrot.lane.b32.xlu2 %v3289_v46, %s2713_s17  ;;  %1409 = vst [vmem:[#allocation1 + $0x10] ss:$2 sm:$0xff] %v1402_v30  ;;  %v3423_v56 = vld.sshfl [vmem:[#allocation1 + $0x20] sm:$0xff pattern:$0x75316420]  ;;  %v1462_v46 = vsel %vm1461_vm8, %v1459_v25, %v2620_v57  ;;  %v1469_v5 = vmul.f32 %v1464_v44, %v3186_v14  ;;  %v3945_v30 = vunpack.i.h.bf16 %v3120_v21  ;;  %v1520_v35 = vrot.slane %v1517_v63, 4 }
 0x119   : > { %1045 = vrot.lane.b32.xlu1 %v3303_v27, %s2713_s17  ;;  %1479 = vst [vmem:[#allocation1 + $0x21] ss:$2 sm:$0xff] %v1470_v36  ;;  %v1468_v36 = vmul.f32 %v1462_v46, %v3178_v9  ;;  %v1523_v14 = vsel %vm369_vm7, %v1518_v10, %v1521_v50  ;;  %v2625_v10 = vunpack.i.l.bf16 %v3120_v21  ;;  %vm1495_vm8 = vcmask 375808  }
 0x11a   : > { %v3427_v37 = vld.sshfl [vmem:[#allocation1] sm:$0xff pattern:$0x75316420]  ;;  %v3429_v42 = vld.sshfl [vmem:[#allocation1 + $0x8] sm:$0xff pattern:$0x75316420]  ;;  %v3432_v40 = vpop.permute.xlu2 %643 }
 0x11b   : > { %1407 = vst [vmem:[#allocation1] ss:$2 sm:$0xff] %v1401_v22  ;;  %v506_v49 = vpop.permute.xlu1 %505  ;;  %v1547_v22 = vld [vmem:[%s2826_s10 + $0x14] sm:$0xf] }
 0x11c   : > { %1287 = vrot.lane.b32.xlu0 %v1280_v3, %s2715_s19  ;;  %v516_v27 = vsel %vm515_vm1, %v506_v49, %v3379_v48  ;;  %v1516_v48 = vperm.slane %v2463_v45, 0  ;;  %v1564_v45 = vrot.slane %v3945_v30, 4 }
 0x11d   : > { %524 = vst [vmem:[#allocation2 + $0x50] sm:$0xf] %v516_v27 }
 0x11e   : > { %v3439_v15 = vpop.permute.xlu0 %577  ;;  %v1573_v50 = vmul.f32 %v1564_v45, %v1547_v22 }
 0x11f   : > { %v585_v3 = vsel %vm583_vm6, %v3402_v39, %v3439_v15  ;;  %v1414_v57 = vld.sshfl [vmem:[#allocation1 + $0x10] sm:$0xff pattern:$0x75316420]  ;;  %v3446_v25 = vld.sshfl [vmem:[#allocation1 + $0x18] sm:$0xff pattern:$0x75316420] }
 0x120   : > { %593 = vst [vmem:[#allocation2 + $0x168] sm:$0xf0] %v585_v3  ;;  %1181 = vrot.lane.b32.xlu2 %v3338_v33, %s2714_s18  ;;  %v3470_v27 = vld.sshfl [vmem:[#allocation1 + $0x20] sm:$0xff pattern:$0x75316420] }
 0x121   : > { %1221 = vrot.lane.b32.xlu1 %v3363_v23, %s2716_s16  ;;  %1477 = vst [vmem:[#allocation1 + $0x11] ss:$2 sm:$0xff] %v1469_v5  ;;  %v1522_v23 = vsel %vm369_vm7, %v1516_v48, %v1520_v35  ;;  %v1527_v5 = vmul.f32 %v1523_v14, %v3260_v6  ;;  %v1563_v35 = vrot.slane %v2625_v10, 4  ;;  %v1612_v14 = vld [vmem:[%s2826_s10 + $0x14] sm:$0xf] }
 0x122   : > { %v3452_v9 = vld.sshfl [vmem:[#allocation1] sm:$0xff pattern:$0x75316420]  ;;  %v3456_v43 = vpop.permute.xlu2 %645  ;;  %v3458_v44 = vld.sshfl [vmem:[#allocation1 + $0x8] sm:$0xff pattern:$0x75316420] }
 0x123   : > { %v652_v33 = vsel %vm649_vm10, %v3432_v40, %v3456_v43  ;;  %v512_v49 = vpop.permute.xlu1 %511  ;;  %1475 = vst [vmem:[#allocation1 + $0x1] ss:$2 sm:$0xff] %v1468_v36  ;;  %v3475_v36 = vld [vmem:[%s2826_s10 + $0x4] sm:$0xff] }
 0x124   : > { %660 = vst [vmem:[#allocation2 + $0x118] sm:$0xf] %v652_v33  ;;  %1357 = vrot.lane.b32.xlu0 %v1349_v32, %s2717_s20  ;;  %v518_v63 = vsel %vm515_vm1, %v510_v24, %v512_v49  ;;  %v519_v46 = vsel %vm515_vm1, %v512_v49, %v3356_v53  ;;  %v1526_v32 = vmul.f32 %v1522_v23, %v3475_v36  ;;  %v3946_v24 = vunpack.i.h.bf16 %v3317_v19 }
 0x125   : > { %526 = vst [vmem:[#allocation2 + $0x130] sm:$0xf] %v518_v63 }
 0x126   : > { %527 = vst [vmem:[#allocation2 + $0x48] sm:$0xf] %v519_v46  ;;  %v640_v3 = vpop.permute.xlu0 %639  ;;  %v1630_v23 = vrot.slane %v3946_v24, 4 }
 0x127   : > { %1582 = vst [vmem:[#allocation1 + $0x21] ss:$2 sm:$0xff] %v1573_v50 }
 0x128   : > { %1223 = vrot.lane.b32.xlu2 %v3365_v4, %s2716_s16  ;;  %v1483_v53 = vld.sshfl [vmem:[#allocation1 + $0x18] sm:$0xff pattern:$0x75316420]  ;;  %v3481_v48 = vld.sshfl [vmem:[#allocation1 + $0x10] sm:$0xff pattern:$0x75316420]  ;;  %v2630_v4 = vunpack.i.l.bf16 %v3317_v19  ;;  %v1639_v46 = vmul.f32 %v1630_v23, %v1612_v14 }
 0x129   : > { %1289 = vrot.lane.b32.xlu1 %v3387_v51, %s2715_s19  ;;  %1532 = vst [vmem:[#allocation1 + $0x10] ss:$2 sm:$0xff] %v1527_v5  ;;  %v1565_v51 = vsel %vm3947_vm4, %v1563_v35, %v2625_v10 }
 0x12a   : > { %v708_v22 = vpop.permute.xlu2 %707  ;;  %v3486_v33 = vld.sshfl [vmem:[#allocation1] sm:$0xff pattern:$0x75316420]  ;;  %v3488_v49 = vld.sshfl [vmem:[#allocation1 + $0x8] sm:$0xff pattern:$0x75316420] }
 0x12b   : > { %v582_v63 = vpop.permute.xlu1 %581  ;;  %1530 = vst [vmem:[#allocation1] ss:$2 sm:$0xff] %v1526_v32  ;;  %v1677_v32 = vld [vmem:[%s2826_s10 + $0x14] sm:$0xf]  ;;  %v1629_v24 = vrot.slane %v2630_v4, 4 }
 0x12c   : > { %1421 = vrot.lane.b32.xlu0 %v1414_v57, %s2718_s25  ;;  %v1571_v57 = vmul.f32 %v1565_v51, %v3475_v36  ;;  %v3969_v51 = vunpack.i.h.bf16 %v3120_v21 }
 0x12e   : > { %v642_v5 = vpop.permute.xlu0 %641  ;;  %v3495_v50 = vld.sshfl [vmem:[#allocation1 + $0x20] sm:$0xff pattern:$0x75316420] }
 0x12f   : > { %v650_v30 = vsel %vm649_vm10, %v640_v3, %v642_v5  ;;  %v651_v61 = vsel %vm649_vm10, %v642_v5, %v3432_v40  ;;  %1647 = vst [vmem:[#allocation1 + $0x20] ss:$2 sm:$0xff] %v1639_v46  ;;  %v1566_v40 = vsel %vm369_vm7, %v1563_v35, %v1564_v45 }
 0x130   : > { %658 = vst [vmem:[#allocation2 + $0x180] sm:$0xf] %v650_v30  ;;  %1355 = vrot.lane.b32.xlu2 %v3418_v20, %s2717_s20  ;;  %v1567_v45 = vsel %vm3947_vm4, %v1566_v40, %v3969_v51  ;;  %vm1427_vm4 = vcmask 384000  }
 0x131   : > { %659 = vst [vmem:[#allocation2 + $0x110] sm:$0xf] %v651_v61  ;;  %1359 = vrot.lane.b32.xlu1 %v3391_v2, %s2717_s20  ;;  %v1704_v61 = vmul.f32 %v3159_v58, %v1677_v32  ;;  %v1631_v2 = vsel %vm482_vm13, %v1629_v24, %v2630_v4  ;;  %v1535_v58 = vld.sshfl [vmem:[#allocation1 + $0x10] sm:$0xff pattern:$0x75316420]  ;;  %v1572_v4 = vmul.f32 %v1567_v45, %v3260_v6 }
 0x132   : > { %v3506_v10 = vpop.permute.xlu2 %711  ;;  %v1533_v14 = vld.sshfl [vmem:[#allocation1] sm:$0xff pattern:$0x75316420]  ;;  %v1534_v3 = vld.sshfl [vmem:[#allocation1 + $0x8] sm:$0xff pattern:$0x75316420] }
 0x133   : > { %v574_v17 = vpop.permute.xlu1 %573  ;;  %1578 = vst [vmem:[#allocation1 + $0x1] ss:$2 sm:$0xff] %v1571_v57 }
 0x134   : > { %1491 = vrot.lane.b32.xlu0 %v1483_v53, %s2719_s26  ;;  %v584_v20 = vsel %vm583_vm6, %v574_v17, %v3402_v39  ;;  %1541 = vst [vmem:[#allocation2 + $0x40] sm:$0xf] %v1533_v14  ;;  %v3521_v17 = vld [vmem:[%s2826_s10 + $0x4] sm:$0xff]  ;;  %v2641_v39 = vunpack.i.h.bf16 %v3191_v18 }
 0x135   : > { %592 = vst [vmem:[#allocation2 + $0x50] sm:$0xf0] %v584_v20  ;;  %v1637_v21 = vmul.f32 %v1631_v2, %v3521_v17 }
 0x136   : > { %v710_v30 = vpop.permute.xlu0 %709  ;;  %v1652_v46 = vld.sshfl [vmem:[#allocation1 + $0x20] sm:$0xff pattern:$0x75316420]  ;;  %1542 = vst [vmem:[#allocation2 + $0xa8] sm:$0xf] %v1534_v3  ;;  %v1760_v20 = vrot.slane %v2641_v39, 4 }
 0x137   : > { %v718_v35 = vsel %vm717_vm11, %v708_v22, %v710_v30  ;;  %v719_v53 = vsel %vm717_vm11, %v710_v30, %v3506_v10  ;;  %1713 = vst [vmem:[#allocation1 + $0x21] ss:$2 sm:$0xff] %v1704_v61  ;;  %v1536_v22 = vld.sshfl [vmem:[#allocation1 + $0x18] sm:$0xff pattern:$0x75316420] }
 0x138   : > { %726 = vst [vmem:[#allocation2 + $0x180] sm:$0xf0] %v718_v35  ;;  %1417 = vrot.lane.b32.xlu2 %v3452_v9, %s2718_s25  ;;  %v1743_v3 = vld [vmem:[%s2826_s10 + $0x14] sm:$0xf]  ;;  %v1632_v9 = vsel %vm369_vm7, %v1629_v24, %v1630_v23  ;;  %v3970_v24 = vunpack.i.h.bf16 %v3317_v19 }
 0x139   : > { %727 = vst [vmem:[#allocation2 + $0x110] sm:$0xf0] %v719_v53  ;;  %1425 = vrot.lane.b32.xlu1 %v3423_v56, %s2718_s25  ;;  %v1769_v30 = vmul.f32 %v1760_v20, %v1743_v3 }
 0x13a   : > { %v777_v5 = vpop.permute.xlu2 %776  ;;  %v1583_v57 = vld.sshfl [vmem:[#allocation1] sm:$0xff pattern:$0x75316420]  ;;  %v3530_v32 = vld.sshfl [vmem:[#allocation1 + $0x8] sm:$0xff pattern:$0x75316420]  ;;  %v1633_v23 = vsel %vm482_vm13, %v1632_v9, %v3970_v24 }
 0x13b   : > { %v580_v14 = vpop.permute.xlu1 %579  ;;  %1643 = vst [vmem:[#allocation1] ss:$2 sm:$0xff] %v1637_v21  ;;  %v1807_v21 = vld [vmem:[%s2826_s10 + $0x14] sm:$0xf]  ;;  %vm786_vm13 = vcmask 916480  }
 0x13c   : > { %1661 = vrot.lane.b32.xlu0 %v1652_v46, %s2706_s8  ;;  %v586_v40 = vsel %vm583_vm6, %v3439_v15, %v580_v14  ;;  %v587_v56 = vsel %vm583_vm6, %v580_v14, %v582_v63  ;;  %1580 = vst [vmem:[#allocation1 + $0x11] ss:$2 sm:$0xff] %v1572_v4  ;;  %v3550_v15 = vld [vmem:[%s2826_s10 + $0xc] sm:$0xff]  ;;  %v2640_v63 = vunpack.i.l.bf16 %v3191_v18  ;;  %v1834_v14 = vmul.f32 %v3183_v1, %v1807_v21 }
 0x13d   : > { %594 = vst [vmem:[#allocation2 + $0x130] sm:$0xf0] %v586_v40  ;;  %v1638_v46 = vmul.f32 %v1633_v23, %v3550_v15  ;;  %v1703_v1 = vmul.f32 %v3175_v8, %v3260_v6 }
 0x13e   : > { %595 = vst [vmem:[#allocation2 + $0x48] sm:$0xf0] %v587_v56  ;;  %v3540_v61 = vpop.permute.xlu0 %784  ;;  %v3542_v2 = vld.sshfl [vmem:[#allocation1 + $0x20] sm:$0xff pattern:$0x75316420] }
 0x13f   : > { %1543 = vst [vmem:[#allocation2 + $0xd0] sm:$0xf] %v1535_v58 }
 0x140   : > { %1493 = vrot.lane.b32.xlu2 %v3470_v27, %s2719_s26  ;;  %1544 = vst [vmem:[#allocation2 + $0x1a0] sm:$0xf] %v1536_v22  ;;  %v1702_v27 = vmul.f32 %v3168_v26, %v3475_v36  ;;  %v1759_v22 = vrot.slane %v2640_v63, 4 }
 0x141   : > { %1423 = vrot.lane.b32.xlu1 %v3446_v25, %s2718_s25  ;;  %1777 = vst [vmem:[#allocation1 + $0x20] ss:$2 sm:$0xff] %v1769_v30 }
 0x142   : > { %v846_v51 = vpop.permute.xlu2 %845  ;;  %v1649_v19 = vld.sshfl [vmem:[#allocation1 + $0x8] sm:$0xff pattern:$0x75316420]  ;;  %v3556_v45 = vld.sshfl [vmem:[#allocation1] sm:$0xff pattern:$0x75316420]  ;;  %v1762_v8 = vsel %vm369_vm7, %v1759_v22, %v1760_v20 }
 0x143   : > { %v648_v35 = vpop.permute.xlu1 %647  ;;  %v1586_v53 = vld.sshfl [vmem:[#allocation1 + $0x18] sm:$0xff pattern:$0x75316420]  ;;  %v3558_v58 = vld.sshfl [vmem:[#allocation1 + $0x10] sm:$0xff pattern:$0x75316420]  ;;  %v1763_v20 = vsel %vm616_vm15, %v1762_v8, %v2641_v39 }
 0x144   : > { %1588 = vrot.lane.b32.xlu0 %v1583_v57, %s2705_s7  ;;  %v653_v25 = vsel %vm649_vm10, %v3456_v43, %v648_v35  ;;  %1645 = vst [vmem:[#allocation1 + $0x10] ss:$2 sm:$0xff] %v1638_v46  ;;  %v1761_v43 = vsel %vm616_vm15, %v1759_v22, %v2640_v63  ;;  %vm920_vm15 = vcmask 900096  }
 0x145   : > { %661 = vst [vmem:[#allocation2 + $0x98] sm:$0xf] %v653_v25  ;;  %v1767_v30 = vmul.f32 %v1761_v43, %v3475_v36 }
 0x146   : > { %v3566_v4 = vpop.permute.xlu0 %778  ;;  %1709 = vst [vmem:[#allocation1 + $0x1] ss:$2 sm:$0xff] %v1702_v27 }
 0x147   : > { %v787_v3 = vsel %vm786_vm13, %v777_v5, %v3566_v4 }
 0x148   : > { %795 = vst [vmem:[#allocation2 + $0x120] sm:$0xf] %v787_v3  ;;  %1489 = vrot.lane.b32.xlu2 %v3481_v48, %s2719_s26  ;;  %v3573_v26 = vld.sshfl [vmem:[#allocation1 + $0x20] sm:$0xff pattern:$0x75316420] }
 0x149   : > { %1596 = vrot.lane.b32.xlu1 %v3495_v50, %s2705_s7  ;;  %1843 = vst [vmem:[#allocation1 + $0x21] ss:$2 sm:$0xff] %v1834_v14  ;;  %v1873_v48 = vld [vmem:[%s2826_s10 + $0x14] sm:$0xf]  ;;  %v1768_v14 = vmul.f32 %v1763_v20, %v3260_v6 }
 0x14a   : > { %v848_v57 = vpop.permute.xlu2 %847  ;;  %v1901_v63 = vmul.f32 %v3239_v55, %v1873_v48  ;;  %v1939_v55 = vld [vmem:[%s2826_s10 + $0x14] sm:$0xf]  ;;  %v3971_v48 = vunpack.i.l.bf16 %v3225_v41 }
 0x14b   : > { %v855_v9 = vsel %vm853_vm12, %v846_v51, %v848_v57  ;;  %v716_v5 = vpop.permute.xlu1 %715  ;;  %v1650_v40 = vld.sshfl [vmem:[#allocation1 + $0x10] sm:$0xff pattern:$0x75316420]  ;;  %v3581_v56 = vld.sshfl [vmem:[#allocation1 + $0x18] sm:$0xff pattern:$0x75316420] }
 0x14c   : > { %863 = vst [vmem:[#allocation2 + $0x150] sm:$0xf0] %v855_v9  ;;  %1655 = vrot.lane.b32.xlu0 %v1649_v19, %s2706_s8  ;;  %v2656_v19 = vunpack.i.h.bf16 %v3349_v52 }
 0x14d   : > { %1711 = vst [vmem:[#allocation1 + $0x11] ss:$2 sm:$0xff] %v1703_v1  ;;  %v1715_v50 = vld.sshfl [vmem:[#allocation1 + $0x8] sm:$0xff pattern:$0x75316420]  ;;  %v1832_v1 = vmul.f32 %v3201_v28, %v3475_v36 }
 0x14e   : > { %v844_v24 = vpop.permute.xlu0 %843  ;;  %v3586_v23 = vld.sshfl [vmem:[#allocation1] sm:$0xff pattern:$0x75316420] }
 0x14f   : > { %v854_v46 = vsel %vm853_vm12, %v844_v24, %v846_v51  ;;  %1773 = vst [vmem:[#allocation1] ss:$2 sm:$0xff] %v1767_v30  ;;  %v2655_v30 = vunpack.i.l.bf16 %v3349_v52  ;;  %v2029_v52 = vmul.f32 %v3284_v31, %v3521_v17  ;;  %v2030_v31 = vmul.f32 %v3294_v12, %v3550_v15 }
 0x150   : > { %862 = vst [vmem:[#allocation2 + $0x120] sm:$0xf0] %v854_v46  ;;  %1594 = vrot.lane.b32.xlu2 %v1586_v53, %s2705_s7  ;;  %v3592_v35 = vld.sshfl [vmem:[#allocation1 + $0x20] sm:$0xff pattern:$0x75316420] }
 0x151   : > { %1590 = vrot.lane.b32.xlu1 %v3530_v32, %s2705_s7  ;;  %1909 = vst [vmem:[#allocation1 + $0x20] ss:$2 sm:$0xff] %v1901_v63  ;;  %v1956_v32 = vrot.slane %v2656_v19, 4 }
 0x152   : > { %v911_v27 = vpop.permute.xlu2 %910 }
 0x153   : > { %v714_v21 = vpop.permute.xlu1 %713  ;;  %v1965_v3 = vmul.f32 %v1956_v32, %v1939_v55 }
 0x154   : > { %1657 = vrot.lane.b32.xlu0 %v1650_v40, %s2706_s8  ;;  %v720_v51 = vsel %vm717_vm11, %v3506_v10, %v714_v21  ;;  %v721_v53 = vsel %vm717_vm11, %v714_v21, %v716_v5  ;;  %v1717_v25 = vld.sshfl [vmem:[#allocation1 + $0x18] sm:$0xff pattern:$0x75316420]  ;;  %v1716_v22 = vld.sshfl [vmem:[#allocation1 + $0x10] sm:$0xff pattern:$0x75316420] }
 0x155   : > { %728 = vst [vmem:[#allocation2 + $0x118] sm:$0xf0] %v720_v51  ;;  %v2004_v40 = vld [vmem:[%s2826_s10 + $0x14] sm:$0xf]  ;;  %s2720_s10 = smov 62  }
 0x156   : > { %729 = vst [vmem:[#allocation2 + $0x98] sm:$0xf0] %v721_v53  ;;  %v3608_v18 = vpop.permute.xlu0 %849  ;;  %v1779_v39 = vld.sshfl [vmem:[#allocation1 + $0x8] sm:$0xff pattern:$0x75316420]  ;;  %v2031_v46 = vmul.f32 %v3276_v29, %v2004_v40 }
 0x157   : > { %v856_v43 = vsel %vm853_vm12, %v848_v57, %v3608_v18  ;;  %1775 = vst [vmem:[#allocation1 + $0x10] ss:$2 sm:$0xff] %v1768_v14  ;;  %v3612_v10 = vld.sshfl [vmem:[#allocation1] sm:$0xff pattern:$0x75316420] }
 0x158   : > { %864 = vst [vmem:[#allocation2 + $0x108] sm:$0xf0] %v856_v43  ;;  %1653 = vrot.lane.b32.xlu2 %v3556_v45, %s2706_s8  ;;  %v3618_v9 = vld.sshfl [vmem:[#allocation1 + $0x20] sm:$0xff pattern:$0x75316420]  ;;  %v1833_v45 = vmul.f32 %v3208_v34, %v3260_v6  ;;  %v1955_v6 = vrot.slane %v2655_v30, 4 }
 0x159   : > { %1592 = vrot.lane.b32.xlu1 %v3558_v58, %s2705_s7  ;;  %1974 = vst [vmem:[#allocation1 + $0x21] ss:$2 sm:$0xff] %v1965_v3  ;;  %v1893_v58 = vsel %vm753_vm3, %v3243_v16, %v3971_v48  ;;  %vm1187_vm3 = vcmask 457728   ;;  %s2482_s7 = sshll.u32 %s3985_s21, 5 }
 0x15a   : > { %v3622_v5 = vpop.permute.xlu2 %916  ;;  %1839 = vst [vmem:[#allocation1 + $0x1] ss:$2 sm:$0xff] %v1832_v1  ;;  %v1899_v41 = vmul.f32 %v1893_v58, %v3475_v36 }
 0x15b   : > { %v781_v57 = vpop.permute.xlu1 %780 }
 0x15c   : > { %1725 = vrot.lane.b32.xlu0 %v1717_v25, %s2707_s9  ;;  %v788_v28 = vsel %vm786_vm13, %v3566_v4, %v781_v57 }
 0x15d   : > { %796 = vst [vmem:[#allocation2 + $0x150] sm:$0xf] %v788_v28 }
 0x15e   : > { %v919_v24 = vpop.permute.xlu0 %918  ;;  %v3635_v8 = vld.sshfl [vmem:[#allocation1 + $0x10] sm:$0xff pattern:$0x75316420]  ;;  %v3637_v63 = vld.sshfl [vmem:[#allocation1 + $0x18] sm:$0xff pattern:$0x75316420] }
 0x15f   : > { %v924_v4 = vsel %vm920_vm15, %v3622_v5, %v919_v24  ;;  %1841 = vst [vmem:[#allocation1 + $0x11] ss:$2 sm:$0xff] %v1833_v45 }
 0x160   : > { %932 = vst [vmem:[#allocation2 + $0x140] sm:$0xf] %v924_v4  ;;  %1721 = vrot.lane.b32.xlu2 %v1715_v50, %s2707_s9  ;;  %v1979_v34 = vld.sshfl [vmem:[#allocation1 + $0x20] sm:$0xff pattern:$0x75316420] }
 0x161   : > { %1727 = vrot.lane.b32.xlu1 %v3542_v2, %s2707_s9  ;;  %2039 = vst [vmem:[#allocation1 + $0x20] ss:$2 sm:$0xff] %v2031_v46  ;;  %v3646_v16 = vld.sshfl [vmem:[#allocation1] sm:$0xff pattern:$0x75316420]  ;;  %v1957_v2 = vsel %vm819_vm5, %v1955_v6, %v2655_v30 }
 0x162   : > { %v3648_v20 = vpop.permute.xlu2 %986  ;;  %v3650_v29 = vld.sshfl [vmem:[#allocation1 + $0x8] sm:$0xff pattern:$0x75316420]  ;;  %v1963_v14 = vmul.f32 %v1957_v2, %v3521_v17 }
 0x163   : > { %v783_v55 = vpop.permute.xlu1 %782  ;;  %1905 = vst [vmem:[#allocation1] ss:$2 sm:$0xff] %v1899_v41 }
 0x164   : > { %1785 = vrot.lane.b32.xlu0 %v1779_v39, %s2708_s11  ;;  %v789_v50 = vsel %vm786_vm13, %v781_v57, %v783_v55  ;;  %v790_v36 = vsel %vm786_vm13, %v783_v55, %v3540_v61  ;;  %v1958_v61 = vsel %vm369_vm7, %v1955_v6, %v1956_v32 }
 0x165   : > { %797 = vst [vmem:[#allocation2 + $0x108] sm:$0xf] %v789_v50 }
 0x166   : > { %798 = vst [vmem:[#allocation2 + $0x60] sm:$0xf] %v790_v36  ;;  %v913_v21 = vpop.permute.xlu0 %912  ;;  %v1846_v51 = vld.sshfl [vmem:[#allocation1 + $0x10] sm:$0xff pattern:$0x75316420] }
 0x167   : > { %v921_v53 = vsel %vm920_vm15, %v911_v27, %v913_v21  ;;  %v3658_v25 = vld.sshfl [vmem:[#allocation1 + $0x18] sm:$0xff pattern:$0x75316420] }
 0x168   : > { %929 = vst [vmem:[#allocation2 + $0xe0] sm:$0xf] %v921_v53  ;;  %1723 = vrot.lane.b32.xlu2 %v1716_v22, %s2707_s9  ;;  %v1959_v22 = vsel %vm819_vm5, %v1958_v61, %v2656_v19  ;;  %vm1053_vm5 = vcmask 515072  }
 0x169   : > { %1659 = vrot.lane.b32.xlu1 %v3581_v56, %s2706_s8  ;;  %1907 = vst [vmem:[#allocation1 + $0x10] ss:$2 sm:$0xff] %v3269_v0  ;;  %v1964_v32 = vmul.f32 %v1959_v22, %v3550_v15 }
 0x16a   : > { %v981_v39 = vpop.permute.xlu2 %980  ;;  %v1910_v3 = vld.sshfl [vmem:[#allocation1] sm:$0xff pattern:$0x75316420]  ;;  %v3666_v43 = vld.sshfl [vmem:[#allocation1 + $0x8] sm:$0xff pattern:$0x75316420] }
 0x16b   : > { %v852_v1 = vpop.permute.xlu1 %851  ;;  %1970 = vst [vmem:[#allocation1 + $0x1] ss:$2 sm:$0xff] %v1963_v14 }
 0x16c   : > { %1853 = vrot.lane.b32.xlu0 %v1846_v51, %s2709_s12  ;;  %v857_v27 = vsel %vm853_vm12, %v3608_v18, %v852_v1 }
 0x16d   : > { %865 = vst [vmem:[#allocation2 + $0x60] sm:$0xf0] %v857_v27 }
 0x16e   : > { %v983_v56 = vpop.permute.xlu0 %982 }
 0x16f   : > { %v989_v0 = vsel %vm954_vm9, %v981_v39, %v983_v56 }
 0x170   : > { %997 = vst [vmem:[#allocation2 + $0x188] sm:$0xf0] %v989_v0  ;;  %1857 = vrot.lane.b32.xlu2 %v3592_v35, %s2709_s12  ;;  %v1913_v57 = vld.sshfl [vmem:[#allocation1 + $0x18] sm:$0xff pattern:$0x75316420] }
 0x171   : > { %1791 = vrot.lane.b32.xlu1 %v3573_v26, %s2708_s11  ;;  %v3680_v40 = vld.sshfl [vmem:[#allocation1 + $0x10] sm:$0xff pattern:$0x75316420] }
 0x172   : > { %v3684_v19 = vpop.permute.xlu2 %1047  ;;  %v1976_v18 = vld.sshfl [vmem:[#allocation1 + $0x8] sm:$0xff pattern:$0x75316420]  ;;  %1972 = vst [vmem:[#allocation1 + $0x11] ss:$2 sm:$0xff] %v1964_v32 }
 0x173   : > { %v915_v28 = vpop.permute.xlu1 %914  ;;  %v3686_v45 = vld.sshfl [vmem:[#allocation1] sm:$0xff pattern:$0x75316420] }
 0x174   : > { %1988 = vrot.lane.b32.xlu0 %v1979_v34, %s2711_s14  ;;  %v922_v35 = vsel %vm920_vm15, %v913_v21, %v915_v28  ;;  %v923_v48 = vsel %vm920_vm15, %v915_v28, %v3622_v5  ;;  %2035 = vst [vmem:[#allocation1] ss:$2 sm:$0xff] %v2029_v52 }
 0x175   : > { %930 = vst [vmem:[#allocation2 + $0x188] sm:$0xf] %v922_v35 }
 0x176   : > { %931 = vst [vmem:[#allocation2 + $0x138] sm:$0xf] %v923_v48  ;;  %v1044_v26 = vpop.permute.xlu0 %1043 }
 0x178   : > { %1783 = vrot.lane.b32.xlu2 %v3612_v10, %s2708_s11 }
 0x179   : > { %1719 = vrot.lane.b32.xlu1 %v3586_v23, %s2707_s9  ;;  %v1977_v17 = vld.sshfl [vmem:[#allocation1 + $0x10] sm:$0xff pattern:$0x75316420]  ;;  %v3698_v58 = vld.sshfl [vmem:[#allocation1 + $0x18] sm:$0xff pattern:$0x75316420] }
 0x17a   : > { %v3700_v30 = vpop.permute.xlu2 %1181  ;;  %2037 = vst [vmem:[#allocation1 + $0x10] ss:$2 sm:$0xff] %v2030_v31 }
 0x17b   : > { %v979_v5 = vpop.permute.xlu1 %978  ;;  %v2040_v22 = vld.sshfl [vmem:[#allocation1] sm:$0xff pattern:$0x75316420]  ;;  %v2041_v32 = vld.sshfl [vmem:[#allocation1 + $0x8] sm:$0xff pattern:$0x75316420] }
 0x17c   : > { %1915 = vrot.lane.b32.xlu0 %v1910_v3, %s2710_s13  ;;  %v988_v24 = vsel %vm954_vm9, %v979_v5, %v981_v39 }
 0x17d   : > { %996 = vst [vmem:[#allocation2 + $0xe0] sm:$0xf0] %v988_v24 }
 0x17e   : > { %v3704_v12 = vpop.permute.xlu0 %1183 }
 0x17f   : > { %v1190_v15 = vsel %vm1187_vm3, %v3700_v30, %v3704_v12 }
 0x180   : > { %1198 = vst [vmem:[#allocation2 + $0x190] sm:$0xf] %v1190_v15  ;;  %1789 = vrot.lane.b32.xlu2 %v3637_v63, %s2708_s11  ;;  %v2044_v63 = vld.sshfl [vmem:[#allocation1 + $0x20] sm:$0xff pattern:$0x75316420] }
 0x181   : > { %1787 = vrot.lane.b32.xlu1 %v3635_v8, %s2708_s11  ;;  %v2042_v21 = vld.sshfl [vmem:[#allocation1 + $0x10] sm:$0xff pattern:$0x75316420]  ;;  %s332_s11 = scalar_lea.vmem %s3940_s4, %s2482_s7 }
 0x182   : > { %v3713_v23 = vpop.permute.xlu2 %1223 }
 0x183   : > { %v985_v10 = vpop.permute.xlu1 %984 }
 0x184   : > { %1921 = vrot.lane.b32.xlu0 %v1913_v57, %s2710_s13  ;;  %v990_v46 = vsel %vm954_vm9, %v983_v56, %v985_v10  ;;  %v991_v4 = vsel %vm954_vm9, %v985_v10, %v3648_v20  ;;  %vm1227_vm9 = vcmask 449536   ;;  %v2043_v57 = vld.sshfl [vmem:[#allocation1 + $0x18] sm:$0xff pattern:$0x75316420] }
 0x185   : > { %998 = vst [vmem:[#allocation2 + $0x138] sm:$0xf0] %v990_v46 }
 0x186   : > { %999 = vst [vmem:[#allocation2 + $0x140] sm:$0xf0] %v991_v4  ;;  %v1292_v34 = vpop.permute.xlu0 %1291 }
 0x188   : > { %1923 = vrot.lane.b32.xlu2 %v3618_v9, %s2710_s13 }
 0x189   : > { %1849 = vrot.lane.b32.xlu1 %v3646_v16, %s2709_s12 }
 0x18a   : > { %v3723_v8 = vpop.permute.xlu2 %1355 }
 0x18b   : > { %v1046_v41 = vpop.permute.xlu1 %1045 }
 0x18c   : > { %2053 = vrot.lane.b32.xlu0 %v2044_v63, %s2712_s15  ;;  %v1054_v6 = vsel %vm1053_vm5, %v1044_v26, %v1046_v41  ;;  %v1055_v20 = vsel %vm1053_vm5, %v1046_v41, %v3684_v19 }
 0x18d   : > { %1062 = vst [vmem:[#allocation2 + $0x80] sm:$0xf] %v1054_v6 }
 0x18e   : > { %1063 = vst [vmem:[#allocation2 + $0x1a8] sm:$0xf] %v1055_v20  ;;  %v3729_v55 = vpop.permute.xlu0 %1287 }
 0x190   : > { %1851 = vrot.lane.b32.xlu2 %v3650_v29, %s2709_s12 }
 0x191   : > { %1855 = vrot.lane.b32.xlu1 %v3658_v25, %s2709_s12  ;;  %s2442_s12 = sshll.u32 %s3985_s21, 3 }
 0x192   : > { %v3735_v9 = vpop.permute.xlu2 %1417 }
 0x193   : > { %v3737_v16 = vpop.permute.xlu1 %1221 }
 0x194   : > { %1982 = vrot.lane.b32.xlu0 %v1976_v18, %s2711_s14  ;;  %v1230_v50 = vsel %vm1227_vm9, %v3737_v16, %v3713_v23 }
 0x195   : > { %1238 = vst [vmem:[#allocation2 + $0x190] sm:$0xf0] %v1230_v50  ;;  %v3975_v50 = vld [vmem:[#allocation8_spill] sm:$0xff] }
 0x196   : > { %v1358_v36 = vpop.permute.xlu0 %1357 }
 0x197   : > { %v1364_v29 = vsel %vm1361_vm14, %v3723_v8, %v1358_v36 }
 0x198   : > { %1372 = vst [vmem:[#allocation2 + $0x178] sm:$0xf0] %v1364_v29  ;;  %1919 = vrot.lane.b32.xlu2 %v3680_v40, %s2710_s13 }
 0x199   : > { %1917 = vrot.lane.b32.xlu1 %v3666_v43, %s2710_s13 }
 0x19a   : > { %v1494_v2 = vpop.permute.xlu2 %1493 }
 0x19b   : > { %v1290_v51 = vpop.permute.xlu1 %1289 }
 0x19c   : > { %2049 = vrot.lane.b32.xlu0 %v2042_v21, %s2712_s15  ;;  %v1296_v53 = vsel %vm1293_vm0, %v3729_v55, %v1290_v51  ;;  %v1297_v25 = vsel %vm1293_vm0, %v1290_v51, %v1292_v34  ;;  %v3973_v34 = vld [vmem:[#allocation6_spill] sm:$0xff] }
 0x19d   : > { %1304 = vst [vmem:[#allocation2 + $0x178] sm:$0xf] %v1296_v53  ;;  %v3977_v53 = vld [vmem:[#allocation5_spill] sm:$0xff] }
 0x19e   : > { %1305 = vst [vmem:[#allocation2 + $0xc8] sm:$0xf] %v1297_v25  ;;  %v3753_v14 = vpop.permute.xlu0 %1421 }
 0x1a0   : > { %1980 = vrot.lane.b32.xlu2 %v3686_v45, %s2711_s14 }
 0x1a1   : > { %1984 = vrot.lane.b32.xlu1 %v1977_v17, %s2711_s14 }
 0x1a2   : > { %v3758_v61 = vpop.permute.xlu2 %1489 }
 0x1a3   : > { %v1360_v39 = vpop.permute.xlu1 %1359 }
 0x1a4   : > { %1419 = vrot.lane.b32.xlu0 %v3458_v44, %s2718_s25  ;;  %v1365_v3 = vsel %vm1361_vm14, %v1358_v36, %v1360_v39  ;;  %v3976_v36 = vld [vmem:[#allocation7_spill] sm:$0xff] }
 0x1a5   : > { %1373 = vst [vmem:[#allocation2 + $0xc8] sm:$0xf0] %v1365_v3 }
 0x1a6   : > { %v1492_v43 = vpop.permute.xlu0 %1491 }
 0x1a7   : > { %v1498_v1 = vsel %vm1495_vm8, %v3758_v61, %v1492_v43  ;;  %v1499_v27 = vsel %vm1495_vm8, %v1492_v43, %v1494_v2 }
 0x1a8   : > { %1506 = vst [vmem:[#allocation2 + $0x148] sm:$0xf0] %v1498_v1  ;;  %1986 = vrot.lane.b32.xlu2 %v3698_v58, %s2711_s14 }
 0x1a9   : > { %1507 = vst [vmem:[#allocation2 + $0x8] sm:$0xf0] %v1499_v27  ;;  %2045 = vrot.lane.b32.xlu1 %v2040_v22, %s2712_s15 }
 0x1aa   : > { %v1595_v56 = vpop.permute.xlu2 %1594 }
 0x1ab   : > { %v1426_v44 = vpop.permute.xlu1 %1425 }
 0x1ac   : > { %1049 = vrot.lane.b32.xlu0 %v3291_v47, %s2713_s17 }
 0x1ae   : > { %v3771_v0 = vpop.permute.xlu0 %1661 }
 0x1b0   : > { %2047 = vrot.lane.b32.xlu2 %v2041_v32, %s2712_s15 }
 0x1b1   : > { %2051 = vrot.lane.b32.xlu1 %v2043_v57, %s2712_s15  ;;  %s340_s15 = scalar_lea.vmem %s3941_s5, %s2442_s12 }
 0x1b2   : > { %v1654_v40 = vpop.permute.xlu2 %1653 }
 0x1b3   : > { %v1424_v52 = vpop.permute.xlu1 %1423 }
 0x1b4   : > { %1185 = vrot.lane.b32.xlu0 %v3319_v60, %s2714_s18  ;;  %v1430_v18 = vsel %vm1427_vm4, %v3753_v14, %v1424_v52  ;;  %v1431_v28 = vsel %vm1427_vm4, %v1424_v52, %v1426_v44 }
 0x1b5   : > { %1438 = vst [vmem:[#allocation2 + $0x148] sm:$0xf] %v1430_v18 }
 0x1b6   : > { %1439 = vst [vmem:[#allocation2 + $0x8] sm:$0xf] %v1431_v28  ;;  %v1589_v47 = vpop.permute.xlu0 %1588 }
 0x1b8   : > { %1487 = vrot.lane.b32.xlu2 %v3488_v49, %s2719_s26 }
 0x1b9   : > { %1485 = vrot.lane.b32.xlu1 %v3486_v33, %s2719_s26 }
 0x1ba   : > { %v3784_v45 = vpop.permute.xlu2 %1721 }
 0x1bb   : > { %v1597_v35 = vpop.permute.xlu1 %1596 }
 0x1bc   : > { %1285 = vrot.lane.b32.xlu0 %v3400_v11, %s2715_s19  ;;  %v1601_v60 = vsel %vm447_vm2, %v1595_v56, %v1597_v35 }
 0x1bd   : > { %1609 = vst [vmem:[#allocation2 + $0x1a0] sm:$0xf0] %v1601_v60 }
 0x1be   : > { %v1656_v48 = vpop.permute.xlu0 %1655 }
 0x1bf   : > { %v1663_v26 = vsel %vm515_vm1, %v1654_v40, %v1656_v48 }
 0x1c0   : > { %1671 = vst [vmem:[#allocation2 + $0x10] sm:$0xf] %v1663_v26  ;;  %1117 = vrot.lane.b32.xlu2 %v3313_v62, %s2720_s10 }
 0x1c1   : > { %1115 = vrot.lane.b32.xlu1 %v3311_v13, %s2720_s10 }
 0x1c2   : > { %v1724_v33 = vpop.permute.xlu2 %1723 }
 0x1c3   : > { %v1730_v49 = vsel %vm583_vm6, %v3784_v45, %v1724_v33  ;;  %v1591_v31 = vpop.permute.xlu1 %1590 }
 0x1c4   : > { %1738 = vst [vmem:[#allocation2 + $0x100] sm:$0xf0] %v1730_v49  ;;  %1051 = vrot.lane.b32.xlu0 %v3262_v7, %s2713_s17  ;;  %v1598_v11 = vsel %vm447_vm2, %v1589_v47, %v1591_v31 }
 0x1c5   : > { %1606 = vst [vmem:[#allocation2 + $0x40] sm:$0xf0] %v1598_v11 }
 0x1c6   : > { %v1658_v17 = vpop.permute.xlu0 %1657 }
 0x1c7   : > { %v1664_v58 = vsel %vm515_vm1, %v1656_v48, %v1658_v17 }
 0x1c8   : > { %1672 = vst [vmem:[#allocation2 + $0x100] sm:$0xf] %v1664_v58  ;;  %1283 = vrot.lane.b32.xlu2 %v3398_v54, %s2715_s19  ;;  %s347_s19 = scalar_lea.vmem %s3942_s6, %s2442_s12 }
 0x1c9   : > { %1225 = vrot.lane.b32.xlu1 %v3342_v38, %s2716_s16 }
 0x1ca   : > { %v3804_v13 = vpop.permute.xlu2 %1857 }
 0x1cb   : > { %v1593_v62 = vpop.permute.xlu1 %1592 }
 0x1cc   : > { %1179 = vrot.lane.b32.xlu0 %v3353_v59, %s2714_s18  ;;  %v1599_v7 = vsel %vm447_vm2, %v1591_v31, %v1593_v62  ;;  %v1600_v5 = vsel %vm447_vm2, %v1593_v62, %v1595_v56  ;;  %v3972_v59 = vld [vmem:[#allocation4_spill] sm:$0xff]  ;;  %vm3978_vm2 = vcmask 7168  }
 0x1cd   : > { %1607 = vst [vmem:[#allocation2 + $0xa8] sm:$0xf0] %v1599_v7 }
 0x1ce   : > { %1608 = vst [vmem:[#allocation2 + $0xd0] sm:$0xf0] %v1600_v5  ;;  %v1726_v24 = vpop.permute.xlu0 %1725 }
 0x1cf   : > { %v1731_v15 = vsel %vm583_vm6, %v1724_v33, %v1726_v24 }
 0x1d0   : > { %1739 = vst [vmem:[#allocation2 + $0x160] sm:$0xf0] %v1731_v15  ;;  %1353 = vrot.lane.b32.xlu2 %v3429_v42, %s2717_s20  ;;  %v3974_v42 = vld [vmem:[#allocation3_spill] sm:$0xff] }
 0x1d1   : > { %1351 = vrot.lane.b32.xlu1 %v3427_v37, %s2717_s20 }
 0x1d2   : > { %v1784_v38 = vpop.permute.xlu2 %1783 }
 0x1d3   : > { %v1728_v54 = vpop.permute.xlu1 %1727 }
 0x1d4   : > { %1111 = vrot.lane.b32.xlu0 %v3972_v59, %s2720_s10  ;;  %v1732_v10 = vsel %vm583_vm6, %v1726_v24, %v1728_v54 }
 0x1d5   : > { %1740 = vst [vmem:[#allocation2 + $0x20] sm:$0xf0] %v1732_v10 }
 0x1d6   : > { %v1786_v46 = vpop.permute.xlu0 %1785 }
 0x1d7   : > { %v1793_v4 = vsel %vm649_vm10, %v1784_v38, %v1786_v46 }
 0x1d8   : > { %1801 = vst [vmem:[#allocation2 + $0x70] sm:$0xf] %v1793_v4  ;;  %1177 = vrot.lane.b32.xlu2 %v3973_v34, %s2714_s18 }
 0x1d9   : > { %1119 = vrot.lane.b32.xlu1 %v3974_v42, %s2720_s10 }
 0x1da   : > { %v1790_v63 = vpop.permute.xlu2 %1789 }
 0x1db   : > { %v1660_v37 = vpop.permute.xlu1 %1659 }
 0x1dc   : > { %v1665_v41 = vsel %vm515_vm1, %v1658_v17, %v1660_v37  ;;  %v1666_v6 = vsel %vm515_vm1, %v1660_v37, %v3771_v0  ;;  %vm3979_vm1 = vmmov %vm3978_vm2 }
 0x1dd   : > { %1673 = vst [vmem:[#allocation2 + $0x160] sm:$0xf] %v1665_v41  ;;  %v2105_v41 = vld [vmem:[#allocation2 + $0xa8] sm:$0xff] }
 0x1de   : > { %1674 = vst [vmem:[#allocation2 + $0x20] sm:$0xf] %v1666_v6  ;;  %v1854_v20 = vpop.permute.xlu0 %1853 }
 0x1e0   : > { %1219 = vrot.lane.b32.xlu2 %v3975_v50, %s2716_s16 }
 0x1e1   : > { %1217 = vrot.lane.b32.xlu1 %v3976_v36, %s2716_s16 }
 0x1e2   : > { %v1924_v29 = vpop.permute.xlu2 %1923 }
 0x1e3   : > { %v1792_v2 = vpop.permute.xlu1 %1791 }
 0x1e4   : > { %v1796_v21 = vsel %vm649_vm10, %v1790_v63, %v1792_v2 }
 0x1e5   : > { %1804 = vst [vmem:[#allocation2 + $0x158] sm:$0xf] %v1796_v21 }
 0x1e6   : > { %v1989_v51 = vpop.permute.xlu0 %1988 }
 0x1e9   : > { %1113 = vrot.lane.b32.xlu1 %v3977_v53, %s2720_s10 }
 0x1ea   : > { %v1852_v25 = vpop.permute.xlu2 %1851 }
 0x1eb   : > { %v1860_v39 = vsel %vm717_vm11, %v1852_v25, %v1854_v20  ;;  %v1720_v3 = vpop.permute.xlu1 %1719 }
 0x1ec   : > { %1868 = vst [vmem:[#allocation2 + $0x78] sm:$0xf0] %v1860_v39  ;;  %v1729_v43 = vsel %vm583_vm6, %v1720_v3, %v3784_v45 }
 0x1ed   : > { %1737 = vst [vmem:[#allocation2 + $0x10] sm:$0xf0] %v1729_v43 }
 0x1ee   : > { %v1916_v1 = vpop.permute.xlu0 %1915 }
 0x1f2   : > { %v1920_v27 = vpop.permute.xlu2 %1919 }
 0x1f3   : > { %v1788_v22 = vpop.permute.xlu1 %1787 }
 0x1f4   : > { %v1794_v56 = vsel %vm649_vm10, %v1786_v46, %v1788_v22  ;;  %v1795_v44 = vsel %vm649_vm10, %v1788_v22, %v1790_v63 }
 0x1f5   : > { %1802 = vst [vmem:[#allocation2 + $0x78] sm:$0xf] %v1794_v56 }
 0x1f6   : > { %1803 = vst [vmem:[#allocation2 + $0xa0] sm:$0xf] %v1795_v44  ;;  %v1922_v0 = vpop.permute.xlu0 %1921 }
 0x1f7   : > { %v1927_v32 = vsel %vm786_vm13, %v1920_v27, %v1922_v0  ;;  %v1928_v57 = vsel %vm786_vm13, %v1922_v0, %v1924_v29 }
 0x1f8   : > { %1935 = vst [vmem:[#allocation2 + $0x88] sm:$0xf] %v1927_v32 }
 0x1f9   : > { %1936 = vst [vmem:[#allocation2 + $0x170] sm:$0xf] %v1928_v57 }
 0x1fa   : > { %v1981_v40 = vpop.permute.xlu2 %1980 }
 0x1fb   : > { %v1850_v52 = vpop.permute.xlu1 %1849 }
 0x1fc   : > { %v1859_v18 = vsel %vm717_vm11, %v1850_v52, %v1852_v25  ;;  %v2113_v63 = vld [vmem:[#allocation2 + $0x78] sm:$0xff]  ;;  %v2108_v25 = vld [vmem:[#allocation2 + $0x10] sm:$0xff]  ;;  %v2110_v52 = vld [vmem:[#allocation2 + $0x160] sm:$0xff] }
 0x1fd   : > { %1867 = vst [vmem:[#allocation2 + $0x70] sm:$0xf0] %v1859_v18  ;;  %v2111_v18 = vld [vmem:[#allocation2 + $0x20] sm:$0xff] }
 0x1fe   : > { %v2054_v28 = vpop.permute.xlu0 %2053 }
 0x202   : > { %v1987_v47 = vpop.permute.xlu2 %1986 }
 0x203   : > { %v1993_v45 = vsel %vm853_vm12, %v1987_v47, %v1989_v51  ;;  %v1856_v35 = vpop.permute.xlu1 %1855 }
 0x204   : > { %2001 = vst [vmem:[#allocation2 + $0x170] sm:$0xf0] %v1993_v45  ;;  %v1861_v60 = vsel %vm717_vm11, %v1854_v20, %v1856_v35  ;;  %v1862_v48 = vsel %vm717_vm11, %v1856_v35, %v3804_v13  ;;  %v2112_v51 = vld [vmem:[#allocation2 + $0x70] sm:$0xff]  ;;  %v2107_v35 = vld [vmem:[#allocation2 + $0x1a0] sm:$0xff] }
 0x205   : > { %1869 = vst [vmem:[#allocation2 + $0xa0] sm:$0xf0] %v1861_v60  ;;  %v2106_v45 = vld [vmem:[#allocation2 + $0xd0] sm:$0xff] }
 0x206   : > { %1870 = vst [vmem:[#allocation2 + $0x158] sm:$0xf0] %v1862_v48  ;;  %v1983_v26 = vpop.permute.xlu0 %1982  ;;  %v2102_v48 = vld [vmem:[#allocation2 + $0x148] sm:$0xff] }
 0x207   : > { %v1990_v33 = vsel %vm853_vm12, %v1981_v40, %v1983_v26 }
 0x208   : > { %1998 = vst [vmem:[#allocation2 + $0x128] sm:$0xf0] %v1990_v33  ;;  %v2103_v33 = vld [vmem:[#allocation2 + $0x8] sm:$0xff] }
 0x20a   : > { %v2048_v49 = vpop.permute.xlu2 %2047 }
 0x20b   : > { %v1918_v31 = vpop.permute.xlu1 %1917  ;;  %v2119_v0 = vld [vmem:[#allocation2 + $0x170] sm:$0xff] }
 0x20c   : > { %v1925_v11 = vsel %vm786_vm13, %v1916_v1, %v1918_v31  ;;  %v1926_v17 = vsel %vm786_vm13, %v1918_v31, %v1920_v27  ;;  %v2104_v1 = vld [vmem:[#allocation2 + $0x40] sm:$0xff]  ;;  %v2098_v31 = vld [vmem:[#allocation2 + $0x178] sm:$0xff] }
 0x20d   : > { %1933 = vst [vmem:[#allocation2 + $0x128] sm:$0xf] %v1925_v11  ;;  %v2114_v32 = vld [vmem:[#allocation2 + $0xa0] sm:$0xff]  ;;  %v2115_v57 = vld [vmem:[#allocation2 + $0x158] sm:$0xff]  ;;  %v2099_v11 = vld [vmem:[#allocation2 + $0xc8] sm:$0xff] }
 0x20e   : > { %1934 = vst [vmem:[#allocation2 + $0x38] sm:$0xf] %v1926_v17  ;;  %v2050_v58 = vpop.permute.xlu0 %2049 }
 0x20f   : > { %v2056_v62 = vsel %vm920_vm15, %v2048_v49, %v2050_v58 }
 0x210   : > { %2064 = vst [vmem:[#allocation2 + $0xf0] sm:$0xf] %v2056_v62 }
 0x212   : > { %v1488_v7 = vpop.permute.xlu2 %1487 }
 0x213   : > { %v1497_v13 = vsel %vm1495_vm8, %v1488_v7, %v3758_v61  ;;  %v1985_v5 = vpop.permute.xlu1 %1984 }
 0x214   : > { %1505 = vst [vmem:[#allocation2 + $0x68] sm:$0xf0] %v1497_v13  ;;  %v1991_v24 = vsel %vm853_vm12, %v1983_v26, %v1985_v5  ;;  %v1992_v15 = vsel %vm853_vm12, %v1985_v5, %v1987_v47  ;;  %v2116_v2 = vld [vmem:[#allocation2 + $0x128] sm:$0xff] }
 0x215   : > { %1999 = vst [vmem:[#allocation2 + $0x38] sm:$0xf0] %v1991_v24 }
 0x216   : > { %2000 = vst [vmem:[#allocation2 + $0x88] sm:$0xf0] %v1992_v15  ;;  %v1420_v38 = vpop.permute.xlu0 %1419  ;;  %v2086_v15 = vld [vmem:[#allocation2 + $0x138] sm:$0xff] }
 0x217   : > { %v1428_v54 = vsel %vm1427_vm4, %v3735_v9, %v1420_v38  ;;  %v1429_v59 = vsel %vm1427_vm4, %v1420_v38, %v3753_v14  ;;  %v2121_v10 = vld [vmem:[#allocation2 + $0xf0] sm:$0xf]  ;;  %v2109_v14 = vld [vmem:[#allocation2 + $0x100] sm:$0xff]  ;;  %vm1121_vm4 = vcmask 506880  }
 0x218   : > { %1436 = vst [vmem:[#allocation2] sm:$0xf] %v1428_v54  ;;  %2474 = vmatpush.msk.msra.mxu1 %vm369_vm7, %v2121_v10 }
 0x219   : > { %1437 = vst [vmem:[#allocation2 + $0x68] sm:$0xf] %v1429_v59  ;;  %v2082_v59 = vld [vmem:[#allocation2 + $0x108] sm:$0xff] }
 0x21a   : > { %v3858_v61 = vpop.permute.xlu2 %1117 }
 0x21b   : > { %v2046_v46 = vpop.permute.xlu1 %2045 }
 0x21c   : > { %v2055_v4 = vsel %vm920_vm15, %v2046_v46, %v2048_v49  ;;  %v2117_v34 = vld [vmem:[#allocation2 + $0x38] sm:$0xff]  ;;  %v2074_v46 = vld [vmem:[#allocation2 + $0x130] sm:$0xff] }
 0x21d   : > { %2063 = vst [vmem:[#allocation2 + $0x58] sm:$0xf] %v2055_v4  ;;  %2169 = vmatpush.msra.mxu1 %v2117_v34  ;;  %v2118_v56 = vld [vmem:[#allocation2 + $0x88] sm:$0xff]  ;;  %v2070_v34 = vld [vmem:[#allocation2 + $0xd8] sm:$0xff] }
 0x21e   : > { %v3861_v42 = vpop.permute.xlu0 %1049 }
 0x21f   : > { %v1056_v9 = vsel %vm1053_vm5, %v3684_v19, %v3861_v42  ;;  %2170 = vmatpush.msra.mxu1 %v2113_v63 }
 0x220   : > { %1064 = vst [vmem:[#allocation2 + $0x1b8] sm:$0xf] %v1056_v9  ;;  %v2101_v29 = vld [vmem:[#allocation2 + $0x68] sm:$0xff] }
 0x221   : > { %2171 = vmatpush.msra.mxu1 %v2109_v14 }
 0x222   : > { %v1284_v37 = vpop.permute.xlu2 %1283 }
 0x223   : > { %2172 = vmatpush.msra.mxu1 %v2105_v41  ;;  %v2052_v6 = vpop.permute.xlu1 %2051  ;;  %v2721_v41 = vmov 0  }
 0x224   : > { %v2057_v20 = vsel %vm920_vm15, %v2050_v58, %v2052_v6  ;;  %v2058_v50 = vsel %vm920_vm15, %v2052_v6, %v2054_v28  ;;  %v2120_v36 = vld [vmem:[#allocation2 + $0x58] sm:$0xf]  ;;  %v2094_v58 = vld [vmem:[#allocation2 + $0x190] sm:$0xff]  ;;  %2662 = vset.pattern.permute.xlu2 %v2721_v41  ;;  %2663 = vset.pattern.permute.xlu0 %v2721_v41 }
 0x225   : > { %2065 = vst [vmem:[#allocation2 + $0x30] sm:$0xf] %v2057_v20  ;;  %2472 = vmatpush.msk.msra.mxu0 %vm369_vm7, %v2120_v36  ;;  %2173 = vmatpush.msra.mxu1 %v2101_v29  ;;  %v2087_v36 = vld [vmem:[#allocation2 + $0x140] sm:$0xff]  ;;  %v2079_v29 = vld [vmem:[#allocation2 + $0x98] sm:$0xff] }
 0x226   : > { %2066 = vst [vmem:[#allocation2 + $0x198] sm:$0xf] %v2058_v50  ;;  %v1186_v19 = vpop.permute.xlu0 %1185 }
 0x227   : > { %v1191_v21 = vsel %vm1187_vm3, %v3704_v12, %v1186_v19  ;;  %2149 = vmatpush.msra.mxu0 %v2116_v2 }
 0x228   : > { %1199 = vst [vmem:[#allocation2 + $0xb8] sm:$0xf] %v1191_v21 }
 0x229   : > { %2150 = vmatpush.msra.mxu0 %v2112_v51 }
 0x22a   : > { %v3871_v53 = vpop.permute.xlu2 %1353 }
 0x22b   : > { %v1363_v39 = vsel %vm1361_vm14, %v3871_v53, %v3723_v8  ;;  %2151 = vmatpush.msra.mxu0 %v2108_v25  ;;  %v1486_v3 = vpop.permute.xlu1 %1485  ;;  %v2075_v25 = vld [vmem:[#allocation2 + $0x48] sm:$0xff] }
 0x22c   : > { %1371 = vst [vmem:[#allocation2 + $0xc0] sm:$0xf0] %v1363_v39  ;;  %v1496_v43 = vsel %vm1495_vm8, %v1486_v3, %v1488_v7  ;;  %v2122_v27 = vld [vmem:[#allocation2 + $0x30] sm:$0xf]  ;;  %v2071_v39 = vld [vmem:[#allocation2 + $0x18] sm:$0xff] }
 0x22d   : > { %1504 = vst [vmem:[#allocation2] sm:$0xf0] %v1496_v43  ;;  %2152 = vmatpush.msra.mxu0 %v2104_v1  ;;  %2476 = vmatpush.msk.msra.mxu2 %vm369_vm7, %v2122_v27  ;;  %v2123_v12 = vld [vmem:[#allocation2 + $0x198] sm:$0xf]  ;;  %v2084_v1 = vld [vmem:[#allocation2 + $0xe0] sm:$0xff]  ;;  %v2085_v27 = vld [vmem:[#allocation2 + $0x188] sm:$0xff] }
 0x22e   : > { %v1286_v22 = vpop.permute.xlu0 %1285  ;;  %2478 = vmatpush.msk.msra.mxu3 %vm369_vm7, %v2123_v12  ;;  %vm2130_vm7 = vcmask 883712   ;;  %v2080_v12 = vld [vmem:[#allocation2 + $0x120] sm:$0xff] }
 0x22f   : > { %v1294_v44 = vsel %vm1293_vm0, %v1284_v37, %v1286_v22  ;;  %v1295_v8 = vsel %vm1293_vm0, %v1286_v22, %v3729_v55  ;;  %2189 = vmatpush.msra.mxu2 %v2118_v56  ;;  %v2124_v37 = vld [vmem:[%s3939_s3] sm:$0xff]  ;;  %v2081_v22 = vld [vmem:[#allocation2 + $0x150] sm:$0xff]  ;;  %v2076_v56 = vld [vmem:[#allocation2 + $0x180] sm:$0xff] }
 0x230   : > { %1302 = vst [vmem:[#allocation2 + $0x90] sm:$0xf] %v1294_v44  ;;  %2209 = vmatpush.msra.mxu3 %v2119_v0  ;;  %2127 = vperm.xlu2 %2662, %v2124_v37   ;;  %v2077_v44 = vld [vmem:[#allocation2 + $0x110] sm:$0xff]  ;;  %v2073_v0 = vld [vmem:[#allocation2 + $0x168] sm:$0xff] }
 0x231   : > { %1303 = vst [vmem:[#allocation2 + $0xc0] sm:$0xf] %v1295_v8  ;;  %2190 = vmatpush.msra.mxu2 %v2114_v32  ;;  %v2072_v8 = vld [vmem:[#allocation2 + $0x50] sm:$0xff] }
 0x232   : > { %2210 = vmatpush.msra.mxu3 %v2115_v57  ;;  %v1178_v40 = vpop.permute.xlu2 %1177  ;;  %v2068_v32 = vld [vmem:[#allocation2 + $0xb0] sm:$0xff] }
 0x233   : > { %2191 = vmatpush.msra.mxu2 %v2110_v52  ;;  %v3882_v28 = vpop.permute.xlu1 %1115  ;;  %v2069_v57 = vld [vmem:[#allocation2 + $0x1b0] sm:$0xff] }
 0x234   : > { %2211 = vmatpush.msra.mxu3 %v2111_v18  ;;  %v1124_v55 = vsel %vm1121_vm4, %v3882_v28, %v3858_v61  ;;  %v2100_v47 = vld [vmem:[#allocation2] sm:$0xff] }
 0x235   : > { %1132 = vst [vmem:[#allocation2 + $0x1b8] sm:$0xf0] %v1124_v55  ;;  %2153 = vmatpush.msra.mxu0 %v2100_v47  ;;  %2192 = vmatpush.msra.mxu2 %v2106_v45 }
 0x236   : > { %v1052_v60 = vpop.permute.xlu0 %1051  ;;  %2212 = vmatpush.msra.mxu3 %v2107_v35 }
 0x237   : > { %v1057_v26 = vsel %vm1053_vm5, %v3861_v42, %v1052_v60  ;;  %2193 = vmatpush.msra.mxu2 %v2102_v48 }
 0x238   : > { %1065 = vst [vmem:[#allocation2 + $0x28] sm:$0xf] %v1057_v26  ;;  %v2097_v49 = vld [vmem:[#allocation2 + $0xc0] sm:$0xff]  ;;  %2213 = vmatpush.msra.mxu3 %v2103_v33 }
 0x239   : > { %2174 = vmatpush.msra.mxu1 %v2097_v49  ;;  %2194 = vmatpush.msra.mxu2 %v2098_v31 }
 0x23a   : > { %2214 = vmatpush.msra.mxu3 %v2099_v11  ;;  %v1220_v17 = vpop.permute.xlu2 %1219 }
 0x23b   : > { %v1229_v62 = vsel %vm1227_vm9, %v1220_v17, %v3737_v16  ;;  %2195 = vmatpush.msra.mxu2 %v2094_v58  ;;  %v1226_v7 = vpop.permute.xlu1 %1225  ;;  %v2078_v16 = vld [vmem:[#allocation2 + $0x118] sm:$0xff] }
 0x23c   : > { %1237 = vst [vmem:[#allocation2 + $0xf8] sm:$0xf0] %v1229_v62  ;;  %v1231_v13 = vsel %vm1227_vm9, %v3713_v23, %v1226_v7  ;;  %v2090_v5 = vld [vmem:[#allocation2 + $0x1b8] sm:$0xff] }
 0x23d   : > { %1239 = vst [vmem:[#allocation2 + $0xb8] sm:$0xf0] %v1231_v13  ;;  %2196 = vmatpush.msra.mxu2 %v2090_v5 }
 0x23e   : > { %v1180_v24 = vpop.permute.xlu0 %1179 }
 0x23f   : > { %v1188_v38 = vsel %vm1187_vm3, %v1178_v40, %v1180_v24  ;;  %v1189_v54 = vsel %vm1187_vm3, %v1180_v24, %v3700_v30  ;;  %2197 = vmatpush.msra.mxu2 %v2086_v15  ;;  %v2067_v30 = vld [vmem:[%s3938_s2] sm:$0xff] }
 0x240   : > { %1196 = vst [vmem:[#allocation2 + $0xe8] sm:$0xf] %v1188_v38 }
 0x241   : > { %1197 = vst [vmem:[#allocation2 + $0xf8] sm:$0xf] %v1189_v54  ;;  %2198 = vmatpush.msra.mxu2 %v2082_v59 }
 0x243   : > { %2199 = vmatpush.msra.mxu2 %v2078_v16  ;;  %v1352_v10 = vpop.permute.xlu1 %1351 }
 0x244   : > { %v1362_v23 = vsel %vm1361_vm14, %v1352_v10, %v3871_v53  ;;  %v2095_v4 = vld [vmem:[#allocation2 + $0xb8] sm:$0xff] }
 0x245   : > { %1370 = vst [vmem:[#allocation2 + $0x90] sm:$0xf0] %v1362_v23  ;;  %2200 = vmatpush.msra.mxu2 %v2074_v46  ;;  %2215 = vmatpush.msra.mxu3 %v2095_v4 }
 0x246   : > { %v1112_v19 = vpop.permute.xlu0 %1111 }
 0x247   : > { %2201 = vmatpush.msra.mxu2 %v2070_v34 }
 0x248   : > { %v2093_v42 = vld [vmem:[#allocation2 + $0xf8] sm:$0xff]  ;;  %2477 = vmatmul.msk.f32.vlgmr.msra.gmra.mxu2 %vm2130_vm7, %v2067_v30 }
 0x249   : > { %2175 = vmatpush.msra.mxu1 %v2093_v42 }
 0x24b   : > { %v1120_v63 = vpop.permute.xlu1 %1119 }
 0x24c   : > { %v1125_v9 = vsel %vm1121_vm4, %v3858_v61, %v1120_v63  ;;  %v2096_v14 = vld [vmem:[#allocation2 + $0x90] sm:$0xff]  ;;  %v2083_v61 = vld [vmem:[#allocation2 + $0x60] sm:$0xff] }
 0x24d   : > { %1133 = vst [vmem:[#allocation2 + $0x28] sm:$0xf0] %v1125_v9  ;;  %2154 = vmatpush.msra.mxu0 %v2096_v14 }
 0x253   : > { %v1218_v6 = vpop.permute.xlu1 %1217 }
 0x254   : > { %v1228_v20 = vsel %vm1227_vm9, %v1218_v6, %v1220_v17  ;;  %v2091_v50 = vld [vmem:[#allocation2 + $0x28] sm:$0xff] }
 0x255   : > { %1236 = vst [vmem:[#allocation2 + $0xe8] sm:$0xf0] %v1228_v20  ;;  %2216 = vmatpush.msra.mxu3 %v2091_v50 }
 0x257   : > { %2217 = vmatpush.msra.mxu3 %v2087_v36 }
 0x259   : > { %2218 = vmatpush.msra.mxu3 %v2083_v61 }
 0x25b   : > { %2219 = vmatpush.msra.mxu3 %v2079_v29  ;;  %v1114_v2 = vpop.permute.xlu1 %1113 }
 0x25c   : > { %v1122_v21 = vsel %vm1121_vm4, %v1112_v19, %v1114_v2  ;;  %v1123_v51 = vsel %vm1121_vm4, %v1114_v2, %v3882_v28  ;;  %v2092_v53 = vld [vmem:[#allocation2 + $0xe8] sm:$0xff] }
 0x25d   : > { %1130 = vst [vmem:[#allocation2 + $0x80] sm:$0xf0] %v1122_v21  ;;  %2155 = vmatpush.msra.mxu0 %v2092_v53  ;;  %2220 = vmatpush.msra.mxu3 %v2075_v25 }
 0x25e   : > { %1131 = vst [vmem:[#allocation2 + $0x1a8] sm:$0xf0] %v1123_v51 }
 0x25f   : > { %2221 = vmatpush.msra.mxu3 %v2071_v39 }
 0x260   : > { %2479 = vmatmul.msk.f32.vlgmr.msra.gmra.mxu3 %vm2130_vm7, %v2067_v30 }
 0x264   : > { %v2088_v3 = vld [vmem:[#allocation2 + $0x80] sm:$0xff] }
 0x265   : > { %2156 = vmatpush.msra.mxu0 %v2088_v3  ;;  %v2089_v43 = vld [vmem:[#allocation2 + $0x1a8] sm:$0xff] }
 0x266   : > { %2176 = vmatpush.msra.mxu1 %v2089_v43 }
 0x267   : > { %2157 = vmatpush.msra.mxu0 %v2084_v1 }
 0x268   : > { %2177 = vmatpush.msra.mxu1 %v2085_v27 }
 0x269   : > { %2158 = vmatpush.msra.mxu0 %v2080_v12 }
 0x26a   : > { %2178 = vmatpush.msra.mxu1 %v2081_v22 }
 0x26b   : > { %2159 = vmatpush.msra.mxu0 %v2076_v56 }
 0x26c   : > { %2179 = vmatpush.msra.mxu1 %v2077_v44 }
 0x26d   : > { %2160 = vmatpush.msra.mxu0 %v2072_v8 }
 0x26e   : > { %2180 = vmatpush.msra.mxu1 %v2073_v0 }
 0x26f   : > { %2161 = vmatpush.msra.mxu0 %v2068_v32 }
 0x270   : > { %2181 = vmatpush.msra.mxu1 %v2069_v57  ;;  %2473 = vmatmul.msk.f32.vlgmr.msra.gmra.mxu0 %vm2130_vm7, %v2067_v30 }
 0x271   : > { %2475 = vmatmul.msk.f32.vlgmr.msra.gmra.mxu1 %vm2130_vm7, %v2067_v30 }
 0x28a   : > { %v2128_v40 = vpop.permute.xlu2 %2127 }
 0x2cb   : > { %v2203_v52 = vpop.f32.mrf.mxu2 }
 0x2cc   : > { %v2204_v18 = vadd.f32 %v2203_v52, %v2128_v40 }
 0x2ce   : > { %2228 = vst [vmem:[%s332_s11 + $0x10] sm:$0xff] %v2204_v18  ;;  %v2238_v11 = vmul.f32 %v2204_v18, %v2204_v18 }
 0x2e3   : > { %v2223_v28 = vpop.f32.mrf.mxu3 }
 0x2e4   : > { %v2224_v55 = vadd.f32 %v2223_v28, %v2128_v40 }
 0x2e6   : > { %2229 = vst [vmem:[%s332_s11 + $0x18] sm:$0xff] %v2224_v55  ;;  %v2239_v17 = vmul.f32 %v2224_v55, %v2224_v55 }
 0x2ed   : > { %v2163_v47 = vpop.f32.mrf.mxu0 }
 0x2ee   : > { %v2164_v45 = vadd.f32 %v2163_v47, %v2128_v40  ;;  %v2183_v35 = vpop.f32.mrf.mxu1 }
 0x2ef   : > { %v2184_v60 = vadd.f32 %v2183_v35, %v2128_v40 }
 0x2f0   : > { %2226 = vst [vmem:[%s332_s11] sm:$0xff] %v2164_v45  ;;  %v2236_v48 = vmul.f32 %v2164_v45, %v2164_v45 }
 0x2f1   : > { %2227 = vst [vmem:[%s332_s11 + $0x8] sm:$0xff] %v2184_v60  ;;  %v2230_v26 = vadd.f32 %v2184_v60, %v2164_v45  ;;  %v2237_v33 = vmul.f32 %v2184_v60, %v2184_v60 }
 0x2f3   : > { %v2240_v49 = vadd.f32 %v2237_v33, %v2236_v48  ;;  %v2231_v31 = vadd.f32 %v2230_v26, %v2204_v18 }
 0x2f5   : > { %v2232_v58 = vadd.f32 %v2231_v31, %v2224_v55  ;;  %v2241_v62 = vadd.f32 %v2240_v49, %v2238_v11 }
 0x2f7   : > { %2233 = vadd.xlane.f32.xlu0 %v2232_v58  ;;  %v2242_v7 = vadd.f32 %v2241_v62, %v2239_v17 }
 0x2f9   : > { %2243 = vadd.xlane.f32.xlu1 %v2242_v7 }
 0x36a   : > { %v2234_v13 = vpop.xlane.xlu0 %2233 }
 0x36b   : > { %2235 = vst.msk [vmem:[%s340_s15] sm:$0xff] %vm3978_vm2, %v2234_v13 }
 0x36c   : > { %v2244_v5 = vpop.xlane.xlu1 %2243 }
 0x36d   : > { %2245 = vst.msk [vmem:[%s347_s19] sm:$0xff] %vm3979_vm1, %v2244_v5 }
 0x36e PF: > { %s17_s23 = sadd.s32 1, %s2686_s23   ;;  %s3980_s21 = smov %s2682_s22 }
 0x36f   : > { %p14_p5 = scmp.ge.s32.totalorder %s17_s23, 4   ;;  %s3981_s22 = smov %s3983_s24 }
 0x371   :  { %16 = sbr.rel (!%p14_p5) target bundleno = 2 (0x2), region = 160 }

// kernel: res_block_pallas.5
= control target key start
LH: loop header
LB: loop body
LE: loop exit
PB: predicated region body
PF: predicated region fallthrough
CT: control target
= control target key end

     0   :  { %s740_s26 = smov 0   ;;  %s742_s27 = smov 0   ;;  %s792_s0 = inlined_call_operand.vmem [shape: f32[2,8,512], index: 0, kind: input, shape index: {}, may-alias: {0,7}]   ;;  %s793_s1 = inlined_call_operand.vmem [shape: f32[8,1], index: 1, kind: input, shape index: {}]   ;;  %s794_s2 = inlined_call_operand.vmem [shape: f32[8,1], index: 2, kind: input, shape index: {}]   ;;  %s795_s3 = inlined_call_operand.<no memory space> [shape: f32[1], index: 3, kind: input, shape index: {}]   ;;  %s796_s4 = inlined_call_operand.vmem [shape: f32[2,4,512], index: 4, kind: input, shape index: {}]   ;;  %s797_s5 = inlined_call_operand.vmem [shape: f32[8,4], index: 5, kind: input, shape index: {}]   ;;  %s798_s6 = inlined_call_operand.vmem [shape: f32[8,1], index: 6, kind: input, shape index: {}]   ;;  %s799_s7 = inlined_call_operand.vmem [shape: f32[2,8,512], index: 7, kind: output, shape index: {}, may-alias: {0,7}]  }
   0x1   :  { %12 = sst [smem:[#allocation2]] %s795_s3  ;;  %s744_s28 = smov 0  }
   0x2 LB: > { %s30_s3 = sadd.s32 1, %s690_s27  ;;  %p625_p0 = scmp.ge.s32.totalorder %s694_s28, 1  ;;  %s694_s28 = sphi %s744_s28, %s18_s28   ;;  %s690_s27 = sphi %s742_s27, %s801_s27   ;;  %s686_s26 = sphi %s740_s26, %s800_s26  }
   0x3   : > { %p32_p1 = scmp.ge.s32.totalorder %s30_s3, 2  ;;  %p276_p2 = scmp.lt.s32.totalorder %s694_s28, 3 }
   0x5   : > { %s803_s3 = smov (%p32_p1, %s30_s3), 0  ;;  %p277_p3 = pnand %p625_p0, %p276_p2 }
   0x6   : > { %p326_p4 = scmp.lt.s32.totalorder (!%p277_p3), %s686_s26, 1  ;;  %s383_s22 = sld [smem:[#allocation2]] (!%p277_p3) }
   0x7   : > { %280 = sbr.rel (%p277_p3) target bundleno = 165 (0xa5), region = 48 }
   0xc   : > { %v359_v0 = vld [vmem:[%s793_s1] sm:$0xff]  ;;  %v696_v1 = vmov 0   ;;  %s805_s26 = smov (!%p326_p4, %s686_s26), 1  ;;  %vm409_vm0 = vcmask 1043456   ;;  %vm405_vm1 = vcmask 31744   ;;  %v384_v21 = vstv %s383_s22 }
   0xd   : > { %670 = vset.pattern.permute.xlu0 %v696_v1  ;;  %671 = vset.pattern.permute.xlu1 %v696_v1  ;;  %v502_v2 = vld [vmem:[%s798_s6] sm:$0xff]  ;;  %s643_s10 = sshll.u32 %s805_s26, 4  ;;  %s642_s18 = sshll.u32 %s805_s26, 5 }
   0xe   : > { %362 = vperm.xlu0 %670, %v359_v0   ;;  %505 = vperm.xlu1 %671, %v502_v2   ;;  %s343_s13 = scalar_lea.vmem %s796_s4, %s643_s10  ;;  %v369_v5 = vld [vmem:[%s794_s2] sm:$0xff]  ;;  %s333_s21 = scalar_lea.vmem %s792_s0, %s642_s18 }
   0xf   : > { %v394_v3 = vld [vmem:[%s343_s13] sm:$0xff]  ;;  %v395_v4 = vld [vmem:[%s343_s13 + $0x8] sm:$0xff]  ;;  %v357_v17 = vld [vmem:[%s333_s21 + $0x10] sm:$0xff]  ;;  %s353_s25 = scalar_lea.vmem %s799_s7, %s642_s18 }
  0x10   : > { %398 = vst [vmem:[#allocation1] ss:$2 sm:$0xff] %v394_v3  ;;  %v393_v6 = vld [vmem:[%s797_s5] sm:$0xff]  ;;  %v356_v13 = vld [vmem:[%s333_s21 + $0x8] sm:$0xff]  ;;  %v358_v18 = vld [vmem:[%s333_s21 + $0x18] sm:$0xff] }
  0x11   : > { %400 = vst [vmem:[#allocation1 + $0x10] ss:$2 sm:$0xff] %v395_v4  ;;  %v355_v12 = vld [vmem:[%s333_s21] sm:$0xff] }
  0x16   : > { %372 = vperm.xlu0 %670, %v369_v5  }
  0x17   : > { %v401_v7 = vld.sshfl [vmem:[#allocation1] sm:$0xff pattern:$0x75316420]  ;;  %v402_v8 = vld.sshfl [vmem:[#allocation1 + $0x8] sm:$0xff pattern:$0x75316420] }
  0x18   : > { %632 = vmatpush.msk.msra.mxu0 %vm409_vm0, %v401_v7  ;;  %634 = vmatpush.msk.msra.mxu1 %vm409_vm0, %v402_v8  ;;  %v403_v9 = vld.sshfl [vmem:[#allocation1 + $0x10] sm:$0xff pattern:$0x75316420]  ;;  %v404_v10 = vld.sshfl [vmem:[#allocation1 + $0x18] sm:$0xff pattern:$0x75316420] }
  0x19   : > { %636 = vmatpush.msk.msra.mxu2 %vm409_vm0, %v403_v9  ;;  %638 = vmatpush.msk.msra.mxu3 %vm409_vm0, %v404_v10 }
  0x1a   : > { %633 = vmatmul.msk.f32.vlgmr.msra.gmra.mxu0 %vm405_vm1, %v393_v6  ;;  %635 = vmatmul.msk.f32.vlgmr.msra.gmra.mxu1 %vm405_vm1, %v393_v6 }
  0x1b   : > { %637 = vmatmul.msk.f32.vlgmr.msra.gmra.mxu2 %vm405_vm1, %v393_v6  ;;  %639 = vmatmul.msk.f32.vlgmr.msra.gmra.mxu3 %vm405_vm1, %v393_v6 }
  0x80   : > { %v363_v11 = vpop.permute.xlu0 %362  ;;  %v506_v28 = vpop.permute.xlu1 %505 }
  0x81   : > { %v365_v14 = vmul.f32 %v363_v11, %v355_v12  ;;  %v366_v15 = vmul.f32 %v363_v11, %v356_v13  ;;  %v367_v22 = vmul.f32 %v363_v11, %v357_v17  ;;  %v368_v23 = vmul.f32 %v363_v11, %v358_v18 }
  0x88   : > { %v373_v16 = vpop.permute.xlu0 %372 }
  0x89   : > { %v375_v19 = vadd.f32 %v373_v16, %v365_v14  ;;  %v376_v20 = vadd.f32 %v373_v16, %v366_v15  ;;  %v377_v26 = vadd.f32 %v373_v16, %v367_v22  ;;  %v378_v27 = vadd.f32 %v373_v16, %v368_v23 }
  0x8b   : > { %v385_v24 = vmul.f32 %v384_v21, %v375_v19  ;;  %v386_v25 = vmul.f32 %v384_v21, %v376_v20  ;;  %vm379_vm2 = vcmp.ge.f32.partialorder %v375_v19, 0.0  ;;  %vm380_vm3 = vcmp.ge.f32.partialorder %v376_v20, 0.0 }
  0x8c   : > { %v387_v37 = vmul.f32 %v384_v21, %v377_v26  ;;  %v388_v38 = vmul.f32 %v384_v21, %v378_v27  ;;  %vm381_vm4 = vcmp.ge.f32.partialorder %v377_v26, 0.0  ;;  %vm382_vm5 = vcmp.ge.f32.partialorder %v378_v27, 0.0 }
  0x8d   : > { %v389_v29 = vsel %vm379_vm2, %v375_v19, %v385_v24  ;;  %v390_v31 = vsel %vm380_vm3, %v376_v20, %v386_v25 }
  0x8e   : > { %v391_v39 = vsel %vm381_vm4, %v377_v26, %v387_v37  ;;  %v392_v41 = vsel %vm382_vm5, %v378_v27, %v388_v38 }
  0x97   : > { %v435_v30 = vpop.f32.mrf.mxu0  ;;  %v455_v32 = vpop.f32.mrf.mxu1 }
  0x98   : > { %v498_v33 = vadd.f32 %v435_v30, %v389_v29  ;;  %v499_v34 = vadd.f32 %v455_v32, %v390_v31 }
  0x9a   : > { %v508_v35 = vadd.f32 %v506_v28, %v498_v33  ;;  %v509_v36 = vadd.f32 %v506_v28, %v499_v34 }
  0x9c   : > { %512 = vst [vmem:[%s353_s25] sm:$0xff] %v508_v35 }
  0x9d   : > { %513 = vst [vmem:[%s353_s25 + $0x8] sm:$0xff] %v509_v36 }
  0x9e   : > { %v475_v40 = vpop.f32.mrf.mxu2  ;;  %v495_v42 = vpop.f32.mrf.mxu3 }
  0x9f   : > { %v500_v43 = vadd.f32 %v475_v40, %v391_v39  ;;  %v501_v44 = vadd.f32 %v495_v42, %v392_v41 }
  0xa1   : > { %v510_v45 = vadd.f32 %v506_v28, %v500_v43  ;;  %v511_v46 = vadd.f32 %v506_v28, %v501_v44 }
  0xa3   : > { %514 = vst [vmem:[%s353_s25 + $0x10] sm:$0xff] %v510_v45 }
  0xa4   : > { %515 = vst [vmem:[%s353_s25 + $0x18] sm:$0xff] %v511_v46 }
  0xa5 PF: > { %s18_s28 = sadd.s32 1, %s694_s28   ;;  %s800_s26 = smov %s690_s27 }
  0xa6   : > { %p15_p5 = scmp.ge.s32.totalorder %s18_s28, 4   ;;  %s801_s27 = smov %s803_s3 }
  0xa8   :  { %17 = sbr.rel (!%p15_p5) target bundleno = 2 (0x2), region = 82 }

// kernel: res_block_pallas.4
= control target key start
LH: loop header
LB: loop body
LE: loop exit
PB: predicated region body
PF: predicated region fallthrough
CT: control target
= control target key end

     0   :  { %s3263_s11 = smov 0   ;;  %s3265_s12 = smov 0   ;;  %s4471_s0 = inlined_call_operand.vmem [shape: f32[2,1,8,658], index: 0, kind: input, shape index: {}]   ;;  %s4472_s1 = inlined_call_operand.vmem [shape: s32[3,512], index: 1, kind: input, shape index: {}]   ;;  %s4473_s2 = inlined_call_operand.vmem [shape: f32[8,216], index: 2, kind: input, shape index: {}]   ;;  %s4474_s3 = inlined_call_operand.vmem [shape: f32[8,1], index: 3, kind: input, shape index: {}]   ;;  %s4475_s4 = inlined_call_operand.vmem [shape: f32[8,1], index: 4, kind: input, shape index: {}]   ;;  %s4476_s5 = inlined_call_operand.vmem [shape: f32[8,1], index: 5, kind: input, shape index: {}]   ;;  %s4477_s6 = inlined_call_operand.<no memory space> [shape: f32[1], index: 6, kind: input, shape index: {}]   ;;  %s4478_s7 = inlined_call_operand.vmem [shape: f32[2,8,512], index: 7, kind: output, shape index: {0}]   ;;  %s4479_s8 = inlined_call_operand.vmem [shape: f32[2,1,8,1], index: 8, kind: output, shape index: {1}]   ;;  %s4480_s9 = inlined_call_operand.vmem [shape: f32[2,1,8,1], index: 9, kind: output, shape index: {2}]  }
   0x1   :  { %15 = sst [smem:[#allocation4]] %s4477_s6  ;;  %s3267_s13 = smov 0  }
   0x2 LB: > { %s33_s6 = sadd.s32 1, %s3170_s12  ;;  %p2559_p0 = scmp.ge.s32.totalorder %s3174_s13, 1  ;;  %s3174_s13 = sphi %s3267_s13, %s21_s13   ;;  %s3170_s12 = sphi %s3265_s12, %s4656_s12   ;;  %s3166_s11 = sphi %s3263_s11, %s4655_s11  }
   0x3   : > { %p35_p1 = scmp.ge.s32.totalorder %s33_s6, 2  ;;  %p328_p2 = scmp.lt.s32.totalorder %s3174_s13, 3 }
   0x5   : > { %s4658_s6 = smov (%p35_p1, %s33_s6), 0  ;;  %p329_p3 = pnand %p2559_p0, %p328_p2 }
   0x7   : > { %332 = sbr.rel (%p329_p3) target bundleno = 1342 (0x53e), region = 48 }
   0xc   : > { %v436_v0 = vld [vmem:[%s4475_s4] sm:$0xff]  ;;  %v3176_v2 = vmov 0   ;;  %v4503_v6 = vmov 0.0   ;;  %s3178_s24 = smov 1   ;;  %s3179_s25 = smov 2   ;;  %vm4483_vm13 = vcmask 7168  }
   0xd   : > { %v487_v1 = vld [vmem:[%s4472_s1] ss:$4 sm:$0xf]  ;;  %2659 = vset.pattern.permute.xlu0 %v3176_v2  ;;  %v3292_v3 = vld [vmem:[%s4472_s1 + $0x1] ss:$4 sm:$0xf]  ;;  %3150 = vset.pattern.permute.xlu2 %v3176_v2 }
   0xe   : > { %vm496_vm0 = vcmp.ge.s32.totalorder %v487_v1, 1  ;;  %439 = vperm.xlu0 %2659, %v436_v0   ;;  %vm497_vm1 = vcmp.ge.s32.totalorder %v3292_v3, 1  ;;  %v3298_v4 = vld [vmem:[%s4472_s1 + $0x2] ss:$4 sm:$0xf]  ;;  %vm839_vm8 = vcmp.lt.s32.totalorder %v3292_v3, 7 }
   0xf   : > { %vm3303_vm2 = vmand %vm496_vm0, %vm497_vm1  ;;  %vm498_vm3 = vcmp.ge.s32.totalorder %v3298_v4, 1  ;;  %vm587_vm4 = vcmp.lt.s32.totalorder %v3298_v4, 7  ;;  %v448_v14 = vld [vmem:[%s4476_s5] sm:$0xff]  ;;  %v2571_v15 = vsel %vm496_vm0, 1.0, %v4503_v6  ;;  %s3180_s26 = smov 9   ;;  %s3181_s27 = smov 8  }
  0x10   : > { %v2568_v7 = vsel %vm3303_vm2, 1.0, %v4503_v6  ;;  %vm588_vm5 = vmand %vm3303_vm2, %vm587_vm4  ;;  %v717_v20 = vperm.slane %v2571_v15, 0  ;;  %v718_v21 = vperm.slane %v2571_v15, 1  ;;  %v719_v33 = vperm.slane %v2571_v15, 2  ;;  %s3182_s28 = smov 10   ;;  %s3183_s29 = smov 17  }
  0x11   : > { %v528_v8 = vperm.slane %v2568_v7, 0  ;;  %v529_v9 = vperm.slane %v2568_v7, 1  ;;  %v2569_v10 = vsel %vm588_vm5, 1.0, %v4503_v6  ;;  %vm651_vm6 = vmand %vm496_vm0, %vm498_vm3  ;;  %v530_v18 = vperm.slane %v2568_v7, 2  ;;  %s3184_s30 = smov 16   ;;  %s3185_s10 = smov 18  }
  0x12   : > { %v594_v11 = vperm.slane %v2569_v10, 2  ;;  %v595_v12 = vperm.slane %v2569_v10, 3  ;;  %v2570_v16 = vsel %vm651_vm6, 1.0, %v4503_v6  ;;  %v531_v19 = vperm.slane %v2568_v7, 3  ;;  %vm776_vm7 = vmand %vm496_vm0, %vm587_vm4  ;;  %s3186_s14 = smov 65   ;;  %s3187_s15 = smov 64  }
  0x13   : > { %v2660_v13 = vpack.i.bf16 %v529_v9, %v528_v8  ;;  %v655_v22 = vperm.slane %v2570_v16, 0  ;;  %v656_v23 = vperm.slane %v2570_v16, 1  ;;  %v2690_v25 = vpack.i.bf16 %v718_v21, %v717_v20  ;;  %vm3337_vm9 = vmand %vm496_vm0, %vm839_vm8  ;;  %p391_p4 = scmp.lt.s32.totalorder %s3166_s11, 1  ;;  %s466_s20 = sld [smem:[#allocation4]] }
  0x14   : > { %v2675_v17 = vpack.i.bf16 %v595_v12, %v594_v11  ;;  %v2665_v24 = vpack.i.bf16 %v531_v19, %v530_v18  ;;  %v2572_v27 = vsel %vm776_vm7, 1.0, %v4503_v6  ;;  %v592_v28 = vperm.slane %v2569_v10, 0  ;;  %vm841_vm10 = vmand %vm3337_vm9, %vm498_vm3  ;;  %s4481_s21 = smov 127   ;;  %s4512_s22 = smov 126  }
  0x15   : > { %2661 = vrot.lane.b32.xlu1 %v2660_v13, %s3178_s24  ;;  %v2680_v26 = vpack.i.bf16 %v656_v23, %v655_v22  ;;  %v593_v29 = vperm.slane %v2569_v10, 1  ;;  %v782_v31 = vperm.slane %v2572_v27, 2  ;;  %v783_v32 = vperm.slane %v2572_v27, 3  ;;  %vm966_vm11 = vmand %vm3337_vm9, %vm587_vm4  ;;  %s4660_s11 = smov (!%p391_p4, %s3166_s11), 1  ;;  %s3190_s23 = smov 120  }
  0x16   : > { %2676 = vrot.lane.b32.xlu2 %v2675_v17, %s3179_s25  ;;  %451 = vperm.xlu0 %2659, %v448_v14   ;;  %v720_v34 = vperm.slane %v2571_v15, 3  ;;  %v2574_v38 = vsel %vm3337_vm9, 1.0, %v4503_v6  ;;  %v2573_v39 = vsel %vm841_vm10, 1.0, %v4503_v6  ;;  %v657_v40 = vperm.slane %v2570_v16, 2  ;;  %vm1028_vm12 = vmand %vm497_vm1, %vm498_vm3  ;;  %s2600_s16 = smul.u32 48, %s4660_s11  ;;  %s3193_s17 = smov 112  }
  0x17   : > { %v2670_v35 = vpack.i.bf16 %v593_v29, %v592_v28  ;;  %v2705_v36 = vpack.i.bf16 %v783_v32, %v782_v31  ;;  %v658_v41 = vperm.slane %v2570_v16, 3  ;;  %v907_v42 = vperm.slane %v2574_v38, 0  ;;  %s3194_s18 = smov 111  }
  0x18   : > { %v2695_v37 = vpack.i.bf16 %v720_v34, %v719_v33  ;;  %v908_v43 = vperm.slane %v2574_v38, 1  ;;  %v845_v44 = vperm.slane %v2573_v39, 0  ;;  %v846_v45 = vperm.slane %v2573_v39, 1  ;;  %s399_s19 = scalar_lea.vmem %s4471_s0, %s2600_s16  ;;  %s3192_s16 = smov 118  }
  0x19   : > { %v2685_v46 = vpack.i.bf16 %v658_v41, %v657_v40  ;;  %v2575_v49 = vsel %vm966_vm11, 1.0, %v4503_v6  ;;  %v780_v50 = vperm.slane %v2572_v27, 0  ;;  %v781_v51 = vperm.slane %v2572_v27, 1  ;;  %v430_v20 = vld [vmem:[%s399_s19] sm:$0xff]  ;;  %v431_v21 = vld [vmem:[%s399_s19 + $0x8] sm:$0xff]  ;;  %v432_v22 = vld [vmem:[%s399_s19 + $0x10] sm:$0xff] }
  0x1a   : > { %v2720_v47 = vpack.i.bf16 %v908_v43, %v907_v42  ;;  %v2710_v48 = vpack.i.bf16 %v846_v45, %v845_v44  ;;  %v972_v52 = vperm.slane %v2575_v49, 2  ;;  %v973_v53 = vperm.slane %v2575_v49, 3  ;;  %v433_v23 = vld [vmem:[%s399_s19 + $0x18] sm:$0xff] }
  0x1b   : > { %v909_v54 = vperm.slane %v2574_v38, 2  ;;  %v910_v55 = vperm.slane %v2574_v38, 3  ;;  %v2700_v56 = vpack.i.bf16 %v781_v51, %v780_v50  ;;  %v2577_v59 = vsel %vm497_vm1, 1.0, %v4503_v6 }
  0x1c   : > { %v2735_v57 = vpack.i.bf16 %v973_v53, %v972_v52  ;;  %v2576_v60 = vsel %vm1028_vm12, 1.0, %v4503_v6  ;;  %v847_v61 = vperm.slane %v2573_v39, 2  ;;  %v848_v62 = vperm.slane %v2573_v39, 3 }
  0x1d   : > { %2666 = vrot.lane.b32.xlu1 %v2665_v24, %s3178_s24  ;;  %v2725_v58 = vpack.i.bf16 %v910_v55, %v909_v54  ;;  %v1093_v63 = vperm.slane %v2577_v59, 0  ;;  %v1094_v0 = vperm.slane %v2577_v59, 1  ;;  %v1032_v1 = vperm.slane %v2576_v60, 0  ;;  %v434_v24 = vld [vmem:[%s399_s19 + $0x20] sm:$0xff] }
  0x1e   : > { %2691 = vrot.lane.b32.xlu2 %v2690_v25, %s3180_s26  ;;  %2681 = vrot.lane.b32.xlu0 %v2680_v26, %s3181_s27  ;;  %v1033_v2 = vperm.slane %v2576_v60, 1  ;;  %v2715_v7 = vpack.i.bf16 %v848_v62, %v847_v61  ;;  %v970_v10 = vperm.slane %v2575_v49, 0  ;;  %v971_v11 = vperm.slane %v2575_v49, 1  ;;  %v435_v25 = vld [vmem:[%s399_s19 + $0x28] sm:$0xff]  ;;  %s3195_s19 = smov 110  }
  0x1f   : > { %v2750_v8 = vpack.i.bf16 %v1094_v0, %v1093_v63  ;;  %v1095_v12 = vperm.slane %v2577_v59, 2  ;;  %v1096_v13 = vperm.slane %v2577_v59, 3  ;;  %v1034_v16 = vperm.slane %v2576_v60, 2 }
  0x20   : > { %v2740_v9 = vpack.i.bf16 %v1033_v2, %v1032_v1  ;;  %v2730_v14 = vpack.i.bf16 %v971_v11, %v970_v10  ;;  %v1035_v17 = vperm.slane %v2576_v60, 3  ;;  %v467_v34 = vstv %s466_s20  ;;  %s3196_s20 = smov 63  }
  0x21   : > { %v2755_v15 = vpack.i.bf16 %v1096_v13, %v1095_v12  ;;  %vm485_vm9 = vcmask 146432   ;;  %vm4484_vm10 = vcmask 15360   ;;  %vm4485_vm11 = vcmask 64512  }
  0x22   : > { %v2745_v18 = vpack.i.bf16 %v1035_v17, %v1034_v16  ;;  %vm4486_vm12 = vcmask 72704  }
  0x25   : > { %2671 = vrot.lane.b32.xlu1 %v2670_v35, %s3179_s25 }
  0x26   : > { %2706 = vrot.lane.b32.xlu2 %v2705_v36, %s3182_s28  ;;  %2696 = vrot.lane.b32.xlu0 %v2695_v37, %s3180_s26 }
  0x2d   : > { %2686 = vrot.lane.b32.xlu1 %v2685_v46, %s3181_s27 }
  0x2e   : > { %2721 = vrot.lane.b32.xlu2 %v2720_v47, %s3183_s29  ;;  %2711 = vrot.lane.b32.xlu0 %v2710_v48, %s3184_s30 }
  0x35   : > { %2701 = vrot.lane.b32.xlu1 %v2700_v56, %s3182_s28 }
  0x36   : > { %2736 = vrot.lane.b32.xlu2 %v2735_v57, %s3185_s10  ;;  %2726 = vrot.lane.b32.xlu0 %v2725_v58, %s3183_s29 }
  0x3d   : > { %2716 = vrot.lane.b32.xlu1 %v2715_v7, %s3184_s30 }
  0x3e   : > { %2751 = vrot.lane.b32.xlu2 %v2750_v8, %s3186_s14  ;;  %2741 = vrot.lane.b32.xlu0 %v2740_v9, %s3187_s15 }
  0x45   : > { %2731 = vrot.lane.b32.xlu1 %v2730_v14, %s3185_s10 }
  0x46   : > { %2756 = vrot.lane.b32.xlu0 %v2755_v15, %s3186_s14  ;;  %s3191_s14 = smov 119  }
  0x4d   : > { %2746 = vrot.lane.b32.xlu1 %v2745_v18, %s3187_s15 }
  0x70   : > { %v2677_v62 = vpop.permute.xlu2 %2676 }
  0x71   : > { %v2679_v0 = vunpack.i.h.bf16 %v2677_v62  ;;  %v2678_v1 = vunpack.i.l.bf16 %v2677_v62 }
  0x73   : > { %v607_v13 = vsel %vm4484_vm10, %v2678_v1, %v2679_v0 }
  0x80   : > { %v440_v19 = vpop.permute.xlu0 %439 }
  0x81   : > { %v442_v26 = vmul.f32 %v440_v19, %v430_v20  ;;  %v443_v27 = vmul.f32 %v440_v19, %v431_v21  ;;  %v444_v28 = vmul.f32 %v440_v19, %v432_v22  ;;  %v445_v29 = vmul.f32 %v440_v19, %v433_v23 }
  0x82   : > { %v446_v30 = vmul.f32 %v440_v19, %v434_v24  ;;  %v447_v31 = vmul.f32 %v440_v19, %v435_v25 }
  0x87   : > { %v2662_v32 = vpop.permute.xlu1 %2661 }
  0x88   : > { %v452_v33 = vpop.permute.xlu0 %451  ;;  %v2664_v40 = vunpack.i.h.bf16 %v2662_v32  ;;  %v2663_v41 = vunpack.i.l.bf16 %v2662_v32 }
  0x89   : > { %v454_v35 = vadd.f32 %v452_v33, %v442_v26  ;;  %v455_v36 = vadd.f32 %v452_v33, %v443_v27  ;;  %v456_v37 = vadd.f32 %v452_v33, %v444_v28  ;;  %v457_v38 = vadd.f32 %v452_v33, %v445_v29  ;;  %v2692_v29 = vpop.permute.xlu2 %2691 }
  0x8a   : > { %v458_v39 = vadd.f32 %v452_v33, %v446_v30  ;;  %v459_v42 = vadd.f32 %v452_v33, %v447_v31  ;;  %v541_v57 = vsel %vm4483_vm13, %v2663_v41, %v2664_v40  ;;  %v2694_v32 = vunpack.i.h.bf16 %v2692_v29 }
  0x8b   : > { %vm460_vm14 = vcmp.ge.f32.partialorder %v454_v35, 0.0  ;;  %vm461_vm15 = vcmp.ge.f32.partialorder %v455_v36, 0.0  ;;  %vm462_vm0 = vcmp.ge.f32.partialorder %v456_v37, 0.0  ;;  %vm463_vm5 = vcmp.ge.f32.partialorder %v457_v38, 0.0 }
  0x8c   : > { %v468_v43 = vmul.f32 %v467_v34, %v454_v35  ;;  %vm464_vm6 = vcmp.ge.f32.partialorder %v458_v39, 0.0  ;;  %v469_v44 = vmul.f32 %v467_v34, %v455_v36  ;;  %v470_v45 = vmul.f32 %v467_v34, %v456_v37 }
  0x8d   : > { %v471_v46 = vmul.f32 %v467_v34, %v457_v38  ;;  %vm465_vm7 = vcmp.ge.f32.partialorder %v459_v42, 0.0  ;;  %v472_v47 = vmul.f32 %v467_v34, %v458_v39  ;;  %v473_v48 = vmul.f32 %v467_v34, %v459_v42 }
  0x8e   : > { %v3385_v49 = vsel %vm460_vm14, %v454_v35, %v468_v43  ;;  %v3387_v50 = vsel %vm461_vm15, %v455_v36, %v469_v44  ;;  %v3389_v51 = vsel %vm462_vm0, %v456_v37, %v470_v45  ;;  %v2693_v33 = vunpack.i.l.bf16 %v2692_v29 }
  0x8f   : > { %v3391_v52 = vsel %vm463_vm5, %v457_v38, %v471_v46  ;;  %480 = vst [vmem:[#allocation3] sm:$0xff] %v3385_v49  ;;  %v2667_v53 = vpop.permute.xlu1 %2666  ;;  %v3394_v54 = vsel %vm464_vm6, %v458_v39, %v472_v47  ;;  %v549_v56 = vmul.f32 %v2663_v41, %v3385_v49  ;;  %v479_v58 = vsel %vm465_vm7, %v459_v42, %v473_v48  ;;  %vm1152_vm7 = vmand %vm497_vm1, %vm587_vm4 }
  0x90   : > { %481 = vst [vmem:[#allocation3 + $0x8] sm:$0xff] %v3387_v50  ;;  %v2669_v55 = vunpack.i.h.bf16 %v2667_v53  ;;  %v2668_v59 = vunpack.i.l.bf16 %v2667_v53  ;;  %v550_v61 = vmul.f32 %v541_v57, %v3387_v50  ;;  %v2682_v17 = vpop.permute.xlu0 %2681  ;;  %v616_v19 = vmul.f32 %v607_v13, %v3391_v52 }
  0x91   : > { %482 = vst [vmem:[#allocation3 + $0x10] sm:$0xff] %v3389_v51  ;;  %v2684_v25 = vunpack.i.h.bf16 %v2682_v17  ;;  %v2683_v28 = vunpack.i.l.bf16 %v2682_v17  ;;  %v617_v36 = vmul.f32 %v2679_v0, %v3394_v54  ;;  %v730_v41 = vsel %vm4486_vm12, %v2693_v33, %v2694_v32 }
  0x92   : > { %483 = vst [vmem:[#allocation3 + $0x18] sm:$0xff] %v3391_v52  ;;  %v553_v60 = vmul.f32 %v2669_v55, %v3394_v54  ;;  %v2760_v63 = vpack.i.bf16 %v550_v61, %v549_v56  ;;  %v542_v2 = vsel %vm4483_vm13, %v2664_v40, %v2668_v59  ;;  %v543_v7 = vsel %vm4483_vm13, %v2668_v59, %v2669_v55  ;;  %v2707_v56 = vpop.permute.xlu2 %2706 }
  0x93   : > { %484 = vst [vmem:[#allocation3 + $0x20] sm:$0xff] %v3394_v54  ;;  %v551_v11 = vmul.f32 %v542_v2, %v3389_v51  ;;  %v552_v12 = vmul.f32 %v543_v7, %v3391_v52  ;;  %v668_v37 = vsel %vm4485_vm11, %v2683_v28, %v2684_v25  ;;  %v676_v43 = vmul.f32 %v2683_v28, %v3385_v49 }
  0x94   : > { %486 = vst.msk [vmem:[#allocation3 + $0x28] sm:$0xff] %vm485_vm9, %v479_v58  ;;  %567 = vrot.lane.b32.xlu0 %v553_v60, %s4481_s21  ;;  %2761 = vrot.lane.b32.xlu2 %v2760_v63, %s4481_s21  ;;  %v677_v44 = vmul.f32 %v668_v37, %v3387_v50  ;;  %v738_v47 = vmul.f32 %v2693_v33, %v3385_v49  ;;  %v2709_v58 = vunpack.i.h.bf16 %v2707_v56  ;;  %v2708_v59 = vunpack.i.l.bf16 %v2707_v56 }
  0x95   : > { %v2765_v21 = vpack.i.bf16 %v552_v12, %v551_v11  ;;  %v739_v48 = vmul.f32 %v730_v41, %v3387_v50  ;;  %vm4488_vm14 = vcmask 80896   ;;  %vm4502_vm15 = vcmask 130048  }
  0x96   : > { %v2780_v57 = vpack.i.bf16 %v677_v44, %v676_v43  ;;  %vm4516_vm0 = vcmask 138240   ;;  %v805_v29 = vmul.f32 %v2709_v58, %v3394_v54  ;;  %vm1044_vm5 = vcmask 523264  }
  0x97   : > { %v2672_v8 = vpop.permute.xlu1 %2671  ;;  %v2790_v63 = vpack.i.bf16 %v739_v48, %v738_v47  ;;  %vm1105_vm6 = vcmask 531456   ;;  %vm4489_vm13 = vcmask 1031168  }
  0x98   : > { %v2674_v9 = vunpack.i.h.bf16 %v2672_v8  ;;  %v2673_v10 = vunpack.i.l.bf16 %v2672_v8  ;;  %v2697_v39 = vpop.permute.xlu0 %2696 }
  0x99   : > { %v2699_v45 = vunpack.i.h.bf16 %v2697_v39  ;;  %v2698_v46 = vunpack.i.l.bf16 %v2697_v39 }
  0x9a   : > { %v606_v14 = vsel %vm4484_vm10, %v2674_v9, %v2678_v1  ;;  %v605_v15 = vsel %vm4484_vm10, %v2673_v10, %v2674_v9  ;;  %v613_v16 = vmul.f32 %v2673_v10, %v3385_v49  ;;  %v795_v9 = vsel %vm4488_vm14, %v2708_v59, %v2709_v58 }
  0x9b   : > { %v615_v18 = vmul.f32 %v606_v14, %v3389_v51  ;;  %v614_v20 = vmul.f32 %v605_v15, %v3387_v50  ;;  %v731_v60 = vsel %vm4486_vm12, %v2694_v32, %v2698_v46  ;;  %v732_v61 = vsel %vm4486_vm12, %v2698_v46, %v2699_v45 }
  0x9c   : > { %2766 = vrot.lane.b32.xlu2 %v2765_v21, %s4481_s21  ;;  %v742_v62 = vmul.f32 %v2699_v45, %v3394_v54  ;;  %v740_v7 = vmul.f32 %v731_v60, %v3389_v51  ;;  %v741_v8 = vmul.f32 %v732_v61, %v3391_v52  ;;  %s3197_s21 = smov 66   ;;  %vm4493_vm10 = vcmask 982016  }
  0x9d   : > { %v2775_v22 = vpack.i.bf16 %v616_v19, %v615_v18  ;;  %v2770_v23 = vpack.i.bf16 %v614_v20, %v613_v16  ;;  %v804_v16 = vmul.f32 %v795_v9, %v3391_v52  ;;  %vm4508_vm12 = vcmask 965632  }
  0x9e   : > { %v2795_v17 = vpack.i.bf16 %v741_v8, %v740_v7 }
  0x9f   : > { %v2687_v24 = vpop.permute.xlu1 %2686  ;;  %2776 = vrot.lane.b32.xlu1 %v2775_v22, %s4512_s22  ;;  %2771 = vrot.lane.b32.xlu0 %v2770_v23, %s4512_s22  ;;  %v2722_v23 = vpop.permute.xlu2 %2721 }
  0xa0   : > { %v2689_v26 = vunpack.i.h.bf16 %v2687_v24  ;;  %v2688_v27 = vunpack.i.l.bf16 %v2687_v24  ;;  %v2712_v10 = vpop.permute.xlu0 %2711  ;;  %v2723_v28 = vunpack.i.l.bf16 %v2722_v23 }
  0xa1   : > { %v2714_v18 = vunpack.i.h.bf16 %v2712_v10  ;;  %v2713_v24 = vunpack.i.l.bf16 %v2712_v10 }
  0xa2   : > { %v669_v30 = vsel %vm4485_vm11, %v2684_v25, %v2688_v27  ;;  %v670_v31 = vsel %vm4485_vm11, %v2688_v27, %v2689_v26  ;;  %v680_v40 = vmul.f32 %v2689_v26, %v3394_v54  ;;  %v2724_v27 = vunpack.i.h.bf16 %v2722_v23 }
  0xa3   : > { %v678_v34 = vmul.f32 %v669_v30, %v3389_v51  ;;  %v679_v35 = vmul.f32 %v670_v31, %v3391_v52  ;;  %v858_v30 = vsel %vm4502_vm15, %v2713_v24, %v2714_v18  ;;  %v928_v41 = vmul.f32 %v2723_v28, %v3385_v49 }
  0xa4   : > { %631 = vrot.lane.b32.xlu2 %v617_v36, %s4512_s22  ;;  %v866_v36 = vmul.f32 %v2713_v24, %v3385_v49  ;;  %v867_v37 = vmul.f32 %v858_v30, %v3387_v50  ;;  %vm4515_vm11 = vcmask 908288   ;;  %s3205_s22 = smov 48  }
  0xa5   : > { %v2785_v38 = vpack.i.bf16 %v679_v35, %v678_v34  ;;  %v920_v35 = vsel %vm4516_vm0, %v2723_v28, %v2724_v27 }
  0xa6   : > { %v2810_v45 = vpack.i.bf16 %v867_v37, %v866_v36  ;;  %v2578_v37 = vsel %vm1152_vm7, 1.0, %v4503_v6  ;;  %vm4507_vm7 = vcmask 973824  }
  0xa7   : > { %v2702_v42 = vpop.permute.xlu1 %2701  ;;  %694 = vrot.lane.b32.xlu1 %v680_v40, %s3190_s23  ;;  %2786 = vrot.lane.b32.xlu0 %v2785_v38, %s3190_s23  ;;  %v2737_v40 = vpop.permute.xlu2 %2736 }
  0xa8   : > { %v2704_v53 = vunpack.i.h.bf16 %v2702_v42  ;;  %v2703_v55 = vunpack.i.l.bf16 %v2702_v42  ;;  %v2727_v31 = vpop.permute.xlu0 %2726  ;;  %v929_v42 = vmul.f32 %v920_v35, %v3387_v50  ;;  %v2739_v46 = vunpack.i.h.bf16 %v2737_v40 }
  0xa9   : > { %v2729_v38 = vunpack.i.h.bf16 %v2727_v31  ;;  %v2728_v39 = vunpack.i.l.bf16 %v2727_v31  ;;  %v2738_v47 = vunpack.i.l.bf16 %v2737_v40  ;;  %v1156_v40 = vperm.slane %v2578_v37, 0 }
  0xaa   : > { %v794_v0 = vsel %vm4488_vm14, %v2704_v53, %v2708_v59  ;;  %v793_v1 = vsel %vm4488_vm14, %v2703_v55, %v2704_v53  ;;  %v801_v11 = vmul.f32 %v2703_v55, %v3385_v49  ;;  %v2820_v56 = vpack.i.bf16 %v929_v42, %v928_v41 }
  0xab   : > { %v803_v12 = vmul.f32 %v794_v0, %v3389_v51  ;;  %v802_v13 = vmul.f32 %v793_v1, %v3387_v50  ;;  %v921_v48 = vsel %vm4516_vm0, %v2724_v27, %v2728_v39  ;;  %v922_v53 = vsel %vm4516_vm0, %v2728_v39, %v2729_v38 }
  0xac   : > { %2781 = vrot.lane.b32.xlu2 %v2780_v57, %s3190_s23  ;;  %v932_v55 = vmul.f32 %v2729_v38, %v3394_v54  ;;  %v930_v60 = vmul.f32 %v921_v48, %v3389_v51  ;;  %v931_v61 = vmul.f32 %v922_v53, %v3391_v52  ;;  %v1157_v41 = vperm.slane %v2578_v37, 1 }
  0xad   : > { %v2805_v19 = vpack.i.bf16 %v804_v16, %v803_v12  ;;  %v2800_v20 = vpack.i.bf16 %v802_v13, %v801_v11  ;;  %vm1134_vm14 = vcmask 515072   ;;  %vm1388_vm0 = vcmask 654336  }
  0xae   : > { %v2825_v10 = vpack.i.bf16 %v931_v61, %v930_v60 }
  0xaf   : > { %v2717_v2 = vpop.permute.xlu1 %2716  ;;  %2791 = vrot.lane.b32.xlu1 %v2790_v63, %s3191_s14  ;;  %756 = vrot.lane.b32.xlu0 %v742_v62, %s3191_s14  ;;  %v984_v62 = vsel %vm485_vm9, %v2738_v47, %v2739_v46  ;;  %v2752_v16 = vpop.permute.xlu2 %2751 }
  0xb0   : > { %v2719_v14 = vunpack.i.h.bf16 %v2717_v2  ;;  %v2718_v15 = vunpack.i.l.bf16 %v2717_v2  ;;  %v2742_v63 = vpop.permute.xlu0 %2741  ;;  %v993_v9 = vmul.f32 %v984_v62, %v3391_v52 }
  0xb1   : > { %v2744_v11 = vunpack.i.h.bf16 %v2742_v63 }
  0xb2   : > { %v859_v21 = vsel %vm4502_vm15, %v2714_v18, %v2718_v15  ;;  %v860_v22 = vsel %vm4502_vm15, %v2718_v15, %v2719_v14  ;;  %v870_v32 = vmul.f32 %v2719_v14, %v3394_v54  ;;  %vm1230_vm15 = vcmask 588800  }
  0xb3   : > { %v868_v25 = vmul.f32 %v859_v21, %v3389_v51  ;;  %v869_v26 = vmul.f32 %v860_v22, %v3391_v52  ;;  %v2753_v21 = vunpack.i.l.bf16 %v2752_v16  ;;  %v994_v22 = vmul.f32 %v2739_v46, %v3394_v54 }
  0xb4   : > { %2796 = vrot.lane.b32.xlu2 %v2795_v17, %s3191_s14  ;;  %v2743_v17 = vunpack.i.l.bf16 %v2742_v63  ;;  %v1158_v46 = vperm.slane %v2578_v37, 2 }
  0xb5   : > { %v2815_v34 = vpack.i.bf16 %v869_v26, %v868_v25 }
  0xb6   : > { %v1045_v23 = vsel %vm1044_vm5, %v2743_v17, %v2744_v11  ;;  %v1053_v28 = vmul.f32 %v2743_v17, %v3385_v49 }
  0xb7   : > { %2806 = vrot.lane.b32.xlu1 %v2805_v19, %s3192_s16  ;;  %2801 = vrot.lane.b32.xlu0 %v2800_v20, %s3192_s16  ;;  %v2732_v33 = vpop.permute.xlu1 %2731  ;;  %v2754_v20 = vunpack.i.h.bf16 %v2752_v16 }
  0xb8   : > { %v2734_v43 = vunpack.i.h.bf16 %v2732_v33  ;;  %v2733_v44 = vunpack.i.l.bf16 %v2732_v33  ;;  %v2757_v24 = vpop.permute.xlu0 %2756 }
  0xb9   : > { %v1106_v27 = vsel %vm1105_vm6, %v2753_v21, %v2754_v20  ;;  %v2759_v30 = vunpack.i.h.bf16 %v2757_v24  ;;  %v2758_v31 = vunpack.i.l.bf16 %v2757_v24 }
  0xba   : > { %v982_v57 = vsel %vm485_vm9, %v2733_v44, %v2734_v43  ;;  %v983_v58 = vsel %vm485_vm9, %v2734_v43, %v2738_v47  ;;  %v990_v0 = vmul.f32 %v2733_v44, %v3385_v49  ;;  %v1115_v33 = vmul.f32 %v1106_v27, %v3387_v50 }
  0xbb   : > { %v992_v1 = vmul.f32 %v983_v58, %v3389_v51  ;;  %v991_v2 = vmul.f32 %v982_v57, %v3387_v50  ;;  %v1107_v35 = vsel %vm1105_vm6, %v2754_v20, %v2758_v31  ;;  %v1108_v36 = vsel %vm1105_vm6, %v2758_v31, %v2759_v30 }
  0xbc   : > { %819 = vrot.lane.b32.xlu2 %v805_v29, %s3192_s16  ;;  %v1054_v29 = vmul.f32 %v1045_v23, %v3387_v50  ;;  %v1118_v38 = vmul.f32 %v2759_v30, %v3394_v54  ;;  %v1116_v42 = vmul.f32 %v1107_v35, %v3389_v51  ;;  %v1117_v43 = vmul.f32 %v1108_v36, %v3391_v52 }
  0xbd   : > { %v2835_v12 = vpack.i.bf16 %v993_v9, %v992_v1  ;;  %v2830_v13 = vpack.i.bf16 %v991_v2, %v990_v0  ;;  %v2860_v44 = vpack.i.bf16 %v1157_v41, %v1156_v40  ;;  %v1159_v47 = vperm.slane %v2578_v37, 3 }
  0xbe   : > { %vm4487_vm6 = vcmask 1039360  }
  0xbf   : > { %884 = vrot.lane.b32.xlu1 %v870_v32, %s3193_s17  ;;  %2816 = vrot.lane.b32.xlu0 %v2815_v34, %s3193_s17  ;;  %v2747_v59 = vpop.permute.xlu1 %2746  ;;  %v1114_v32 = vmul.f32 %v2753_v21, %v3385_v49  ;;  %v2840_v34 = vpack.i.bf16 %v1054_v29, %v1053_v28  ;;  %v2865_v48 = vpack.i.bf16 %v1159_v47, %v1158_v46 }
  0xc0   : > { %v2749_v7 = vunpack.i.h.bf16 %v2747_v59  ;;  %v2748_v8 = vunpack.i.l.bf16 %v2747_v59 }
  0xc1   : > { %v2850_v39 = vpack.i.bf16 %v1115_v33, %v1114_v32 }
  0xc2   : > { %v1046_v14 = vsel %vm1044_vm5, %v2744_v11, %v2748_v8  ;;  %v1047_v15 = vsel %vm1044_vm5, %v2748_v8, %v2749_v7  ;;  %v1057_v25 = vmul.f32 %v2749_v7, %v3394_v54 }
  0xc3   : > { %v1055_v18 = vmul.f32 %v1046_v14, %v3389_v51  ;;  %v1056_v19 = vmul.f32 %v1047_v15, %v3391_v52 }
  0xc4   : > { %2811 = vrot.lane.b32.xlu2 %v2810_v45, %s3193_s17  ;;  %v2855_v45 = vpack.i.bf16 %v1117_v43, %v1116_v42 }
  0xc5   : > { %v2845_v26 = vpack.i.bf16 %v1056_v19, %v1055_v18 }
  0xc7   : > { %2821 = vrot.lane.b32.xlu1 %v2820_v56, %s3194_s18  ;;  %946 = vrot.lane.b32.xlu0 %v932_v55, %s3194_s18 }
  0xcc   : > { %2826 = vrot.lane.b32.xlu2 %v2825_v10, %s3194_s18 }
  0xcf   : > { %2836 = vrot.lane.b32.xlu1 %v2835_v12, %s3195_s19  ;;  %2831 = vrot.lane.b32.xlu0 %v2830_v13, %s3195_s19 }
  0xd4   : > { %1008 = vrot.lane.b32.xlu2 %v994_v22, %s3195_s19 }
  0xd7   : > { %1071 = vrot.lane.b32.xlu1 %v1057_v25, %s3187_s15  ;;  %2846 = vrot.lane.b32.xlu0 %v2845_v26, %s3187_s15 }
  0xdc   : > { %2841 = vrot.lane.b32.xlu2 %v2840_v34, %s3187_s15  ;;  %s3198_s15 = smov 62  }
  0xdf   : > { %2851 = vrot.lane.b32.xlu1 %v2850_v39, %s3196_s20  ;;  %1132 = vrot.lane.b32.xlu0 %v1118_v38, %s3196_s20 }
  0xe4   : > { %2856 = vrot.lane.b32.xlu2 %v2855_v45, %s3196_s20  ;;  %s3200_s20 = smov 56  }
  0xe7   : > { %2861 = vrot.lane.b32.xlu1 %v2860_v44, %s3197_s21 }
  0xec   : > { %2866 = vrot.lane.b32.xlu2 %v2865_v48, %s3197_s21  ;;  %s3199_s21 = smov 72  }
  0xee   : > { %v3513_v53 = vpop.permute.xlu2 %2761 }
  0xef   : > { %v4491_v56 = vunpack.i.h.bf16 %v3513_v53 }
  0xf6   : > { %v2767_v55 = vpop.permute.xlu2 %2766 }
  0xf7   : > { %v2769_v57 = vunpack.i.h.bf16 %v2767_v55  ;;  %v2768_v58 = vunpack.i.l.bf16 %v2767_v55 }
  0xf9   : > { %v3519_v59 = vsel %vm4487_vm6, %v4491_v56, %v2768_v58  ;;  %v3522_v60 = vsel %vm4487_vm6, %v2768_v58, %v2769_v57 }
  0xfa   : > { %4524 = vst [vmem:[#allocation5_spill] sm:$0xff] %v3522_v60 }
  0xfe   : > { %v632_v61 = vpop.permute.xlu2 %631 }
 0x106   : > { %v568_v62 = vpop.permute.xlu0 %567  ;;  %v3527_v0 = vpop.permute.xlu2 %2781 }
 0x107   : > { %v3525_v63 = vsel %vm4487_vm6, %v2769_v57, %v568_v62  ;;  %v4494_v20 = vunpack.i.h.bf16 %v3527_v0  ;;  %vm4514_vm6 = vcmask 916480  }
 0x108   : > { %4525 = vst [vmem:[#allocation6_spill] sm:$0xff] %v3525_v63 }
 0x10e   : > { %v2797_v1 = vpop.permute.xlu2 %2796 }
 0x10f   : > { %v2799_v2 = vunpack.i.h.bf16 %v2797_v1  ;;  %v2798_v7 = vunpack.i.l.bf16 %v2797_v1 }
 0x111   : > { %v2777_v8 = vpop.permute.xlu1 %2776  ;;  %v3529_v9 = vpop.permute.xlu0 %2771  ;;  %v3533_v13 = vsel %vm4507_vm7, %v2798_v7, %v2799_v2 }
 0x112   : > { %v2779_v10 = vunpack.i.h.bf16 %v2777_v8  ;;  %v2778_v11 = vunpack.i.l.bf16 %v2777_v8  ;;  %v4492_v12 = vunpack.i.h.bf16 %v3529_v9  ;;  %4526 = vst [vmem:[#allocation7_spill] sm:$0xff] %v3533_v13 }
 0x114   : > { %v3538_v14 = vsel %vm4489_vm13, %v4492_v12, %v2778_v11  ;;  %v3541_v15 = vsel %vm4489_vm13, %v2779_v10, %v632_v61  ;;  %v3544_v16 = vsel %vm4489_vm13, %v2778_v11, %v2779_v10  ;;  %vm4517_vm13 = vcmask 900096  }
 0x115   : > { %4527 = vst [vmem:[#allocation8_spill] sm:$0xff] %v3541_v15 }
 0x116   : > { %4528 = vst [vmem:[#allocation9_spill] sm:$0xff] %v3544_v16  ;;  %v820_v17 = vpop.permute.xlu2 %819 }
 0x119   : > { %v695_v18 = vpop.permute.xlu1 %694  ;;  %v2787_v19 = vpop.permute.xlu0 %2786 }
 0x11a   : > { %v2789_v21 = vunpack.i.h.bf16 %v2787_v19  ;;  %v2788_v22 = vunpack.i.l.bf16 %v2787_v19 }
 0x11c   : > { %v3550_v23 = vsel %vm4493_vm10, %v4494_v20, %v2788_v22  ;;  %v3553_v24 = vsel %vm4493_vm10, %v2789_v21, %v695_v18  ;;  %v3556_v25 = vsel %vm4493_vm10, %v2788_v22, %v2789_v21  ;;  %vm1168_vm10 = vcmask 539648  }
 0x11d   : > { %4529 = vst [vmem:[#allocation10_spill] sm:$0xff] %v3553_v24 }
 0x11e   : > { %4530 = vst [vmem:[#allocation11_spill] sm:$0xff] %v3556_v25  ;;  %v3558_v26 = vpop.permute.xlu2 %2811 }
 0x11f   : > { %v4497_v47 = vunpack.i.h.bf16 %v3558_v26 }
 0x121   : > { %v3560_v27 = vpop.permute.xlu1 %2791  ;;  %v757_v28 = vpop.permute.xlu0 %756 }
 0x122   : > { %v4495_v29 = vunpack.i.h.bf16 %v3560_v27  ;;  %v3564_v30 = vsel %vm4507_vm7, %v2799_v2, %v757_v28 }
 0x123   : > { %4531 = vst [vmem:[#allocation12_spill] sm:$0xff] %v3564_v30 }
 0x124   : > { %v3569_v31 = vsel %vm4507_vm7, %v4495_v29, %v2798_v7  ;;  %vm1372_vm7 = vmand %vm839_vm8, %vm498_vm3 }
 0x126   : > { %v2827_v32 = vpop.permute.xlu2 %2826 }
 0x127   : > { %v2829_v33 = vunpack.i.h.bf16 %v2827_v32  ;;  %v2828_v34 = vunpack.i.l.bf16 %v2827_v32 }
 0x129   : > { %v2807_v35 = vpop.permute.xlu1 %2806  ;;  %v3571_v36 = vpop.permute.xlu0 %2801  ;;  %v3575_v40 = vsel %vm4515_vm11, %v2828_v34, %v2829_v33 }
 0x12a   : > { %v2809_v37 = vunpack.i.h.bf16 %v2807_v35  ;;  %v2808_v38 = vunpack.i.l.bf16 %v2807_v35  ;;  %v4496_v39 = vunpack.i.h.bf16 %v3571_v36  ;;  %4532 = vst [vmem:[#allocation13_spill] sm:$0xff] %v3575_v40 }
 0x12c   : > { %v3580_v41 = vsel %vm4508_vm12, %v4496_v39, %v2808_v38  ;;  %v3583_v42 = vsel %vm4508_vm12, %v2809_v37, %v820_v17  ;;  %v3586_v43 = vsel %vm4508_vm12, %v2808_v38, %v2809_v37  ;;  %vm1259_vm12 = vcmask 457728  }
 0x12d   : > { %4533 = vst [vmem:[#allocation14_spill] sm:$0xff] %v3583_v42 }
 0x12e   : > { %4534 = vst [vmem:[#allocation15_spill] sm:$0xff] %v3586_v43  ;;  %v1009_v44 = vpop.permute.xlu2 %1008 }
 0x131   : > { %v885_v45 = vpop.permute.xlu1 %884  ;;  %v2817_v46 = vpop.permute.xlu0 %2816 }
 0x132   : > { %v2819_v48 = vunpack.i.h.bf16 %v2817_v46  ;;  %v2818_v55 = vunpack.i.l.bf16 %v2817_v46 }
 0x134   : > { %v3592_v57 = vsel %vm4514_vm6, %v4497_v47, %v2818_v55  ;;  %v3595_v58 = vsel %vm4514_vm6, %v2819_v48, %v885_v45  ;;  %v3598_v61 = vsel %vm4514_vm6, %v2818_v55, %v2819_v48 }
 0x135   : > { %4535 = vst [vmem:[#allocation16_spill] sm:$0xff] %v3595_v58 }
 0x136   : > { %4536 = vst [vmem:[#allocation17_spill] sm:$0xff] %v3598_v61  ;;  %v3600_v62 = vpop.permute.xlu2 %2841 }
 0x137   : > { %v4500_v55 = vunpack.i.h.bf16 %v3600_v62 }
 0x139   : > { %v3602_v1 = vpop.permute.xlu1 %2821  ;;  %v947_v2 = vpop.permute.xlu0 %946 }
 0x13a   : > { %v4498_v7 = vunpack.i.h.bf16 %v3602_v1  ;;  %v3606_v8 = vsel %vm4515_vm11, %v2829_v33, %v947_v2 }
 0x13b   : > { %4537 = vst [vmem:[#allocation18_spill] sm:$0xff] %v3606_v8 }
 0x13c   : > { %v3611_v10 = vsel %vm4515_vm11, %v4498_v7, %v2828_v34 }
 0x13e   : > { %v3613_v11 = vpop.permute.xlu2 %2856 }
 0x13f   : > { %v4490_v17 = vunpack.i.h.bf16 %v3613_v11  ;;  %v2858_v18 = vunpack.i.l.bf16 %v3613_v11 }
 0x141   : > { %v2837_v19 = vpop.permute.xlu1 %2836  ;;  %v3617_v21 = vpop.permute.xlu0 %2831  ;;  %v3623_v33 = vsel %vm1134_vm14, %v2858_v18, %v4490_v17 }
 0x142   : > { %v2839_v22 = vunpack.i.h.bf16 %v2837_v19  ;;  %v2838_v28 = vunpack.i.l.bf16 %v2837_v19  ;;  %v4499_v32 = vunpack.i.h.bf16 %v3617_v21  ;;  %4538 = vst [vmem:[#allocation19_spill] sm:$0xff] %v3623_v33 }
 0x144   : > { %v3628_v34 = vsel %vm4517_vm13, %v4499_v32, %v2838_v28  ;;  %v3631_v35 = vsel %vm4517_vm13, %v2839_v22, %v1009_v44  ;;  %v3634_v37 = vsel %vm4517_vm13, %v2838_v28, %v2839_v22 }
 0x145   : > { %4539 = vst [vmem:[#allocation20_spill] sm:$0xff] %v3631_v35 }
 0x146   : > { %4540 = vst [vmem:[#allocation21_spill] sm:$0xff] %v3634_v37  ;;  %v2867_v38 = vpop.permute.xlu2 %2866 }
 0x147   : > { %v2869_v45 = vunpack.i.h.bf16 %v2867_v38 }
 0x149   : > { %v1072_v46 = vpop.permute.xlu1 %1071  ;;  %v2847_v48 = vpop.permute.xlu0 %2846  ;;  %v1181_v17 = vmul.f32 %v2869_v45, %v3394_v54 }
 0x14a   : > { %v2849_v2 = vunpack.i.h.bf16 %v2847_v48  ;;  %v2848_v19 = vunpack.i.l.bf16 %v2847_v48 }
 0x14b   : > { %1195 = vrot.lane.b32.xlu2 %v1181_v17, %s3198_s15  ;;  %v2868_v17 = vunpack.i.l.bf16 %v2867_v38 }
 0x14c   : > { %v3641_v44 = vsel %vm1044_vm5, %v4500_v55, %v2848_v19  ;;  %v3644_v22 = vsel %vm1044_vm5, %v2849_v2, %v1072_v46  ;;  %v3647_v28 = vsel %vm1044_vm5, %v2848_v19, %v2849_v2 }
 0x14d   : > { %4541 = vst [vmem:[#allocation22_spill] sm:$0xff] %v3647_v28  ;;  %v1171_v29 = vsel %vm1168_vm10, %v2868_v17, %v2869_v45 }
 0x14e   : > { %v1180_v55 = vmul.f32 %v1171_v29, %v3391_v52 }
 0x151   : > { %v3649_v56 = vpop.permute.xlu1 %2851 }
 0x152   : > { %v4501_v12 = vunpack.i.h.bf16 %v3649_v56 }
 0x154   : > { %v3655_v48 = vsel %vm1134_vm14, %v4501_v12, %v2858_v18  ;;  %v2579_v18 = vsel %vm498_vm3, 1.0, %v4503_v6 }
 0x155   : > { %v1218_v45 = vperm.slane %v2579_v18, 0  ;;  %v1220_v60 = vperm.slane %v2579_v18, 2 }
 0x159   : > { %v2862_v20 = vpop.permute.xlu1 %2861 }
 0x15a   : > { %v2864_v39 = vunpack.i.h.bf16 %v2862_v20  ;;  %v2863_v47 = vunpack.i.l.bf16 %v2862_v20  ;;  %v1219_v20 = vperm.slane %v2579_v18, 1 }
 0x15c   : > { %v1169_v46 = vsel %vm1168_vm10, %v2863_v47, %v2864_v39  ;;  %v1170_v7 = vsel %vm1168_vm10, %v2864_v39, %v2868_v17  ;;  %v1177_v2 = vmul.f32 %v2863_v47, %v3385_v49  ;;  %v1221_v39 = vperm.slane %v2579_v18, 3 }
 0x15d   : > { %v1178_v19 = vmul.f32 %v1169_v46, %v3387_v50  ;;  %v1179_v32 = vmul.f32 %v1170_v7, %v3389_v51  ;;  %v2880_v17 = vpack.i.bf16 %v1219_v20, %v1218_v45  ;;  %v3664_v7 = vpop.permute.xlu0 %1132  ;;  %vm1197_vm10 = vcmask 506880  }
 0x15e   : > { %v2885_v47 = vpack.i.bf16 %v1221_v39, %v1220_v60 }
 0x15f   : > { %v2870_v38 = vpack.i.bf16 %v1178_v19, %v1177_v2  ;;  %v2875_v12 = vpack.i.bf16 %v1180_v55, %v1179_v32 }
 0x161   : > { %2871 = vrot.lane.b32.xlu0 %v2870_v38, %s3198_s15  ;;  %2876 = vrot.lane.b32.xlu1 %v2875_v12, %s3198_s15  ;;  %s3201_s15 = smov 55  }
 0x169   : > { %2881 = vrot.lane.b32.xlu0 %v2880_v17, %s3199_s21  ;;  %2886 = vrot.lane.b32.xlu1 %v2885_v47, %s3199_s21  ;;  %s3202_s21 = smov 74  }
 0x1d3   : > { %v3666_v29 = vpop.permute.xlu0 %2871  ;;  %v3668_v46 = vpop.permute.xlu1 %2876 }
 0x1d4   : > { %v4505_v32 = vunpack.i.h.bf16 %v3666_v29  ;;  %v4506_v12 = vunpack.i.h.bf16 %v3668_v46  ;;  %v2878_v55 = vunpack.i.l.bf16 %v3668_v46 }
 0x1d6   : > { %v3676_v60 = vsel %vm1197_vm10, %v4505_v32, %v2878_v55  ;;  %v3681_v2 = vsel %vm1197_vm10, %v2878_v55, %v4506_v12 }
 0x1d7   : > { %4542 = vst [vmem:[#allocation23_spill] sm:$0xff] %v3681_v2 }
 0x1db   : > { %v2882_v19 = vpop.permute.xlu0 %2881  ;;  %v2887_v18 = vpop.permute.xlu1 %2886 }
 0x1dc   : > { %v2884_v38 = vunpack.i.h.bf16 %v2882_v19  ;;  %v2883_v45 = vunpack.i.l.bf16 %v2882_v19  ;;  %v2889_v20 = vunpack.i.h.bf16 %v2887_v18  ;;  %v2888_v39 = vunpack.i.l.bf16 %v2887_v18 }
 0x1dd   : > { %v4543_v19 = vmov 0.0  }
 0x1de   : > { %v1231_v17 = vsel %vm1230_vm15, %v2883_v45, %v2884_v38  ;;  %v1239_v47 = vmul.f32 %v2883_v45, %v3385_v49  ;;  %v1243_v6 = vmul.f32 %v2889_v20, %v3394_v54  ;;  %v1232_v16 = vsel %vm1230_vm15, %v2884_v38, %v2888_v39  ;;  %v3696_v45 = vpop.permute.xlu2 %1195 }
 0x1df   : > { %v1233_v32 = vsel %vm1230_vm15, %v2888_v39, %v2889_v20  ;;  %v1240_v25 = vmul.f32 %v1231_v17, %v3387_v50  ;;  %v1241_v13 = vmul.f32 %v1232_v16, %v3389_v51  ;;  %v2580_v18 = vsel %vm587_vm4, 1.0, %v4543_v19 }
 0x1e0   : > { %1257 = vrot.lane.b32.xlu1 %v1243_v6, %s3200_s20  ;;  %v1242_v55 = vmul.f32 %v1233_v32, %v3391_v52  ;;  %v2900_v38 = vpack.i.bf16 %v3387_v50, %v3385_v49  ;;  %v2905_v16 = vpack.i.bf16 %v3391_v52, %v3389_v51  ;;  %v1313_v6 = vperm.slane %v2580_v18, 0 }
 0x1e1   : > { %v2890_v12 = vpack.i.bf16 %v1240_v25, %v1239_v47  ;;  %v1314_v32 = vperm.slane %v2580_v18, 1  ;;  %v1316_v25 = vperm.slane %v2580_v18, 3  ;;  %vm1325_vm15 = vcmask 605184  }
 0x1e2   : > { %v2895_v43 = vpack.i.bf16 %v1242_v55, %v1241_v13  ;;  %v1315_v13 = vperm.slane %v2580_v18, 2 }
 0x1e3   : > { %2891 = vrot.lane.b32.xlu2 %v2890_v12, %s3200_s20 }
 0x1e4   : > { %2896 = vrot.lane.b32.xlu0 %v2895_v43, %s3200_s20  ;;  %v2910_v43 = vpack.i.bf16 %v1314_v32, %v1313_v6  ;;  %v2915_v12 = vpack.i.bf16 %v1316_v25, %v1315_v13  ;;  %v2581_v6 = vsel %vm1372_vm7, 1.0, %v4543_v19  ;;  %s3203_s20 = smov 54   ;;  %vm1292_vm7 = vcmask 449536  }
 0x1e5   : > { %v1376_v13 = vperm.slane %v2581_v6, 0  ;;  %v1377_v25 = vperm.slane %v2581_v6, 1 }
 0x1e7   : > { %v2930_v37 = vpack.i.bf16 %v1377_v25, %v1376_v13 }
 0x1e8   : > { %1290 = vrot.lane.b32.xlu1 %v3394_v54, %s3201_s15 }
 0x1eb   : > { %2901 = vrot.lane.b32.xlu2 %v2900_v38, %s3201_s15 }
 0x1ec   : > { %2906 = vrot.lane.b32.xlu0 %v2905_v16, %s3201_s15  ;;  %s3204_s15 = smov 80  }
 0x1f3   : > { %2911 = vrot.lane.b32.xlu2 %v2910_v43, %s3202_s21 }
 0x1f4   : > { %2916 = vrot.lane.b32.xlu0 %v2915_v12, %s3202_s21  ;;  %s2563_s21 = sshll.u32 %s4660_s11, 3 }
 0x23d   : > { %v3698_v20 = vpop.permute.xlu2 %2891 }
 0x23e   : > { %v4509_v12 = vunpack.i.h.bf16 %v3698_v20 }
 0x245   : > { %v3700_v39 = vpop.permute.xlu2 %2901 }
 0x24d   : > { %v2912_v17 = vpop.permute.xlu2 %2911 }
 0x24e   : > { %v2914_v47 = vunpack.i.h.bf16 %v2912_v17  ;;  %v2913_v55 = vunpack.i.l.bf16 %v2912_v17 }
 0x250   : > { %v1326_v18 = vsel %vm1325_vm15, %v2913_v55, %v2914_v47  ;;  %v1334_v38 = vmul.f32 %v2913_v55, %v3385_v49 }
 0x251   : > { %v1335_v16 = vmul.f32 %v1326_v18, %v3387_v50 }
 0x252   : > { %v1258_v40 = vpop.permute.xlu1 %1257 }
 0x253   : > { %v2920_v32 = vpack.i.bf16 %v1335_v16, %v1334_v38 }
 0x255   : > { %2921 = vrot.lane.b32.xlu1 %v2920_v32, %s3203_s20  ;;  %v4510_v32 = vunpack.i.h.bf16 %v3700_v39 }
 0x256   : > { %v2897_v43 = vpop.permute.xlu0 %2896 }
 0x257   : > { %v2899_v17 = vunpack.i.h.bf16 %v2897_v43  ;;  %v2898_v61 = vunpack.i.l.bf16 %v2897_v43 }
 0x259   : > { %v3715_v55 = vsel %vm1259_vm12, %v4509_v12, %v2898_v61  ;;  %v3718_v18 = vsel %vm1259_vm12, %v2899_v17, %v1258_v40  ;;  %v3721_v38 = vsel %vm1259_vm12, %v2898_v61, %v2899_v17 }
 0x25a   : > { %4544 = vst [vmem:[#allocation24_spill] sm:$0xff] %v3721_v38 }
 0x25d   : > { %2931 = vrot.lane.b32.xlu1 %v2930_v37, %s3204_s15 }
 0x25e   : > { %v3723_v16 = vpop.permute.xlu0 %2906 }
 0x25f   : > { %v4511_v43 = vunpack.i.h.bf16 %v3723_v16  ;;  %v2908_v13 = vunpack.i.l.bf16 %v3723_v16 }
 0x261   : > { %v3731_v25 = vsel %vm1292_vm7, %v4510_v32, %v2908_v13  ;;  %v3736_v40 = vsel %vm1292_vm7, %v2908_v13, %v4511_v43  ;;  %v1378_v13 = vperm.slane %v2581_v6, 2  ;;  %v1379_v43 = vperm.slane %v2581_v6, 3 }
 0x262   : > { %4545 = vst [vmem:[#allocation25_spill] sm:$0xff] %v3736_v40 }
 0x263   : > { %v2935_v40 = vpack.i.bf16 %v1379_v43, %v1378_v13 }
 0x266   : > { %v2917_v61 = vpop.permute.xlu0 %2916 }
 0x267   : > { %v2919_v37 = vunpack.i.h.bf16 %v2917_v61  ;;  %v2918_v17 = vunpack.i.l.bf16 %v2917_v61  ;;  %v3745_v61 = vpop.permute.xlu1 %1290 }
 0x269   : > { %v1338_v12 = vmul.f32 %v2919_v37, %v3394_v54  ;;  %v1327_v28 = vsel %vm1325_vm15, %v2914_v47, %v2918_v17  ;;  %v1328_v33 = vsel %vm1325_vm15, %v2918_v17, %v2919_v37  ;;  %vm1354_vm15 = vcmask 441344  }
 0x26a   : > { %v1336_v2 = vmul.f32 %v1327_v28, %v3389_v51  ;;  %v1337_v38 = vmul.f32 %v1328_v33, %v3391_v52 }
 0x26b   : > { %1352 = vrot.lane.b32.xlu0 %v1338_v12, %s3203_s20 }
 0x26c   : > { %v2925_v32 = vpack.i.bf16 %v1337_v38, %v1336_v2  ;;  %v3757_v2 = vld [vmem:[%s4472_s1] ss:$4 sm:$0xf] }
 0x26d   : > { %vm1559_vm6 = vcmp.lt.s32.totalorder %v3757_v2, 7 }
 0x26e   : > { %2926 = vrot.lane.b32.xlu2 %v2925_v32, %s3203_s20  ;;  %vm3774_vm11 = vmand %vm1559_vm6, %vm839_vm8  ;;  %s3206_s20 = smov 81  }
 0x26f   : > { %vm2011_vm13 = vmand %vm3774_vm11, %vm587_vm4 }
 0x276   : > { %2936 = vrot.lane.b32.xlu2 %v2935_v40, %s3204_s15 }
 0x2c7   : > { %v3747_v63 = vpop.permute.xlu1 %2921 }
 0x2c8   : > { %v4519_v47 = vunpack.i.h.bf16 %v3747_v63  ;;  %v3750_v37 = vpop.permute.xlu2 %2926 }
 0x2c9   : > { %v4518_v33 = vunpack.i.h.bf16 %v3750_v37  ;;  %v2928_v28 = vunpack.i.l.bf16 %v3750_v37 }
 0x2cb   : > { %v3763_v6 = vsel %vm1354_vm15, %v4519_v47, %v2928_v28  ;;  %v3768_v12 = vsel %vm1354_vm15, %v2928_v28, %v4518_v33 }
 0x2cc   : > { %4546 = vst [vmem:[#allocation26_spill] sm:$0xff] %v3768_v12  ;;  %v2592_v12 = vsel %vm2011_vm13, 1.0, %v4543_v19  ;;  %vm1890_vm13 = vmand %vm3774_vm11, %vm498_vm3 }
 0x2cf   : > { %v2932_v32 = vpop.permute.xlu1 %2931 }
 0x2d0   : > { %v2934_v43 = vunpack.i.h.bf16 %v2932_v32  ;;  %v2933_v40 = vunpack.i.l.bf16 %v2932_v32  ;;  %v2937_v17 = vpop.permute.xlu2 %2936  ;;  %v3791_v32 = vsel %vm839_vm8, 1.0, %v4543_v19 }
 0x2d1   : > { %v2939_v13 = vunpack.i.h.bf16 %v2937_v17  ;;  %v2938_v28 = vunpack.i.l.bf16 %v2937_v17  ;;  %v2018_v17 = vperm.slane %v2592_v12, 3 }
 0x2d2   : > { %v1389_v33 = vsel %vm1388_vm0, %v2933_v40, %v2934_v43  ;;  %v1397_v47 = vmul.f32 %v2933_v40, %v3385_v49  ;;  %v2017_v40 = vperm.slane %v2592_v12, 2 }
 0x2d3   : > { %v1401_v15 = vmul.f32 %v2939_v13, %v3394_v54  ;;  %v1390_v24 = vsel %vm1388_vm0, %v2934_v43, %v2938_v28  ;;  %v1391_v30 = vsel %vm1388_vm0, %v2938_v28, %v2939_v13  ;;  %v1398_v42 = vmul.f32 %v1389_v33, %v3387_v50  ;;  %vm1828_vm0 = vmand %vm1559_vm6, %vm587_vm4 }
 0x2d4   : > { %v1399_v58 = vmul.f32 %v1390_v24, %v3389_v51  ;;  %v1400_v8 = vmul.f32 %v1391_v30, %v3391_v52  ;;  %v1438_v54 = vperm.slane %v3791_v32, 0  ;;  %v1439_v50 = vperm.slane %v3791_v32, 1 }
 0x2d5   : > { %1415 = vrot.lane.b32.xlu2 %v1401_v15, %s3205_s22  ;;  %v2940_v49 = vpack.i.bf16 %v1398_v42, %v1397_v47  ;;  %v2015_v51 = vperm.slane %v2592_v12, 0  ;;  %v2016_v52 = vperm.slane %v2592_v12, 1  ;;  %v2960_v24 = vpack.i.bf16 %v2018_v17, %v2017_v40 }
 0x2d6   : > { %v2945_v35 = vpack.i.bf16 %v1400_v8, %v1399_v58  ;;  %v2590_v15 = vsel %vm1890_vm13, 1.0, %v4543_v19  ;;  %v2950_v30 = vpack.i.bf16 %v1439_v50, %v1438_v54  ;;  %v2591_v58 = vsel %vm3774_vm11, 1.0, %v4543_v19  ;;  %vm1707_vm11 = vmand %vm1559_vm6, %vm498_vm3 }
 0x2d7   : > { %2941 = vrot.lane.b32.xlu0 %v2940_v49, %s3205_s22  ;;  %v2955_v42 = vpack.i.bf16 %v2016_v52, %v2015_v51  ;;  %v1894_v8 = vperm.slane %v2590_v15, 0  ;;  %v1895_v47 = vperm.slane %v2590_v15, 1  ;;  %v1954_v33 = vperm.slane %v2591_v58, 0  ;;  %vm3827_vm13 = vmand %vm1559_vm6, %vm497_vm1 }
 0x2d8   : > { %2946 = vrot.lane.b32.xlu1 %v2945_v35, %s3205_s22  ;;  %v1955_v35 = vperm.slane %v2591_v58, 1  ;;  %v1956_v12 = vperm.slane %v2591_v58, 2  ;;  %v1957_v43 = vperm.slane %v2591_v58, 3  ;;  %v2589_v13 = vsel %vm1828_vm0, 1.0, %v4543_v19  ;;  %vm1646_vm0 = vmand %vm3827_vm13, %vm587_vm4 }
 0x2d9   : > { %v2975_v38 = vpack.i.bf16 %v1895_v47, %v1894_v8  ;;  %v1834_v40 = vperm.slane %v2589_v13, 2  ;;  %v1835_v17 = vperm.slane %v2589_v13, 3  ;;  %v1896_v54 = vperm.slane %v2590_v15, 2  ;;  %vm1497_vm1 = vmand %vm839_vm8, %vm587_vm4 }
 0x2da   : > { %v2965_v28 = vpack.i.bf16 %v1955_v35, %v1954_v33  ;;  %v2970_v49 = vpack.i.bf16 %v1957_v43, %v1956_v12  ;;  %v1897_v50 = vperm.slane %v2590_v15, 3  ;;  %v1832_v51 = vperm.slane %v2589_v13, 0 }
 0x2db   : > { %v1833_v52 = vperm.slane %v2589_v13, 1  ;;  %v2588_v8 = vsel %vm1559_vm6, 1.0, %v4543_v19  ;;  %v2586_v2 = vsel %vm1646_vm0, 1.0, %v4543_v19  ;;  %vm1417_vm4 = vcmask 392192  }
 0x2dc   : > { %v1771_v35 = vperm.slane %v2588_v8, 0  ;;  %v1772_v12 = vperm.slane %v2588_v8, 1  ;;  %v1773_v43 = vperm.slane %v2588_v8, 2  ;;  %vm4558_vm8 = vcmask 900096  }
 0x2dd   : > { %2961 = vrot.lane.b32.xlu2 %v2960_v24, %s3185_s10  ;;  %v2990_v24 = vpack.i.bf16 %v1835_v17, %v1834_v40  ;;  %v2985_v58 = vpack.i.bf16 %v1833_v52, %v1832_v51  ;;  %v1652_v40 = vperm.slane %v2586_v2, 2  ;;  %v1653_v17 = vperm.slane %v2586_v2, 3 }
 0x2de   : > { %v1650_v51 = vperm.slane %v2586_v2, 0  ;;  %v1651_v52 = vperm.slane %v2586_v2, 1  ;;  %vm4568_vm0 = vcmask 973824  }
 0x2df   : > { %2951 = vrot.lane.b32.xlu0 %v2950_v30, %s3206_s20  ;;  %v2587_v30 = vsel %vm1707_vm11, 1.0, %v4543_v19  ;;  %vm4564_vm11 = vcmask 916480  }
 0x2e0   : > { %2956 = vrot.lane.b32.xlu1 %v2955_v42, %s3185_s10  ;;  %v2980_v42 = vpack.i.bf16 %v1897_v50, %v1896_v54  ;;  %v1711_v15 = vperm.slane %v2587_v30, 0  ;;  %v1712_v47 = vperm.slane %v2587_v30, 1  ;;  %v1713_v54 = vperm.slane %v2587_v30, 2 }
 0x2e1   : > { %v1714_v50 = vperm.slane %v2587_v30, 3 }
 0x2e2   : > { %v3005_v13 = vpack.i.bf16 %v1712_v47, %v1711_v15  ;;  %v2585_v15 = vsel %vm3827_vm13, 1.0, %v4543_v19 }
 0x2e3   : > { %v1589_v3 = vperm.slane %v2585_v15, 0 }
 0x2e5   : > { %2976 = vrot.lane.b32.xlu2 %v2975_v38, %s3184_s30  ;;  %v1774_v38 = vperm.slane %v2588_v8, 3  ;;  %v3015_v8 = vpack.i.bf16 %v1651_v52, %v1650_v51  ;;  %v3857_v51 = vpop.permute.xlu0 %1352 }
 0x2e7   : > { %2966 = vrot.lane.b32.xlu0 %v2965_v28, %s3183_s29  ;;  %v2995_v28 = vpack.i.bf16 %v1772_v12, %v1771_v35  ;;  %v1590_v35 = vperm.slane %v2585_v15, 1  ;;  %v1591_v12 = vperm.slane %v2585_v15, 2 }
 0x2e8   : > { %2971 = vrot.lane.b32.xlu1 %v2970_v49, %s3183_s29  ;;  %v3000_v49 = vpack.i.bf16 %v1774_v38, %v1773_v43  ;;  %v1592_v43 = vperm.slane %v2585_v15, 3 }
 0x2ea   : > { %v3030_v2 = vpack.i.bf16 %v1592_v43, %v1591_v12 }
 0x2ed   : > { %2991 = vrot.lane.b32.xlu2 %v2990_v24, %s3182_s28  ;;  %v3020_v24 = vpack.i.bf16 %v1653_v17, %v1652_v40  ;;  %v1440_v40 = vperm.slane %v3791_v32, 2  ;;  %v1441_v17 = vperm.slane %v3791_v32, 3 }
 0x2ef   : > { %2981 = vrot.lane.b32.xlu0 %v2980_v42, %s3184_s30  ;;  %v2583_v42 = vsel %vm1497_vm1, 1.0, %v4543_v19  ;;  %vm4569_vm1 = vcmask 130048  }
 0x2f0   : > { %2986 = vrot.lane.b32.xlu1 %v2985_v58, %s3182_s28  ;;  %v3010_v58 = vpack.i.bf16 %v1714_v50, %v1713_v54  ;;  %v1501_v30 = vperm.slane %v2583_v42, 0  ;;  %v1502_v47 = vperm.slane %v2583_v42, 1  ;;  %v3045_v50 = vpack.i.bf16 %v1441_v17, %v1440_v40  ;;  %s3209_s28 = smov 47  }
 0x2f2   : > { %v3035_v38 = vpack.i.bf16 %v1502_v47, %v1501_v30  ;;  %v2903_v47 = vunpack.i.l.bf16 %v3700_v39 }
 0x2f5   : > { %3006 = vrot.lane.b32.xlu2 %v3005_v13, %s3181_s27  ;;  %v3025_v13 = vpack.i.bf16 %v1590_v35, %v1589_v3 }
 0x2f7   : > { %2996 = vrot.lane.b32.xlu0 %v2995_v28, %s3180_s26  ;;  %v1503_v28 = vperm.slane %v2583_v42, 2 }
 0x2f8   : > { %3001 = vrot.lane.b32.xlu1 %v3000_v49, %s3180_s26  ;;  %s3207_s26 = smov 82   ;;  %v1504_v49 = vperm.slane %v2583_v42, 3 }
 0x2fa   : > { %v3040_v54 = vpack.i.bf16 %v1504_v49, %v1503_v28  ;;  %v2873_v28 = vunpack.i.l.bf16 %v3666_v29  ;;  %v4552_v49 = vunpack.i.h.bf16 %v3700_v39  ;;  %v2843_v39 = vunpack.i.l.bf16 %v3600_v62 }
 0x2fc   : > { %v1293_v40 = vsel %vm1292_vm7, %v2903_v47, %v4552_v49  ;;  %v2823_v49 = vunpack.i.l.bf16 %v3602_v1 }
 0x2fd   : > { %3021 = vrot.lane.b32.xlu2 %v3020_v24, %s3179_s25 }
 0x2ff   : > { %3011 = vrot.lane.b32.xlu0 %v3010_v58, %s3181_s27  ;;  %v2923_v58 = vunpack.i.l.bf16 %v3747_v63  ;;  %s3208_s27 = smov 46  }
 0x300   : > { %3016 = vrot.lane.b32.xlu1 %v3015_v8, %s3179_s25  ;;  %s4605_s25 = smov 127  }
 0x305   : > { %3036 = vrot.lane.b32.xlu2 %v3035_v38, %s3207_s26  ;;  %v2893_v38 = vunpack.i.l.bf16 %v3698_v20 }
 0x307   : > { %3026 = vrot.lane.b32.xlu0 %v3025_v13, %s3178_s24  ;;  %v4551_v13 = vunpack.i.h.bf16 %v3747_v63  ;;  %v4553_v63 = vunpack.i.h.bf16 %v3698_v20  ;;  %v3900_v20 = vld [vmem:[#allocation3 + $0x10] sm:$0xff] }
 0x308   : > { %3031 = vrot.lane.b32.xlu1 %v3030_v2, %s3178_s24  ;;  %s4600_s24 = smov 126  }
 0x309   : > { %v1355_v2 = vsel %vm1354_vm15, %v2923_v58, %v4551_v13 }
 0x30f   : > { %3041 = vrot.lane.b32.xlu0 %v3040_v54, %s3207_s26  ;;  %v2853_v54 = vunpack.i.l.bf16 %v3649_v56  ;;  %s422_s26 = scalar_lea.vmem %s4479_s8, %s2563_s21 }
 0x310   : > { %3046 = vrot.lane.b32.xlu1 %v3045_v50, %s3206_s20 }
 0x32f   : > { %v3859_v52 = vpop.permute.xlu2 %1415 }
 0x337   : > { %v3867_v3 = vpop.permute.xlu2 %2961 }
 0x338   : > { %v2963_v58 = vunpack.i.l.bf16 %v3867_v3 }
 0x349   : > { %v2942_v24 = vpop.permute.xlu0 %2941 }
 0x34a   : > { %v2944_v42 = vunpack.i.h.bf16 %v2942_v24  ;;  %v2943_v8 = vunpack.i.l.bf16 %v2942_v24  ;;  %v3862_v15 = vpop.permute.xlu1 %2946  ;;  %v1260_v24 = vsel %vm1259_vm12, %v2893_v38, %v4553_v63  ;;  %v3905_v38 = vpop.permute.xlu2 %2976  ;;  %vm4559_vm12 = vcmask 138240  }
 0x34b   : > { %v2949_v30 = vunpack.i.h.bf16 %v3862_v15  ;;  %v2948_v32 = vunpack.i.l.bf16 %v3862_v15  ;;  %vm4562_vm6 = vmmov %vm4559_vm12 }
 0x34c   : > { %v1418_v35 = vsel %vm1417_vm4, %v2943_v8, %v2944_v42  ;;  %v4554_v8 = vunpack.i.h.bf16 %v3666_v29 }
 0x34d   : > { %2187 = vmatpush.msra.mxu0 %v1418_v35  ;;  %v1419_v12 = vsel %vm1417_vm4, %v2944_v42, %v2948_v32  ;;  %v3874_v43 = vsel %vm1417_vm4, %v2948_v32, %v2949_v30  ;;  %v3902_v35 = vld [vmem:[#allocation3 + $0x18] sm:$0xff] }
 0x34e   : > { %2227 = vmatpush.msra.mxu2 %v1419_v12  ;;  %v1198_v32 = vsel %vm1197_vm10, %v2873_v28, %v4554_v8  ;;  %v2833_v12 = vunpack.i.l.bf16 %v3617_v21  ;;  %v2964_v28 = vunpack.i.h.bf16 %v3867_v3  ;;  %v3934_v8 = vld [vmem:[#allocation3 + $0x8] sm:$0xff] }
 0x34f   : > { %2188 = vmatpush.msra.mxu0 %v1355_v2  ;;  %v4593_v3 = vld [vmem:[#allocation20_spill] sm:$0xff] }
 0x350   : > { %2228 = vmatpush.msra.mxu2 %v3763_v6 }
 0x351   : > { %v3885_v17 = vpop.permute.xlu0 %2951  ;;  %2189 = vmatpush.msra.mxu0 %v1293_v40 }
 0x352   : > { %v2957_v50 = vpop.permute.xlu1 %2956  ;;  %2229 = vmatpush.msra.mxu2 %v3731_v25 }
 0x353   : > { %v2959_v42 = vunpack.i.h.bf16 %v2957_v50  ;;  %v2958_v6 = vunpack.i.l.bf16 %v2957_v50  ;;  %2190 = vmatpush.msra.mxu0 %v1260_v24  ;;  %v4556_v50 = vunpack.i.h.bf16 %v3600_v62 }
 0x354   : > { %2230 = vmatpush.msra.mxu2 %v3715_v55  ;;  %v4555_v55 = vunpack.i.h.bf16 %v3649_v56  ;;  %v2813_v56 = vunpack.i.l.bf16 %v3558_v26 }
 0x355   : > { %v2028_v47 = vsel %vm485_vm9, %v2959_v42, %v2963_v58  ;;  %v2027_v25 = vsel %vm485_vm9, %v2958_v6, %v2959_v42  ;;  %2191 = vmatpush.msra.mxu0 %v1198_v32 }
 0x356   : > { %2231 = vmatpush.msra.mxu2 %v3676_v60  ;;  %v1135_v29 = vsel %vm1134_vm14, %v2853_v54, %v4555_v55  ;;  %v2036_v13 = vmul.f32 %v2027_v25, %v3900_v20  ;;  %v2037_v2 = vmul.f32 %v2028_v47, %v3902_v35  ;;  %v1073_v60 = vsel %vm1044_vm5, %v2843_v39, %v4556_v50  ;;  %v3954_v55 = vld [vmem:[#allocation3 + $0x20] sm:$0xff] }
 0x357   : > { %2192 = vmatpush.msra.mxu0 %v1135_v29  ;;  %v2029_v39 = vsel %vm485_vm9, %v2963_v58, %v2964_v28  ;;  %v2803_v47 = vunpack.i.l.bf16 %v3571_v36  ;;  %v2035_v25 = vmul.f32 %v2958_v6, %v3934_v8  ;;  %vm4561_vm5 = vcmask 908288   ;;  %vm500_vm9 = vmand %vm3303_vm2, %vm498_vm3 }
 0x358   : > { %2232 = vmatpush.msra.mxu2 %v3655_v48  ;;  %v3050_v40 = vpack.i.bf16 %v2037_v2, %v2036_v13  ;;  %v4557_v48 = vunpack.i.h.bf16 %v3617_v21  ;;  %v4560_v21 = vunpack.i.h.bf16 %v3602_v1  ;;  %v4563_v1 = vunpack.i.h.bf16 %v3558_v26 }
 0x359   : > { %v3919_v63 = vpop.permute.xlu0 %2966  ;;  %2193 = vmatpush.msra.mxu0 %v1073_v60  ;;  %v2038_v13 = vmul.f32 %v2029_v39, %v3954_v55  ;;  %v2783_v2 = vunpack.i.l.bf16 %v3527_v0  ;;  %v3967_v50 = vsel %vm500_vm9, 1.0, %v4543_v19  ;;  %v3970_v60 = vpop.permute.xlu2 %2991  ;;  %vm4566_vm2 = vcmask 965632  }
 0x35a   : > { %v2969_v54 = vunpack.i.h.bf16 %v3919_v63  ;;  %v2968_v24 = vunpack.i.l.bf16 %v3919_v63  ;;  %v3924_v42 = vpop.permute.xlu1 %2971  ;;  %3051 = vrot.lane.b32.xlu2 %v3050_v40, %s3195_s19  ;;  %2233 = vmatpush.msra.mxu2 %v3641_v44  ;;  %v1011_v62 = vsel %vm4558_vm8, %v2833_v12, %v4557_v48  ;;  %v949_v12 = vsel %vm4561_vm5, %v2823_v49, %v4560_v21  ;;  %vm4570_vm8 = vmmov %vm4569_vm1 }
 0x35b   : > { %v2973_v32 = vunpack.i.l.bf16 %v3924_v42  ;;  %2194 = vmatpush.msra.mxu0 %v1011_v62  ;;  %v887_v29 = vsel %vm4564_vm11, %v2813_v56, %v4563_v1  ;;  %v2979_v49 = vunpack.i.h.bf16 %v3905_v38  ;;  %v2978_v40 = vunpack.i.l.bf16 %v3905_v38 }
 0x35c   : > { %v1966_v44 = vsel %vm4559_vm12, %v2968_v24, %v2969_v54  ;;  %2234 = vmatpush.msra.mxu2 %v3628_v34  ;;  %v2793_v34 = vunpack.i.l.bf16 %v3560_v27  ;;  %v3065_v56 = vpack.i.bf16 %v2038_v13, %v2035_v25  ;;  %v4567_v21 = vunpack.i.h.bf16 %v3560_v27 }
 0x35d   : > { %v1967_v58 = vsel %vm4562_vm6, %v2969_v54, %v2973_v32  ;;  %2195 = vmatpush.msra.mxu0 %v949_v12  ;;  %v1975_v6 = vmul.f32 %v3900_v20, %v1966_v44  ;;  %v4565_v54 = vunpack.i.h.bf16 %v3571_v36  ;;  %v504_v25 = vperm.slane %v3967_v50, 0 }
 0x35e   : > { %2235 = vmatpush.msra.mxu2 %v3611_v10  ;;  %v1976_v5 = vmul.f32 %v3902_v35, %v1967_v58  ;;  %v2773_v10 = vunpack.i.l.bf16 %v3529_v9  ;;  %v1906_v36 = vsel %vm4569_vm1, %v2978_v40, %v2979_v49  ;;  %vm4572_vm12 = vcmask 982016  }
 0x35f   : > { %2196 = vmatpush.msra.mxu0 %v887_v29  ;;  %v822_v48 = vsel %vm4566_vm2, %v2803_v47, %v4565_v54  ;;  %v2993_v47 = vunpack.i.l.bf16 %v3970_v60  ;;  %v4573_v29 = vunpack.i.h.bf16 %v3529_v9  ;;  %vm4574_vm5 = vcmask 1031168  }
 0x360   : > { %2236 = vmatpush.msra.mxu2 %v3592_v57  ;;  %v3055_v26 = vpack.i.bf16 %v1976_v5, %v1975_v6  ;;  %v759_v57 = vsel %vm4568_vm0, %v2793_v34, %v4567_v21  ;;  %v2763_v6 = vunpack.i.l.bf16 %v3513_v53  ;;  %v4571_v34 = vunpack.i.h.bf16 %v3527_v0  ;;  %v4011_v0 = vld [vmem:[#allocation3] sm:$0xff]  ;;  %vm4580_vm0 = vmmov %vm4569_vm1 }
 0x361   : > { %v3976_v62 = vpop.permute.xlu0 %2981  ;;  %2197 = vmatpush.msra.mxu0 %v822_v48  ;;  %v634_v5 = vsel %vm4574_vm5, %v2773_v10, %v4573_v29  ;;  %v2974_v13 = vunpack.i.h.bf16 %v3924_v42  ;;  %vm4575_vm9 = vcmask 80896   ;;  %v1915_v9 = vmul.f32 %v3900_v20, %v1906_v36  ;;  %v4601_v42 = vld [vmem:[#allocation12_spill] sm:$0xff] }
 0x362   : > { %v2983_v39 = vunpack.i.l.bf16 %v3976_v62  ;;  %v3979_v44 = vpop.permute.xlu1 %2986  ;;  %3056 = vrot.lane.b32.xlu0 %v3055_v26, %s3194_s18  ;;  %3066 = vrot.lane.b32.xlu2 %v3065_v56, %s3195_s19  ;;  %v697_v1 = vsel %vm4572_vm12, %v2783_v2, %v4571_v34  ;;  %v2984_v26 = vunpack.i.h.bf16 %v3976_v62  ;;  %vm4576_vm6 = vmmov %vm4575_vm9  ;;  %v505_v54 = vperm.slane %v3967_v50, 1 }
 0x363   : > { %v2989_v12 = vunpack.i.h.bf16 %v3979_v44  ;;  %v2988_v58 = vunpack.i.l.bf16 %v3979_v44  ;;  %2237 = vmatpush.msra.mxu2 %v3580_v41  ;;  %2198 = vmatpush.msra.mxu0 %v759_v57  ;;  %vm4578_vm11 = vcmask 1039360   ;;  %vm4579_vm2 = vcmask 138240  }
 0x364   : > { %v1907_v27 = vsel %vm4570_vm8, %v2979_v49, %v2983_v39  ;;  %v1968_v36 = vsel %vm4579_vm2, %v2973_v32, %v2974_v13  ;;  %vm4582_vm1 = vcmask 72704   ;;  %v1914_v63 = vmul.f32 %v2978_v40, %v3934_v8 }
 0x365   : > { %v1845_v41 = vsel %vm4575_vm9, %v2989_v12, %v2993_v47  ;;  %v1844_v49 = vsel %vm4576_vm6, %v2988_v58, %v2989_v12  ;;  %2238 = vmatpush.msra.mxu2 %v3569_v31  ;;  %2199 = vmatpush.msra.mxu0 %v697_v1  ;;  %v1916_v2 = vmul.f32 %v3902_v35, %v1907_v27  ;;  %v4577_v31 = vunpack.i.h.bf16 %v3513_v53  ;;  %v4034_v53 = vpop.permute.xlu2 %3006 }
 0x366   : > { %v1853_v10 = vmul.f32 %v3900_v20, %v1844_v49  ;;  %v1854_v56 = vmul.f32 %v3902_v35, %v1845_v41  ;;  %v1908_v12 = vsel %vm4580_vm0, %v2983_v39, %v2984_v26  ;;  %v512_v27 = vmul.f32 %v4011_v0, %v504_v25 }
 0x367   : > { %2239 = vmatpush.msra.mxu2 %v3550_v23  ;;  %2200 = vmatpush.msra.mxu0 %v634_v5  ;;  %v3060_v48 = vpack.i.bf16 %v1916_v2, %v1915_v9  ;;  %v570_v57 = vsel %vm4578_vm11, %v2763_v6, %v4577_v31  ;;  %v1421_v25 = vsel %vm1417_vm4, %v2949_v30, %v3859_v52  ;;  %v4581_v1 = vunpack.i.h.bf16 %v3750_v37  ;;  %vm4583_vm4 = vmmov %vm4582_vm1 }
 0x368   : > { %v3070_v21 = vpack.i.bf16 %v1854_v56, %v1853_v10  ;;  %v1974_v5 = vmul.f32 %v2968_v24, %v3934_v8  ;;  %v1977_v41 = vmul.f32 %v3954_v55, %v1968_v36  ;;  %v1917_v15 = vmul.f32 %v3954_v55, %v1908_v12 }
 0x369   : > { %2240 = vmatpush.msra.mxu2 %v3538_v14  ;;  %v4031_v23 = vpop.permute.xlu0 %2996  ;;  %2201 = vmatpush.msra.mxu0 %v570_v57  ;;  %v513_v14 = vmul.f32 %v3934_v8, %v505_v54  ;;  %v1358_v29 = vsel %vm1354_vm15, %v4581_v1, %v3857_v51  ;;  %v3009_v52 = vunpack.i.h.bf16 %v4034_v53  ;;  %v3008_v30 = vunpack.i.l.bf16 %v4034_v53 }
 0x36a   : > { %v2999_v6 = vunpack.i.h.bf16 %v4031_v23  ;;  %v2998_v34 = vunpack.i.l.bf16 %v4031_v23  ;;  %3061 = vrot.lane.b32.xlu1 %v3060_v48, %s3193_s17  ;;  %v4039_v32 = vpop.permute.xlu1 %3001  ;;  %3071 = vrot.lane.b32.xlu0 %v3070_v21, %s3192_s16  ;;  %v4584_v49 = vunpack.i.h.bf16 %v3723_v16  ;;  %v2994_v2 = vunpack.i.h.bf16 %v3970_v60 }
 0x36b   : > { %v3003_v39 = vunpack.i.l.bf16 %v4039_v32  ;;  %2241 = vmatpush.msra.mxu2 %v3519_v59  ;;  %2202 = vmatpush.msra.mxu0 %v512_v27  ;;  %v3075_v10 = vpack.i.bf16 %v1977_v41, %v1974_v5  ;;  %v3085_v56 = vpack.i.bf16 %v1917_v15, %v1914_v63  ;;  %vm4585_vm15 = vcmask 64512   ;;  %v4594_v63 = vld [vmem:[#allocation18_spill] sm:$0xff] }
 0x36c   : > { %v1783_v59 = vsel %vm4582_vm1, %v2998_v34, %v2999_v6  ;;  %v1296_v9 = vsel %vm1292_vm7, %v4584_v49, %v3745_v61  ;;  %v1723_v48 = vsel %vm4585_vm15, %v3008_v30, %v3009_v52  ;;  %vm4586_vm7 = vmmov %vm4576_vm6  ;;  %v4588_v57 = vunpack.i.h.bf16 %v3668_v46 }
 0x36d   : > { %2307 = vmatpush.msrb.mxu0 %v1421_v25  ;;  %v1784_v37 = vsel %vm4583_vm4, %v2999_v6, %v3003_v39  ;;  %2242 = vmatpush.msra.mxu2 %v513_v14  ;;  %v1792_v51 = vmul.f32 %v3900_v20, %v1783_v59  ;;  %v1846_v16 = vsel %vm4586_vm7, %v2993_v47, %v2994_v2  ;;  %v4091_v61 = vpop.permute.xlu2 %3021  ;;  %vm4587_vm8 = vmmov %vm4585_vm15  ;;  %v3004_v14 = vunpack.i.h.bf16 %v4039_v32  ;;  %v4110_v25 = vld [vmem:[#allocation3 + $0x28] sm:$0xff] }
 0x36e   : > { %v1793_v24 = vmul.f32 %v3902_v35, %v1784_v37  ;;  %v1201_v36 = vsel %vm1197_vm10, %v4588_v57, %v3696_v45  ;;  %v1732_v12 = vmul.f32 %v3900_v20, %v1723_v48  ;;  %v4589_v46 = vunpack.i.h.bf16 %v3613_v11  ;;  %vm4599_vm6 = vmmov %vm4587_vm8 }
 0x36f   : > { %2308 = vmatpush.msrb.mxu0 %v1358_v29  ;;  %v3023_v1 = vunpack.i.l.bf16 %v4091_v61  ;;  %v2039_v29 = vmul.f32 %v2964_v28, %v4110_v25  ;;  %vm4590_vm10 = vcmask 15360   ;;  %v1978_v23 = vmul.f32 %v2974_v13, %v4110_v25 }
 0x370   : > { %v3080_v54 = vpack.i.bf16 %v1793_v24, %v1792_v51  ;;  %v1138_v45 = vsel %vm1134_vm14, %v4589_v46, %v3664_v7  ;;  %vm4591_vm12 = vmmov %vm4590_vm10  ;;  %vm4596_vm5 = vcmask 7168   ;;  %v3024_v46 = vunpack.i.h.bf16 %v4091_v61 }
 0x371   : > { %2309 = vmatpush.msrb.mxu0 %v1296_v9  ;;  %v4077_v38 = vpop.permute.xlu0 %3011  ;;  %vm4592_vm14 = vmmov %vm4582_vm1  ;;  %v4595_v9 = vld [vmem:[#allocation16_spill] sm:$0xff]  ;;  %vm1513_vm11 = vcmask 670720   ;;  %vm1450_vm0 = vcmask 662528   ;;  %vm4608_vm4 = vcmask 900096   ;;  %vm4610_vm7 = vcmask 908288  }
 0x372   : > { %v3013_v40 = vunpack.i.l.bf16 %v4077_v38  ;;  %v4080_v21 = vpop.permute.xlu1 %3016  ;;  %3076 = vrot.lane.b32.xlu1 %v3075_v10, %s3194_s18  ;;  %3086 = vrot.lane.b32.xlu0 %v3085_v56, %s3193_s17  ;;  %v1785_v41 = vsel %vm4592_vm14, %v3003_v39, %v3004_v14  ;;  %v3014_v49 = vunpack.i.h.bf16 %v4077_v38  ;;  %vm4597_vm9 = vmmov %vm4596_vm5 }
 0x373   : > { %3081 = vrot.lane.b32.xlu2 %v3080_v54, %s3191_s14  ;;  %2310 = vmatpush.msrb.mxu0 %v3718_v18  ;;  %v1852_v18 = vmul.f32 %v2988_v58, %v3934_v8  ;;  %v3019_v27 = vunpack.i.h.bf16 %v4080_v21  ;;  %v3018_v6 = vunpack.i.l.bf16 %v4080_v21  ;;  %v1855_v58 = vmul.f32 %v3954_v55, %v1846_v16  ;;  %v4598_v54 = vld [vmem:[#allocation14_spill] sm:$0xff]  ;;  %vm4606_vm2 = vmmov %vm4590_vm10 }
 0x374   : > { %v1724_v31 = vsel %vm4587_vm8, %v3009_v52, %v3013_v40  ;;  %v1794_v24 = vmul.f32 %v3954_v55, %v1785_v41  ;;  %v1725_v16 = vsel %vm4599_vm6, %v3013_v40, %v3014_v49  ;;  %v1664_v61 = vsel %vm4606_vm2, %v3023_v1, %v3024_v46  ;;  %vm4607_vm1 = vmmov %vm4596_vm5 }
 0x375   : > { %2311 = vmatpush.msrb.mxu0 %v1201_v36  ;;  %v1733_v47 = vmul.f32 %v3902_v35, %v1724_v31  ;;  %v1663_v5 = vsel %vm4590_vm10, %v3019_v27, %v3023_v1  ;;  %v1662_v11 = vsel %vm4591_vm12, %v3018_v6, %v3019_v27  ;;  %v3095_v59 = vpack.i.bf16 %v1855_v58, %v1852_v18  ;;  %v3037_v13 = vpop.permute.xlu2 %3036  ;;  %v4602_v18 = vld [vmem:[#allocation10_spill] sm:$0xff]  ;;  %v4603_v58 = vld [vmem:[#allocation8_spill] sm:$0xff]  ;;  %vm4609_vm15 = vmmov %vm4608_vm4 }
 0x376   : > { %v1671_v28 = vmul.f32 %v3900_v20, %v1662_v11  ;;  %v1672_v52 = vmul.f32 %v3902_v35, %v1663_v5  ;;  %v1734_v40 = vmul.f32 %v3954_v55, %v1725_v16  ;;  %v507_v27 = vperm.slane %v3967_v50, 3  ;;  %vm4614_vm14 = vmmov %vm4610_vm7 }
 0x377   : > { %2312 = vmatpush.msrb.mxu0 %v1138_v45  ;;  %v3090_v44 = vpack.i.bf16 %v1733_v47, %v1732_v12  ;;  %v1731_v47 = vmul.f32 %v3008_v30, %v3934_v8  ;;  %v3039_v45 = vunpack.i.h.bf16 %v3037_v13  ;;  %v1670_v62 = vmul.f32 %v3018_v6, %v3934_v8 }
 0x378   : > { %v515_v53 = vmul.f32 %v3902_v35, %v507_v27  ;;  %v2954_v1 = vunpack.i.h.bf16 %v3885_v17  ;;  %v1856_v21 = vmul.f32 %v2994_v2, %v4110_v25  ;;  %v1735_v32 = vmul.f32 %v3014_v49, %v4110_v25 }
 0x379   : > { %2313 = vmatpush.msrb.mxu0 %v3644_v22  ;;  %v4122_v7 = vpop.permute.xlu0 %3026  ;;  %v1791_v22 = vmul.f32 %v2998_v34, %v3934_v8  ;;  %v3100_v34 = vpack.i.bf16 %v1672_v52, %v1671_v28  ;;  %v3115_v41 = vpack.i.bf16 %v1734_v40, %v1731_v47  ;;  %v1673_v52 = vmul.f32 %v3954_v55, %v1664_v61 }
 0x37a   : > { %v4127_v15 = vpop.permute.xlu1 %3031  ;;  %3091 = vrot.lane.b32.xlu1 %v3090_v44, %s3190_s23  ;;  %2053 = vrot.lane.b32.xlu0 %v2039_v29, %s3195_s19  ;;  %v3029_v39 = vunpack.i.h.bf16 %v4122_v7  ;;  %v3028_v37 = vunpack.i.l.bf16 %v4122_v7  ;;  %v3038_v44 = vunpack.i.l.bf16 %v3037_v13  ;;  %v1918_v29 = vmul.f32 %v2984_v26, %v4110_v25 }
 0x37b   : > { %3096 = vrot.lane.b32.xlu2 %v3095_v59, %s3192_s16  ;;  %2314 = vmatpush.msrb.mxu0 %v4593_v3  ;;  %v3033_v51 = vunpack.i.l.bf16 %v4127_v15  ;;  %v3105_v48 = vpack.i.bf16 %v1794_v24, %v1791_v22  ;;  %v4604_v59 = vld [vmem:[#allocation6_spill] sm:$0xff]  ;;  %v3034_v22 = vunpack.i.h.bf16 %v4127_v15  ;;  %v3120_v24 = vpack.i.bf16 %v1673_v52, %v1670_v62 }
 0x37c   : > { %v1601_v10 = vsel %vm4596_vm5, %v3028_v37, %v3029_v39  ;;  %v1514_v3 = vsel %vm1513_vm11, %v3038_v44, %v3039_v45  ;;  %v1522_v16 = vmul.f32 %v3038_v44, %v4011_v0  ;;  %vm4611_vm8 = vcmask 916480  }
 0x37d   : > { %2315 = vmatpush.msrb.mxu0 %v4594_v63  ;;  %v1602_v56 = vsel %vm4597_vm9, %v3029_v39, %v3033_v51  ;;  %v1610_v57 = vmul.f32 %v3900_v20, %v1601_v10  ;;  %v1523_v39 = vmul.f32 %v3934_v8, %v1514_v3  ;;  %v2953_v63 = vunpack.i.l.bf16 %v3885_v17  ;;  %vm4615_vm5 = vmmov %vm4611_vm8 }
 0x37e   : > { %v1611_v36 = vmul.f32 %v3902_v35, %v1602_v56  ;;  %v1603_v6 = vsel %vm4607_vm1, %v3033_v51, %v3034_v22  ;;  %v1609_v17 = vmul.f32 %v3028_v37, %v3934_v8  ;;  %vm4612_vm10 = vcmask 965632   ;;  %vm4621_vm1 = vmmov %vm4610_vm7 }
 0x37f   : > { %2316 = vmatpush.msrb.mxu0 %v4595_v9  ;;  %v1612_v60 = vmul.f32 %v3954_v55, %v1603_v6  ;;  %vm4613_vm12 = vcmask 973824   ;;  %vm4616_vm9 = vmmov %vm4612_vm10  ;;  %vm4619_vm2 = vcmask 982016  }
 0x380   : > { %v3110_v5 = vpack.i.bf16 %v1611_v36, %v1610_v57  ;;  %v1459_v57 = vmul.f32 %v2953_v63, %v4011_v0  ;;  %vm4617_vm6 = vmmov %vm4613_vm12 }
 0x381   : > { %2317 = vmatpush.msrb.mxu0 %v4598_v54  ;;  %v4156_v31 = vpop.permute.xlu0 %3041  ;;  %v3130_v10 = vpack.i.bf16 %v1612_v60, %v1609_v17  ;;  %v1795_v54 = vmul.f32 %v3004_v14, %v4110_v25 }
 0x382   : > { %3101 = vrot.lane.b32.xlu1 %v3100_v34, %s4600_s24  ;;  %1992 = vrot.lane.b32.xlu0 %v1978_v23, %s3194_s18  ;;  %v3043_v12 = vunpack.i.l.bf16 %v4156_v31  ;;  %v3047_v30 = vpop.permute.xlu1 %3046  ;;  %v1451_v23 = vsel %vm1450_vm0, %v2953_v63, %v2954_v1  ;;  %v3044_v51 = vunpack.i.h.bf16 %v4156_v31  ;;  %v1674_v31 = vmul.f32 %v3024_v46, %v4110_v25 }
 0x383   : > { %3106 = vrot.lane.b32.xlu2 %v3105_v48, %s3191_s14  ;;  %2318 = vmatpush.msrb.mxu0 %v4601_v42  ;;  %v3048_v28 = vunpack.i.l.bf16 %v3047_v30  ;;  %v1460_v34 = vmul.f32 %v3934_v8, %v1451_v23  ;;  %v3049_v7 = vunpack.i.h.bf16 %v3047_v30 }
 0x384   : > { %v1515_v11 = vsel %vm1513_vm11, %v3039_v45, %v3043_v12  ;;  %v1516_v48 = vsel %vm1513_vm11, %v3043_v12, %v3044_v51  ;;  %v1526_v36 = vmul.f32 %v3044_v51, %v3954_v55  ;;  %vm4618_vm11 = vmmov %vm4608_vm4 }
 0x385   : > { %2319 = vmatpush.msrb.mxu0 %v4602_v18  ;;  %v1524_v26 = vmul.f32 %v3900_v20, %v1515_v11  ;;  %v1452_v15 = vsel %vm1450_vm0, %v2954_v1, %v3048_v28  ;;  %v1525_v37 = vmul.f32 %v3902_v35, %v1516_v48  ;;  %v1453_v14 = vsel %vm1450_vm0, %v3048_v28, %v3049_v7  ;;  %vm4620_vm0 = vmmov %vm4619_vm2 }
 0x386   : > { %v1461_v2 = vmul.f32 %v3900_v20, %v1452_v15  ;;  %v1462_v13 = vmul.f32 %v3902_v35, %v1453_v14  ;;  %v1613_v18 = vmul.f32 %v3034_v22, %v4110_v25  ;;  %v1463_v38 = vmul.f32 %v3049_v7, %v3954_v55 }
 0x387   : > { %2320 = vmatpush.msrb.mxu0 %v4603_v58  ;;  %v3125_v9 = vpack.i.bf16 %v1524_v26, %v1523_v39  ;;  %v3140_v42 = vpack.i.bf16 %v1525_v37, %v1522_v16 }
 0x388   : > { %v3135_v56 = vpack.i.bf16 %v1461_v2, %v1460_v34  ;;  %v3145_v12 = vpack.i.bf16 %v1462_v13, %v1459_v57 }
 0x389   : > { %2321 = vmatpush.msrb.mxu0 %v4604_v59 }
 0x38a   : > { %3111 = vrot.lane.b32.xlu1 %v3110_v5, %s4605_s25  ;;  %1932 = vrot.lane.b32.xlu0 %v1918_v29, %s3193_s17  ;;  %s2599_s17 = sshll.u32 %s4660_s11, 5 }
 0x38b   : > { %3116 = vrot.lane.b32.xlu2 %v3115_v41, %s3190_s23  ;;  %2322 = vmatpush.msrb.mxu0 %v515_v53  ;;  %s414_s15 = scalar_lea.vmem %s4478_s7, %s2599_s17 }
 0x392   : > { %3121 = vrot.lane.b32.xlu1 %v3120_v24, %s4600_s24  ;;  %3126 = vrot.lane.b32.xlu0 %v3125_v9, %s3208_s27 }
 0x393   : > { %1870 = vrot.lane.b32.xlu2 %v1856_v21, %s3192_s16 }
 0x39a   : > { %3131 = vrot.lane.b32.xlu1 %v3130_v10, %s4605_s25  ;;  %3136 = vrot.lane.b32.xlu0 %v3135_v56, %s3209_s28 }
 0x39b   : > { %1809 = vrot.lane.b32.xlu2 %v1795_v54, %s3191_s14 }
 0x3a2   : > { %1749 = vrot.lane.b32.xlu1 %v1735_v32, %s3190_s23  ;;  %1688 = vrot.lane.b32.xlu0 %v1674_v31, %s4600_s24 }
 0x3a3   : > { %3141 = vrot.lane.b32.xlu2 %v3140_v42, %s3208_s27 }
 0x3aa   : > { %3146 = vrot.lane.b32.xlu1 %v3145_v12, %s3209_s28  ;;  %1540 = vrot.lane.b32.xlu0 %v1526_v36, %s3208_s27  ;;  %s429_s27 = scalar_lea.vmem %s4480_s9, %s2563_s21 }
 0x3ab   : > { %1627 = vrot.lane.b32.xlu2 %v1613_v18, %s4605_s25 }
 0x3b2   : > { %1477 = vrot.lane.b32.xlu1 %v1463_v38, %s3209_s28 }
 0x3b4   : > { %v4232_v49 = vpop.permute.xlu2 %3051 }
 0x3b5   : > { %v3054_v40 = vunpack.i.h.bf16 %v4232_v49  ;;  %v3053_v27 = vunpack.i.l.bf16 %v4232_v49 }
 0x3b7   : > { %v2056_v0 = vsel %vm4608_vm4, %v3053_v27, %v3054_v40  ;;  %vm1561_vm4 = vmand %vm3827_vm13, %vm498_vm3  ;;  %vm4624_vm13 = vcmask 1039360  }
 0x3b8   : > { %2252 = vmatpush.msra.mxu3 %v2056_v0  ;;  %v4318_v18 = vsel %vm1561_vm4, 1.0, %v4543_v19  ;;  %vm4623_vm3 = vmmov %vm4615_vm5 }
 0x3bc   : > { %v4239_v25 = vpop.permute.xlu2 %3066 }
 0x3bd   : > { %v3068_v47 = vunpack.i.l.bf16 %v4239_v25  ;;  %v3069_v60 = vunpack.i.h.bf16 %v4239_v25 }
 0x3bf   : > { %v2055_v46 = vsel %vm4609_vm15, %v3068_v47, %v3053_v27  ;;  %vm4622_vm15 = vcmask 1031168   ;;  %v1566_v47 = vperm.slane %v4318_v18, 1 }
 0x3c0   : > { %2212 = vmatpush.msra.mxu1 %v2055_v46 }
 0x3cd   : > { %v4243_v45 = vpop.permute.xlu2 %3081 }
 0x3ce   : > { %v3084_v62 = vunpack.i.h.bf16 %v4243_v45  ;;  %v3083_v26 = vunpack.i.l.bf16 %v4243_v45 }
 0x3d0   : > { %v1812_v39 = vsel %vm4613_vm12, %v3083_v26, %v3084_v62  ;;  %vm4627_vm12 = vmmov %vm4622_vm15 }
 0x3d1   : > { %vm4633_vm4 = vmmov %vm4627_vm12 }
 0x3d4   : > { %v4245_v44 = vpop.permute.xlu0 %3056 }
 0x3d5   : > { %v3059_v58 = vunpack.i.h.bf16 %v4245_v44  ;;  %v3058_v29 = vunpack.i.l.bf16 %v4245_v44  ;;  %v4249_v5 = vpop.permute.xlu2 %3096 }
 0x3d6   : > { %v3098_v15 = vunpack.i.l.bf16 %v4249_v5  ;;  %v3099_v4 = vunpack.i.h.bf16 %v4249_v5  ;;  %v1574_v5 = vmul.f32 %v3900_v20, %v1566_v47 }
 0x3d7   : > { %v1995_v11 = vsel %vm4610_vm7, %v3058_v29, %v3059_v58  ;;  %vm4625_vm7 = vmmov %vm4616_vm9 }
 0x3d8   : > { %2253 = vmatpush.msra.mxu3 %v1995_v11 }
 0x3dc   : > { %v4254_v59 = vpop.permute.xlu1 %3061  ;;  %v4256_v41 = vpop.permute.xlu0 %3071 }
 0x3dd   : > { %v3064_v53 = vunpack.i.h.bf16 %v4254_v59  ;;  %v3063_v30 = vunpack.i.l.bf16 %v4254_v59  ;;  %v3074_v61 = vunpack.i.h.bf16 %v4256_v41  ;;  %v3073_v3 = vunpack.i.l.bf16 %v4256_v41  ;;  %v4264_v22 = vpop.permute.xlu2 %3106 }
 0x3de   : > { %v3108_v6 = vunpack.i.l.bf16 %v4264_v22  ;;  %v3109_v19 = vunpack.i.h.bf16 %v4264_v22 }
 0x3df   : > { %v1935_v28 = vsel %vm4611_vm8, %v3063_v30, %v3064_v53  ;;  %v1873_v52 = vsel %vm4612_vm10, %v3073_v3, %v3074_v61  ;;  %v1872_v2 = vsel %vm4616_vm9, %v3098_v15, %v3073_v3  ;;  %vm4626_vm8 = vmmov %vm4617_vm6  ;;  %vm1542_vm10 = vcmask 375808  }
 0x3e0   : > { %2254 = vmatpush.msra.mxu3 %v1935_v28  ;;  %v1811_v10 = vsel %vm4617_vm6, %v3108_v6, %v3083_v26  ;;  %v1565_v15 = vperm.slane %v4318_v18, 0  ;;  %vm4629_vm9 = vmmov %vm4618_vm11  ;;  %vm2183_vm6 = vcmask 719872  }
 0x3e2   : > { %2255 = vmatpush.msra.mxu3 %v1873_v52 }
 0x3e4   : > { %v4275_v1 = vpop.permute.xlu1 %3076  ;;  %v4277_v63 = vpop.permute.xlu0 %3086  ;;  %2256 = vmatpush.msra.mxu3 %v1812_v39 }
 0x3e5   : > { %v3078_v24 = vunpack.i.l.bf16 %v4275_v1  ;;  %v3088_v9 = vunpack.i.l.bf16 %v4277_v63  ;;  %v4284_v23 = vpop.permute.xlu2 %3116  ;;  %v3079_v31 = vunpack.i.h.bf16 %v4275_v1  ;;  %v3089_v38 = vunpack.i.h.bf16 %v4277_v63 }
 0x3e6   : > { %v3118_v56 = vunpack.i.l.bf16 %v4284_v23 }
 0x3e7   : > { %v1994_v21 = vsel %vm4614_vm14, %v3078_v24, %v3058_v29  ;;  %v1934_v17 = vsel %vm4615_vm5, %v3088_v9, %v3063_v30  ;;  %vm1479_vm14 = vcmask 384000   ;;  %vm4628_vm5 = vmmov %vm4624_vm13 }
 0x3e8   : > { %2213 = vmatpush.msra.mxu1 %v1994_v21 }
 0x3ea   : > { %2214 = vmatpush.msra.mxu1 %v1934_v17 }
 0x3ec   : > { %v4289_v51 = vpop.permute.xlu1 %3091  ;;  %v2054_v34 = vpop.permute.xlu0 %2053  ;;  %2215 = vmatpush.msra.mxu1 %v1872_v2 }
 0x3ed   : > { %v3094_v54 = vunpack.i.h.bf16 %v4289_v51  ;;  %v3093_v48 = vunpack.i.l.bf16 %v4289_v51  ;;  %v2058_v7 = vsel %vm4618_vm11, %v3069_v60, %v2054_v34  ;;  %v1871_v32 = vpop.permute.xlu2 %1870  ;;  %vm4630_vm11 = vmmov %vm4621_vm1 }
 0x3ee   : > { %2216 = vmatpush.msra.mxu1 %v1811_v10  ;;  %2332 = vmatpush.msrb.mxu2 %v2058_v7  ;;  %v1875_v3 = vsel %vm4625_vm7, %v3099_v4, %v1871_v32  ;;  %v4360_v7 = vld [vmem:[%s4473_s2] sm:$0xff]  ;;  %v1996_v49 = vsel %vm4630_vm11, %v3059_v58, %v3079_v31 }
 0x3ef   : > { %v1751_v37 = vsel %vm4619_vm2, %v3118_v56, %v3093_v48  ;;  %v1752_v16 = vsel %vm4620_vm0, %v3093_v48, %v3094_v54  ;;  %2243 = vmatmul.f32.vlgmr.msra.gmra.mxu2 %v4360_v7  ;;  %2203 = vmatmul.f32.vlgmr.msra.gmra.mxu0 %v4360_v7  ;;  %vm4631_vm2 = vmmov %vm4623_vm3 }
 0x3f0   : > { %2217 = vmatpush.msra.mxu1 %v1751_v37  ;;  %2257 = vmatpush.msra.mxu3 %v1752_v16  ;;  %v2057_v37 = vsel %vm4629_vm9, %v3054_v40, %v3069_v60  ;;  %v1573_v16 = vmul.f32 %v3934_v8, %v1565_v15  ;;  %v3119_v8 = vunpack.i.h.bf16 %v4284_v23  ;;  %v1936_v1 = vsel %vm4631_vm2, %v3064_v53, %v3089_v38 }
 0x3f4   : > { %v4303_v14 = vpop.permute.xlu1 %3101  ;;  %v1993_v42 = vpop.permute.xlu0 %1992 }
 0x3f5   : > { %v3104_v13 = vunpack.i.h.bf16 %v4303_v14  ;;  %v3103_v57 = vunpack.i.l.bf16 %v4303_v14  ;;  %v1997_v36 = vsel %vm4621_vm1, %v3079_v31, %v1993_v42  ;;  %v1810_v11 = vpop.permute.xlu2 %1809  ;;  %v4373_v42 = vld [vmem:[%s4473_s2 + $0x8] sm:$0xff]  ;;  %vm4632_vm1 = vmmov %vm4625_vm7  ;;  %v2177_v14 = vld [vmem:[%s4474_s3] sm:$0xff] }
 0x3f6   : > { %2333 = vmatpush.msrb.mxu2 %v1997_v36  ;;  %v1814_v26 = vsel %vm4626_vm8, %v3109_v19, %v1810_v11  ;;  %v1874_v23 = vsel %vm4632_vm1, %v3074_v61, %v3099_v4  ;;  %vm4637_vm7 = vmmov %vm4633_vm4  ;;  %2180 = vperm.xlu2 %3150, %v2177_v14   ;;  %v4641_v11 = vld [vmem:[#allocation24_spill] sm:$0xff] }
 0x3f7   : > { %v1691_v12 = vsel %vm4622_vm15, %v3103_v57, %v3104_v13  ;;  %vm4634_vm15 = vmmov %vm4626_vm8  ;;  %2323 = vmatmul.f32.vlgmr.msrb.gmra.mxu0 %v4360_v7 }
 0x3f8   : > { %2258 = vmatpush.msra.mxu3 %v1691_v12  ;;  %v1813_v59 = vsel %vm4634_vm15, %v3084_v62, %v3109_v19  ;;  %v4642_v19 = vld [vmem:[#allocation23_spill] sm:$0xff] }
 0x3fc   : > { %v4321_v27 = vpop.permute.xlu1 %3111  ;;  %v1933_v0 = vpop.permute.xlu0 %1932 }
 0x3fd   : > { %v3114_v33 = vunpack.i.h.bf16 %v4321_v27  ;;  %v3113_v46 = vunpack.i.l.bf16 %v4321_v27  ;;  %v1937_v29 = vsel %vm4623_vm3, %v3089_v38, %v1933_v0  ;;  %v4351_v10 = vpop.permute.xlu2 %3141  ;;  %vm4635_vm3 = vmmov %vm4628_vm5  ;;  %v1567_v0 = vperm.slane %v4318_v18, 2  ;;  %v4639_v27 = vld [vmem:[#allocation26_spill] sm:$0xff] }
 0x3fe   : > { %2334 = vmatpush.msrb.mxu2 %v1937_v29  ;;  %v3143_v32 = vunpack.i.l.bf16 %v4351_v10  ;;  %v3144_v38 = vunpack.i.h.bf16 %v4351_v10  ;;  %vm4638_vm8 = vmmov %vm4635_vm3  ;;  %v4640_v29 = vld [vmem:[#allocation25_spill] sm:$0xff] }
 0x3ff   : > { %v1630_v30 = vsel %vm4624_vm13, %v3113_v46, %v3114_v33  ;;  %vm4636_vm13 = vmmov %vm4620_vm0 }
 0x400   : > { %2259 = vmatpush.msra.mxu3 %v1630_v30  ;;  %2335 = vmatpush.msrb.mxu2 %v1875_v3  ;;  %v1753_v41 = vsel %vm4636_vm13, %v3094_v54, %v3119_v8  ;;  %v4643_v30 = vld [vmem:[#allocation19_spill] sm:$0xff]  ;;  %v4644_v3 = vld [vmem:[#allocation22_spill] sm:$0xff] }
 0x402   : > { %2260 = vmatpush.msra.mxu3 %v1574_v5  ;;  %2336 = vmatpush.msrb.mxu2 %v1814_v26  ;;  %v4645_v5 = vld [vmem:[#allocation21_spill] sm:$0xff] }
 0x403   : > { %v4646_v26 = vld [vmem:[#allocation13_spill] sm:$0xff] }
 0x404   : > { %v4335_v28 = vpop.permute.xlu1 %3121  ;;  %v4337_v52 = vpop.permute.xlu0 %3126 }
 0x405   : > { %v3123_v22 = vunpack.i.l.bf16 %v4335_v28  ;;  %v3129_v39 = vunpack.i.h.bf16 %v4337_v52  ;;  %v3128_v63 = vunpack.i.l.bf16 %v4337_v52  ;;  %v3124_v44 = vunpack.i.h.bf16 %v4335_v28  ;;  %v1628_v12 = vpop.permute.xlu2 %1627  ;;  %v4647_v28 = vld [vmem:[#allocation17_spill] sm:$0xff]  ;;  %v4648_v52 = vld [vmem:[#allocation15_spill] sm:$0xff] }
 0x407   : > { %v1690_v24 = vsel %vm4627_vm12, %v3123_v22, %v3103_v57  ;;  %v1544_v9 = vsel %vm1542_vm10, %v3128_v63, %v3129_v39  ;;  %v1543_v40 = vsel %vm1542_vm10, %v3143_v32, %v3128_v63  ;;  %v1568_v57 = vperm.slane %v4318_v18, 3  ;;  %v4649_v22 = vld [vmem:[#allocation7_spill] sm:$0xff] }
 0x408   : > { %2218 = vmatpush.msra.mxu1 %v1690_v24  ;;  %2261 = vmatpush.msra.mxu3 %v1544_v9  ;;  %v1692_v62 = vsel %vm4637_vm7, %v3104_v13, %v3124_v44  ;;  %v1575_v18 = vmul.f32 %v3902_v35, %v1567_v0  ;;  %v1545_v13 = vsel %vm1542_vm10, %v3129_v39, %v3144_v38  ;;  %v4650_v39 = vld [vmem:[#allocation11_spill] sm:$0xff]  ;;  %v506_v63 = vperm.slane %v3967_v50, 2  ;;  %v4651_v24 = vld [vmem:[#allocation9_spill] sm:$0xff] }
 0x409   : > { %v1576_v61 = vmul.f32 %v3954_v55, %v1568_v57  ;;  %v4652_v9 = vld [vmem:[#allocation5_spill] sm:$0xff] }
 0x40c   : > { %v3132_v21 = vpop.permute.xlu1 %3131  ;;  %v4346_v6 = vpop.permute.xlu0 %3136 }
 0x40d   : > { %v3133_v17 = vunpack.i.l.bf16 %v3132_v21  ;;  %v3139_v2 = vunpack.i.h.bf16 %v4346_v6  ;;  %v3138_v34 = vunpack.i.l.bf16 %v4346_v6  ;;  %v3134_v58 = vunpack.i.h.bf16 %v3132_v21 }
 0x40e   : > { %v514_v21 = vmul.f32 %v3900_v20, %v506_v63 }
 0x40f   : > { %v1629_v56 = vsel %vm4628_vm5, %v3133_v17, %v3113_v46  ;;  %v1481_v48 = vsel %vm1479_vm14, %v3138_v34, %v3139_v2  ;;  %v1632_v53 = vsel %vm4635_vm3, %v3134_v58, %v1628_v12  ;;  %v1631_v55 = vsel %vm4638_vm8, %v3114_v33, %v3134_v58 }
 0x410   : > { %2219 = vmatpush.msra.mxu1 %v1629_v56  ;;  %2262 = vmatpush.msra.mxu3 %v1481_v48 }
 0x411   : > { %2594 = vmatmul.msk.f32.vlgmr.msra.gmra.mxu3 %vm2183_vm6, %v4373_v42 }
 0x412   : > { %2292 = vmatpush.msrb.mxu3 %v2057_v37  ;;  %2220 = vmatpush.msra.mxu1 %v1573_v16 }
 0x414   : > { %2293 = vmatpush.msrb.mxu3 %v1996_v49  ;;  %v1750_v25 = vpop.permute.xlu1 %1749  ;;  %v1689_v60 = vpop.permute.xlu0 %1688  ;;  %2221 = vmatpush.msra.mxu1 %v1543_v40 }
 0x415   : > { %v1754_v31 = vsel %vm4620_vm0, %v3119_v8, %v1750_v25  ;;  %v1693_v36 = vsel %vm4633_vm4, %v3124_v44, %v1689_v60 }
 0x416   : > { %2294 = vmatpush.msrb.mxu3 %v1936_v1  ;;  %2337 = vmatpush.msrb.mxu2 %v1754_v31 }
 0x418   : > { %2295 = vmatpush.msrb.mxu3 %v1874_v23  ;;  %2338 = vmatpush.msrb.mxu2 %v1693_v36 }
 0x41a   : > { %2296 = vmatpush.msrb.mxu3 %v1813_v59  ;;  %2339 = vmatpush.msrb.mxu2 %v1632_v53 }
 0x41c   : > { %2297 = vmatpush.msrb.mxu3 %v1753_v41  ;;  %v3147_v45 = vpop.permute.xlu1 %3146  ;;  %v1541_v47 = vpop.permute.xlu0 %1540  ;;  %2340 = vmatpush.msrb.mxu2 %v1576_v61 }
 0x41d   : > { %v3148_v4 = vunpack.i.l.bf16 %v3147_v45  ;;  %v1546_v51 = vsel %vm1542_vm10, %v3144_v38, %v1541_v47  ;;  %v3149_v46 = vunpack.i.h.bf16 %v3147_v45  ;;  %vm4653_vm10 = vcmask 7168  }
 0x41e   : > { %2298 = vmatpush.msrb.mxu3 %v1692_v62  ;;  %2341 = vmatpush.msrb.mxu2 %v1546_v51  ;;  %vm4654_vm12 = vmmov %vm4653_vm10 }
 0x41f   : > { %v1480_v54 = vsel %vm1479_vm14, %v3148_v4, %v3138_v34  ;;  %v1482_v33 = vsel %vm1479_vm14, %v3139_v2, %v3149_v46 }
 0x420   : > { %2299 = vmatpush.msrb.mxu3 %v1631_v55  ;;  %2222 = vmatpush.msra.mxu1 %v1480_v54 }
 0x421   : > { %2593 = vmatmul.msk.f32.vlgmr.msra.gmra.mxu1 %vm2183_vm6, %v4373_v42 }
 0x422   : > { %2267 = vmatpush.msrb.mxu1 %v3874_v43  ;;  %2300 = vmatpush.msrb.mxu3 %v1575_v18 }
 0x424   : > { %2268 = vmatpush.msrb.mxu1 %v4639_v27  ;;  %2301 = vmatpush.msrb.mxu3 %v1545_v13  ;;  %v1478_v35 = vpop.permute.xlu1 %1477 }
 0x425   : > { %v1483_v43 = vsel %vm1479_vm14, %v3149_v46, %v1478_v35 }
 0x426   : > { %2269 = vmatpush.msrb.mxu1 %v4640_v29  ;;  %2302 = vmatpush.msrb.mxu3 %v1482_v33 }
 0x427   : > { %2342 = vmatpush.msrb.mxu2 %v1483_v43  ;;  %2595 = vmatmul.msk.f32.vlgmr.msrb.gmra.mxu3 %vm2183_vm6, %v4373_v42 }
 0x428   : > { %2270 = vmatpush.msrb.mxu1 %v4641_v11  ;;  %2596 = vmatmul.msk.f32.vlgmr.msrb.gmra.mxu2 %vm2183_vm6, %v4373_v42 }
 0x42a   : > { %2271 = vmatpush.msrb.mxu1 %v4642_v19 }
 0x42c   : > { %2272 = vmatpush.msrb.mxu1 %v4643_v30 }
 0x42e   : > { %2273 = vmatpush.msrb.mxu1 %v4644_v3 }
 0x430   : > { %2274 = vmatpush.msrb.mxu1 %v4645_v5 }
 0x432   : > { %2275 = vmatpush.msrb.mxu1 %v4646_v26 }
 0x434   : > { %2276 = vmatpush.msrb.mxu1 %v4647_v28 }
 0x436   : > { %2277 = vmatpush.msrb.mxu1 %v4648_v52 }
 0x438   : > { %2278 = vmatpush.msrb.mxu1 %v4649_v22 }
 0x43a   : > { %2279 = vmatpush.msrb.mxu1 %v4650_v39 }
 0x43c   : > { %2280 = vmatpush.msrb.mxu1 %v4651_v24 }
 0x43e   : > { %2281 = vmatpush.msrb.mxu1 %v4652_v9 }
 0x440   : > { %2282 = vmatpush.msrb.mxu1 %v514_v21 }
 0x441   : > { %2283 = vmatmul.f32.vlgmr.msrb.gmra.mxu1 %v4360_v7 }
 0x450   : > { %v2181_v6 = vpop.permute.xlu2 %2180 }
 0x46c   : > { %v2204_v50 = vpop.f32.mrf.mxu0 }
 0x46d   : > { %v2205_v10 = vadd.f32 %v2204_v50, %v2181_v6 }
 0x472   : > { %v2244_v15 = vpop.f32.mrf.mxu2 }
 0x473   : > { %v2245_v17 = vadd.f32 %v2244_v15, %v2181_v6 }
 0x474   : > { %v2324_v20 = vpop.f32.mrf.mxu0 }
 0x475   : > { %v2325_v37 = vadd.f32 %v2324_v20, %v2181_v6 }
 0x494   : > { %v2264_v2 = vpop.f32.mrf.mxu3 }
 0x495   : > { %v2265_v34 = vadd.f32 %v2264_v2, %v2245_v17 }
 0x497   : > { %2348 = vst [vmem:[%s414_s15 + $0x8] sm:$0xff] %v2265_v34  ;;  %v2358_v8 = vmul.f32 %v2265_v34, %v2265_v34 }
 0x49e   : > { %v2224_v56 = vpop.f32.mrf.mxu1 }
 0x49f   : > { %v2225_v48 = vadd.f32 %v2224_v56, %v2205_v10 }
 0x4a1   : > { %2347 = vst [vmem:[%s414_s15] sm:$0xff] %v2225_v48  ;;  %v2357_v49 = vmul.f32 %v2225_v48, %v2225_v48  ;;  %v2351_v25 = vadd.f32 %v2265_v34, %v2225_v48 }
 0x4a3   : > { %v2361_v58 = vadd.f32 %v2358_v8, %v2357_v49 }
 0x4aa   : > { %v2304_v42 = vpop.f32.mrf.mxu3 }
 0x4ab   : > { %v2344_v16 = vpop.f32.mrf.mxu2 }
 0x4ac   : > { %v2345_v7 = vadd.f32 %v2344_v16, %v2325_v37 }
 0x4ae   : > { %2350 = vst [vmem:[%s414_s15 + $0x18] sm:$0xff] %v2345_v7  ;;  %v2360_v23 = vmul.f32 %v2345_v7, %v2345_v7 }
 0x4be   : > { %v2284_v32 = vpop.f32.mrf.mxu1 }
 0x4bf   : > { %v2285_v40 = vadd.f32 %v2284_v32, %v2181_v6 }
 0x4c1   : > { %v2305_v60 = vadd.f32 %v2304_v42, %v2285_v40 }
 0x4c3   : > { %2349 = vst [vmem:[%s414_s15 + $0x10] sm:$0xff] %v2305_v60  ;;  %v2359_v1 = vmul.f32 %v2305_v60, %v2305_v60  ;;  %v2352_v44 = vadd.f32 %v2351_v25, %v2305_v60 }
 0x4c5   : > { %v2353_v31 = vadd.f32 %v2352_v44, %v2345_v7  ;;  %v2362_v57 = vadd.f32 %v2361_v58, %v2359_v1 }
 0x4c7   : > { %2354 = vadd.xlane.f32.xlu0 %v2353_v31  ;;  %v2363_v36 = vadd.f32 %v2362_v57, %v2360_v23 }
 0x4c9   : > { %2364 = vadd.xlane.f32.xlu1 %v2363_v36 }
 0x53a   : > { %v2355_v12 = vpop.xlane.xlu0 %2354 }
 0x53b   : > { %2356 = vst.msk [vmem:[%s422_s26] sm:$0xff] %vm4653_vm10, %v2355_v12 }
 0x53c   : > { %v2365_v59 = vpop.xlane.xlu1 %2364 }
 0x53d   : > { %2366 = vst.msk [vmem:[%s429_s27] sm:$0xff] %vm4654_vm12, %v2365_v59 }
 0x53e PF: > { %s21_s13 = sadd.s32 1, %s3174_s13   ;;  %s4655_s11 = smov %s3170_s12 }
 0x53f   : > { %p18_p5 = scmp.ge.s32.totalorder %s21_s13, 4   ;;  %s4656_s12 = smov %s4658_s6 }
 0x541   :  { %20 = sbr.rel (!%p18_p5) target bundleno = 2 (0x2), region = 107 }

</bundles_post_ra>
